<compile_context>
chip_gen: v7x
topology: tpu7x:2x2x1
jax: 0.10.0
libtpu: 0.0.40
codegen_flags: <defaults>
</compile_context>

<pallas_src>
import jax
import jax.numpy as jnp
from jax.experimental import pallas as pl
from jax.experimental.pallas import tpu as pltpu

# ---- hyperparameters from the module ----
N_EMBD = 192
N_HEAD = 3
HEAD_SIZE = N_EMBD // N_HEAD      # 64
N_LAYER = 3
BLOCK_SIZE = 128
VOCAB_SIZE = 65                    # len(chars) for the Shakespeare char set (synthetic)
V_PAD = 128                        # lane-dense padded logits width
FF_HIDDEN = 4 * N_EMBD             # 768
LN_EPS = 1e-5
NEG_BIG = -1e30                    # finite "masked" score (NaN-safe vs -inf)


def _layernorm(x, g, b):
    mu = jnp.mean(x, axis=-1, keepdims=True)
    xc = x - mu
    var = jnp.mean(xc * xc, axis=-1, keepdims=True)
    return xc * jax.lax.rsqrt(var + LN_EPS) * g + b


# ----------------------------------------------------------------------------
# Fused Pallas kernel: 3 transformer blocks + lm_head for G sequences per step
# ----------------------------------------------------------------------------
def fused_forward_kernel(x_ref,
                         ln1g_ref, ln1b_ref,
                         wqkv_ref, wp_ref, bp_ref,
                         ln2g_ref, ln2b_ref,
                         w1_ref, b1_ref, w2_ref, b2_ref,
                         lmw_ref, lmb_ref,
                         out_ref,
                         heads_ref):
    G, T, C = x_ref.shape
    GT = G * T
    HS = HEAD_SIZE

    x = x_ref[...].reshape(GT, C)                 # (GT, C) f32 residual stream

    # causal mask, built once in-kernel (no HBM operand)
    row = jax.lax.broadcasted_iota(jnp.int32, (T, T), 0)
    col = jax.lax.broadcasted_iota(jnp.int32, (T, T), 1)
    causal = col <= row                           # (T, T) bool
    neg = jnp.float32(NEG_BIG)

    for l in range(N_LAYER):
        # ---------------- self-attention branch ----------------
        h1 = _layernorm(x, ln1g_ref[l], ln1b_ref[l]).astype(jnp.bfloat16)
        # fused QKV projection: (GT, C) @ (C, 3C) -> (GT, 3C), f32 acc then bf16
        qkv = jnp.dot(h1, wqkv_ref[l],
                      preferred_element_type=jnp.float32).astype(jnp.bfloat16)

        for g in range(G):
            r0, r1 = g * T, (g + 1) * T
            for h in range(N_HEAD):
                c0 = h * HS
                q = qkv[r0:r1, c0:c0 + HS]                       # scale pre-folded
                k = qkv[r0:r1, C + c0:C + c0 + HS]
                v = qkv[r0:r1, 2 * C + c0:2 * C + c0 + HS]
                # scores: q @ k^T via dot_general (no explicit transpose)
                s = jax.lax.dot_general(q, k, (((1,), (1,)), ((), ())),
                                        preferred_element_type=jnp.float32)   # (T, T)
                s = jnp.where(causal, s, neg)
                m = jnp.max(s, axis=-1, keepdims=True)
                p = jnp.exp(s - m)
                denom = jnp.sum(p, axis=-1, keepdims=True)
                # deferred normalization: matmul first, scale the (T, HS) result
                o = jnp.dot(p.astype(jnp.bfloat16), v,
                            preferred_element_type=jnp.float32)               # (T, HS)
                o = o * pl.reciprocal(denom, approx=True)
                heads_ref[r0:r1, c0:c0 + HS] = o                 # "concat" via scratch

        # single full-width output projection (K = C = 192)
        sa = jnp.dot(heads_ref[...].astype(jnp.bfloat16), wp_ref[l],
                     preferred_element_type=jnp.float32)                       # (GT, C)
        x = x + sa + bp_ref[l]                                   # residual 1 (+ bias)

        # ---------------- feed-forward branch ----------------
        h2 = _layernorm(x, ln2g_ref[l], ln2b_ref[l]).astype(jnp.bfloat16)
        f = jnp.dot(h2, w1_ref[l], preferred_element_type=jnp.float32) + b1_ref[l]
        f = jnp.maximum(f, 0.0).astype(jnp.bfloat16)
        f = jnp.dot(f, w2_ref[l], preferred_element_type=jnp.float32) + b2_ref[l]
        x = x + f                                                 # residual 2

    # ---------------- lm_head (lane-dense padded output) ----------------
    logits = jnp.dot(x.astype(jnp.bfloat16), lmw_ref[...],
                     preferred_element_type=jnp.float32) + lmb_ref[...]
    out_ref[...] = logits.reshape(G, T, V_PAD)


# ----------------------------------------------------------------------------
# pallas_call plumbing
# ----------------------------------------------------------------------------
def _const_spec(shape):
    # Whole-array block, same block for every grid step (stays VMEM-resident).
    return pl.BlockSpec(shape, lambda b: (0,) * len(shape))


def run_fused_forward(x, pk):
    B, T, C = x.shape
    G = 2 if B % 2 == 0 else 1          # sequences per grid step (M = G*T for matmuls)
    grid = (B // G,)

    in_specs = [
        pl.BlockSpec((G, T, C), lambda b: (b, 0, 0)),            # x (per-group block)
        _const_spec(pk["ln1_g"].shape), _const_spec(pk["ln1_b"].shape),
        _const_spec(pk["wqkv"].shape), _const_spec(pk["wp"].shape),
        _const_spec(pk["bp"].shape),
        _const_spec(pk["ln2_g"].shape), _const_spec(pk["ln2_b"].shape),
        _const_spec(pk["w1"].shape), _const_spec(pk["b1"].shape),
        _const_spec(pk["w2"].shape), _const_spec(pk["b2"].shape),
        _const_spec(pk["lm_w"].shape), _const_spec(pk["lm_b"].shape),
    ]
    return pl.pallas_call(
        fused_forward_kernel,
        out_shape=jax.ShapeDtypeStruct((B, T, V_PAD), jnp.float32),
        grid=grid,
        in_specs=in_specs,
        out_specs=pl.BlockSpec((G, T, V_PAD), lambda b: (b, 0, 0)),
        scratch_shapes=[pltpu.VMEM((G * T, N_EMBD), jnp.float32)],   # head-concat buffer
        compiler_params=pltpu.CompilerParams(dimension_semantics=("parallel",)),
    )(x,
      pk["ln1_g"], pk["ln1_b"],
      pk["wqkv"], pk["wp"], pk["bp"],
      pk["ln2_g"], pk["ln2_b"],
      pk["w1"], pk["b1"], pk["w2"], pk["b2"],
      pk["lm_w"], pk["lm_b"])


# ----------------------------------------------------------------------------
# Parameter init (torch layout, f32) and kernel-friendly packing
# ----------------------------------------------------------------------------
def init_params(key):
    def normal(k, shape, scale=0.02):
        return (scale * jax.random.normal(k, shape)).astype(jnp.float32)

    keys = jax.random.split(key, 4 + N_LAYER)
    params = {
        "tok_emb": normal(keys[0], (VOCAB_SIZE, N_EMBD)),
        "pos_emb": normal(keys[1], (BLOCK_SIZE, N_EMBD)),
        "lm_w": normal(keys[2], (N_EMBD, VOCAB_SIZE)),
        "lm_b": jnp.zeros((1, VOCAB_SIZE), jnp.float32),
        "blocks": [],
    }
    C, H = N_EMBD, FF_HIDDEN
    for l in range(N_LAYER):
        bk = jax.random.split(keys[4 + l], 8)
        params["blocks"].append({
            "ln1_g": jnp.ones((1, C), jnp.float32),
            "ln1_b": jnp.zeros((1, C), jnp.float32),
            # x @ W layout; head h = columns [h*HS:(h+1)*HS]
            "wq": normal(bk[0], (C, C)),
            "wk": normal(bk[1], (C, C)),
            "wv": normal(bk[2], (C, C)),
            "wp": normal(bk[3], (C, C)),
            "bp": jnp.zeros((1, C), jnp.float32),
            "ln2_g": jnp.ones((1, C), jnp.float32),
            "ln2_b": jnp.zeros((1, C), jnp.float32),
            "w1": normal(bk[4], (C, H)),
            "b1": jnp.zeros((1, H), jnp.float32),
            "w2": normal(bk[5], (H, C)),
            "b2": jnp.zeros((1, C), jnp.float32),
        })
    return params


def pack_params(params):
    """Stack per-layer weights, fuse Q|K|V into one (L, C, 3C) bf16 tensor (with the
    attention scale n_embd**-0.5 folded into the Q columns), keep Wp full (L, C, C),
    cast matmul weights to bf16, and zero-pad lm_head to a 128-lane output."""
    blocks = params["blocks"]
    scale = float(N_EMBD) ** -0.5      # reference scales by n_embd**-0.5, not head_size

    def stack(name):
        return jnp.stack([blk[name] for blk in blocks])

    wqkv = jnp.concatenate(
        [stack("wq") * scale, stack("wk"), stack("wv")], axis=-1
    ).astype(jnp.bfloat16)                                        # (L, C, 3C)

    lm_w = jnp.zeros((N_EMBD, V_PAD), jnp.bfloat16).at[:, :VOCAB_SIZE].set(
        params["lm_w"].astype(jnp.bfloat16))
    lm_b = jnp.zeros((1, V_PAD), jnp.float32).at[:, :VOCAB_SIZE].set(params["lm_b"])

    return {
        "tok_emb": params["tok_emb"],
        "pos_emb": params["pos_emb"],
        "ln1_g": stack("ln1_g"), "ln1_b": stack("ln1_b"),          # (L, 1, C) f32
        "wqkv": wqkv,                                              # (L, C, 3C) bf16
        "wp": stack("wp").astype(jnp.bfloat16),                    # (L, C, C) bf16
        "bp": stack("bp"),                                         # (L, 1, C) f32
        "ln2_g": stack("ln2_g"), "ln2_b": stack("ln2_b"),
        "w1": stack("w1").astype(jnp.bfloat16),                    # (L, C, 4C) bf16
        "b1": stack("b1"),                                         # (L, 1, 4C) f32
        "w2": stack("w2").astype(jnp.bfloat16),                    # (L, 4C, C) bf16
        "b2": stack("b2"),                                         # (L, 1, C) f32
        "lm_w": lm_w, "lm_b": lm_b,
    }


# ----------------------------------------------------------------------------
# Full forward (targets=None path of BigramLanguageModel.forward)
# ----------------------------------------------------------------------------
@jax.jit
def bigram_forward(idx, packed):
    B, T = idx.shape
    tok_emb = jnp.take(packed["tok_emb"], idx, axis=0)            # (B, T, C) glue gather
    pos_emb = packed["pos_emb"][:T]                               # (T, C)
    x = (tok_emb + pos_emb[None, :, :]).astype(jnp.float32)

    logits_padded = run_fused_forward(x, packed)                  # (B, T, 128)
    # NOTE: reference forward skips self.ln_f — reproduced here.
    return logits_padded[:, :, :VOCAB_SIZE]                       # slice off lane padding


if __name__ == "__main__":
    key = jax.random.PRNGKey(0)
    pkey, dkey = jax.random.split(key)
    params = init_params(pkey)
    packed = pack_params(params)

    B, T = 4, 8
    idx = jax.random.randint(dkey, (B, T), 0, VOCAB_SIZE, dtype=jnp.int32)

    logits = bigram_forward(idx, packed)
    jax.block_until_ready(logits)
    assert logits.shape == (B, T, VOCAB_SIZE)
    assert bool(jnp.all(jnp.isfinite(logits)))
    print("KERNEL_OK")
</pallas_src>

<mosaic_0001>
module attributes {stable_mosaic.version = 11 : i64} {
  func.func @fused_forward_kernel(%arg0: i32, %arg1: memref<2x8x192xf32, #tpu.memory_space<vmem>>, %arg2: memref<3x1x192xf32, #tpu.memory_space<vmem>>, %arg3: memref<3x1x192xf32, #tpu.memory_space<vmem>>, %arg4: memref<3x192x576xbf16, #tpu.memory_space<vmem>>, %arg5: memref<3x192x192xbf16, #tpu.memory_space<vmem>>, %arg6: memref<3x1x192xf32, #tpu.memory_space<vmem>>, %arg7: memref<3x1x192xf32, #tpu.memory_space<vmem>>, %arg8: memref<3x1x192xf32, #tpu.memory_space<vmem>>, %arg9: memref<3x192x768xbf16, #tpu.memory_space<vmem>>, %arg10: memref<3x1x768xf32, #tpu.memory_space<vmem>>, %arg11: memref<3x768x192xbf16, #tpu.memory_space<vmem>>, %arg12: memref<3x1x192xf32, #tpu.memory_space<vmem>>, %arg13: memref<192x128xbf16, #tpu.memory_space<vmem>>, %arg14: memref<1x128xf32, #tpu.memory_space<vmem>>, %arg15: memref<2x8x128xf32, #tpu.memory_space<vmem>>, %arg16: memref<16x192xf32, #tpu.memory_space<vmem>>) attributes {dimension_semantics = [#tpu.dimension_semantics<parallel>], iteration_bounds = array<i64: 2>, scalar_prefetch = 0 : i64, scratch_operands = 1 : i64, tpu.core_type = #tpu.core_type<tc>, window_params = [{transform_indices = @transform_0, window_bounds = array<i64: 2, 8, 192>}, {pipeline_mode = #tpu.pipeline_mode<synchronous>, transform_indices = @transform_1, window_bounds = array<i64: 3, 1, 192>}, {pipeline_mode = #tpu.pipeline_mode<synchronous>, transform_indices = @transform_2, window_bounds = array<i64: 3, 1, 192>}, {pipeline_mode = #tpu.pipeline_mode<synchronous>, transform_indices = @transform_3, window_bounds = array<i64: 3, 192, 576>}, {pipeline_mode = #tpu.pipeline_mode<synchronous>, transform_indices = @transform_4, window_bounds = array<i64: 3, 192, 192>}, {pipeline_mode = #tpu.pipeline_mode<synchronous>, transform_indices = @transform_5, window_bounds = array<i64: 3, 1, 192>}, {pipeline_mode = #tpu.pipeline_mode<synchronous>, transform_indices = @transform_6, window_bounds = array<i64: 3, 1, 192>}, {pipeline_mode = #tpu.pipeline_mode<synchronous>, transform_indices = @transform_7, window_bounds = array<i64: 3, 1, 192>}, {pipeline_mode = #tpu.pipeline_mode<synchronous>, transform_indices = @transform_8, window_bounds = array<i64: 3, 192, 768>}, {pipeline_mode = #tpu.pipeline_mode<synchronous>, transform_indices = @transform_9, window_bounds = array<i64: 3, 1, 768>}, {pipeline_mode = #tpu.pipeline_mode<synchronous>, transform_indices = @transform_10, window_bounds = array<i64: 3, 768, 192>}, {pipeline_mode = #tpu.pipeline_mode<synchronous>, transform_indices = @transform_11, window_bounds = array<i64: 3, 1, 192>}, {pipeline_mode = #tpu.pipeline_mode<synchronous>, transform_indices = @transform_12, window_bounds = array<i64: 192, 128>}, {pipeline_mode = #tpu.pipeline_mode<synchronous>, transform_indices = @transform_13, window_bounds = array<i64: 1, 128>}, {transform_indices = @transform_14, window_bounds = array<i64: 2, 8, 128>}]} {
    %c0 = arith.constant 0 : index
    %c0_0 = arith.constant 0 : index
    %c0_1 = arith.constant 0 : index
    %0 = vector.load %arg1[%c0, %c0_0, %c0_1] : memref<2x8x192xf32, #tpu.memory_space<vmem>>, vector<2x8x192xf32>
    %1 = vector.shape_cast %0 : vector<2x8x192xf32> to vector<16x192xf32>
    %2 = tpu.iota {dimensions = array<i32: 0>} : vector<8x8xi32>
    %3 = tpu.iota {dimensions = array<i32: 1>} : vector<8x8xi32>
    %4 = arith.cmpi sle, %3, %2 : vector<8x8xi32>
    %c0_2 = arith.constant 0 : index
    %c0_3 = arith.constant 0 : index
    %c0_4 = arith.constant 0 : index
    %5 = vector.load %arg2[%c0_2, %c0_3, %c0_4] : memref<3x1x192xf32, #tpu.memory_space<vmem>>, vector<1x1x192xf32>
    %6 = vector.shape_cast %5 : vector<1x1x192xf32> to vector<1x192xf32>
    %c0_5 = arith.constant 0 : index
    %c0_6 = arith.constant 0 : index
    %c0_7 = arith.constant 0 : index
    %7 = vector.load %arg3[%c0_5, %c0_6, %c0_7] : memref<3x1x192xf32, #tpu.memory_space<vmem>>, vector<1x1x192xf32>
    %8 = vector.shape_cast %7 : vector<1x1x192xf32> to vector<1x192xf32>
    %cst = arith.constant dense<0.000000e+00> : vector<16xf32>
    %9 = vector.multi_reduction <add>, %1, %cst [1] : vector<16x192xf32> to vector<16xf32>
    %10 = vector.shape_cast %9 : vector<16xf32> to vector<16x1xf32>
    %cst_8 = arith.constant 1.920000e+02 : f32
    %11 = vector.broadcast %cst_8 : f32 to vector<16x1xf32>
    %12 = arith.divf %10, %11 : vector<16x1xf32>
    %13 = vector.broadcast %12 : vector<16x1xf32> to vector<16x192xf32>
    %14 = arith.subf %1, %13 : vector<16x192xf32>
    %15 = arith.mulf %14, %14 : vector<16x192xf32>
    %cst_9 = arith.constant dense<0.000000e+00> : vector<16xf32>
    %16 = vector.multi_reduction <add>, %15, %cst_9 [1] : vector<16x192xf32> to vector<16xf32>
    %17 = vector.shape_cast %16 : vector<16xf32> to vector<16x1xf32>
    %cst_10 = arith.constant 1.920000e+02 : f32
    %18 = vector.broadcast %cst_10 : f32 to vector<16x1xf32>
    %19 = arith.divf %17, %18 : vector<16x1xf32>
    %cst_11 = arith.constant 9.99999974E-6 : f32
    %20 = vector.broadcast %cst_11 : f32 to vector<16x1xf32>
    %21 = arith.addf %19, %20 : vector<16x1xf32>
    %22 = math.rsqrt %21 : vector<16x1xf32>
    %23 = vector.broadcast %22 : vector<16x1xf32> to vector<16x192xf32>
    %24 = arith.mulf %14, %23 : vector<16x192xf32>
    %25 = vector.broadcast %6 : vector<1x192xf32> to vector<16x192xf32>
    %26 = arith.mulf %24, %25 : vector<16x192xf32>
    %27 = vector.broadcast %8 : vector<1x192xf32> to vector<16x192xf32>
    %28 = arith.addf %26, %27 : vector<16x192xf32>
    %29 = arith.truncf %28 : vector<16x192xf32> to vector<16x192xbf16>
    %c0_12 = arith.constant 0 : index
    %c0_13 = arith.constant 0 : index
    %c0_14 = arith.constant 0 : index
    %30 = vector.load %arg4[%c0_12, %c0_13, %c0_14] : memref<3x192x576xbf16, #tpu.memory_space<vmem>>, vector<1x192x576xbf16>
    %31 = vector.shape_cast %30 : vector<1x192x576xbf16> to vector<192x576xbf16>
    %cst_15 = arith.constant dense<0.000000e+00> : vector<16x576xf32>
    %32 = tpu.matmul %29, %31, %cst_15 {dimension_numbers = #tpu.dot_dimension_numbers<[1], [0], [0], [1], [0, 0, 1, 1], [], []>} : vector<16x192xbf16>, vector<192x576xbf16>, vector<16x576xf32> -> vector<16x576xf32>
    %33 = arith.truncf %32 : vector<16x576xf32> to vector<16x576xbf16>
    %34 = vector.extract_strided_slice %33 {offsets = [0, 0], sizes = [8, 64], strides = [1, 1]} : vector<16x576xbf16> to vector<8x64xbf16>
    %35 = vector.extract_strided_slice %33 {offsets = [0, 192], sizes = [8, 64], strides = [1, 1]} : vector<16x576xbf16> to vector<8x64xbf16>
    %36 = vector.extract_strided_slice %33 {offsets = [0, 384], sizes = [8, 64], strides = [1, 1]} : vector<16x576xbf16> to vector<8x64xbf16>
    %cst_16 = arith.constant dense<0.000000e+00> : vector<8x8xf32>
    %37 = tpu.matmul %34, %35, %cst_16 {dimension_numbers = #tpu.dot_dimension_numbers<[1], [1], [0], [0], [0, 0, 1, 0], [], []>} : vector<8x64xbf16>, vector<8x64xbf16>, vector<8x8xf32> -> vector<8x8xf32>
    %cst_17 = arith.constant -1.000000e+30 : f32
    %38 = vector.broadcast %cst_17 : f32 to vector<8x8xf32>
    %39 = arith.select %4, %37, %38 : vector<8x8xi1>, vector<8x8xf32>
    %cst_18 = arith.constant dense<0xFF800000> : vector<8xf32>
    %40 = vector.multi_reduction <maximumf>, %39, %cst_18 [1] : vector<8x8xf32> to vector<8xf32>
    %41 = vector.shape_cast %40 : vector<8xf32> to vector<8x1xf32>
    %42 = vector.broadcast %41 : vector<8x1xf32> to vector<8x8xf32>
    %43 = arith.subf %39, %42 : vector<8x8xf32>
    %44 = math.exp %43 : vector<8x8xf32>
    %cst_19 = arith.constant dense<0.000000e+00> : vector<8xf32>
    %45 = vector.multi_reduction <add>, %44, %cst_19 [1] : vector<8x8xf32> to vector<8xf32>
    %46 = vector.shape_cast %45 : vector<8xf32> to vector<8x1xf32>
    %47 = arith.truncf %44 : vector<8x8xf32> to vector<8x8xbf16>
    %cst_20 = arith.constant dense<0.000000e+00> : vector<8x64xf32>
    %48 = tpu.matmul %47, %36, %cst_20 {dimension_numbers = #tpu.dot_dimension_numbers<[1], [0], [0], [1], [0, 0, 1, 1], [], []>} : vector<8x8xbf16>, vector<8x64xbf16>, vector<8x64xf32> -> vector<8x64xf32>
    %49 = tpu.reciprocal %46 {approx = true} : vector<8x1xf32> -> vector<8x1xf32>
    %50 = vector.broadcast %49 : vector<8x1xf32> to vector<8x64xf32>
    %51 = arith.mulf %48, %50 : vector<8x64xf32>
    %c0_21 = arith.constant 0 : index
    %c0_22 = arith.constant 0 : index
    %52 = vector.load %arg16[%c0_21, %c0_22] : memref<16x192xf32, #tpu.memory_space<vmem>>, vector<8x64xf32>
    tpu.vector_store %arg16[%c0_21, %c0_22], %51 {strides = array<i32>} : memref<16x192xf32, #tpu.memory_space<vmem>>, vector<8x64xf32>,
    %53 = vector.extract_strided_slice %33 {offsets = [0, 64], sizes = [8, 64], strides = [1, 1]} : vector<16x576xbf16> to vector<8x64xbf16>
    %54 = vector.extract_strided_slice %33 {offsets = [0, 256], sizes = [8, 64], strides = [1, 1]} : vector<16x576xbf16> to vector<8x64xbf16>
    %55 = vector.extract_strided_slice %33 {offsets = [0, 448], sizes = [8, 64], strides = [1, 1]} : vector<16x576xbf16> to vector<8x64xbf16>
    %cst_23 = arith.constant dense<0.000000e+00> : vector<8x8xf32>
    %56 = tpu.matmul %53, %54, %cst_23 {dimension_numbers = #tpu.dot_dimension_numbers<[1], [1], [0], [0], [0, 0, 1, 0], [], []>} : vector<8x64xbf16>, vector<8x64xbf16>, vector<8x8xf32> -> vector<8x8xf32>
    %cst_24 = arith.constant -1.000000e+30 : f32
    %57 = vector.broadcast %cst_24 : f32 to vector<8x8xf32>
    %58 = arith.select %4, %56, %57 : vector<8x8xi1>, vector<8x8xf32>
    %cst_25 = arith.constant dense<0xFF800000> : vector<8xf32>
    %59 = vector.multi_reduction <maximumf>, %58, %cst_25 [1] : vector<8x8xf32> to vector<8xf32>
    %60 = vector.shape_cast %59 : vector<8xf32> to vector<8x1xf32>
    %61 = vector.broadcast %60 : vector<8x1xf32> to vector<8x8xf32>
    %62 = arith.subf %58, %61 : vector<8x8xf32>
    %63 = math.exp %62 : vector<8x8xf32>
    %cst_26 = arith.constant dense<0.000000e+00> : vector<8xf32>
    %64 = vector.multi_reduction <add>, %63, %cst_26 [1] : vector<8x8xf32> to vector<8xf32>
    %65 = vector.shape_cast %64 : vector<8xf32> to vector<8x1xf32>
    %66 = arith.truncf %63 : vector<8x8xf32> to vector<8x8xbf16>
    %cst_27 = arith.constant dense<0.000000e+00> : vector<8x64xf32>
    %67 = tpu.matmul %66, %55, %cst_27 {dimension_numbers = #tpu.dot_dimension_numbers<[1], [0], [0], [1], [0, 0, 1, 1], [], []>} : vector<8x8xbf16>, vector<8x64xbf16>, vector<8x64xf32> -> vector<8x64xf32>
    %68 = tpu.reciprocal %65 {approx = true} : vector<8x1xf32> -> vector<8x1xf32>
    %69 = vector.broadcast %68 : vector<8x1xf32> to vector<8x64xf32>
    %70 = arith.mulf %67, %69 : vector<8x64xf32>
    %c0_28 = arith.constant 0 : index
    %c64 = arith.constant 64 : index
    %71 = vector.load %arg16[%c0_28, %c64] : memref<16x192xf32, #tpu.memory_space<vmem>>, vector<8x64xf32>
    tpu.vector_store %arg16[%c0_28, %c64], %70 {strides = array<i32>} : memref<16x192xf32, #tpu.memory_space<vmem>>, vector<8x64xf32>,
    %72 = vector.extract_strided_slice %33 {offsets = [0, 128], sizes = [8, 64], strides = [1, 1]} : vector<16x576xbf16> to vector<8x64xbf16>
    %73 = vector.extract_strided_slice %33 {offsets = [0, 320], sizes = [8, 64], strides = [1, 1]} : vector<16x576xbf16> to vector<8x64xbf16>
    %74 = vector.extract_strided_slice %33 {offsets = [0, 512], sizes = [8, 64], strides = [1, 1]} : vector<16x576xbf16> to vector<8x64xbf16>
    %cst_29 = arith.constant dense<0.000000e+00> : vector<8x8xf32>
    %75 = tpu.matmul %72, %73, %cst_29 {dimension_numbers = #tpu.dot_dimension_numbers<[1], [1], [0], [0], [0, 0, 1, 0], [], []>} : vector<8x64xbf16>, vector<8x64xbf16>, vector<8x8xf32> -> vector<8x8xf32>
    %cst_30 = arith.constant -1.000000e+30 : f32
    %76 = vector.broadcast %cst_30 : f32 to vector<8x8xf32>
    %77 = arith.select %4, %75, %76 : vector<8x8xi1>, vector<8x8xf32>
    %cst_31 = arith.constant dense<0xFF800000> : vector<8xf32>
    %78 = vector.multi_reduction <maximumf>, %77, %cst_31 [1] : vector<8x8xf32> to vector<8xf32>
    %79 = vector.shape_cast %78 : vector<8xf32> to vector<8x1xf32>
    %80 = vector.broadcast %79 : vector<8x1xf32> to vector<8x8xf32>
    %81 = arith.subf %77, %80 : vector<8x8xf32>
    %82 = math.exp %81 : vector<8x8xf32>
    %cst_32 = arith.constant dense<0.000000e+00> : vector<8xf32>
    %83 = vector.multi_reduction <add>, %82, %cst_32 [1] : vector<8x8xf32> to vector<8xf32>
    %84 = vector.shape_cast %83 : vector<8xf32> to vector<8x1xf32>
    %85 = arith.truncf %82 : vector<8x8xf32> to vector<8x8xbf16>
    %cst_33 = arith.constant dense<0.000000e+00> : vector<8x64xf32>
    %86 = tpu.matmul %85, %74, %cst_33 {dimension_numbers = #tpu.dot_dimension_numbers<[1], [0], [0], [1], [0, 0, 1, 1], [], []>} : vector<8x8xbf16>, vector<8x64xbf16>, vector<8x64xf32> -> vector<8x64xf32>
    %87 = tpu.reciprocal %84 {approx = true} : vector<8x1xf32> -> vector<8x1xf32>
    %88 = vector.broadcast %87 : vector<8x1xf32> to vector<8x64xf32>
    %89 = arith.mulf %86, %88 : vector<8x64xf32>
    %c0_34 = arith.constant 0 : index
    %c128 = arith.constant 128 : index
    %90 = vector.load %arg16[%c0_34, %c128] : memref<16x192xf32, #tpu.memory_space<vmem>>, vector<8x64xf32>
    tpu.vector_store %arg16[%c0_34, %c128], %89 {strides = array<i32>} : memref<16x192xf32, #tpu.memory_space<vmem>>, vector<8x64xf32>,
    %91 = vector.extract_strided_slice %33 {offsets = [8, 0], sizes = [8, 64], strides = [1, 1]} : vector<16x576xbf16> to vector<8x64xbf16>
    %92 = vector.extract_strided_slice %33 {offsets = [8, 192], sizes = [8, 64], strides = [1, 1]} : vector<16x576xbf16> to vector<8x64xbf16>
    %93 = vector.extract_strided_slice %33 {offsets = [8, 384], sizes = [8, 64], strides = [1, 1]} : vector<16x576xbf16> to vector<8x64xbf16>
    %cst_35 = arith.constant dense<0.000000e+00> : vector<8x8xf32>
    %94 = tpu.matmul %91, %92, %cst_35 {dimension_numbers = #tpu.dot_dimension_numbers<[1], [1], [0], [0], [0, 0, 1, 0], [], []>} : vector<8x64xbf16>, vector<8x64xbf16>, vector<8x8xf32> -> vector<8x8xf32>
    %cst_36 = arith.constant -1.000000e+30 : f32
    %95 = vector.broadcast %cst_36 : f32 to vector<8x8xf32>
    %96 = arith.select %4, %94, %95 : vector<8x8xi1>, vector<8x8xf32>
    %cst_37 = arith.constant dense<0xFF800000> : vector<8xf32>
    %97 = vector.multi_reduction <maximumf>, %96, %cst_37 [1] : vector<8x8xf32> to vector<8xf32>
    %98 = vector.shape_cast %97 : vector<8xf32> to vector<8x1xf32>
    %99 = vector.broadcast %98 : vector<8x1xf32> to vector<8x8xf32>
    %100 = arith.subf %96, %99 : vector<8x8xf32>
    %101 = math.exp %100 : vector<8x8xf32>
    %cst_38 = arith.constant dense<0.000000e+00> : vector<8xf32>
    %102 = vector.multi_reduction <add>, %101, %cst_38 [1] : vector<8x8xf32> to vector<8xf32>
    %103 = vector.shape_cast %102 : vector<8xf32> to vector<8x1xf32>
    %104 = arith.truncf %101 : vector<8x8xf32> to vector<8x8xbf16>
    %cst_39 = arith.constant dense<0.000000e+00> : vector<8x64xf32>
    %105 = tpu.matmul %104, %93, %cst_39 {dimension_numbers = #tpu.dot_dimension_numbers<[1], [0], [0], [1], [0, 0, 1, 1], [], []>} : vector<8x8xbf16>, vector<8x64xbf16>, vector<8x64xf32> -> vector<8x64xf32>
    %106 = tpu.reciprocal %103 {approx = true} : vector<8x1xf32> -> vector<8x1xf32>
    %107 = vector.broadcast %106 : vector<8x1xf32> to vector<8x64xf32>
    %108 = arith.mulf %105, %107 : vector<8x64xf32>
    %c8 = arith.constant 8 : index
    %c0_40 = arith.constant 0 : index
    %109 = vector.load %arg16[%c8, %c0_40] : memref<16x192xf32, #tpu.memory_space<vmem>>, vector<8x64xf32>
    tpu.vector_store %arg16[%c8, %c0_40], %108 {strides = array<i32>} : memref<16x192xf32, #tpu.memory_space<vmem>>, vector<8x64xf32>,
    %110 = vector.extract_strided_slice %33 {offsets = [8, 64], sizes = [8, 64], strides = [1, 1]} : vector<16x576xbf16> to vector<8x64xbf16>
    %111 = vector.extract_strided_slice %33 {offsets = [8, 256], sizes = [8, 64], strides = [1, 1]} : vector<16x576xbf16> to vector<8x64xbf16>
    %112 = vector.extract_strided_slice %33 {offsets = [8, 448], sizes = [8, 64], strides = [1, 1]} : vector<16x576xbf16> to vector<8x64xbf16>
    %cst_41 = arith.constant dense<0.000000e+00> : vector<8x8xf32>
    %113 = tpu.matmul %110, %111, %cst_41 {dimension_numbers = #tpu.dot_dimension_numbers<[1], [1], [0], [0], [0, 0, 1, 0], [], []>} : vector<8x64xbf16>, vector<8x64xbf16>, vector<8x8xf32> -> vector<8x8xf32>
    %cst_42 = arith.constant -1.000000e+30 : f32
    %114 = vector.broadcast %cst_42 : f32 to vector<8x8xf32>
    %115 = arith.select %4, %113, %114 : vector<8x8xi1>, vector<8x8xf32>
    %cst_43 = arith.constant dense<0xFF800000> : vector<8xf32>
    %116 = vector.multi_reduction <maximumf>, %115, %cst_43 [1] : vector<8x8xf32> to vector<8xf32>
    %117 = vector.shape_cast %116 : vector<8xf32> to vector<8x1xf32>
    %118 = vector.broadcast %117 : vector<8x1xf32> to vector<8x8xf32>
    %119 = arith.subf %115, %118 : vector<8x8xf32>
    %120 = math.exp %119 : vector<8x8xf32>
    %cst_44 = arith.constant dense<0.000000e+00> : vector<8xf32>
    %121 = vector.multi_reduction <add>, %120, %cst_44 [1] : vector<8x8xf32> to vector<8xf32>
    %122 = vector.shape_cast %121 : vector<8xf32> to vector<8x1xf32>
    %123 = arith.truncf %120 : vector<8x8xf32> to vector<8x8xbf16>
    %cst_45 = arith.constant dense<0.000000e+00> : vector<8x64xf32>
    %124 = tpu.matmul %123, %112, %cst_45 {dimension_numbers = #tpu.dot_dimension_numbers<[1], [0], [0], [1], [0, 0, 1, 1], [], []>} : vector<8x8xbf16>, vector<8x64xbf16>, vector<8x64xf32> -> vector<8x64xf32>
    %125 = tpu.reciprocal %122 {approx = true} : vector<8x1xf32> -> vector<8x1xf32>
    %126 = vector.broadcast %125 : vector<8x1xf32> to vector<8x64xf32>
    %127 = arith.mulf %124, %126 : vector<8x64xf32>
    %c8_46 = arith.constant 8 : index
    %c64_47 = arith.constant 64 : index
    %128 = vector.load %arg16[%c8_46, %c64_47] : memref<16x192xf32, #tpu.memory_space<vmem>>, vector<8x64xf32>
    tpu.vector_store %arg16[%c8_46, %c64_47], %127 {strides = array<i32>} : memref<16x192xf32, #tpu.memory_space<vmem>>, vector<8x64xf32>,
    %129 = vector.extract_strided_slice %33 {offsets = [8, 128], sizes = [8, 64], strides = [1, 1]} : vector<16x576xbf16> to vector<8x64xbf16>
    %130 = vector.extract_strided_slice %33 {offsets = [8, 320], sizes = [8, 64], strides = [1, 1]} : vector<16x576xbf16> to vector<8x64xbf16>
    %131 = vector.extract_strided_slice %33 {offsets = [8, 512], sizes = [8, 64], strides = [1, 1]} : vector<16x576xbf16> to vector<8x64xbf16>
    %cst_48 = arith.constant dense<0.000000e+00> : vector<8x8xf32>
    %132 = tpu.matmul %129, %130, %cst_48 {dimension_numbers = #tpu.dot_dimension_numbers<[1], [1], [0], [0], [0, 0, 1, 0], [], []>} : vector<8x64xbf16>, vector<8x64xbf16>, vector<8x8xf32> -> vector<8x8xf32>
    %cst_49 = arith.constant -1.000000e+30 : f32
    %133 = vector.broadcast %cst_49 : f32 to vector<8x8xf32>
    %134 = arith.select %4, %132, %133 : vector<8x8xi1>, vector<8x8xf32>
    %cst_50 = arith.constant dense<0xFF800000> : vector<8xf32>
    %135 = vector.multi_reduction <maximumf>, %134, %cst_50 [1] : vector<8x8xf32> to vector<8xf32>
    %136 = vector.shape_cast %135 : vector<8xf32> to vector<8x1xf32>
    %137 = vector.broadcast %136 : vector<8x1xf32> to vector<8x8xf32>
    %138 = arith.subf %134, %137 : vector<8x8xf32>
    %139 = math.exp %138 : vector<8x8xf32>
    %cst_51 = arith.constant dense<0.000000e+00> : vector<8xf32>
    %140 = vector.multi_reduction <add>, %139, %cst_51 [1] : vector<8x8xf32> to vector<8xf32>
    %141 = vector.shape_cast %140 : vector<8xf32> to vector<8x1xf32>
    %142 = arith.truncf %139 : vector<8x8xf32> to vector<8x8xbf16>
    %cst_52 = arith.constant dense<0.000000e+00> : vector<8x64xf32>
    %143 = tpu.matmul %142, %131, %cst_52 {dimension_numbers = #tpu.dot_dimension_numbers<[1], [0], [0], [1], [0, 0, 1, 1], [], []>} : vector<8x8xbf16>, vector<8x64xbf16>, vector<8x64xf32> -> vector<8x64xf32>
    %144 = tpu.reciprocal %141 {approx = true} : vector<8x1xf32> -> vector<8x1xf32>
    %145 = vector.broadcast %144 : vector<8x1xf32> to vector<8x64xf32>
    %146 = arith.mulf %143, %145 : vector<8x64xf32>
    %c8_53 = arith.constant 8 : index
    %c128_54 = arith.constant 128 : index
    %147 = vector.load %arg16[%c8_53, %c128_54] : memref<16x192xf32, #tpu.memory_space<vmem>>, vector<8x64xf32>
    tpu.vector_store %arg16[%c8_53, %c128_54], %146 {strides = array<i32>} : memref<16x192xf32, #tpu.memory_space<vmem>>, vector<8x64xf32>,
    %c0_55 = arith.constant 0 : index
    %c0_56 = arith.constant 0 : index
    %148 = vector.load %arg16[%c0_55, %c0_56] : memref<16x192xf32, #tpu.memory_space<vmem>>, vector<16x192xf32>
    %149 = arith.truncf %148 : vector<16x192xf32> to vector<16x192xbf16>
    %c0_57 = arith.constant 0 : index
    %c0_58 = arith.constant 0 : index
    %c0_59 = arith.constant 0 : index
    %150 = vector.load %arg5[%c0_57, %c0_58, %c0_59] : memref<3x192x192xbf16, #tpu.memory_space<vmem>>, vector<1x192x192xbf16>
    %151 = vector.shape_cast %150 : vector<1x192x192xbf16> to vector<192x192xbf16>
    %cst_60 = arith.constant dense<0.000000e+00> : vector<16x192xf32>
    %152 = tpu.matmul %149, %151, %cst_60 {dimension_numbers = #tpu.dot_dimension_numbers<[1], [0], [0], [1], [0, 0, 1, 1], [], []>} : vector<16x192xbf16>, vector<192x192xbf16>, vector<16x192xf32> -> vector<16x192xf32>
    %153 = arith.addf %1, %152 : vector<16x192xf32>
    %c0_61 = arith.constant 0 : index
    %c0_62 = arith.constant 0 : index
    %c0_63 = arith.constant 0 : index
    %154 = vector.load %arg6[%c0_61, %c0_62, %c0_63] : memref<3x1x192xf32, #tpu.memory_space<vmem>>, vector<1x1x192xf32>
    %155 = vector.shape_cast %154 : vector<1x1x192xf32> to vector<1x192xf32>
    %156 = vector.broadcast %155 : vector<1x192xf32> to vector<16x192xf32>
    %157 = arith.addf %153, %156 : vector<16x192xf32>
    %c0_64 = arith.constant 0 : index
    %c0_65 = arith.constant 0 : index
    %c0_66 = arith.constant 0 : index
    %158 = vector.load %arg7[%c0_64, %c0_65, %c0_66] : memref<3x1x192xf32, #tpu.memory_space<vmem>>, vector<1x1x192xf32>
    %159 = vector.shape_cast %158 : vector<1x1x192xf32> to vector<1x192xf32>
    %c0_67 = arith.constant 0 : index
    %c0_68 = arith.constant 0 : index
    %c0_69 = arith.constant 0 : index
    %160 = vector.load %arg8[%c0_67, %c0_68, %c0_69] : memref<3x1x192xf32, #tpu.memory_space<vmem>>, vector<1x1x192xf32>
    %161 = vector.shape_cast %160 : vector<1x1x192xf32> to vector<1x192xf32>
    %cst_70 = arith.constant dense<0.000000e+00> : vector<16xf32>
    %162 = vector.multi_reduction <add>, %157, %cst_70 [1] : vector<16x192xf32> to vector<16xf32>
    %163 = vector.shape_cast %162 : vector<16xf32> to vector<16x1xf32>
    %cst_71 = arith.constant 1.920000e+02 : f32
    %164 = vector.broadcast %cst_71 : f32 to vector<16x1xf32>
    %165 = arith.divf %163, %164 : vector<16x1xf32>
    %166 = vector.broadcast %165 : vector<16x1xf32> to vector<16x192xf32>
    %167 = arith.subf %157, %166 : vector<16x192xf32>
    %168 = arith.mulf %167, %167 : vector<16x192xf32>
    %cst_72 = arith.constant dense<0.000000e+00> : vector<16xf32>
    %169 = vector.multi_reduction <add>, %168, %cst_72 [1] : vector<16x192xf32> to vector<16xf32>
    %170 = vector.shape_cast %169 : vector<16xf32> to vector<16x1xf32>
    %cst_73 = arith.constant 1.920000e+02 : f32
    %171 = vector.broadcast %cst_73 : f32 to vector<16x1xf32>
    %172 = arith.divf %170, %171 : vector<16x1xf32>
    %cst_74 = arith.constant 9.99999974E-6 : f32
    %173 = vector.broadcast %cst_74 : f32 to vector<16x1xf32>
    %174 = arith.addf %172, %173 : vector<16x1xf32>
    %175 = math.rsqrt %174 : vector<16x1xf32>
    %176 = vector.broadcast %175 : vector<16x1xf32> to vector<16x192xf32>
    %177 = arith.mulf %167, %176 : vector<16x192xf32>
    %178 = vector.broadcast %159 : vector<1x192xf32> to vector<16x192xf32>
    %179 = arith.mulf %177, %178 : vector<16x192xf32>
    %180 = vector.broadcast %161 : vector<1x192xf32> to vector<16x192xf32>
    %181 = arith.addf %179, %180 : vector<16x192xf32>
    %182 = arith.truncf %181 : vector<16x192xf32> to vector<16x192xbf16>
    %c0_75 = arith.constant 0 : index
    %c0_76 = arith.constant 0 : index
    %c0_77 = arith.constant 0 : index
    %183 = vector.load %arg9[%c0_75, %c0_76, %c0_77] : memref<3x192x768xbf16, #tpu.memory_space<vmem>>, vector<1x192x768xbf16>
    %184 = vector.shape_cast %183 : vector<1x192x768xbf16> to vector<192x768xbf16>
    %cst_78 = arith.constant dense<0.000000e+00> : vector<16x768xf32>
    %185 = tpu.matmul %182, %184, %cst_78 {dimension_numbers = #tpu.dot_dimension_numbers<[1], [0], [0], [1], [0, 0, 1, 1], [], []>} : vector<16x192xbf16>, vector<192x768xbf16>, vector<16x768xf32> -> vector<16x768xf32>
    %c0_79 = arith.constant 0 : index
    %c0_80 = arith.constant 0 : index
    %c0_81 = arith.constant 0 : index
    %186 = vector.load %arg10[%c0_79, %c0_80, %c0_81] : memref<3x1x768xf32, #tpu.memory_space<vmem>>, vector<1x1x768xf32>
    %187 = vector.shape_cast %186 : vector<1x1x768xf32> to vector<1x768xf32>
    %188 = vector.broadcast %187 : vector<1x768xf32> to vector<16x768xf32>
    %189 = arith.addf %185, %188 : vector<16x768xf32>
    %cst_82 = arith.constant 0.000000e+00 : f32
    %190 = vector.broadcast %cst_82 : f32 to vector<16x768xf32>
    %191 = arith.maximumf %189, %190 : vector<16x768xf32>
    %192 = arith.truncf %191 : vector<16x768xf32> to vector<16x768xbf16>
    %c0_83 = arith.constant 0 : index
    %c0_84 = arith.constant 0 : index
    %c0_85 = arith.constant 0 : index
    %193 = vector.load %arg11[%c0_83, %c0_84, %c0_85] : memref<3x768x192xbf16, #tpu.memory_space<vmem>>, vector<1x768x192xbf16>
    %194 = vector.shape_cast %193 : vector<1x768x192xbf16> to vector<768x192xbf16>
    %cst_86 = arith.constant dense<0.000000e+00> : vector<16x192xf32>
    %195 = tpu.matmul %192, %194, %cst_86 {dimension_numbers = #tpu.dot_dimension_numbers<[1], [0], [0], [1], [0, 0, 1, 1], [], []>} : vector<16x768xbf16>, vector<768x192xbf16>, vector<16x192xf32> -> vector<16x192xf32>
    %c0_87 = arith.constant 0 : index
    %c0_88 = arith.constant 0 : index
    %c0_89 = arith.constant 0 : index
    %196 = vector.load %arg12[%c0_87, %c0_88, %c0_89] : memref<3x1x192xf32, #tpu.memory_space<vmem>>, vector<1x1x192xf32>
    %197 = vector.shape_cast %196 : vector<1x1x192xf32> to vector<1x192xf32>
    %198 = vector.broadcast %197 : vector<1x192xf32> to vector<16x192xf32>
    %199 = arith.addf %195, %198 : vector<16x192xf32>
    %200 = arith.addf %157, %199 : vector<16x192xf32>
    %c1 = arith.constant 1 : index
    %c0_90 = arith.constant 0 : index
    %c0_91 = arith.constant 0 : index
    %201 = vector.load %arg2[%c1, %c0_90, %c0_91] : memref<3x1x192xf32, #tpu.memory_space<vmem>>, vector<1x1x192xf32>
    %202 = vector.shape_cast %201 : vector<1x1x192xf32> to vector<1x192xf32>
    %c1_92 = arith.constant 1 : index
    %c0_93 = arith.constant 0 : index
    %c0_94 = arith.constant 0 : index
    %203 = vector.load %arg3[%c1_92, %c0_93, %c0_94] : memref<3x1x192xf32, #tpu.memory_space<vmem>>, vector<1x1x192xf32>
    %204 = vector.shape_cast %203 : vector<1x1x192xf32> to vector<1x192xf32>
    %cst_95 = arith.constant dense<0.000000e+00> : vector<16xf32>
    %205 = vector.multi_reduction <add>, %200, %cst_95 [1] : vector<16x192xf32> to vector<16xf32>
    %206 = vector.shape_cast %205 : vector<16xf32> to vector<16x1xf32>
    %cst_96 = arith.constant 1.920000e+02 : f32
    %207 = vector.broadcast %cst_96 : f32 to vector<16x1xf32>
    %208 = arith.divf %206, %207 : vector<16x1xf32>
    %209 = vector.broadcast %208 : vector<16x1xf32> to vector<16x192xf32>
    %210 = arith.subf %200, %209 : vector<16x192xf32>
    %211 = arith.mulf %210, %210 : vector<16x192xf32>
    %cst_97 = arith.constant dense<0.000000e+00> : vector<16xf32>
    %212 = vector.multi_reduction <add>, %211, %cst_97 [1] : vector<16x192xf32> to vector<16xf32>
    %213 = vector.shape_cast %212 : vector<16xf32> to vector<16x1xf32>
    %cst_98 = arith.constant 1.920000e+02 : f32
    %214 = vector.broadcast %cst_98 : f32 to vector<16x1xf32>
    %215 = arith.divf %213, %214 : vector<16x1xf32>
    %cst_99 = arith.constant 9.99999974E-6 : f32
    %216 = vector.broadcast %cst_99 : f32 to vector<16x1xf32>
    %217 = arith.addf %215, %216 : vector<16x1xf32>
    %218 = math.rsqrt %217 : vector<16x1xf32>
    %219 = vector.broadcast %218 : vector<16x1xf32> to vector<16x192xf32>
    %220 = arith.mulf %210, %219 : vector<16x192xf32>
    %221 = vector.broadcast %202 : vector<1x192xf32> to vector<16x192xf32>
    %222 = arith.mulf %220, %221 : vector<16x192xf32>
    %223 = vector.broadcast %204 : vector<1x192xf32> to vector<16x192xf32>
    %224 = arith.addf %222, %223 : vector<16x192xf32>
    %225 = arith.truncf %224 : vector<16x192xf32> to vector<16x192xbf16>
    %c1_100 = arith.constant 1 : index
    %c0_101 = arith.constant 0 : index
    %c0_102 = arith.constant 0 : index
    %226 = vector.load %arg4[%c1_100, %c0_101, %c0_102] : memref<3x192x576xbf16, #tpu.memory_space<vmem>>, vector<1x192x576xbf16>
    %227 = vector.shape_cast %226 : vector<1x192x576xbf16> to vector<192x576xbf16>
    %cst_103 = arith.constant dense<0.000000e+00> : vector<16x576xf32>
    %228 = tpu.matmul %225, %227, %cst_103 {dimension_numbers = #tpu.dot_dimension_numbers<[1], [0], [0], [1], [0, 0, 1, 1], [], []>} : vector<16x192xbf16>, vector<192x576xbf16>, vector<16x576xf32> -> vector<16x576xf32>
    %229 = arith.truncf %228 : vector<16x576xf32> to vector<16x576xbf16>
    %230 = vector.extract_strided_slice %229 {offsets = [0, 0], sizes = [8, 64], strides = [1, 1]} : vector<16x576xbf16> to vector<8x64xbf16>
    %231 = vector.extract_strided_slice %229 {offsets = [0, 192], sizes = [8, 64], strides = [1, 1]} : vector<16x576xbf16> to vector<8x64xbf16>
    %232 = vector.extract_strided_slice %229 {offsets = [0, 384], sizes = [8, 64], strides = [1, 1]} : vector<16x576xbf16> to vector<8x64xbf16>
    %cst_104 = arith.constant dense<0.000000e+00> : vector<8x8xf32>
    %233 = tpu.matmul %230, %231, %cst_104 {dimension_numbers = #tpu.dot_dimension_numbers<[1], [1], [0], [0], [0, 0, 1, 0], [], []>} : vector<8x64xbf16>, vector<8x64xbf16>, vector<8x8xf32> -> vector<8x8xf32>
    %cst_105 = arith.constant -1.000000e+30 : f32
    %234 = vector.broadcast %cst_105 : f32 to vector<8x8xf32>
    %235 = arith.select %4, %233, %234 : vector<8x8xi1>, vector<8x8xf32>
    %cst_106 = arith.constant dense<0xFF800000> : vector<8xf32>
    %236 = vector.multi_reduction <maximumf>, %235, %cst_106 [1] : vector<8x8xf32> to vector<8xf32>
    %237 = vector.shape_cast %236 : vector<8xf32> to vector<8x1xf32>
    %238 = vector.broadcast %237 : vector<8x1xf32> to vector<8x8xf32>
    %239 = arith.subf %235, %238 : vector<8x8xf32>
    %240 = math.exp %239 : vector<8x8xf32>
    %cst_107 = arith.constant dense<0.000000e+00> : vector<8xf32>
    %241 = vector.multi_reduction <add>, %240, %cst_107 [1] : vector<8x8xf32> to vector<8xf32>
    %242 = vector.shape_cast %241 : vector<8xf32> to vector<8x1xf32>
    %243 = arith.truncf %240 : vector<8x8xf32> to vector<8x8xbf16>
    %cst_108 = arith.constant dense<0.000000e+00> : vector<8x64xf32>
    %244 = tpu.matmul %243, %232, %cst_108 {dimension_numbers = #tpu.dot_dimension_numbers<[1], [0], [0], [1], [0, 0, 1, 1], [], []>} : vector<8x8xbf16>, vector<8x64xbf16>, vector<8x64xf32> -> vector<8x64xf32>
    %245 = tpu.reciprocal %242 {approx = true} : vector<8x1xf32> -> vector<8x1xf32>
    %246 = vector.broadcast %245 : vector<8x1xf32> to vector<8x64xf32>
    %247 = arith.mulf %244, %246 : vector<8x64xf32>
    %c0_109 = arith.constant 0 : index
    %c0_110 = arith.constant 0 : index
    %248 = vector.load %arg16[%c0_109, %c0_110] : memref<16x192xf32, #tpu.memory_space<vmem>>, vector<8x64xf32>
    tpu.vector_store %arg16[%c0_109, %c0_110], %247 {strides = array<i32>} : memref<16x192xf32, #tpu.memory_space<vmem>>, vector<8x64xf32>,
    %249 = vector.extract_strided_slice %229 {offsets = [0, 64], sizes = [8, 64], strides = [1, 1]} : vector<16x576xbf16> to vector<8x64xbf16>
    %250 = vector.extract_strided_slice %229 {offsets = [0, 256], sizes = [8, 64], strides = [1, 1]} : vector<16x576xbf16> to vector<8x64xbf16>
    %251 = vector.extract_strided_slice %229 {offsets = [0, 448], sizes = [8, 64], strides = [1, 1]} : vector<16x576xbf16> to vector<8x64xbf16>
    %cst_111 = arith.constant dense<0.000000e+00> : vector<8x8xf32>
    %252 = tpu.matmul %249, %250, %cst_111 {dimension_numbers = #tpu.dot_dimension_numbers<[1], [1], [0], [0], [0, 0, 1, 0], [], []>} : vector<8x64xbf16>, vector<8x64xbf16>, vector<8x8xf32> -> vector<8x8xf32>
    %cst_112 = arith.constant -1.000000e+30 : f32
    %253 = vector.broadcast %cst_112 : f32 to vector<8x8xf32>
    %254 = arith.select %4, %252, %253 : vector<8x8xi1>, vector<8x8xf32>
    %cst_113 = arith.constant dense<0xFF800000> : vector<8xf32>
    %255 = vector.multi_reduction <maximumf>, %254, %cst_113 [1] : vector<8x8xf32> to vector<8xf32>
    %256 = vector.shape_cast %255 : vector<8xf32> to vector<8x1xf32>
    %257 = vector.broadcast %256 : vector<8x1xf32> to vector<8x8xf32>
    %258 = arith.subf %254, %257 : vector<8x8xf32>
    %259 = math.exp %258 : vector<8x8xf32>
    %cst_114 = arith.constant dense<0.000000e+00> : vector<8xf32>
    %260 = vector.multi_reduction <add>, %259, %cst_114 [1] : vector<8x8xf32> to vector<8xf32>
    %261 = vector.shape_cast %260 : vector<8xf32> to vector<8x1xf32>
    %262 = arith.truncf %259 : vector<8x8xf32> to vector<8x8xbf16>
    %cst_115 = arith.constant dense<0.000000e+00> : vector<8x64xf32>
    %263 = tpu.matmul %262, %251, %cst_115 {dimension_numbers = #tpu.dot_dimension_numbers<[1], [0], [0], [1], [0, 0, 1, 1], [], []>} : vector<8x8xbf16>, vector<8x64xbf16>, vector<8x64xf32> -> vector<8x64xf32>
    %264 = tpu.reciprocal %261 {approx = true} : vector<8x1xf32> -> vector<8x1xf32>
    %265 = vector.broadcast %264 : vector<8x1xf32> to vector<8x64xf32>
    %266 = arith.mulf %263, %265 : vector<8x64xf32>
    %c0_116 = arith.constant 0 : index
    %c64_117 = arith.constant 64 : index
    %267 = vector.load %arg16[%c0_116, %c64_117] : memref<16x192xf32, #tpu.memory_space<vmem>>, vector<8x64xf32>
    tpu.vector_store %arg16[%c0_116, %c64_117], %266 {strides = array<i32>} : memref<16x192xf32, #tpu.memory_space<vmem>>, vector<8x64xf32>,
    %268 = vector.extract_strided_slice %229 {offsets = [0, 128], sizes = [8, 64], strides = [1, 1]} : vector<16x576xbf16> to vector<8x64xbf16>
    %269 = vector.extract_strided_slice %229 {offsets = [0, 320], sizes = [8, 64], strides = [1, 1]} : vector<16x576xbf16> to vector<8x64xbf16>
    %270 = vector.extract_strided_slice %229 {offsets = [0, 512], sizes = [8, 64], strides = [1, 1]} : vector<16x576xbf16> to vector<8x64xbf16>
    %cst_118 = arith.constant dense<0.000000e+00> : vector<8x8xf32>
    %271 = tpu.matmul %268, %269, %cst_118 {dimension_numbers = #tpu.dot_dimension_numbers<[1], [1], [0], [0], [0, 0, 1, 0], [], []>} : vector<8x64xbf16>, vector<8x64xbf16>, vector<8x8xf32> -> vector<8x8xf32>
    %cst_119 = arith.constant -1.000000e+30 : f32
    %272 = vector.broadcast %cst_119 : f32 to vector<8x8xf32>
    %273 = arith.select %4, %271, %272 : vector<8x8xi1>, vector<8x8xf32>
    %cst_120 = arith.constant dense<0xFF800000> : vector<8xf32>
    %274 = vector.multi_reduction <maximumf>, %273, %cst_120 [1] : vector<8x8xf32> to vector<8xf32>
    %275 = vector.shape_cast %274 : vector<8xf32> to vector<8x1xf32>
    %276 = vector.broadcast %275 : vector<8x1xf32> to vector<8x8xf32>
    %277 = arith.subf %273, %276 : vector<8x8xf32>
    %278 = math.exp %277 : vector<8x8xf32>
    %cst_121 = arith.constant dense<0.000000e+00> : vector<8xf32>
    %279 = vector.multi_reduction <add>, %278, %cst_121 [1] : vector<8x8xf32> to vector<8xf32>
    %280 = vector.shape_cast %279 : vector<8xf32> to vector<8x1xf32>
    %281 = arith.truncf %278 : vector<8x8xf32> to vector<8x8xbf16>
    %cst_122 = arith.constant dense<0.000000e+00> : vector<8x64xf32>
    %282 = tpu.matmul %281, %270, %cst_122 {dimension_numbers = #tpu.dot_dimension_numbers<[1], [0], [0], [1], [0, 0, 1, 1], [], []>} : vector<8x8xbf16>, vector<8x64xbf16>, vector<8x64xf32> -> vector<8x64xf32>
    %283 = tpu.reciprocal %280 {approx = true} : vector<8x1xf32> -> vector<8x1xf32>
    %284 = vector.broadcast %283 : vector<8x1xf32> to vector<8x64xf32>
    %285 = arith.mulf %282, %284 : vector<8x64xf32>
    %c0_123 = arith.constant 0 : index
    %c128_124 = arith.constant 128 : index
    %286 = vector.load %arg16[%c0_123, %c128_124] : memref<16x192xf32, #tpu.memory_space<vmem>>, vector<8x64xf32>
    tpu.vector_store %arg16[%c0_123, %c128_124], %285 {strides = array<i32>} : memref<16x192xf32, #tpu.memory_space<vmem>>, vector<8x64xf32>,
    %287 = vector.extract_strided_slice %229 {offsets = [8, 0], sizes = [8, 64], strides = [1, 1]} : vector<16x576xbf16> to vector<8x64xbf16>
    %288 = vector.extract_strided_slice %229 {offsets = [8, 192], sizes = [8, 64], strides = [1, 1]} : vector<16x576xbf16> to vector<8x64xbf16>
    %289 = vector.extract_strided_slice %229 {offsets = [8, 384], sizes = [8, 64], strides = [1, 1]} : vector<16x576xbf16> to vector<8x64xbf16>
    %cst_125 = arith.constant dense<0.000000e+00> : vector<8x8xf32>
    %290 = tpu.matmul %287, %288, %cst_125 {dimension_numbers = #tpu.dot_dimension_numbers<[1], [1], [0], [0], [0, 0, 1, 0], [], []>} : vector<8x64xbf16>, vector<8x64xbf16>, vector<8x8xf32> -> vector<8x8xf32>
    %cst_126 = arith.constant -1.000000e+30 : f32
    %291 = vector.broadcast %cst_126 : f32 to vector<8x8xf32>
    %292 = arith.select %4, %290, %291 : vector<8x8xi1>, vector<8x8xf32>
    %cst_127 = arith.constant dense<0xFF800000> : vector<8xf32>
    %293 = vector.multi_reduction <maximumf>, %292, %cst_127 [1] : vector<8x8xf32> to vector<8xf32>
    %294 = vector.shape_cast %293 : vector<8xf32> to vector<8x1xf32>
    %295 = vector.broadcast %294 : vector<8x1xf32> to vector<8x8xf32>
    %296 = arith.subf %292, %295 : vector<8x8xf32>
    %297 = math.exp %296 : vector<8x8xf32>
    %cst_128 = arith.constant dense<0.000000e+00> : vector<8xf32>
    %298 = vector.multi_reduction <add>, %297, %cst_128 [1] : vector<8x8xf32> to vector<8xf32>
    %299 = vector.shape_cast %298 : vector<8xf32> to vector<8x1xf32>
    %300 = arith.truncf %297 : vector<8x8xf32> to vector<8x8xbf16>
    %cst_129 = arith.constant dense<0.000000e+00> : vector<8x64xf32>
    %301 = tpu.matmul %300, %289, %cst_129 {dimension_numbers = #tpu.dot_dimension_numbers<[1], [0], [0], [1], [0, 0, 1, 1], [], []>} : vector<8x8xbf16>, vector<8x64xbf16>, vector<8x64xf32> -> vector<8x64xf32>
    %302 = tpu.reciprocal %299 {approx = true} : vector<8x1xf32> -> vector<8x1xf32>
    %303 = vector.broadcast %302 : vector<8x1xf32> to vector<8x64xf32>
    %304 = arith.mulf %301, %303 : vector<8x64xf32>
    %c8_130 = arith.constant 8 : index
    %c0_131 = arith.constant 0 : index
    %305 = vector.load %arg16[%c8_130, %c0_131] : memref<16x192xf32, #tpu.memory_space<vmem>>, vector<8x64xf32>
    tpu.vector_store %arg16[%c8_130, %c0_131], %304 {strides = array<i32>} : memref<16x192xf32, #tpu.memory_space<vmem>>, vector<8x64xf32>,
    %306 = vector.extract_strided_slice %229 {offsets = [8, 64], sizes = [8, 64], strides = [1, 1]} : vector<16x576xbf16> to vector<8x64xbf16>
    %307 = vector.extract_strided_slice %229 {offsets = [8, 256], sizes = [8, 64], strides = [1, 1]} : vector<16x576xbf16> to vector<8x64xbf16>
    %308 = vector.extract_strided_slice %229 {offsets = [8, 448], sizes = [8, 64], strides = [1, 1]} : vector<16x576xbf16> to vector<8x64xbf16>
    %cst_132 = arith.constant dense<0.000000e+00> : vector<8x8xf32>
    %309 = tpu.matmul %306, %307, %cst_132 {dimension_numbers = #tpu.dot_dimension_numbers<[1], [1], [0], [0], [0, 0, 1, 0], [], []>} : vector<8x64xbf16>, vector<8x64xbf16>, vector<8x8xf32> -> vector<8x8xf32>
    %cst_133 = arith.constant -1.000000e+30 : f32
    %310 = vector.broadcast %cst_133 : f32 to vector<8x8xf32>
    %311 = arith.select %4, %309, %310 : vector<8x8xi1>, vector<8x8xf32>
    %cst_134 = arith.constant dense<0xFF800000> : vector<8xf32>
    %312 = vector.multi_reduction <maximumf>, %311, %cst_134 [1] : vector<8x8xf32> to vector<8xf32>
    %313 = vector.shape_cast %312 : vector<8xf32> to vector<8x1xf32>
    %314 = vector.broadcast %313 : vector<8x1xf32> to vector<8x8xf32>
    %315 = arith.subf %311, %314 : vector<8x8xf32>
    %316 = math.exp %315 : vector<8x8xf32>
    %cst_135 = arith.constant dense<0.000000e+00> : vector<8xf32>
    %317 = vector.multi_reduction <add>, %316, %cst_135 [1] : vector<8x8xf32> to vector<8xf32>
    %318 = vector.shape_cast %317 : vector<8xf32> to vector<8x1xf32>
    %319 = arith.truncf %316 : vector<8x8xf32> to vector<8x8xbf16>
    %cst_136 = arith.constant dense<0.000000e+00> : vector<8x64xf32>
    %320 = tpu.matmul %319, %308, %cst_136 {dimension_numbers = #tpu.dot_dimension_numbers<[1], [0], [0], [1], [0, 0, 1, 1], [], []>} : vector<8x8xbf16>, vector<8x64xbf16>, vector<8x64xf32> -> vector<8x64xf32>
    %321 = tpu.reciprocal %318 {approx = true} : vector<8x1xf32> -> vector<8x1xf32>
    %322 = vector.broadcast %321 : vector<8x1xf32> to vector<8x64xf32>
    %323 = arith.mulf %320, %322 : vector<8x64xf32>
    %c8_137 = arith.constant 8 : index
    %c64_138 = arith.constant 64 : index
    %324 = vector.load %arg16[%c8_137, %c64_138] : memref<16x192xf32, #tpu.memory_space<vmem>>, vector<8x64xf32>
    tpu.vector_store %arg16[%c8_137, %c64_138], %323 {strides = array<i32>} : memref<16x192xf32, #tpu.memory_space<vmem>>, vector<8x64xf32>,
    %325 = vector.extract_strided_slice %229 {offsets = [8, 128], sizes = [8, 64], strides = [1, 1]} : vector<16x576xbf16> to vector<8x64xbf16>
    %326 = vector.extract_strided_slice %229 {offsets = [8, 320], sizes = [8, 64], strides = [1, 1]} : vector<16x576xbf16> to vector<8x64xbf16>
    %327 = vector.extract_strided_slice %229 {offsets = [8, 512], sizes = [8, 64], strides = [1, 1]} : vector<16x576xbf16> to vector<8x64xbf16>
    %cst_139 = arith.constant dense<0.000000e+00> : vector<8x8xf32>
    %328 = tpu.matmul %325, %326, %cst_139 {dimension_numbers = #tpu.dot_dimension_numbers<[1], [1], [0], [0], [0, 0, 1, 0], [], []>} : vector<8x64xbf16>, vector<8x64xbf16>, vector<8x8xf32> -> vector<8x8xf32>
    %cst_140 = arith.constant -1.000000e+30 : f32
    %329 = vector.broadcast %cst_140 : f32 to vector<8x8xf32>
    %330 = arith.select %4, %328, %329 : vector<8x8xi1>, vector<8x8xf32>
    %cst_141 = arith.constant dense<0xFF800000> : vector<8xf32>
    %331 = vector.multi_reduction <maximumf>, %330, %cst_141 [1] : vector<8x8xf32> to vector<8xf32>
    %332 = vector.shape_cast %331 : vector<8xf32> to vector<8x1xf32>
    %333 = vector.broadcast %332 : vector<8x1xf32> to vector<8x8xf32>
    %334 = arith.subf %330, %333 : vector<8x8xf32>
    %335 = math.exp %334 : vector<8x8xf32>
    %cst_142 = arith.constant dense<0.000000e+00> : vector<8xf32>
    %336 = vector.multi_reduction <add>, %335, %cst_142 [1] : vector<8x8xf32> to vector<8xf32>
    %337 = vector.shape_cast %336 : vector<8xf32> to vector<8x1xf32>
    %338 = arith.truncf %335 : vector<8x8xf32> to vector<8x8xbf16>
    %cst_143 = arith.constant dense<0.000000e+00> : vector<8x64xf32>
    %339 = tpu.matmul %338, %327, %cst_143 {dimension_numbers = #tpu.dot_dimension_numbers<[1], [0], [0], [1], [0, 0, 1, 1], [], []>} : vector<8x8xbf16>, vector<8x64xbf16>, vector<8x64xf32> -> vector<8x64xf32>
    %340 = tpu.reciprocal %337 {approx = true} : vector<8x1xf32> -> vector<8x1xf32>
    %341 = vector.broadcast %340 : vector<8x1xf32> to vector<8x64xf32>
    %342 = arith.mulf %339, %341 : vector<8x64xf32>
    %c8_144 = arith.constant 8 : index
    %c128_145 = arith.constant 128 : index
    %343 = vector.load %arg16[%c8_144, %c128_145] : memref<16x192xf32, #tpu.memory_space<vmem>>, vector<8x64xf32>
    tpu.vector_store %arg16[%c8_144, %c128_145], %342 {strides = array<i32>} : memref<16x192xf32, #tpu.memory_space<vmem>>, vector<8x64xf32>,
    %c0_146 = arith.constant 0 : index
    %c0_147 = arith.constant 0 : index
    %344 = vector.load %arg16[%c0_146, %c0_147] : memref<16x192xf32, #tpu.memory_space<vmem>>, vector<16x192xf32>
    %345 = arith.truncf %344 : vector<16x192xf32> to vector<16x192xbf16>
    %c1_148 = arith.constant 1 : index
    %c0_149 = arith.constant 0 : index
    %c0_150 = arith.constant 0 : index
    %346 = vector.load %arg5[%c1_148, %c0_149, %c0_150] : memref<3x192x192xbf16, #tpu.memory_space<vmem>>, vector<1x192x192xbf16>
    %347 = vector.shape_cast %346 : vector<1x192x192xbf16> to vector<192x192xbf16>
    %cst_151 = arith.constant dense<0.000000e+00> : vector<16x192xf32>
    %348 = tpu.matmul %345, %347, %cst_151 {dimension_numbers = #tpu.dot_dimension_numbers<[1], [0], [0], [1], [0, 0, 1, 1], [], []>} : vector<16x192xbf16>, vector<192x192xbf16>, vector<16x192xf32> -> vector<16x192xf32>
    %349 = arith.addf %200, %348 : vector<16x192xf32>
    %c1_152 = arith.constant 1 : index
    %c0_153 = arith.constant 0 : index
    %c0_154 = arith.constant 0 : index
    %350 = vector.load %arg6[%c1_152, %c0_153, %c0_154] : memref<3x1x192xf32, #tpu.memory_space<vmem>>, vector<1x1x192xf32>
    %351 = vector.shape_cast %350 : vector<1x1x192xf32> to vector<1x192xf32>
    %352 = vector.broadcast %351 : vector<1x192xf32> to vector<16x192xf32>
    %353 = arith.addf %349, %352 : vector<16x192xf32>
    %c1_155 = arith.constant 1 : index
    %c0_156 = arith.constant 0 : index
    %c0_157 = arith.constant 0 : index
    %354 = vector.load %arg7[%c1_155, %c0_156, %c0_157] : memref<3x1x192xf32, #tpu.memory_space<vmem>>, vector<1x1x192xf32>
    %355 = vector.shape_cast %354 : vector<1x1x192xf32> to vector<1x192xf32>
    %c1_158 = arith.constant 1 : index
    %c0_159 = arith.constant 0 : index
    %c0_160 = arith.constant 0 : index
    %356 = vector.load %arg8[%c1_158, %c0_159, %c0_160] : memref<3x1x192xf32, #tpu.memory_space<vmem>>, vector<1x1x192xf32>
    %357 = vector.shape_cast %356 : vector<1x1x192xf32> to vector<1x192xf32>
    %cst_161 = arith.constant dense<0.000000e+00> : vector<16xf32>
    %358 = vector.multi_reduction <add>, %353, %cst_161 [1] : vector<16x192xf32> to vector<16xf32>
    %359 = vector.shape_cast %358 : vector<16xf32> to vector<16x1xf32>
    %cst_162 = arith.constant 1.920000e+02 : f32
    %360 = vector.broadcast %cst_162 : f32 to vector<16x1xf32>
    %361 = arith.divf %359, %360 : vector<16x1xf32>
    %362 = vector.broadcast %361 : vector<16x1xf32> to vector<16x192xf32>
    %363 = arith.subf %353, %362 : vector<16x192xf32>
    %364 = arith.mulf %363, %363 : vector<16x192xf32>
    %cst_163 = arith.constant dense<0.000000e+00> : vector<16xf32>
    %365 = vector.multi_reduction <add>, %364, %cst_163 [1] : vector<16x192xf32> to vector<16xf32>
    %366 = vector.shape_cast %365 : vector<16xf32> to vector<16x1xf32>
    %cst_164 = arith.constant 1.920000e+02 : f32
    %367 = vector.broadcast %cst_164 : f32 to vector<16x1xf32>
    %368 = arith.divf %366, %367 : vector<16x1xf32>
    %cst_165 = arith.constant 9.99999974E-6 : f32
    %369 = vector.broadcast %cst_165 : f32 to vector<16x1xf32>
    %370 = arith.addf %368, %369 : vector<16x1xf32>
    %371 = math.rsqrt %370 : vector<16x1xf32>
    %372 = vector.broadcast %371 : vector<16x1xf32> to vector<16x192xf32>
    %373 = arith.mulf %363, %372 : vector<16x192xf32>
    %374 = vector.broadcast %355 : vector<1x192xf32> to vector<16x192xf32>
    %375 = arith.mulf %373, %374 : vector<16x192xf32>
    %376 = vector.broadcast %357 : vector<1x192xf32> to vector<16x192xf32>
    %377 = arith.addf %375, %376 : vector<16x192xf32>
    %378 = arith.truncf %377 : vector<16x192xf32> to vector<16x192xbf16>
    %c1_166 = arith.constant 1 : index
    %c0_167 = arith.constant 0 : index
    %c0_168 = arith.constant 0 : index
    %379 = vector.load %arg9[%c1_166, %c0_167, %c0_168] : memref<3x192x768xbf16, #tpu.memory_space<vmem>>, vector<1x192x768xbf16>
    %380 = vector.shape_cast %379 : vector<1x192x768xbf16> to vector<192x768xbf16>
    %cst_169 = arith.constant dense<0.000000e+00> : vector<16x768xf32>
    %381 = tpu.matmul %378, %380, %cst_169 {dimension_numbers = #tpu.dot_dimension_numbers<[1], [0], [0], [1], [0, 0, 1, 1], [], []>} : vector<16x192xbf16>, vector<192x768xbf16>, vector<16x768xf32> -> vector<16x768xf32>
    %c1_170 = arith.constant 1 : index
    %c0_171 = arith.constant 0 : index
    %c0_172 = arith.constant 0 : index
    %382 = vector.load %arg10[%c1_170, %c0_171, %c0_172] : memref<3x1x768xf32, #tpu.memory_space<vmem>>, vector<1x1x768xf32>
    %383 = vector.shape_cast %382 : vector<1x1x768xf32> to vector<1x768xf32>
    %384 = vector.broadcast %383 : vector<1x768xf32> to vector<16x768xf32>
    %385 = arith.addf %381, %384 : vector<16x768xf32>
    %cst_173 = arith.constant 0.000000e+00 : f32
    %386 = vector.broadcast %cst_173 : f32 to vector<16x768xf32>
    %387 = arith.maximumf %385, %386 : vector<16x768xf32>
    %388 = arith.truncf %387 : vector<16x768xf32> to vector<16x768xbf16>
    %c1_174 = arith.constant 1 : index
    %c0_175 = arith.constant 0 : index
    %c0_176 = arith.constant 0 : index
    %389 = vector.load %arg11[%c1_174, %c0_175, %c0_176] : memref<3x768x192xbf16, #tpu.memory_space<vmem>>, vector<1x768x192xbf16>
    %390 = vector.shape_cast %389 : vector<1x768x192xbf16> to vector<768x192xbf16>
    %cst_177 = arith.constant dense<0.000000e+00> : vector<16x192xf32>
    %391 = tpu.matmul %388, %390, %cst_177 {dimension_numbers = #tpu.dot_dimension_numbers<[1], [0], [0], [1], [0, 0, 1, 1], [], []>} : vector<16x768xbf16>, vector<768x192xbf16>, vector<16x192xf32> -> vector<16x192xf32>
    %c1_178 = arith.constant 1 : index
    %c0_179 = arith.constant 0 : index
    %c0_180 = arith.constant 0 : index
    %392 = vector.load %arg12[%c1_178, %c0_179, %c0_180] : memref<3x1x192xf32, #tpu.memory_space<vmem>>, vector<1x1x192xf32>
    %393 = vector.shape_cast %392 : vector<1x1x192xf32> to vector<1x192xf32>
    %394 = vector.broadcast %393 : vector<1x192xf32> to vector<16x192xf32>
    %395 = arith.addf %391, %394 : vector<16x192xf32>
    %396 = arith.addf %353, %395 : vector<16x192xf32>
    %c2 = arith.constant 2 : index
    %c0_181 = arith.constant 0 : index
    %c0_182 = arith.constant 0 : index
    %397 = vector.load %arg2[%c2, %c0_181, %c0_182] : memref<3x1x192xf32, #tpu.memory_space<vmem>>, vector<1x1x192xf32>
    %398 = vector.shape_cast %397 : vector<1x1x192xf32> to vector<1x192xf32>
    %c2_183 = arith.constant 2 : index
    %c0_184 = arith.constant 0 : index
    %c0_185 = arith.constant 0 : index
    %399 = vector.load %arg3[%c2_183, %c0_184, %c0_185] : memref<3x1x192xf32, #tpu.memory_space<vmem>>, vector<1x1x192xf32>
    %400 = vector.shape_cast %399 : vector<1x1x192xf32> to vector<1x192xf32>
    %cst_186 = arith.constant dense<0.000000e+00> : vector<16xf32>
    %401 = vector.multi_reduction <add>, %396, %cst_186 [1] : vector<16x192xf32> to vector<16xf32>
    %402 = vector.shape_cast %401 : vector<16xf32> to vector<16x1xf32>
    %cst_187 = arith.constant 1.920000e+02 : f32
    %403 = vector.broadcast %cst_187 : f32 to vector<16x1xf32>
    %404 = arith.divf %402, %403 : vector<16x1xf32>
    %405 = vector.broadcast %404 : vector<16x1xf32> to vector<16x192xf32>
    %406 = arith.subf %396, %405 : vector<16x192xf32>
    %407 = arith.mulf %406, %406 : vector<16x192xf32>
    %cst_188 = arith.constant dense<0.000000e+00> : vector<16xf32>
    %408 = vector.multi_reduction <add>, %407, %cst_188 [1] : vector<16x192xf32> to vector<16xf32>
    %409 = vector.shape_cast %408 : vector<16xf32> to vector<16x1xf32>
    %cst_189 = arith.constant 1.920000e+02 : f32
    %410 = vector.broadcast %cst_189 : f32 to vector<16x1xf32>
    %411 = arith.divf %409, %410 : vector<16x1xf32>
    %cst_190 = arith.constant 9.99999974E-6 : f32
    %412 = vector.broadcast %cst_190 : f32 to vector<16x1xf32>
    %413 = arith.addf %411, %412 : vector<16x1xf32>
    %414 = math.rsqrt %413 : vector<16x1xf32>
    %415 = vector.broadcast %414 : vector<16x1xf32> to vector<16x192xf32>
    %416 = arith.mulf %406, %415 : vector<16x192xf32>
    %417 = vector.broadcast %398 : vector<1x192xf32> to vector<16x192xf32>
    %418 = arith.mulf %416, %417 : vector<16x192xf32>
    %419 = vector.broadcast %400 : vector<1x192xf32> to vector<16x192xf32>
    %420 = arith.addf %418, %419 : vector<16x192xf32>
    %421 = arith.truncf %420 : vector<16x192xf32> to vector<16x192xbf16>
    %c2_191 = arith.constant 2 : index
    %c0_192 = arith.constant 0 : index
    %c0_193 = arith.constant 0 : index
    %422 = vector.load %arg4[%c2_191, %c0_192, %c0_193] : memref<3x192x576xbf16, #tpu.memory_space<vmem>>, vector<1x192x576xbf16>
    %423 = vector.shape_cast %422 : vector<1x192x576xbf16> to vector<192x576xbf16>
    %cst_194 = arith.constant dense<0.000000e+00> : vector<16x576xf32>
    %424 = tpu.matmul %421, %423, %cst_194 {dimension_numbers = #tpu.dot_dimension_numbers<[1], [0], [0], [1], [0, 0, 1, 1], [], []>} : vector<16x192xbf16>, vector<192x576xbf16>, vector<16x576xf32> -> vector<16x576xf32>
    %425 = arith.truncf %424 : vector<16x576xf32> to vector<16x576xbf16>
    %426 = vector.extract_strided_slice %425 {offsets = [0, 0], sizes = [8, 64], strides = [1, 1]} : vector<16x576xbf16> to vector<8x64xbf16>
    %427 = vector.extract_strided_slice %425 {offsets = [0, 192], sizes = [8, 64], strides = [1, 1]} : vector<16x576xbf16> to vector<8x64xbf16>
    %428 = vector.extract_strided_slice %425 {offsets = [0, 384], sizes = [8, 64], strides = [1, 1]} : vector<16x576xbf16> to vector<8x64xbf16>
    %cst_195 = arith.constant dense<0.000000e+00> : vector<8x8xf32>
    %429 = tpu.matmul %426, %427, %cst_195 {dimension_numbers = #tpu.dot_dimension_numbers<[1], [1], [0], [0], [0, 0, 1, 0], [], []>} : vector<8x64xbf16>, vector<8x64xbf16>, vector<8x8xf32> -> vector<8x8xf32>
    %cst_196 = arith.constant -1.000000e+30 : f32
    %430 = vector.broadcast %cst_196 : f32 to vector<8x8xf32>
    %431 = arith.select %4, %429, %430 : vector<8x8xi1>, vector<8x8xf32>
    %cst_197 = arith.constant dense<0xFF800000> : vector<8xf32>
    %432 = vector.multi_reduction <maximumf>, %431, %cst_197 [1] : vector<8x8xf32> to vector<8xf32>
    %433 = vector.shape_cast %432 : vector<8xf32> to vector<8x1xf32>
    %434 = vector.broadcast %433 : vector<8x1xf32> to vector<8x8xf32>
    %435 = arith.subf %431, %434 : vector<8x8xf32>
    %436 = math.exp %435 : vector<8x8xf32>
    %cst_198 = arith.constant dense<0.000000e+00> : vector<8xf32>
    %437 = vector.multi_reduction <add>, %436, %cst_198 [1] : vector<8x8xf32> to vector<8xf32>
    %438 = vector.shape_cast %437 : vector<8xf32> to vector<8x1xf32>
    %439 = arith.truncf %436 : vector<8x8xf32> to vector<8x8xbf16>
    %cst_199 = arith.constant dense<0.000000e+00> : vector<8x64xf32>
    %440 = tpu.matmul %439, %428, %cst_199 {dimension_numbers = #tpu.dot_dimension_numbers<[1], [0], [0], [1], [0, 0, 1, 1], [], []>} : vector<8x8xbf16>, vector<8x64xbf16>, vector<8x64xf32> -> vector<8x64xf32>
    %441 = tpu.reciprocal %438 {approx = true} : vector<8x1xf32> -> vector<8x1xf32>
    %442 = vector.broadcast %441 : vector<8x1xf32> to vector<8x64xf32>
    %443 = arith.mulf %440, %442 : vector<8x64xf32>
    %c0_200 = arith.constant 0 : index
    %c0_201 = arith.constant 0 : index
    %444 = vector.load %arg16[%c0_200, %c0_201] : memref<16x192xf32, #tpu.memory_space<vmem>>, vector<8x64xf32>
    tpu.vector_store %arg16[%c0_200, %c0_201], %443 {strides = array<i32>} : memref<16x192xf32, #tpu.memory_space<vmem>>, vector<8x64xf32>,
    %445 = vector.extract_strided_slice %425 {offsets = [0, 64], sizes = [8, 64], strides = [1, 1]} : vector<16x576xbf16> to vector<8x64xbf16>
    %446 = vector.extract_strided_slice %425 {offsets = [0, 256], sizes = [8, 64], strides = [1, 1]} : vector<16x576xbf16> to vector<8x64xbf16>
    %447 = vector.extract_strided_slice %425 {offsets = [0, 448], sizes = [8, 64], strides = [1, 1]} : vector<16x576xbf16> to vector<8x64xbf16>
    %cst_202 = arith.constant dense<0.000000e+00> : vector<8x8xf32>
    %448 = tpu.matmul %445, %446, %cst_202 {dimension_numbers = #tpu.dot_dimension_numbers<[1], [1], [0], [0], [0, 0, 1, 0], [], []>} : vector<8x64xbf16>, vector<8x64xbf16>, vector<8x8xf32> -> vector<8x8xf32>
    %cst_203 = arith.constant -1.000000e+30 : f32
    %449 = vector.broadcast %cst_203 : f32 to vector<8x8xf32>
    %450 = arith.select %4, %448, %449 : vector<8x8xi1>, vector<8x8xf32>
    %cst_204 = arith.constant dense<0xFF800000> : vector<8xf32>
    %451 = vector.multi_reduction <maximumf>, %450, %cst_204 [1] : vector<8x8xf32> to vector<8xf32>
    %452 = vector.shape_cast %451 : vector<8xf32> to vector<8x1xf32>
    %453 = vector.broadcast %452 : vector<8x1xf32> to vector<8x8xf32>
    %454 = arith.subf %450, %453 : vector<8x8xf32>
    %455 = math.exp %454 : vector<8x8xf32>
    %cst_205 = arith.constant dense<0.000000e+00> : vector<8xf32>
    %456 = vector.multi_reduction <add>, %455, %cst_205 [1] : vector<8x8xf32> to vector<8xf32>
    %457 = vector.shape_cast %456 : vector<8xf32> to vector<8x1xf32>
    %458 = arith.truncf %455 : vector<8x8xf32> to vector<8x8xbf16>
    %cst_206 = arith.constant dense<0.000000e+00> : vector<8x64xf32>
    %459 = tpu.matmul %458, %447, %cst_206 {dimension_numbers = #tpu.dot_dimension_numbers<[1], [0], [0], [1], [0, 0, 1, 1], [], []>} : vector<8x8xbf16>, vector<8x64xbf16>, vector<8x64xf32> -> vector<8x64xf32>
    %460 = tpu.reciprocal %457 {approx = true} : vector<8x1xf32> -> vector<8x1xf32>
    %461 = vector.broadcast %460 : vector<8x1xf32> to vector<8x64xf32>
    %462 = arith.mulf %459, %461 : vector<8x64xf32>
    %c0_207 = arith.constant 0 : index
    %c64_208 = arith.constant 64 : index
    %463 = vector.load %arg16[%c0_207, %c64_208] : memref<16x192xf32, #tpu.memory_space<vmem>>, vector<8x64xf32>
    tpu.vector_store %arg16[%c0_207, %c64_208], %462 {strides = array<i32>} : memref<16x192xf32, #tpu.memory_space<vmem>>, vector<8x64xf32>,
    %464 = vector.extract_strided_slice %425 {offsets = [0, 128], sizes = [8, 64], strides = [1, 1]} : vector<16x576xbf16> to vector<8x64xbf16>
    %465 = vector.extract_strided_slice %425 {offsets = [0, 320], sizes = [8, 64], strides = [1, 1]} : vector<16x576xbf16> to vector<8x64xbf16>
    %466 = vector.extract_strided_slice %425 {offsets = [0, 512], sizes = [8, 64], strides = [1, 1]} : vector<16x576xbf16> to vector<8x64xbf16>
    %cst_209 = arith.constant dense<0.000000e+00> : vector<8x8xf32>
    %467 = tpu.matmul %464, %465, %cst_209 {dimension_numbers = #tpu.dot_dimension_numbers<[1], [1], [0], [0], [0, 0, 1, 0], [], []>} : vector<8x64xbf16>, vector<8x64xbf16>, vector<8x8xf32> -> vector<8x8xf32>
    %cst_210 = arith.constant -1.000000e+30 : f32
    %468 = vector.broadcast %cst_210 : f32 to vector<8x8xf32>
    %469 = arith.select %4, %467, %468 : vector<8x8xi1>, vector<8x8xf32>
    %cst_211 = arith.constant dense<0xFF800000> : vector<8xf32>
    %470 = vector.multi_reduction <maximumf>, %469, %cst_211 [1] : vector<8x8xf32> to vector<8xf32>
    %471 = vector.shape_cast %470 : vector<8xf32> to vector<8x1xf32>
    %472 = vector.broadcast %471 : vector<8x1xf32> to vector<8x8xf32>
    %473 = arith.subf %469, %472 : vector<8x8xf32>
    %474 = math.exp %473 : vector<8x8xf32>
    %cst_212 = arith.constant dense<0.000000e+00> : vector<8xf32>
    %475 = vector.multi_reduction <add>, %474, %cst_212 [1] : vector<8x8xf32> to vector<8xf32>
    %476 = vector.shape_cast %475 : vector<8xf32> to vector<8x1xf32>
    %477 = arith.truncf %474 : vector<8x8xf32> to vector<8x8xbf16>
    %cst_213 = arith.constant dense<0.000000e+00> : vector<8x64xf32>
    %478 = tpu.matmul %477, %466, %cst_213 {dimension_numbers = #tpu.dot_dimension_numbers<[1], [0], [0], [1], [0, 0, 1, 1], [], []>} : vector<8x8xbf16>, vector<8x64xbf16>, vector<8x64xf32> -> vector<8x64xf32>
    %479 = tpu.reciprocal %476 {approx = true} : vector<8x1xf32> -> vector<8x1xf32>
    %480 = vector.broadcast %479 : vector<8x1xf32> to vector<8x64xf32>
    %481 = arith.mulf %478, %480 : vector<8x64xf32>
    %c0_214 = arith.constant 0 : index
    %c128_215 = arith.constant 128 : index
    %482 = vector.load %arg16[%c0_214, %c128_215] : memref<16x192xf32, #tpu.memory_space<vmem>>, vector<8x64xf32>
    tpu.vector_store %arg16[%c0_214, %c128_215], %481 {strides = array<i32>} : memref<16x192xf32, #tpu.memory_space<vmem>>, vector<8x64xf32>,
    %483 = vector.extract_strided_slice %425 {offsets = [8, 0], sizes = [8, 64], strides = [1, 1]} : vector<16x576xbf16> to vector<8x64xbf16>
    %484 = vector.extract_strided_slice %425 {offsets = [8, 192], sizes = [8, 64], strides = [1, 1]} : vector<16x576xbf16> to vector<8x64xbf16>
    %485 = vector.extract_strided_slice %425 {offsets = [8, 384], sizes = [8, 64], strides = [1, 1]} : vector<16x576xbf16> to vector<8x64xbf16>
    %cst_216 = arith.constant dense<0.000000e+00> : vector<8x8xf32>
    %486 = tpu.matmul %483, %484, %cst_216 {dimension_numbers = #tpu.dot_dimension_numbers<[1], [1], [0], [0], [0, 0, 1, 0], [], []>} : vector<8x64xbf16>, vector<8x64xbf16>, vector<8x8xf32> -> vector<8x8xf32>
    %cst_217 = arith.constant -1.000000e+30 : f32
    %487 = vector.broadcast %cst_217 : f32 to vector<8x8xf32>
    %488 = arith.select %4, %486, %487 : vector<8x8xi1>, vector<8x8xf32>
    %cst_218 = arith.constant dense<0xFF800000> : vector<8xf32>
    %489 = vector.multi_reduction <maximumf>, %488, %cst_218 [1] : vector<8x8xf32> to vector<8xf32>
    %490 = vector.shape_cast %489 : vector<8xf32> to vector<8x1xf32>
    %491 = vector.broadcast %490 : vector<8x1xf32> to vector<8x8xf32>
    %492 = arith.subf %488, %491 : vector<8x8xf32>
    %493 = math.exp %492 : vector<8x8xf32>
    %cst_219 = arith.constant dense<0.000000e+00> : vector<8xf32>
    %494 = vector.multi_reduction <add>, %493, %cst_219 [1] : vector<8x8xf32> to vector<8xf32>
    %495 = vector.shape_cast %494 : vector<8xf32> to vector<8x1xf32>
    %496 = arith.truncf %493 : vector<8x8xf32> to vector<8x8xbf16>
    %cst_220 = arith.constant dense<0.000000e+00> : vector<8x64xf32>
    %497 = tpu.matmul %496, %485, %cst_220 {dimension_numbers = #tpu.dot_dimension_numbers<[1], [0], [0], [1], [0, 0, 1, 1], [], []>} : vector<8x8xbf16>, vector<8x64xbf16>, vector<8x64xf32> -> vector<8x64xf32>
    %498 = tpu.reciprocal %495 {approx = true} : vector<8x1xf32> -> vector<8x1xf32>
    %499 = vector.broadcast %498 : vector<8x1xf32> to vector<8x64xf32>
    %500 = arith.mulf %497, %499 : vector<8x64xf32>
    %c8_221 = arith.constant 8 : index
    %c0_222 = arith.constant 0 : index
    %501 = vector.load %arg16[%c8_221, %c0_222] : memref<16x192xf32, #tpu.memory_space<vmem>>, vector<8x64xf32>
    tpu.vector_store %arg16[%c8_221, %c0_222], %500 {strides = array<i32>} : memref<16x192xf32, #tpu.memory_space<vmem>>, vector<8x64xf32>,
    %502 = vector.extract_strided_slice %425 {offsets = [8, 64], sizes = [8, 64], strides = [1, 1]} : vector<16x576xbf16> to vector<8x64xbf16>
    %503 = vector.extract_strided_slice %425 {offsets = [8, 256], sizes = [8, 64], strides = [1, 1]} : vector<16x576xbf16> to vector<8x64xbf16>
    %504 = vector.extract_strided_slice %425 {offsets = [8, 448], sizes = [8, 64], strides = [1, 1]} : vector<16x576xbf16> to vector<8x64xbf16>
    %cst_223 = arith.constant dense<0.000000e+00> : vector<8x8xf32>
    %505 = tpu.matmul %502, %503, %cst_223 {dimension_numbers = #tpu.dot_dimension_numbers<[1], [1], [0], [0], [0, 0, 1, 0], [], []>} : vector<8x64xbf16>, vector<8x64xbf16>, vector<8x8xf32> -> vector<8x8xf32>
    %cst_224 = arith.constant -1.000000e+30 : f32
    %506 = vector.broadcast %cst_224 : f32 to vector<8x8xf32>
    %507 = arith.select %4, %505, %506 : vector<8x8xi1>, vector<8x8xf32>
    %cst_225 = arith.constant dense<0xFF800000> : vector<8xf32>
    %508 = vector.multi_reduction <maximumf>, %507, %cst_225 [1] : vector<8x8xf32> to vector<8xf32>
    %509 = vector.shape_cast %508 : vector<8xf32> to vector<8x1xf32>
    %510 = vector.broadcast %509 : vector<8x1xf32> to vector<8x8xf32>
    %511 = arith.subf %507, %510 : vector<8x8xf32>
    %512 = math.exp %511 : vector<8x8xf32>
    %cst_226 = arith.constant dense<0.000000e+00> : vector<8xf32>
    %513 = vector.multi_reduction <add>, %512, %cst_226 [1] : vector<8x8xf32> to vector<8xf32>
    %514 = vector.shape_cast %513 : vector<8xf32> to vector<8x1xf32>
    %515 = arith.truncf %512 : vector<8x8xf32> to vector<8x8xbf16>
    %cst_227 = arith.constant dense<0.000000e+00> : vector<8x64xf32>
    %516 = tpu.matmul %515, %504, %cst_227 {dimension_numbers = #tpu.dot_dimension_numbers<[1], [0], [0], [1], [0, 0, 1, 1], [], []>} : vector<8x8xbf16>, vector<8x64xbf16>, vector<8x64xf32> -> vector<8x64xf32>
    %517 = tpu.reciprocal %514 {approx = true} : vector<8x1xf32> -> vector<8x1xf32>
    %518 = vector.broadcast %517 : vector<8x1xf32> to vector<8x64xf32>
    %519 = arith.mulf %516, %518 : vector<8x64xf32>
    %c8_228 = arith.constant 8 : index
    %c64_229 = arith.constant 64 : index
    %520 = vector.load %arg16[%c8_228, %c64_229] : memref<16x192xf32, #tpu.memory_space<vmem>>, vector<8x64xf32>
    tpu.vector_store %arg16[%c8_228, %c64_229], %519 {strides = array<i32>} : memref<16x192xf32, #tpu.memory_space<vmem>>, vector<8x64xf32>,
    %521 = vector.extract_strided_slice %425 {offsets = [8, 128], sizes = [8, 64], strides = [1, 1]} : vector<16x576xbf16> to vector<8x64xbf16>
    %522 = vector.extract_strided_slice %425 {offsets = [8, 320], sizes = [8, 64], strides = [1, 1]} : vector<16x576xbf16> to vector<8x64xbf16>
    %523 = vector.extract_strided_slice %425 {offsets = [8, 512], sizes = [8, 64], strides = [1, 1]} : vector<16x576xbf16> to vector<8x64xbf16>
    %cst_230 = arith.constant dense<0.000000e+00> : vector<8x8xf32>
    %524 = tpu.matmul %521, %522, %cst_230 {dimension_numbers = #tpu.dot_dimension_numbers<[1], [1], [0], [0], [0, 0, 1, 0], [], []>} : vector<8x64xbf16>, vector<8x64xbf16>, vector<8x8xf32> -> vector<8x8xf32>
    %cst_231 = arith.constant -1.000000e+30 : f32
    %525 = vector.broadcast %cst_231 : f32 to vector<8x8xf32>
    %526 = arith.select %4, %524, %525 : vector<8x8xi1>, vector<8x8xf32>
    %cst_232 = arith.constant dense<0xFF800000> : vector<8xf32>
    %527 = vector.multi_reduction <maximumf>, %526, %cst_232 [1] : vector<8x8xf32> to vector<8xf32>
    %528 = vector.shape_cast %527 : vector<8xf32> to vector<8x1xf32>
    %529 = vector.broadcast %528 : vector<8x1xf32> to vector<8x8xf32>
    %530 = arith.subf %526, %529 : vector<8x8xf32>
    %531 = math.exp %530 : vector<8x8xf32>
    %cst_233 = arith.constant dense<0.000000e+00> : vector<8xf32>
    %532 = vector.multi_reduction <add>, %531, %cst_233 [1] : vector<8x8xf32> to vector<8xf32>
    %533 = vector.shape_cast %532 : vector<8xf32> to vector<8x1xf32>
    %534 = arith.truncf %531 : vector<8x8xf32> to vector<8x8xbf16>
    %cst_234 = arith.constant dense<0.000000e+00> : vector<8x64xf32>
    %535 = tpu.matmul %534, %523, %cst_234 {dimension_numbers = #tpu.dot_dimension_numbers<[1], [0], [0], [1], [0, 0, 1, 1], [], []>} : vector<8x8xbf16>, vector<8x64xbf16>, vector<8x64xf32> -> vector<8x64xf32>
    %536 = tpu.reciprocal %533 {approx = true} : vector<8x1xf32> -> vector<8x1xf32>
    %537 = vector.broadcast %536 : vector<8x1xf32> to vector<8x64xf32>
    %538 = arith.mulf %535, %537 : vector<8x64xf32>
    %c8_235 = arith.constant 8 : index
    %c128_236 = arith.constant 128 : index
    %539 = vector.load %arg16[%c8_235, %c128_236] : memref<16x192xf32, #tpu.memory_space<vmem>>, vector<8x64xf32>
    tpu.vector_store %arg16[%c8_235, %c128_236], %538 {strides = array<i32>} : memref<16x192xf32, #tpu.memory_space<vmem>>, vector<8x64xf32>,
    %c0_237 = arith.constant 0 : index
    %c0_238 = arith.constant 0 : index
    %540 = vector.load %arg16[%c0_237, %c0_238] : memref<16x192xf32, #tpu.memory_space<vmem>>, vector<16x192xf32>
    %541 = arith.truncf %540 : vector<16x192xf32> to vector<16x192xbf16>
    %c2_239 = arith.constant 2 : index
    %c0_240 = arith.constant 0 : index
    %c0_241 = arith.constant 0 : index
    %542 = vector.load %arg5[%c2_239, %c0_240, %c0_241] : memref<3x192x192xbf16, #tpu.memory_space<vmem>>, vector<1x192x192xbf16>
    %543 = vector.shape_cast %542 : vector<1x192x192xbf16> to vector<192x192xbf16>
    %cst_242 = arith.constant dense<0.000000e+00> : vector<16x192xf32>
    %544 = tpu.matmul %541, %543, %cst_242 {dimension_numbers = #tpu.dot_dimension_numbers<[1], [0], [0], [1], [0, 0, 1, 1], [], []>} : vector<16x192xbf16>, vector<192x192xbf16>, vector<16x192xf32> -> vector<16x192xf32>
    %545 = arith.addf %396, %544 : vector<16x192xf32>
    %c2_243 = arith.constant 2 : index
    %c0_244 = arith.constant 0 : index
    %c0_245 = arith.constant 0 : index
    %546 = vector.load %arg6[%c2_243, %c0_244, %c0_245] : memref<3x1x192xf32, #tpu.memory_space<vmem>>, vector<1x1x192xf32>
    %547 = vector.shape_cast %546 : vector<1x1x192xf32> to vector<1x192xf32>
    %548 = vector.broadcast %547 : vector<1x192xf32> to vector<16x192xf32>
    %549 = arith.addf %545, %548 : vector<16x192xf32>
    %c2_246 = arith.constant 2 : index
    %c0_247 = arith.constant 0 : index
    %c0_248 = arith.constant 0 : index
    %550 = vector.load %arg7[%c2_246, %c0_247, %c0_248] : memref<3x1x192xf32, #tpu.memory_space<vmem>>, vector<1x1x192xf32>
    %551 = vector.shape_cast %550 : vector<1x1x192xf32> to vector<1x192xf32>
    %c2_249 = arith.constant 2 : index
    %c0_250 = arith.constant 0 : index
    %c0_251 = arith.constant 0 : index
    %552 = vector.load %arg8[%c2_249, %c0_250, %c0_251] : memref<3x1x192xf32, #tpu.memory_space<vmem>>, vector<1x1x192xf32>
    %553 = vector.shape_cast %552 : vector<1x1x192xf32> to vector<1x192xf32>
    %cst_252 = arith.constant dense<0.000000e+00> : vector<16xf32>
    %554 = vector.multi_reduction <add>, %549, %cst_252 [1] : vector<16x192xf32> to vector<16xf32>
    %555 = vector.shape_cast %554 : vector<16xf32> to vector<16x1xf32>
    %cst_253 = arith.constant 1.920000e+02 : f32
    %556 = vector.broadcast %cst_253 : f32 to vector<16x1xf32>
    %557 = arith.divf %555, %556 : vector<16x1xf32>
    %558 = vector.broadcast %557 : vector<16x1xf32> to vector<16x192xf32>
    %559 = arith.subf %549, %558 : vector<16x192xf32>
    %560 = arith.mulf %559, %559 : vector<16x192xf32>
    %cst_254 = arith.constant dense<0.000000e+00> : vector<16xf32>
    %561 = vector.multi_reduction <add>, %560, %cst_254 [1] : vector<16x192xf32> to vector<16xf32>
    %562 = vector.shape_cast %561 : vector<16xf32> to vector<16x1xf32>
    %cst_255 = arith.constant 1.920000e+02 : f32
    %563 = vector.broadcast %cst_255 : f32 to vector<16x1xf32>
    %564 = arith.divf %562, %563 : vector<16x1xf32>
    %cst_256 = arith.constant 9.99999974E-6 : f32
    %565 = vector.broadcast %cst_256 : f32 to vector<16x1xf32>
    %566 = arith.addf %564, %565 : vector<16x1xf32>
    %567 = math.rsqrt %566 : vector<16x1xf32>
    %568 = vector.broadcast %567 : vector<16x1xf32> to vector<16x192xf32>
    %569 = arith.mulf %559, %568 : vector<16x192xf32>
    %570 = vector.broadcast %551 : vector<1x192xf32> to vector<16x192xf32>
    %571 = arith.mulf %569, %570 : vector<16x192xf32>
    %572 = vector.broadcast %553 : vector<1x192xf32> to vector<16x192xf32>
    %573 = arith.addf %571, %572 : vector<16x192xf32>
    %574 = arith.truncf %573 : vector<16x192xf32> to vector<16x192xbf16>
    %c2_257 = arith.constant 2 : index
    %c0_258 = arith.constant 0 : index
    %c0_259 = arith.constant 0 : index
    %575 = vector.load %arg9[%c2_257, %c0_258, %c0_259] : memref<3x192x768xbf16, #tpu.memory_space<vmem>>, vector<1x192x768xbf16>
    %576 = vector.shape_cast %575 : vector<1x192x768xbf16> to vector<192x768xbf16>
    %cst_260 = arith.constant dense<0.000000e+00> : vector<16x768xf32>
    %577 = tpu.matmul %574, %576, %cst_260 {dimension_numbers = #tpu.dot_dimension_numbers<[1], [0], [0], [1], [0, 0, 1, 1], [], []>} : vector<16x192xbf16>, vector<192x768xbf16>, vector<16x768xf32> -> vector<16x768xf32>
    %c2_261 = arith.constant 2 : index
    %c0_262 = arith.constant 0 : index
    %c0_263 = arith.constant 0 : index
    %578 = vector.load %arg10[%c2_261, %c0_262, %c0_263] : memref<3x1x768xf32, #tpu.memory_space<vmem>>, vector<1x1x768xf32>
    %579 = vector.shape_cast %578 : vector<1x1x768xf32> to vector<1x768xf32>
    %580 = vector.broadcast %579 : vector<1x768xf32> to vector<16x768xf32>
    %581 = arith.addf %577, %580 : vector<16x768xf32>
    %cst_264 = arith.constant 0.000000e+00 : f32
    %582 = vector.broadcast %cst_264 : f32 to vector<16x768xf32>
    %583 = arith.maximumf %581, %582 : vector<16x768xf32>
    %584 = arith.truncf %583 : vector<16x768xf32> to vector<16x768xbf16>
    %c2_265 = arith.constant 2 : index
    %c0_266 = arith.constant 0 : index
    %c0_267 = arith.constant 0 : index
    %585 = vector.load %arg11[%c2_265, %c0_266, %c0_267] : memref<3x768x192xbf16, #tpu.memory_space<vmem>>, vector<1x768x192xbf16>
    %586 = vector.shape_cast %585 : vector<1x768x192xbf16> to vector<768x192xbf16>
    %cst_268 = arith.constant dense<0.000000e+00> : vector<16x192xf32>
    %587 = tpu.matmul %584, %586, %cst_268 {dimension_numbers = #tpu.dot_dimension_numbers<[1], [0], [0], [1], [0, 0, 1, 1], [], []>} : vector<16x768xbf16>, vector<768x192xbf16>, vector<16x192xf32> -> vector<16x192xf32>
    %c2_269 = arith.constant 2 : index
    %c0_270 = arith.constant 0 : index
    %c0_271 = arith.constant 0 : index
    %588 = vector.load %arg12[%c2_269, %c0_270, %c0_271] : memref<3x1x192xf32, #tpu.memory_space<vmem>>, vector<1x1x192xf32>
    %589 = vector.shape_cast %588 : vector<1x1x192xf32> to vector<1x192xf32>
    %590 = vector.broadcast %589 : vector<1x192xf32> to vector<16x192xf32>
    %591 = arith.addf %587, %590 : vector<16x192xf32>
    %592 = arith.addf %549, %591 : vector<16x192xf32>
    %593 = arith.truncf %592 : vector<16x192xf32> to vector<16x192xbf16>
    %c0_272 = arith.constant 0 : index
    %c0_273 = arith.constant 0 : index
    %594 = vector.load %arg13[%c0_272, %c0_273] : memref<192x128xbf16, #tpu.memory_space<vmem>>, vector<192x128xbf16>
    %cst_274 = arith.constant dense<0.000000e+00> : vector<16x128xf32>
    %595 = tpu.matmul %593, %594, %cst_274 {dimension_numbers = #tpu.dot_dimension_numbers<[1], [0], [0], [1], [0, 0, 1, 1], [], []>} : vector<16x192xbf16>, vector<192x128xbf16>, vector<16x128xf32> -> vector<16x128xf32>
    %c0_275 = arith.constant 0 : index
    %c0_276 = arith.constant 0 : index
    %596 = vector.load %arg14[%c0_275, %c0_276] : memref<1x128xf32, #tpu.memory_space<vmem>>, vector<1x128xf32>
    %597 = vector.broadcast %596 : vector<1x128xf32> to vector<16x128xf32>
    %598 = arith.addf %595, %597 : vector<16x128xf32>
    %599 = vector.shape_cast %598 : vector<16x128xf32> to vector<2x8x128xf32>
    %c0_277 = arith.constant 0 : index
    %c0_278 = arith.constant 0 : index
    %c0_279 = arith.constant 0 : index
    %600 = vector.load %arg15[%c0_277, %c0_278, %c0_279] : memref<2x8x128xf32, #tpu.memory_space<vmem>>, vector<2x8x128xf32>
    tpu.vector_store %arg15[%c0_277, %c0_278, %c0_279], %599 {strides = array<i32>} : memref<2x8x128xf32, #tpu.memory_space<vmem>>, vector<2x8x128xf32>,
    return
  }
  func.func @transform_0(%arg0: i32) -> (i32, i32, i32) {
    %c0_i32 = arith.constant 0 : i32
    %c0_i32_0 = arith.constant 0 : i32
    %c0_i32_1 = arith.constant 0 : i32
    return %arg0, %c0_i32, %c0_i32_0 : i32, i32, i32
  }
  func.func @transform_1(%arg0: i32) -> (i32, i32, i32) {
    %c0_i32 = arith.constant 0 : i32
    %c0_i32_0 = arith.constant 0 : i32
    %c0_i32_1 = arith.constant 0 : i32
    %c0_i32_2 = arith.constant 0 : i32
    return %c0_i32, %c0_i32_0, %c0_i32_1 : i32, i32, i32
  }
  func.func @transform_2(%arg0: i32) -> (i32, i32, i32) {
    %c0_i32 = arith.constant 0 : i32
    %c0_i32_0 = arith.constant 0 : i32
    %c0_i32_1 = arith.constant 0 : i32
    %c0_i32_2 = arith.constant 0 : i32
    return %c0_i32, %c0_i32_0, %c0_i32_1 : i32, i32, i32
  }
  func.func @transform_3(%arg0: i32) -> (i32, i32, i32) {
    %c0_i32 = arith.constant 0 : i32
    %c0_i32_0 = arith.constant 0 : i32
    %c0_i32_1 = arith.constant 0 : i32
    %c0_i32_2 = arith.constant 0 : i32
    return %c0_i32, %c0_i32_0, %c0_i32_1 : i32, i32, i32
  }
  func.func @transform_4(%arg0: i32) -> (i32, i32, i32) {
    %c0_i32 = arith.constant 0 : i32
    %c0_i32_0 = arith.constant 0 : i32
    %c0_i32_1 = arith.constant 0 : i32
    %c0_i32_2 = arith.constant 0 : i32
    return %c0_i32, %c0_i32_0, %c0_i32_1 : i32, i32, i32
  }
  func.func @transform_5(%arg0: i32) -> (i32, i32, i32) {
    %c0_i32 = arith.constant 0 : i32
    %c0_i32_0 = arith.constant 0 : i32
    %c0_i32_1 = arith.constant 0 : i32
    %c0_i32_2 = arith.constant 0 : i32
    return %c0_i32, %c0_i32_0, %c0_i32_1 : i32, i32, i32
  }
  func.func @transform_6(%arg0: i32) -> (i32, i32, i32) {
    %c0_i32 = arith.constant 0 : i32
    %c0_i32_0 = arith.constant 0 : i32
    %c0_i32_1 = arith.constant 0 : i32
    %c0_i32_2 = arith.constant 0 : i32
    return %c0_i32, %c0_i32_0, %c0_i32_1 : i32, i32, i32
  }
  func.func @transform_7(%arg0: i32) -> (i32, i32, i32) {
    %c0_i32 = arith.constant 0 : i32
    %c0_i32_0 = arith.constant 0 : i32
    %c0_i32_1 = arith.constant 0 : i32
    %c0_i32_2 = arith.constant 0 : i32
    return %c0_i32, %c0_i32_0, %c0_i32_1 : i32, i32, i32
  }
  func.func @transform_8(%arg0: i32) -> (i32, i32, i32) {
    %c0_i32 = arith.constant 0 : i32
    %c0_i32_0 = arith.constant 0 : i32
    %c0_i32_1 = arith.constant 0 : i32
    %c0_i32_2 = arith.constant 0 : i32
    return %c0_i32, %c0_i32_0, %c0_i32_1 : i32, i32, i32
  }
  func.func @transform_9(%arg0: i32) -> (i32, i32, i32) {
    %c0_i32 = arith.constant 0 : i32
    %c0_i32_0 = arith.constant 0 : i32
    %c0_i32_1 = arith.constant 0 : i32
    %c0_i32_2 = arith.constant 0 : i32
    return %c0_i32, %c0_i32_0, %c0_i32_1 : i32, i32, i32
  }
  func.func @transform_10(%arg0: i32) -> (i32, i32, i32) {
    %c0_i32 = arith.constant 0 : i32
    %c0_i32_0 = arith.constant 0 : i32
    %c0_i32_1 = arith.constant 0 : i32
    %c0_i32_2 = arith.constant 0 : i32
    return %c0_i32, %c0_i32_0, %c0_i32_1 : i32, i32, i32
  }
  func.func @transform_11(%arg0: i32) -> (i32, i32, i32) {
    %c0_i32 = arith.constant 0 : i32
    %c0_i32_0 = arith.constant 0 : i32
    %c0_i32_1 = arith.constant 0 : i32
    %c0_i32_2 = arith.constant 0 : i32
    return %c0_i32, %c0_i32_0, %c0_i32_1 : i32, i32, i32
  }
  func.func @transform_12(%arg0: i32) -> (i32, i32) {
    %c0_i32 = arith.constant 0 : i32
    %c0_i32_0 = arith.constant 0 : i32
    %c0_i32_1 = arith.constant 0 : i32
    return %c0_i32, %c0_i32_0 : i32, i32
  }
  func.func @transform_13(%arg0: i32) -> (i32, i32) {
    %c0_i32 = arith.constant 0 : i32
    %c0_i32_0 = arith.constant 0 : i32
    %c0_i32_1 = arith.constant 0 : i32
    return %c0_i32, %c0_i32_0 : i32, i32
  }
  func.func @transform_14(%arg0: i32) -> (i32, i32, i32) {
    %c0_i32 = arith.constant 0 : i32
    %c0_i32_0 = arith.constant 0 : i32
    %c0_i32_1 = arith.constant 0 : i32
    return %arg0, %c0_i32, %c0_i32_0 : i32, i32, i32
  }
}

</mosaic_0001>

<bundles_post_ra>
// kernel: bigram_forward.1
= control target key start
LH: loop header
LB: loop body
LE: loop exit
PB: predicated region body
PF: predicated region fallthrough
CT: control target
= control target key end

     0   :  { %s15815_s0 = inlined_call_operand.vmem [shape: f32[4,8,192], index: 0, kind: input, shape index: {}]   ;;  %s15816_s1 = inlined_call_operand.vmem [shape: f32[3,1,192], index: 1, kind: input, shape index: {}]   ;;  %s15817_s2 = inlined_call_operand.vmem [shape: f32[3,1,192], index: 2, kind: input, shape index: {}]   ;;  %s15818_s3 = inlined_call_operand.vmem [shape: bf16[3,192,576], index: 3, kind: input, shape index: {}]   ;;  %s15819_s4 = inlined_call_operand.vmem [shape: bf16[3,192,192], index: 4, kind: input, shape index: {}]   ;;  %s15820_s5 = inlined_call_operand.vmem [shape: f32[3,1,192], index: 5, kind: input, shape index: {}]   ;;  %s15821_s6 = inlined_call_operand.vmem [shape: f32[3,1,192], index: 6, kind: input, shape index: {}]   ;;  %s15822_s7 = inlined_call_operand.vmem [shape: f32[3,1,192], index: 7, kind: input, shape index: {}]   ;;  %s15823_s8 = inlined_call_operand.vmem [shape: bf16[3,192,768], index: 8, kind: input, shape index: {}]   ;;  %s15824_s9 = inlined_call_operand.vmem [shape: f32[3,1,768], index: 9, kind: input, shape index: {}]   ;;  %s15825_s10 = inlined_call_operand.vmem [shape: bf16[3,768,192], index: 10, kind: input, shape index: {}]   ;;  %s15826_s11 = inlined_call_operand.vmem [shape: f32[3,1,192], index: 11, kind: input, shape index: {}]   ;;  %s15827_s12 = inlined_call_operand.vmem [shape: bf16[192,128], index: 12, kind: input, shape index: {}]   ;;  %s15828_s13 = inlined_call_operand.vmem [shape: f32[1,128], index: 13, kind: input, shape index: {}]   ;;  %s15829_s14 = inlined_call_operand.hbm [shape: f32[4,8,128], index: 14, kind: output, shape index: {}]  }
   0x1   :  { %15835 = sst [smem:[#allocation11_spill]] %s15815_s0 }
   0x2   :  { %19 = vsyncpa [#allocation4], 0 }
   0x3   :  { %21 = vsyncpa [#allocation4 + $0x1], 0  ;;  %s12503_s29 = smov 0   ;;  %s12505_s30 = smov 0  }
   0x4   :  { %s12507_s15 = smov 0   ;;  %s12509_s16 = smov 0  }
   0x5 LB: > { %15836 = sst [smem:[#allocation6_spill]] %s12407_s29  ;;  %s12524_s17 = sadd.s32 4294967295, %s12419_s16   ;;  %s12419_s16 = sphi %s12509_s16, %s15848_s16   ;;  %s12415_s15 = sphi %s12507_s15, %s15850_s15   ;;  %s12411_s30 = sphi %s12505_s30, %s15852_s30   ;;  %s12407_s29 = sphi %s12503_s29, %s15851_s29  }
   0x6   : > { %15837 = sst [smem:[#allocation7_spill]] %s12415_s15  ;;  %s9376_s18 = sadd.s32 4294967294, %s12419_s16  }
   0x7   : > { %s12528_s19 = sadd.s32 1, %s12419_s16   ;;  %s333_s20 = sadd.s32 1, %s12415_s15 }
   0x8   : > { %15838 = sst [smem:[#allocation8_spill]] %s12528_s19  ;;  %s330_s21 = ssub.s32 %s12419_s16, %s12528_s19 }
   0x9   : > { %p343_p0 = scmp.ne.s32.totalorder %s12415_s15, %s12411_s30  ;;  %p331_p1 = scmp.eq.s32.totalorder %s330_s21, 0 }
   0xa   : > { %p344_p2 = scmp.eq.s32.totalorder %s12524_s17, 1  ;;  %p349_p3 = scmp.ne.s32.totalorder %s12411_s30, %s12407_s29 }
   0xb   : > { %p350_p4 = scmp.eq.s32.totalorder %s9376_s18, 1  ;;  %p9379_p7 = scmp.ge.s32.totalorder %s12419_s16, 1 }
   0xc   : > { %s12539_s22 = scalar_select %p331_p1, %s12415_s15, %s333_s20  }
   0xd   : > { %p12541_p5 = por %p344_p2, %p343_p0  ;;  %p12545_p6 = por %p350_p4, %p349_p3 }
   0xe   : > { %15839 = sst [smem:[#allocation9_spill]] %s12539_s22  ;;  %p417_p8 = scmp.lt.s32.totalorder %s12419_s16, 3 }
   0xf   : > { %s15841_s24 = scalar_select %p12545_p6, 1, 0 }
  0x10   : > { %p418_p9 = pnand %p9379_p7, %p417_p8 }
  0x11   : > { %15842 = sst [smem:[#allocation10_spill]] %s15841_s24  ;;  %s9381_s25 = sshll.u32 (!%p418_p9), %s12524_s17, 1  ;;  %vm484_vm0 = vcmask (!%p418_p9), 523264   ;;  %v11129_v8 = vld [vmem:[%s15818_s3 + $0x4] ss:$20 sps:$4 sm:$0xff] (!%p418_p9)   ;;  %vm12423_vm1 = vmmov (!%p418_p9), 0  }
  0x12   : > { %421 = sbr.rel (%p418_p9) target bundleno = 10360 (0x2878), region = 76  ;;  %p465_p10 = scmp.lt.s32.totalorder (!%p418_p9), %s9381_s25, 3  ;;  %v11131_v9 = vld [vmem:[%s15818_s3] ss:$20 sps:$4 sm:$0xff] (!%p418_p9)   ;;  %v11134_v11 = vld [vmem:[%s15818_s3 + $0x8] ss:$20 sps:$4 sm:$0xff] (!%p418_p9)   ;;  %941 = vmatprep.subr.bf16.mxu0 (!%p418_p9), %v11129_v8 }
  0x13   : > { %s15843_s0 = sld [smem:[#allocation11_spill]] (!%p418_p9)  ;;  %v11132_v10 = vld [vmem:[%s15818_s3 + $0xc] ss:$20 sps:$4 sm:$0xff] (!%p418_p9)   ;;  %v11138_v13 = vld [vmem:[%s15818_s3 + $0x34] ss:$20 sps:$4 sm:$0xff] (!%p418_p9)   ;;  %942 = vmatpush1.bf16.msra.mxu0 (!%p418_p9), %v11131_v9  ;;  %v12421_v8 = vmov (!%p418_p9), 0  }
  0x14   : > { %v11135_v12 = vld [vmem:[%s15818_s3 + $0x2c] ss:$20 sps:$4 sm:$0xff] (!%p418_p9)   ;;  %984 = vmatprep.subr.bf16.mxu1 (!%p418_p9), %v11132_v10  ;;  %v11137_v14 = vld [vmem:[%s15818_s3 + $0x28] ss:$20 sps:$4 sm:$0xff] (!%p418_p9)   ;;  %v11140_v15 = vld [vmem:[%s15818_s3 + $0x30] ss:$20 sps:$4 sm:$0xff] (!%p418_p9)  }
  0x15   : > { %985 = vmatpush1.bf16.msra.mxu1 (!%p418_p9), %v11134_v11  ;;  %943 = vmatprep.subr.bf16.mxu0 (!%p418_p9), %v11135_v12  ;;  %v11141_v16 = vld [vmem:[%s15818_s3 + $0x54] ss:$20 sps:$4 sm:$0xff] (!%p418_p9)   ;;  %v11144_v17 = vld [vmem:[%s15818_s3 + $0x5c] ss:$20 sps:$4 sm:$0xff] (!%p418_p9)   ;;  %v11146_v19 = vld [vmem:[%s15818_s3 + $0x58] ss:$20 sps:$4 sm:$0xff] (!%p418_p9)  }
  0x16   : > { %986 = vmatprep.subr.bf16.mxu1 (!%p418_p9), %v11138_v13  ;;  %v11143_v18 = vld [vmem:[%s15818_s3 + $0x50] ss:$20 sps:$4 sm:$0xff] (!%p418_p9)   ;;  %v11149_v22 = vld [vmem:[%s15818_s3 + $0x78] ss:$20 sps:$4 sm:$0xff] (!%p418_p9)   ;;  %v11152_v23 = vld [vmem:[%s15818_s3 + $0x80] ss:$20 sps:$4 sm:$0xff] (!%p418_p9)   ;;  %v477_v13 = vlaneseq (!%p418_p9) }
  0x17   : > { %v11147_v20 = vld [vmem:[%s15818_s3 + $0x7c] ss:$20 sps:$4 sm:$0xff] (!%p418_p9)   ;;  %v11150_v21 = vld [vmem:[%s15818_s3 + $0x84] ss:$20 sps:$4 sm:$0xff] (!%p418_p9)   ;;  %944 = vmatpush1.bf16.msra.mxu0 (!%p418_p9), %v11137_v14  ;;  %v11156_v25 = vld [vmem:[%s15818_s3 + $0xac] ss:$20 sps:$4 sm:$0xff] (!%p418_p9)  }
  0x18   : > { %945 = vmatprep.subr.bf16.mxu0 (!%p418_p9), %v11141_v16  ;;  %v11153_v24 = vld [vmem:[%s15818_s3 + $0xa4] ss:$20 sps:$4 sm:$0xff] (!%p418_p9)   ;;  %v11155_v26 = vld [vmem:[%s15818_s3 + $0xa0] ss:$20 sps:$4 sm:$0xff] (!%p418_p9)   ;;  %v11158_v27 = vld [vmem:[%s15818_s3 + $0xa8] ss:$20 sps:$4 sm:$0xff] (!%p418_p9)  }
  0x19   : > { %s15854_s25 = smov (!%p465_p10, %s9381_s25), 3  ;;  %987 = vmatpush1.bf16.msra.mxu1 %v11140_v15  ;;  %v11159_v28 = vld [vmem:[%s15818_s3 + $0xcc] ss:$20 sps:$4 sm:$0xff]   ;;  %v11161_v45 = vld [vmem:[%s15818_s3 + $0xc8] ss:$20 sps:$4 sm:$0xff]   ;;  %v12727_v16 = vshrl.u32 %v477_v13, 7 }
  0x1a   : > { %s10758_s26 = sshll.u32 %s15854_s25, 4  ;;  %988 = vmatprep.subr.bf16.mxu1 %v11144_v17  ;;  %v11162_v46 = vld [vmem:[%s15818_s3 + $0xd4] ss:$20 sps:$4 sm:$0xff]   ;;  %v11164_v47 = vld [vmem:[%s15818_s3 + $0xd0] ss:$20 sps:$4 sm:$0xff]   ;;  %vm1137_vm2 = vcmask 1043456  }
  0x1b   : > { %s12555_s18 = scalar_lea.vmem %s15843_s0, %s10758_s26  ;;  %946 = vmatpush1.bf16.msra.mxu0 %v11143_v18  ;;  %v11165_v48 = vld [vmem:[%s15818_s3 + $0xf4] ss:$20 sps:$4 sm:$0xff]   ;;  %v11167_v49 = vld [vmem:[%s15818_s3 + $0xf0] ss:$20 sps:$4 sm:$0xff]   ;;  %v11170_v51 = vld [vmem:[%s15818_s3 + $0xf8] ss:$20 sps:$4 sm:$0xff]  }
  0x1c   : > { %v473_v0 = vld [vmem:[%s12555_s18] sm:$0xff]  ;;  %v474_v1 = vld [vmem:[%s12555_s18 + $0x8] sm:$0xff]  ;;  %v475_v2 = vld [vmem:[%s12555_s18 + $0x10] sm:$0xff]  ;;  %947 = vmatprep.subr.bf16.mxu0 %v11147_v20  ;;  %v12730_v17 = vsub.s32 1, %v12727_v16  ;;  %v12733_v18 = vsub.s32 0, %v12727_v16  ;;  %s12424_s0 = smov 64  }
  0x1d   : > { %v485_v3 = vsel %vm484_vm0, %v474_v1, 0.0  ;;  %v476_v4 = vld [vmem:[%s12555_s18 + $0x18] sm:$0xff]  ;;  %989 = vmatpush1.bf16.msra.mxu1 %v11146_v19  ;;  %v11176_v55 = vld [vmem:[%s15818_s3 + $0x120] ss:$20 sps:$4 sm:$0xff]   ;;  %v11188_v63 = vld [vmem:[%s15818_s3 + $0x170] ss:$20 sps:$4 sm:$0xff]  }
  0x1e   : > { %v486_v5 = vadd.f32 %v485_v3, %v473_v0  ;;  %v489_v6 = vsel %vm484_vm0, %v476_v4, 0.0  ;;  %990 = vmatprep.subr.bf16.mxu1 %v11150_v21  ;;  %v11168_v50 = vld [vmem:[%s15818_s3 + $0xfc] ss:$20 sps:$4 sm:$0xff]   ;;  %v11173_v53 = vld [vmem:[%s15818_s3 + $0x118] ss:$20 sps:$4 sm:$0xff]   ;;  %vm1123_vm4 = vcmask 64512  }
  0x1f   : > { %v490_v7 = vadd.f32 %v489_v6, %v475_v2  ;;  %948 = vmatpush1.bf16.msra.mxu0 %v11149_v22  ;;  %v11171_v52 = vld [vmem:[%s15818_s3 + $0x11c] ss:$20 sps:$4 sm:$0xff]   ;;  %v11174_v54 = vld [vmem:[%s15818_s3 + $0x124] ss:$20 sps:$4 sm:$0xff]   ;;  %v11179_v57 = vld [vmem:[%s15818_s3 + $0x140] ss:$20 sps:$4 sm:$0xff]  }
  0x20   : > { %487 = vadd.xlane.f32.xlu0 %v486_v5  ;;  %949 = vmatprep.subr.bf16.mxu0 %v11153_v24  ;;  %v11177_v56 = vld [vmem:[%s15818_s3 + $0x144] ss:$20 sps:$4 sm:$0xff]   ;;  %v11180_v58 = vld [vmem:[%s15818_s3 + $0x14c] ss:$20 sps:$4 sm:$0xff]   ;;  %v11182_v59 = vld [vmem:[%s15818_s3 + $0x148] ss:$20 sps:$4 sm:$0xff]  }
  0x21   : > { %991 = vmatpush1.bf16.msra.mxu1 %v11152_v23  ;;  %v11183_v60 = vld [vmem:[%s15818_s3 + $0x16c] ss:$20 sps:$4 sm:$0xff]   ;;  %v11186_v61 = vld [vmem:[%s15818_s3 + $0x174] ss:$20 sps:$4 sm:$0xff]   ;;  %v11198_v5 = vld [vmem:[%s15818_s3 + $0x1c4] ss:$20 sps:$4 sm:$0xff]  }
  0x22   : > { %992 = vmatprep.subr.bf16.mxu1 %v11156_v25  ;;  %v11185_v62 = vld [vmem:[%s15818_s3 + $0x168] ss:$20 sps:$4 sm:$0xff]   ;;  %v11194_v3 = vld [vmem:[%s15818_s3 + $0x198] ss:$20 sps:$4 sm:$0xff]   ;;  %v482_v19 = vld [vmem:[%s15816_s1] sm:$0x3] }
  0x23   : > { %950 = vmatpush1.bf16.msra.mxu0 %v11155_v26  ;;  %v11197_v6 = vld [vmem:[%s15818_s3 + $0x1b8] ss:$20 sps:$4 sm:$0xff]   ;;  %v483_v21 = vld [vmem:[%s15817_s2] sm:$0x3]  ;;  %v530_v23 = vrot.slane %v482_v19, %v12730_v17  ;;  %v526_v25 = vrot.slane %v482_v19, %v12733_v18  ;;  %vm1299_vm5 = vcmask 1048064   ;;  %s461_s19 = sand.u32 1, %s12411_s30  }
  0x24   : > { %491 = vadd.xlane.f32.xlu0 %v490_v7  ;;  %951 = vmatprep.subr.bf16.mxu0 %v11159_v28  ;;  %v11200_v7 = vld [vmem:[%s15818_s3 + $0x1c0] ss:$20 sps:$4 sm:$0xff]   ;;  %v541_v28 = vrot.slane %v483_v21, %v12733_v18  ;;  %s9380_s22 = sshll.u32 %s461_s19, 4  ;;  %s10759_s26 = sshll.u32 %s12524_s17, 8 }
  0x25   : > { %993 = vmatpush1.bf16.msra.mxu1 %v11158_v27  ;;  %v545_v27 = vrot.slane %v483_v21, %v12730_v17  ;;  %s463_s25 = scalar_lea.vmem [#allocation3], %s9380_s22  ;;  %s15772_s24 = scalar_lea.hbm %s15829_s14, %s10759_s26 }
  0x26   : > { %994 = vmatprep.subr.bf16.mxu1 %v11162_v46  ;;  %v11206_v46 = vld [vmem:[%s15818_s3 + $0xd8] ss:$20 sps:$4 sm:$0xff]   ;;  %s15774_s27 = scalar_lea.sflag [#allocation4], %s461_s19  ;;  %s12425_s28 = smov [#allocation3]  }
  0x27   : > { %952 = vmatpush1.bf16.msra.mxu0 %v11161_v45  ;;  %v11205_v45 = vld [vmem:[%s15818_s3 + $0xb0] ss:$20 sps:$4 sm:$0xff]   ;;  %s12361_s15 = sshll.u32 %s12425_s28, 4  ;;  %s12362_s15 = int_to_ptr.vmem [resolvable:$false] %s12361_s15 }
  0x28   : > { %953 = vmatprep.subr.bf16.mxu0 %v11165_v48  ;;  %v11208_v48 = vld [vmem:[%s15818_s3 + $0x128] ss:$20 sps:$4 sm:$0xff]   ;;  %s12363_s22 = scalar_lea.vmem %s12362_s15, 512 }
  0x29   : > { %995 = vmatpush1.bf16.msra.mxu1 %v11164_v47  ;;  %v11207_v47 = vld [vmem:[%s15818_s3 + $0x100] ss:$20 sps:$4 sm:$0xff]  }
  0x2a   : > { %996 = vmatprep.subr.bf16.mxu1 %v11168_v50  ;;  %v11210_v50 = vld [vmem:[%s15818_s3 + $0x178] ss:$20 sps:$4 sm:$0xff]  }
  0x2b   : > { %954 = vmatpush1.bf16.msra.mxu0 %v11167_v49  ;;  %v11209_v49 = vld [vmem:[%s15818_s3 + $0x150] ss:$20 sps:$4 sm:$0xff]  }
  0x2c   : > { %955 = vmatprep.subr.bf16.mxu0 %v11171_v52  ;;  %v11212_v52 = vld [vmem:[%s15818_s3 + $0x1c8] ss:$20 sps:$4 sm:$0xff]  }
  0x2d   : > { %997 = vmatpush1.bf16.msra.mxu1 %v11170_v51  ;;  %v11211_v51 = vld [vmem:[%s15818_s3 + $0x1a0] ss:$20 sps:$4 sm:$0xff]  }
  0x2e   : > { %998 = vmatprep.subr.bf16.mxu1 %v11174_v54 }
  0x2f   : > { %956 = vmatpush1.bf16.msra.mxu0 %v11173_v53  ;;  %v12422_v53 = vmov 0.0  }
  0x30   : > { %957 = vmatprep.subr.bf16.mxu0 %v11177_v56 }
  0x31   : > { %999 = vmatpush1.bf16.msra.mxu1 %v11176_v55 }
  0x32   : > { %1000 = vmatprep.subr.bf16.mxu1 %v11180_v58 }
  0x33   : > { %958 = vmatpush1.bf16.msra.mxu0 %v11179_v57 }
  0x34   : > { %959 = vmatprep.subr.bf16.mxu0 %v11183_v60 }
  0x35   : > { %1001 = vmatpush1.bf16.msra.mxu1 %v11182_v59 }
  0x36   : > { %1002 = vmatprep.subr.bf16.mxu1 %v11186_v61 }
  0x37   : > { %960 = vmatpush1.bf16.msra.mxu0 %v11185_v62 }
  0x39   : > { %1003 = vmatpush1.bf16.msra.mxu1 %v11188_v63 }
  0xad   : > { %v488_v29 = vpop.xlane.xlu0 %487 }
  0xae   : > { %v494_v30 = vmul.f32 0.0052083335, %v488_v29 }
  0xb0   : > { %v12626_v31 = vsub.f32 %v473_v0, %v494_v30  ;;  %v12628_v32 = vsub.f32 %v474_v1, %v494_v30  ;;  %v11189_v0 = vld [vmem:[%s15818_s3 + $0x194] ss:$20 sps:$4 sm:$0xff]   ;;  %v11191_v1 = vld [vmem:[%s15818_s3 + $0x190] ss:$20 sps:$4 sm:$0xff]  }
  0xb1   : > { %v492_v33 = vpop.xlane.xlu0 %491  ;;  %961 = vmatprep.subr.bf16.mxu0 %v11189_v0 }
  0xb2   : > { %v495_v34 = vmul.f32 0.0052083335, %v492_v33  ;;  %v500_v35 = vmul.f32 %v12626_v31, %v12626_v31  ;;  %v501_v36 = vmul.f32 %v12628_v32, %v12628_v32  ;;  %962 = vmatpush1.bf16.msra.mxu0 %v11191_v1 }
  0xb4   : > { %v12634_v37 = vsub.f32 %v475_v2, %v495_v34  ;;  %v12636_v38 = vsub.f32 %v476_v4, %v495_v34  ;;  %v504_v39 = vsel %vm484_vm0, %v501_v36, 0.0  ;;  %v11192_v2 = vld [vmem:[%s15818_s3 + $0x19c] ss:$20 sps:$4 sm:$0xff]  }
  0xb5   : > { %v505_v40 = vadd.f32 %v504_v39, %v500_v35  ;;  %v11195_v4 = vld [vmem:[%s15818_s3 + $0x1bc] ss:$20 sps:$4 sm:$0xff]   ;;  %1004 = vmatprep.subr.bf16.mxu1 %v11192_v2 }
  0xb6   : > { %v502_v41 = vmul.f32 %v12634_v37, %v12634_v37  ;;  %v503_v42 = vmul.f32 %v12636_v38, %v12636_v38  ;;  %1005 = vmatpush1.bf16.msra.mxu1 %v11194_v3  ;;  %963 = vmatprep.subr.bf16.mxu0 %v11195_v4 }
  0xb7   : > { %506 = vadd.xlane.f32.xlu1 %v505_v40  ;;  %1006 = vmatprep.subr.bf16.mxu1 %v11198_v5 }
  0xb8   : > { %v508_v43 = vsel %vm484_vm0, %v503_v42, 0.0  ;;  %964 = vmatpush1.bf16.msra.mxu0 %v11197_v6 }
  0xb9   : > { %v509_v44 = vadd.f32 %v508_v43, %v502_v41  ;;  %1027 = vmatprep.subr.bf16.mxu0 %v12421_v8  ;;  %v11201_v43 = vld [vmem:[%s15818_s3 + $0x10] ss:$20 sps:$4 sm:$0xff]  }
  0xba   : > { %1007 = vmatpush1.bf16.msra.mxu1 %v11200_v7 }
  0xbb   : > { %510 = vadd.xlane.f32.xlu1 %v509_v44  ;;  %v11204_v44 = vld [vmem:[%s15818_s3 + $0x88] ss:$20 sps:$4 sm:$0xff]   ;;  %10832 = vmatprep.subr.bf16.mxu1 %v12422_v53 }
 0x144   : > { %v507_v9 = vpop.xlane.xlu1 %506 }
 0x145   : > { %v512_v10 = vmul.f32 0.0052083335, %v507_v9 }
 0x147   : > { %v514_v11 = vadd.f32 1e-05, %v512_v10 }
 0x148   : > { %v511_v12 = vpop.xlane.xlu1 %510 }
 0x149   : > { %12257 = vrsqrt.f32 %v514_v11  ;;  %v513_v14 = vmul.f32 0.0052083335, %v511_v12 }
 0x14b   : > { %v515_v15 = vadd.f32 1e-05, %v513_v14  ;;  %v480_v14 = vand.u32 127, %v477_v13 }
 0x14d   : > { %12259 = vrsqrt.f32 %v515_v15  ;;  %vm12837_vm3 = vcmp.le.s32.totalorder %v480_v14, %v12727_v16 }
 0x153   : > { %v12258_v20 = vpop.eup %12257 }
 0x154   : > { %v519_v22 = vmul.f32 %v12258_v20, %v12628_v32  ;;  %v518_v24 = vmul.f32 %v12258_v20, %v12626_v31 }
 0x156   : > { %v534_v30 = vmul.f32 %v530_v23, %v519_v22  ;;  %v533_v34 = vmul.f32 %v526_v25, %v518_v24 }
 0x157   : > { %v12260_v26 = vpop.eup %12259 }
 0x158   : > { %v521_v29 = vmul.f32 %v12260_v26, %v12636_v38  ;;  %v520_v33 = vmul.f32 %v12260_v26, %v12634_v37  ;;  %v549_v32 = vadd.f32 %v545_v27, %v534_v30  ;;  %v548_v40 = vadd.f32 %v541_v28, %v533_v34  ;;  %v11202_v37 = vld [vmem:[%s15818_s3 + $0x38] ss:$20 sps:$4 sm:$0xff]   ;;  %v11203_v38 = vld [vmem:[%s15818_s3 + $0x60] ss:$20 sps:$4 sm:$0xff]  }
 0x15a   : > { %v536_v35 = vmul.f32 %v530_v23, %v521_v29  ;;  %v535_v36 = vmul.f32 %v526_v25, %v520_v33 }
 0x15c   : > { %v551_v39 = vadd.f32 %v545_v27, %v536_v35  ;;  %v550_v41 = vadd.f32 %v541_v28, %v535_v36 }
 0x15e   : > { %v553_v31 = vpack.c.bf16 %v551_v39, %v549_v32  ;;  %v552_v42 = vpack.c.bf16 %v550_v41, %v548_v40 }
 0x160   : > { %9444 = vmatprep.mubr.msk.bf16.mxu0 %vm484_vm0, %v553_v31  ;;  %9445 = vmatprep.mubr.msk.bf16.mxu1 %vm484_vm0, %v553_v31 }
 0x161   : > { %974 = vmatmul.mubr.bf16.vlgmr.msra.gmra.mrb[0].mxu0 %v552_v42  ;;  %1017 = vmatmul.mubr.bf16.vlgmr.msra.gmra.mrb[0].mxu1 %v552_v42 }
 0x162   : > { %1028 = vmatpush1.bf16.msra.mxu0 %v11201_v43  ;;  %9446 = vmatprep.mubr.msk.bf16.mxu0 %vm484_vm0, %v553_v31 }
 0x163   : > { %1029 = vmatprep.subr.bf16.mxu0 %v12421_v8  ;;  %10834 = vmatprep.mubr.msk.bf16.mxu1 %vm12423_vm1, %v12422_v53 }
 0x166   : > { %1030 = vmatpush1.bf16.msra.mxu0 %v11202_v37 }
 0x167   : > { %1031 = vmatprep.subr.bf16.mxu0 %v12421_v8 }
 0x16a   : > { %1032 = vmatpush1.bf16.msra.mxu0 %v11203_v38 }
 0x16b   : > { %1033 = vmatprep.subr.bf16.mxu0 %v12421_v8 }
 0x16e   : > { %1034 = vmatpush1.bf16.msra.mxu0 %v11204_v44 }
 0x16f   : > { %1035 = vmatprep.subr.bf16.mxu0 %v12421_v8 }
 0x172   : > { %1036 = vmatpush1.bf16.msra.mxu0 %v11205_v45 }
 0x173   : > { %1037 = vmatprep.subr.bf16.mxu0 %v12421_v8 }
 0x176   : > { %1038 = vmatpush1.bf16.msra.mxu0 %v11206_v46 }
 0x177   : > { %1039 = vmatprep.subr.bf16.mxu0 %v12421_v8 }
 0x17a   : > { %1040 = vmatpush1.bf16.msra.mxu0 %v11207_v47 }
 0x17b   : > { %1041 = vmatprep.subr.bf16.mxu0 %v12421_v8 }
 0x17e   : > { %1042 = vmatpush1.bf16.msra.mxu0 %v11208_v48 }
 0x17f   : > { %1043 = vmatprep.subr.bf16.mxu0 %v12421_v8 }
 0x182   : > { %1044 = vmatpush1.bf16.msra.mxu0 %v11209_v49 }
 0x183   : > { %1045 = vmatprep.subr.bf16.mxu0 %v12421_v8 }
 0x186   : > { %1046 = vmatpush1.bf16.msra.mxu0 %v11210_v50 }
 0x187   : > { %1047 = vmatprep.subr.bf16.mxu0 %v12421_v8 }
 0x18a   : > { %1048 = vmatpush1.bf16.msra.mxu0 %v11211_v51 }
 0x18b   : > { %1049 = vmatprep.subr.bf16.mxu0 %v12421_v8 }
 0x18e   : > { %1050 = vmatpush1.bf16.msra.mxu0 %v11212_v52 }
 0x18f   : > { %10880 = vmatprep.subr.bf16.mxu0 %v12422_v53 }
 0x191   : > { %1060 = vmatmul.mubr.bf16.vlgmr.msra.gmra.mrb[4].mxu0 %v552_v42 }
 0x192   : > { %10882 = vmatprep.mubr.msk.bf16.mxu0 %vm12423_vm1, %v12422_v53 }
 0x234   : > { %v975_v54 = vpop.f32.mrb[0].mxu0  ;;  %v1018_v55 = vpop.f32.mrb[0].mxu1 }
 0x235   : > { %v977_v56 = vpop.f32.mrb[1].mxu0  ;;  %v1020_v57 = vpop.f32.mrb[1].mxu1 }
 0x236   : > { %v979_v58 = vpop.f32.mrb[2].mxu0  ;;  %v1022_v59 = vpop.f32.mrb[2].mxu1 }
 0x237   : > { %v12805_v60 = vpack.c.bf16 %v979_v58, %v975_v54  ;;  %v12807_v61 = vpack.c.bf16 %v1022_v59, %v1018_v55  ;;  %v981_v62 = vpop.f32.mrb[3].mxu0  ;;  %v1024_v63 = vpop.f32.mrb[3].mxu1 }
 0x238   : > { %v12809_v0 = vpack.c.bf16 %v981_v62, %v977_v56  ;;  %v12811_v1 = vpack.c.bf16 %v1024_v63, %v1020_v57 }
 0x239   : > { %v1523_v2 = vrot.slane %v12807_v61, 4  ;;  %v1191_v29 = vsel %vm484_vm0, %v12807_v61, 0 }
 0x23a   : > { %1074 = vrot.lane.b32.xlu0 %v12809_v0, %s12424_s0  ;;  %v1139_v12 = vsel %vm1137_vm2, %v12811_v1, 0  ;;  %v1411_v38 = vrot.slane %v12809_v0, 4  ;;  %v1471_v14 = vrot.slane %v12811_v1, 4 }
 0x23b   : > { %v1528_v3 = vsel %vm484_vm0, %v1523_v2, 0 }
 0x23c   : > { %10881 = vmatpush3.bf16.xpose.msra.mxu0 %v1528_v3 }
 0x23d   : > { %10892 = vmatprep.subr.bf16.mxu0 %v12422_v53 }
 0x23e   : > { %1245 = vrot.lane.b32.xlu0 %v12811_v1, %s12424_s0 }
 0x242   : > { %1302 = vrot.lane.b32.xlu0 %v12807_v61, %s12424_s0 }
 0x264   : > { %v1061_v4 = vpop.f32.mrb[4].mxu0 }
 0x265   : > { %v1063_v5 = vpop.f32.mrb[5].mxu0 }
 0x266   : > { %v1064_v6 = vpop.f32.mrb[6].mxu0 }
 0x267   : > { %v12824_v7 = vpack.c.bf16 %v1064_v6, %v1061_v4  ;;  %v1066_v9 = vpop.f32.mrb[7].mxu0 }
 0x269   : > { %v1365_v51 = vsel %vm1137_vm2, %v12824_v7, 0 }
 0x2ac   : > { %v1075_v10 = vpop.permute.xlu0 %1074 }
 0x2ad   : > { %v1080_v11 = vsel %vm484_vm0, %v1075_v10, 0 }
 0x2ae   : > { %10833 = vmatpush3.bf16.xpose.msra.mxu1 %v1080_v11 }
 0x2af   : > { %10838 = vmatprep.subr.bf16.mxu1 %v12422_v53 }
 0x2b0   : > { %v1246_v30 = vpop.permute.xlu0 %1245 }
 0x2b1   : > { %v1251_v34 = vsel %vm1137_vm2, %v1246_v30, 0 }
 0x2b4   : > { %v1303_v48 = vpop.permute.xlu0 %1302 }
 0x2b5   : > { %10835 = vmatmul.mubr.msk.bf16.vlgmr.msra.gmra.mrb[4].mxu1 %vm484_vm0, %v12805_v60  ;;  %v1308_v50 = vsel %vm484_vm0, %v1303_v48, 0 }
 0x2b6   : > { %10839 = vmatpush3.bf16.msra.mxu1 %v1139_v12  ;;  %10840 = vmatprep.mubr.msk.bf16.mxu1 %vm12423_vm1, %v12422_v53 }
 0x2b7   : > { %10844 = vmatprep.subr.bf16.mxu1 %v12422_v53 }
 0x388   : > { %v1116_v19 = vpop.f32.mrb[4].mxu1 }
 0x389   : > { %v1122_v20 = vsel %vm12837_vm3, %v1116_v19, -1e+30  ;;  %v10836_v21 = vpop.f32.mrb[5].mxu1  ;;  %v1476_v19 = vsel %vm1137_vm2, %v1471_v14, 0 }
 0x38a   : > { %v1119_v22 = vpop.f32.mrb[6].mxu1  ;;  %v1124_v23 = vsel %vm1123_vm4, %v1122_v20, -inf }
 0x38b   : > { %1125 = vmax.xlane.f32.xlu1 %v1124_v23  ;;  %v10837_v24 = vpop.f32.mrb[7].mxu1 }
 0x39c   : > { %1185 = vrot.lane.b32.xlu1 %v12805_v60, %s12424_s0 }
 0x418   : > { %v1126_v13 = vpop.xlane.xlu1 %1125 }
 0x419   : > { %v1127_v25 = vsub.f32 %v1122_v20, %v1126_v13 }
 0x41b   : > { %v1128_v26 = vmul.f32 1.442695, %v1127_v25 }
 0x41c   : > { %v1186_v33 = vpop.permute.xlu1 %1185 }
 0x41d   : > { %12261 = vpow2.f32 %v1128_v26 }
 0x427   : > { %v12846_v27 = vpop.eup %12261 }
 0x428   : > { %v1133_v28 = vpack.c.bf16 %v12846_v27, %v12846_v27 }
 0x42a   : > { %10841 = vmatmul.mubr.msk.bf16.vlgmr.msra.gmra.mrb[8].mxu1 %vm1123_vm4, %v1133_v28 }
 0x42b   : > { %10845 = vmatpush3.bf16.xpose.msra.mxu1 %v1191_v29  ;;  %10846 = vmatprep.mubr.msk.bf16.mxu1 %vm12423_vm1, %v12422_v53 }
 0x42c   : > { %10850 = vmatprep.subr.bf16.mxu1 %v12422_v53 }
 0x432   : > { %10847 = vmatmul.mubr.msk.bf16.vlgmr.msra.gmra.mrb[12].mxu1 %vm484_vm0, %v1186_v33 }
 0x433   : > { %10851 = vmatpush3.bf16.msra.mxu1 %v1251_v34  ;;  %10852 = vmatprep.mubr.msk.bf16.mxu1 %vm12423_vm1, %v12422_v53 }
 0x434   : > { %10856 = vmatprep.subr.bf16.mxu1 %v12422_v53 }
 0x4fd   : > { %v12861_v35 = vpop.f32.mrb[8].mxu1 }
 0x4fe   : > { %v10842_v36 = vpop.f32.mrb[9].mxu1 }
 0x4ff   : > { %v1178_v32 = vpop.f32.mrb[10].mxu1 }
 0x500   : > { %v10843_v39 = vpop.f32.mrb[11].mxu1 }
 0x505   : > { %v1227_v40 = vpop.f32.mrb[12].mxu1 }
 0x506   : > { %v1233_v41 = vsel %vm12837_vm3, %v1227_v40, -1e+30  ;;  %v10848_v31 = vpop.f32.mrb[13].mxu1 }
 0x507   : > { %v1230_v42 = vpop.f32.mrb[14].mxu1  ;;  %v1234_v43 = vsel %vm1123_vm4, %v1233_v41, -inf }
 0x508   : > { %1235 = vmax.xlane.f32.xlu1 %v1234_v43  ;;  %v10849_v37 = vpop.f32.mrb[15].mxu1 }
 0x519   : > { %1412 = vrot.lane.b32.xlu1 %v1411_v38, %s12424_s0 }
 0x51d   : > { %1636 = vrot.lane.b32.xlu1 %v1523_v2, %s12424_s0 }
 0x595   : > { %v1236_v44 = vpop.xlane.xlu1 %1235 }
 0x596   : > { %v1237_v45 = vsub.f32 %v1233_v41, %v1236_v44 }
 0x598   : > { %v1238_v46 = vmul.f32 1.442695, %v1237_v45 }
 0x599   : > { %v1413_v2 = vpop.permute.xlu1 %1412 }
 0x59a   : > { %12263 = vpow2.f32 %v1238_v46  ;;  %v1418_v12 = vsel %vm484_vm0, %v1413_v2, 0 }
 0x59d   : > { %v1637_v5 = vpop.permute.xlu1 %1636 }
 0x59e   : > { %v1642_v10 = vsel %vm484_vm0, %v1637_v5, 0 }
 0x5a4   : > { %v12871_v47 = vpop.eup %12263 }
 0x5a5   : > { %v1243_v49 = vpack.c.bf16 %v12871_v47, %v12871_v47  ;;  %v1240_v37 = vsel %vm1123_vm4, %v12871_v47, 0.0 }
 0x5a7   : > { %10853 = vmatmul.mubr.msk.bf16.vlgmr.msra.gmra.mrb[16].mxu1 %vm1123_vm4, %v1243_v49  ;;  %v1130_v49 = vsel %vm1123_vm4, %v12846_v27, 0.0 }
 0x5a8   : > { %10857 = vmatpush3.bf16.xpose.msra.mxu1 %v1308_v50  ;;  %10858 = vmatprep.mubr.msk.bf16.mxu1 %vm12423_vm1, %v12422_v53 }
 0x5a9   : > { %10862 = vmatprep.subr.bf16.mxu1 %v12422_v53 }
 0x5af   : > { %10859 = vmatmul.mubr.msk.bf16.vlgmr.msra.gmra.mrb[20].mxu1 %vm484_vm0, %v12809_v0  ;;  %v1410_v0 = vrot.slane %v12805_v60, 4 }
 0x5b0   : > { %10863 = vmatpush3.bf16.msra.mxu1 %v1365_v51  ;;  %10864 = vmatprep.mubr.msk.bf16.mxu1 %vm12423_vm1, %v12422_v53 }
 0x5b1   : > { %10868 = vmatprep.subr.bf16.mxu1 %v12422_v53 }
 0x67a   : > { %v12887_v52 = vpop.f32.mrb[16].mxu1 }
 0x67b   : > { %v10854_v54 = vpop.f32.mrb[17].mxu1 }
 0x67c   : > { %v1290_v55 = vpop.f32.mrb[18].mxu1 }
 0x67d   : > { %v10855_v56 = vpop.f32.mrb[19].mxu1 }
 0x682   : > { %v1344_v57 = vpop.f32.mrb[20].mxu1 }
 0x683   : > { %v1350_v58 = vsel %vm12837_vm3, %v1344_v57, -1e+30  ;;  %v10860_v59 = vpop.f32.mrb[21].mxu1 }
 0x684   : > { %v1347_v61 = vpop.f32.mrb[22].mxu1  ;;  %v1351_v62 = vsel %vm1123_vm4, %v1350_v58, -inf }
 0x685   : > { %1352 = vmax.xlane.f32.xlu0 %v1351_v62  ;;  %v10861_v63 = vpop.f32.mrb[23].mxu1 }
 0x69b   : > { %1521 = vrot.lane.b32.xlu0 %v1410_v0, %s12424_s0 }
 0x712   : > { %v1353_v3 = vpop.xlane.xlu0 %1352 }
 0x713   : > { %v1354_v4 = vsub.f32 %v1350_v58, %v1353_v3 }
 0x715   : > { %v1355_v6 = vmul.f32 1.442695, %v1354_v4  ;;  %v1696_v4 = vrot.slane %v12824_v7, 4  ;;  %v11213_v7 = vld [vmem:[%s15819_s4] ss:$8 sps:$4 sm:$0xff]  }
 0x716   : > { %v1522_v9 = vpop.permute.xlu0 %1521 }
 0x717   : > { %12265 = vpow2.f32 %v1355_v6  ;;  %10883 = vmatmul.mubr.msk.bf16.vlgmr.msra.gmra.mrb[8].mxu0 %vm484_vm0, %v1522_v9  ;;  %v1701_v6 = vsel %vm1137_vm2, %v1696_v4, 0 }
 0x718   : > { %10893 = vmatpush3.bf16.xpose.msra.mxu0 %v1642_v10  ;;  %10894 = vmatprep.mubr.msk.bf16.mxu0 %vm12423_vm1, %v12422_v53 }
 0x71f   : > { %10895 = vmatmul.mubr.msk.bf16.vlgmr.msra.gmra.mrb[12].mxu0 %vm484_vm0, %v1411_v38 }
 0x721   : > { %v12266_v60 = vpop.eup %12265 }
 0x722   : > { %v1360_v11 = vpack.c.bf16 %v12266_v60, %v12266_v60  ;;  %v1357_v55 = vsel %vm1123_vm4, %v12266_v60, 0.0  ;;  %v11218_v60 = vld [vmem:[%s15819_s4 + $0x14] ss:$8 sps:$4 sm:$0xff]  }
 0x724   : > { %10865 = vmatmul.mubr.msk.bf16.vlgmr.msra.gmra.mrb[24].mxu1 %vm1123_vm4, %v1360_v11  ;;  %v11216_v11 = vld [vmem:[%s15819_s4 + $0x10] ss:$8 sps:$4 sm:$0xff]  }
 0x725   : > { %10869 = vmatpush3.bf16.xpose.msra.mxu1 %v1418_v12  ;;  %10870 = vmatprep.mubr.msk.bf16.mxu1 %vm12423_vm1, %v12422_v53  ;;  %v11221_v12 = vld [vmem:[%s15819_s4 + $0x24] ss:$8 sps:$4 sm:$0xff]  }
 0x726   : > { %10874 = vmatprep.subr.bf16.mxu1 %v12422_v53 }
 0x72c   : > { %10871 = vmatmul.mubr.msk.bf16.vlgmr.msra.gmra.mrb[28].mxu1 %vm484_vm0, %v1410_v0 }
 0x72d   : > { %10875 = vmatpush3.bf16.msra.mxu1 %v1476_v19  ;;  %10876 = vmatprep.mubr.msk.bf16.mxu1 %vm12423_vm1, %v12422_v53  ;;  %v11219_v19 = vld [vmem:[%s15819_s4 + $0x20] ss:$8 sps:$4 sm:$0xff]  }
 0x72e   : > { %10886 = vmatprep.subr.bf16.mxu1 %v12422_v53 }
 0x7ea   : > { %v1564_v20 = vpop.f32.mrb[8].mxu0 }
 0x7eb   : > { %v1570_v21 = vsel %vm12837_vm3, %v1564_v20, -1e+30  ;;  %v10884_v22 = vpop.f32.mrb[9].mxu0  ;;  %v11224_v20 = vld [vmem:[%s15819_s4 + $0x34] ss:$8 sps:$4 sm:$0xff]  }
 0x7ec   : > { %v1567_v23 = vpop.f32.mrb[10].mxu0  ;;  %v1571_v24 = vsel %vm1123_vm4, %v1570_v21, -inf  ;;  %v11222_v22 = vld [vmem:[%s15819_s4 + $0x30] ss:$8 sps:$4 sm:$0xff]  }
 0x7ed   : > { %1572 = vmax.xlane.f32.xlu0 %v1571_v24  ;;  %v10885_v1 = vpop.f32.mrb[11].mxu0  ;;  %v11227_v23 = vld [vmem:[%s15819_s4 + $0x44] ss:$8 sps:$4 sm:$0xff]  }
 0x7ee   : > { %v11225_v1 = vld [vmem:[%s15819_s4 + $0x40] ss:$8 sps:$4 sm:$0xff]  }
 0x7f2   : > { %v1678_v13 = vpop.f32.mrb[12].mxu0 }
 0x7f3   : > { %v10896_v25 = vpop.f32.mrb[13].mxu0  ;;  %v1684_v31 = vsel %vm12837_vm3, %v1678_v13, -1e+30  ;;  %v11230_v13 = vld [vmem:[%s15819_s4 + $0x54] ss:$8 sps:$4 sm:$0xff]  }
 0x7f4   : > { %v1681_v26 = vpop.f32.mrb[14].mxu0  ;;  %v1685_v43 = vsel %vm1123_vm4, %v1684_v31, -inf  ;;  %v11228_v25 = vld [vmem:[%s15819_s4 + $0x50] ss:$8 sps:$4 sm:$0xff]  }
 0x7f5   : > { %v10897_v28 = vpop.f32.mrb[15].mxu0  ;;  %v11233_v26 = vld [vmem:[%s15819_s4 + $0x64] ss:$8 sps:$4 sm:$0xff]  }
 0x7f7   : > { %v12913_v29 = vpop.f32.mrb[24].mxu1 }
 0x7f8   : > { %v10866_v30 = vpop.f32.mrb[25].mxu1 }
 0x7f9   : > { %v1404_v33 = vpop.f32.mrb[26].mxu1 }
 0x7fa   : > { %v10867_v34 = vpop.f32.mrb[27].mxu1  ;;  %v11231_v33 = vld [vmem:[%s15819_s4 + $0x60] ss:$8 sps:$4 sm:$0xff]  }
 0x7fb   : > { %v11236_v34 = vld [vmem:[%s15819_s4 + $0x74] ss:$8 sps:$4 sm:$0xff]  }
 0x7ff   : > { %v1454_v36 = vpop.f32.mrb[28].mxu1 }
 0x800   : > { %v1460_v32 = vsel %vm12837_vm3, %v1454_v36, -1e+30  ;;  %v10872_v39 = vpop.f32.mrb[29].mxu1 }
 0x801   : > { %v1457_v40 = vpop.f32.mrb[30].mxu1  ;;  %v1461_v41 = vsel %vm1123_vm4, %v1460_v32, -inf }
 0x802   : > { %1462 = vmax.xlane.f32.xlu1 %v1461_v41  ;;  %v10873_v42 = vpop.f32.mrb[31].mxu1  ;;  %v11239_v40 = vld [vmem:[%s15819_s4 + $0x84] ss:$8 sps:$4 sm:$0xff]   ;;  %v11237_v41 = vld [vmem:[%s15819_s4 + $0x80] ss:$8 sps:$4 sm:$0xff]  }
 0x803   : > { %1581 = vrot.lane.b32.xlu0 %v1471_v14, %s12424_s0 }
 0x806   : > { %1686 = vmax.xlane.f32.xlu1 %v1685_v43  ;;  %v11243_v43 = vld [vmem:[%s15819_s4 + $0xa0] ss:$8 sps:$4 sm:$0xff]  }
 0x80a   : > { %1241 = vadd.xlane.f32.xlu1 %v1240_v37  ;;  %v11245_v37 = vld [vmem:[%s15819_s4 + $0xa4] ss:$8 sps:$4 sm:$0xff]  }
 0x87a   : > { %v1573_v38 = vpop.xlane.xlu0 %1572 }
 0x87b   : > { %v1574_v44 = vsub.f32 %v1570_v21, %v1573_v38  ;;  %v11248_v38 = vld [vmem:[%s15819_s4 + $0xb4] ss:$8 sps:$4 sm:$0xff]  }
 0x87d   : > { %v1575_v45 = vmul.f32 1.442695, %v1574_v44 }
 0x87e   : > { %v1582_v61 = vpop.permute.xlu0 %1581 }
 0x87f   : > { %12267 = vpow2.f32 %v1575_v45  ;;  %v1587_v63 = vsel %vm1137_vm2, %v1582_v61, 0 }
 0x889   : > { %v12268_v46 = vpop.eup %12267 }
 0x88a   : > { %v1577_v48 = vsel %vm1123_vm4, %v12268_v46, 0.0  ;;  %v1580_v5 = vpack.c.bf16 %v12268_v46, %v12268_v46 }
 0x88b   : > { %1578 = vadd.xlane.f32.xlu1 %v1577_v48 }
 0x88f   : > { %v1463_v50 = vpop.xlane.xlu1 %1462  ;;  %1131 = vadd.xlane.f32.xlu1 %v1130_v49  ;;  %v11246_v49 = vld [vmem:[%s15819_s4 + $0xb0] ss:$8 sps:$4 sm:$0xff]  }
 0x890   : > { %v1464_v51 = vsub.f32 %v1460_v32, %v1463_v50 }
 0x892   : > { %v1465_v54 = vmul.f32 1.442695, %v1464_v51 }
 0x893   : > { %1358 = vadd.xlane.f32.xlu1 %v1357_v55  ;;  %v1687_v47 = vpop.xlane.xlu1 %1686 }
 0x894   : > { %12269 = vpow2.f32 %v1465_v54  ;;  %v1688_v56 = vsub.f32 %v1684_v31, %v1687_v47  ;;  %v11240_v31 = vld [vmem:[%s15819_s4 + $0x90] ss:$8 sps:$4 sm:$0xff]  }
 0x896   : > { %v1689_v57 = vmul.f32 1.442695, %v1688_v56 }
 0x897   : > { %v1242_v58 = vpop.xlane.xlu1 %1241 }
 0x898   : > { %12271 = vpow2.f32 %v1689_v57 }
 0x899   : > { %12273 = vrcp.f32 %v1242_v58 }
 0x89e   : > { %v12270_v59 = vpop.eup %12269 }
 0x89f   : > { %v1470_v62 = vpack.c.bf16 %v12270_v59, %v12270_v59  ;;  %v1467_v10 = vsel %vm1123_vm4, %v12270_v59, 0.0 }
 0x8a1   : > { %10877 = vmatmul.mubr.msk.bf16.vlgmr.msra.gmra.mrb[32].mxu1 %vm1123_vm4, %v1470_v62 }
 0x8a2   : > { %v12272_v27 = vpop.eup %12271  ;;  %10887 = vmatpush3.bf16.msra.mxu1 %v1587_v63  ;;  %10888 = vmatprep.mubr.msk.bf16.mxu1 %vm12423_vm1, %v12422_v53 }
 0x8a3   : > { %v12274_v0 = vpop.eup %12273  ;;  %v1691_v2 = vsel %vm1123_vm4, %v12272_v27, 0.0  ;;  %10898 = vmatprep.subr.bf16.mxu1 %v12422_v53  ;;  %v1694_v9 = vpack.c.bf16 %v12272_v27, %v12272_v27 }
 0x8a4   : > { %1692 = vadd.xlane.f32.xlu0 %v1691_v2  ;;  %v1294_v3 = vmul.f32 %v12274_v0, %v12887_v52  ;;  %v11215_v52 = vld [vmem:[%s15819_s4 + $0x4] ss:$8 sps:$4 sm:$0xff]  }
 0x8a5   : > { %1899 = vmatprep.subr.bf16.mxu0 %v11215_v52  ;;  %v1946_v52 = vld [vmem:[%s15820_s5] sm:$0x3] }
 0x8a6   : > { %1296 = vrot.lane.b32.xlu1 %v1294_v3, %s12424_s0  ;;  %1900 = vmatpush1.bf16.msra.mxu0 %v11213_v7 }
 0x8a7   : > { %1901 = vmatprep.subr.bf16.mxu0 %v11218_v60 }
 0x8a9   : > { %10889 = vmatmul.mubr.msk.bf16.vlgmr.msra.gmra.mrb[36].mxu1 %vm1123_vm4, %v1580_v5 }
 0x8aa   : > { %10899 = vmatpush3.bf16.msra.mxu1 %v1701_v6  ;;  %10900 = vmatprep.mubr.msk.bf16.mxu1 %vm12423_vm1, %v12422_v53 }
 0x8ab   : > { %1902 = vmatpush1.bf16.msra.mxu0 %v11216_v11  ;;  %v1955_v11 = vrot.slane %v1946_v52, %v12730_v17 }
 0x8ac   : > { %1903 = vmatprep.subr.bf16.mxu0 %v11221_v12  ;;  %v12353_v12 = vld [vmem:[%s12555_s18] sm:$0xff] }
 0x8af   : > { %1904 = vmatpush1.bf16.msra.mxu0 %v11219_v19  ;;  %v1951_v19 = vrot.slane %v1946_v52, %v12733_v18 }
 0x8b0   : > { %1905 = vmatprep.subr.bf16.mxu0 %v11224_v20 }
 0x8b1   : > { %10901 = vmatmul.mubr.msk.bf16.vlgmr.msra.gmra.mrb[40].mxu1 %vm1123_vm4, %v1694_v9 }
 0x8b3   : > { %1906 = vmatpush1.bf16.msra.mxu0 %v11222_v22 }
 0x8b4   : > { %1907 = vmatprep.subr.bf16.mxu0 %v11227_v23 }
 0x8b7   : > { %1908 = vmatpush1.bf16.msra.mxu0 %v11225_v1 }
 0x8b8   : > { %1909 = vmatprep.subr.bf16.mxu0 %v11230_v13 }
 0x8bb   : > { %1910 = vmatpush1.bf16.msra.mxu0 %v11228_v25 }
 0x8bc   : > { %1911 = vmatprep.subr.bf16.mxu0 %v11233_v26  ;;  %v12356_v26 = vld [vmem:[%s12555_s18 + $0x18] sm:$0xff] }
 0x8bf   : > { %1912 = vmatpush1.bf16.msra.mxu0 %v11231_v33 }
 0x8c0   : > { %1913 = vmatprep.subr.bf16.mxu0 %v11236_v34 }
 0x8ca   : > { %1468 = vadd.xlane.f32.xlu1 %v1467_v10 }
 0x918   : > { %v1579_v14 = vpop.xlane.xlu1 %1578 }
 0x91c   : > { %v1132_v21 = vpop.xlane.xlu1 %1131 }
 0x91d   : > { %12275 = vrcp.f32 %v1132_v21  ;;  %v12354_v21 = vld [vmem:[%s12555_s18 + $0x8] sm:$0xff] }
 0x920   : > { %v1359_v24 = vpop.xlane.xlu1 %1358 }
 0x921   : > { %12277 = vrcp.f32 %v1359_v24  ;;  %v12355_v24 = vld [vmem:[%s12555_s18 + $0x10] sm:$0xff]  ;;  %s9314_s18 = sshll.u32 %s463_s25, 4  ;;  %s15767_s18 = int_to_ptr.vmem [resolvable:$true] %s9314_s18 }
 0x922   : > { %s12357_s17 = scalar_lea.vmem %s15767_s18, 256  ;;  %p12364_p0 = scmp.lt.s32.totalorder %s15767_s18, %s12362_s15 }
 0x923   : > { %p12358_p11 = scmp.ne.s32.totalorder %s15767_s18, %s12357_s17  ;;  %p12365_p1 = scmp.lt.s32.totalorder %s12363_s22, %s12357_s17 }
 0x924   : > { %v1297_v36 = vpop.permute.xlu1 %1296 }
 0x925   : > { %p12359_p12 = pnand %p12358_p11, %p12541_p5  ;;  %p12366_p2 = por %p12365_p1, %p12364_p0 }
 0x927   : > { %v12276_v28 = vpop.eup %12275  ;;  %p12360_p13 = pneg %p12359_p12 }
 0x928   : > { %v1182_v30 = vmul.f32 %v12276_v28, %v12861_v35  ;;  %v11234_v35 = vld [vmem:[%s15819_s4 + $0x70] ss:$8 sps:$4 sm:$0xff]  }
 0x929   : > { %1914 = vmatpush1.bf16.msra.mxu0 %v11234_v35  ;;  %p12367_p3 = pnand %p12366_p2, %p12360_p13 }
 0x92a   : > { %1183 = vst.msk [vmem:[#allocation2] sm:$0xff] %vm484_vm0, %v1182_v30  ;;  %1915 = vmatprep.subr.bf16.mxu0 %v11239_v40  ;;  %v11249_v40 = vld [vmem:[%s15823_s8] ss:$24 sps:$4 sm:$0xff]  }
 0x92b   : > { %v12278_v32 = vpop.eup %12277  ;;  %1300 = vst.msk [vmem:[#allocation2] sm:$0xff] %vm1299_vm5, %v1297_v36 }
 0x92c   : > { %v1408_v39 = vmul.f32 %v12278_v32, %v12913_v29  ;;  %v11242_v29 = vld [vmem:[%s15819_s4 + $0x94] ss:$8 sps:$4 sm:$0xff]  }
 0x92d   : > { %1916 = vmatpush1.bf16.msra.mxu0 %v11237_v41  ;;  %v11251_v41 = vld [vmem:[%s15823_s8 + $0x4] ss:$24 sps:$4 sm:$0xff]  }
 0x92e   : > { %1409 = vst.msk [vmem:[#allocation2 + $0x8] sm:$0xff] %vm484_vm0, %v1408_v39  ;;  %1917 = vmatprep.subr.bf16.mxu0 %v11242_v29  ;;  %v11252_v29 = vld [vmem:[%s15823_s8 + $0x8] ss:$24 sps:$4 sm:$0xff]   ;;  %2499 = vmatprep.subr.bf16.mxu1 %v11251_v41  ;;  %v11306_v41 = vld [vmem:[%s15823_s8 + $0x1b8] ss:$24 sps:$4 sm:$0xff]  }
 0x92f   : > { %2500 = vmatpush1.bf16.msra.mxu1 %v11249_v40  ;;  %v11308_v40 = vld [vmem:[%s15823_s8 + $0x1bc] ss:$24 sps:$4 sm:$0xff]  }
 0x931   : > { %1918 = vmatpush1.bf16.msra.mxu0 %v11240_v31  ;;  %v1693_v51 = vpop.xlane.xlu0 %1692  ;;  %v11254_v31 = vld [vmem:[%s15823_s8 + $0xc] ss:$24 sps:$4 sm:$0xff]  }
 0x932   : > { %1919 = vmatprep.subr.bf16.mxu0 %v11245_v37  ;;  %v1746_v9 = vld [vmem:[#allocation2] sm:$0xff]  ;;  %v11255_v37 = vld [vmem:[%s15823_s8 + $0x30] ss:$24 sps:$4 sm:$0xff]  }
 0x935   : > { %1920 = vmatpush1.bf16.msra.mxu0 %v11243_v43  ;;  %v1747_v3 = vld [vmem:[#allocation2 + $0x8] sm:$0xff]  ;;  %v11260_v43 = vld [vmem:[%s15823_s8 + $0x3c] ss:$24 sps:$4 sm:$0xff]  }
 0x936   : > { %1921 = vmatprep.subr.bf16.mxu0 %v11248_v38  ;;  %v11258_v38 = vld [vmem:[%s15823_s8 + $0x38] ss:$24 sps:$4 sm:$0xff]  }
 0x939   : > { %1922 = vmatpush1.bf16.msra.mxu0 %v11246_v49  ;;  %v11269_v49 = vld [vmem:[%s15823_s8 + $0x94] ss:$24 sps:$4 sm:$0xff]  }
 0x93a   : > { %2542 = vmatprep.subr.bf16.mxu0 %v11254_v31  ;;  %v11309_v31 = vld [vmem:[%s15823_s8 + $0x1e0] ss:$24 sps:$4 sm:$0xff]  }
 0x957   : > { %v1469_v42 = vpop.xlane.xlu1 %1468 }
 0x958   : > { %12279 = vrcp.f32 %v1469_v42  ;;  %v11257_v42 = vld [vmem:[%s15823_s8 + $0x34] ss:$24 sps:$4 sm:$0xff]  }
 0x959   : > { %12281 = vrcp.f32 %v1579_v14  ;;  %2501 = vmatprep.subr.bf16.mxu1 %v11257_v42  ;;  %v11312_v42 = vld [vmem:[%s15823_s8 + $0x1e8] ss:$24 sps:$4 sm:$0xff]  }
 0x95a   : > { %12283 = vrcp.f32 %v1693_v51  ;;  %2502 = vmatpush1.bf16.msra.mxu1 %v11255_v37  ;;  %v11267_v51 = vld [vmem:[%s15823_s8 + $0x90] ss:$24 sps:$4 sm:$0xff]   ;;  %v11317_v37 = vld [vmem:[%s15823_s8 + $0x214] ss:$24 sps:$4 sm:$0xff]  }
 0x962   : > { %v12280_v44 = vpop.eup %12279 }
 0x963   : > { %v12282_v55 = vpop.eup %12281 }
 0x964   : > { %v12284_v61 = vpop.eup %12283 }
 0x974   : > { %v1512_v45 = vpop.f32.mrb[32].mxu1 }
 0x975   : > { %v1519_v46 = vmul.f32 %v12280_v44, %v1512_v45  ;;  %v10878_v48 = vpop.f32.mrb[33].mxu1  ;;  %v11263_v44 = vld [vmem:[%s15823_s8 + $0x64] ss:$24 sps:$4 sm:$0xff]  }
 0x976   : > { %v1515_v50 = vpop.f32.mrb[34].mxu1  ;;  %v11266_v45 = vld [vmem:[%s15823_s8 + $0x6c] ss:$24 sps:$4 sm:$0xff]   ;;  %2503 = vmatprep.subr.bf16.mxu1 %v11263_v44  ;;  %v11264_v48 = vld [vmem:[%s15823_s8 + $0x68] ss:$24 sps:$4 sm:$0xff]  }
 0x977   : > { %1520 = vst.msk [vmem:[#allocation2 + $0x10] sm:$0xff] %vm484_vm0, %v1519_v46  ;;  %v10879_v54 = vpop.f32.mrb[35].mxu1  ;;  %v11261_v46 = vld [vmem:[%s15823_s8 + $0x60] ss:$24 sps:$4 sm:$0xff]   ;;  %v11272_v50 = vld [vmem:[%s15823_s8 + $0x9c] ss:$24 sps:$4 sm:$0xff]  }
 0x978   : > { %2504 = vmatpush1.bf16.msra.mxu1 %v11261_v46  ;;  %v11270_v54 = vld [vmem:[%s15823_s8 + $0x98] ss:$24 sps:$4 sm:$0xff]   ;;  %v11320_v44 = vld [vmem:[%s15823_s8 + $0x21c] ss:$24 sps:$4 sm:$0xff]  }
 0x979   : > { %2505 = vmatprep.subr.bf16.mxu1 %v11269_v49  ;;  %v11323_v46 = vld [vmem:[%s15823_s8 + $0x14] ss:$24 sps:$4 sm:$0xff]  }
 0x97c   : > { %v1623_v47 = vpop.f32.mrb[36].mxu1  ;;  %2506 = vmatpush1.bf16.msra.mxu1 %v11267_v51 }
 0x97d   : > { %v1630_v56 = vmul.f32 %v12282_v55, %v1623_v47  ;;  %v10890_v57 = vpop.f32.mrb[37].mxu1  ;;  %v11275_v55 = vld [vmem:[%s15823_s8 + $0xc4] ss:$24 sps:$4 sm:$0xff]  }
 0x97e   : > { %v1626_v58 = vpop.f32.mrb[38].mxu1  ;;  %v11278_v47 = vld [vmem:[%s15823_s8 + $0xcc] ss:$24 sps:$4 sm:$0xff]   ;;  %2507 = vmatprep.subr.bf16.mxu1 %v11275_v55  ;;  %v11276_v57 = vld [vmem:[%s15823_s8 + $0xc8] ss:$24 sps:$4 sm:$0xff]  }
 0x97f   : > { %v10891_v59 = vpop.f32.mrb[39].mxu1  ;;  %1632 = vrot.lane.b32.xlu1 %v1630_v56, %s12424_s0  ;;  %v11273_v56 = vld [vmem:[%s15823_s8 + $0xc0] ss:$24 sps:$4 sm:$0xff]   ;;  %v11281_v58 = vld [vmem:[%s15823_s8 + $0xf4] ss:$24 sps:$4 sm:$0xff]  }
 0x980   : > { %2508 = vmatpush1.bf16.msra.mxu1 %v11273_v56  ;;  %v11279_v59 = vld [vmem:[%s15823_s8 + $0xf0] ss:$24 sps:$4 sm:$0xff]   ;;  %v1962_v56 = vld [vmem:[%s15821_s6] sm:$0x3] }
 0x981   : > { %2509 = vmatprep.subr.bf16.mxu1 %v11281_v58 }
 0x984   : > { %v1737_v62 = vpop.f32.mrb[40].mxu1  ;;  %2510 = vmatpush1.bf16.msra.mxu1 %v11279_v59 }
 0x985   : > { %v1744_v63 = vmul.f32 %v12284_v61, %v1737_v62  ;;  %v10902_v27 = vpop.f32.mrb[41].mxu1 }
 0x986   : > { %v1740_v0 = vpop.f32.mrb[42].mxu1 }
 0x987   : > { %1745 = vst.msk [vmem:[#allocation2 + $0x18] sm:$0xff] %vm484_vm0, %v1744_v63  ;;  %v10903_v2 = vpop.f32.mrb[43].mxu1 }
 0x98e   : > { %v1749_v4 = vld [vmem:[#allocation2 + $0x18] sm:$0xff] }
 0x98f   : > { %v1751_v5 = vpack.c.bf16 %v1749_v4, %v1747_v3 }
 0x991   : > { %9483 = vmatprep.mubr.msk.bf16.mxu0 %vm484_vm0, %v1751_v5 }
 0x9f1   : > { %v1633_v6 = vpop.permute.xlu1 %1632 }
 0x9f2   : > { %1635 = vst.msk [vmem:[#allocation2 + $0x10] sm:$0xff] %vm1299_vm5, %v1633_v6 }
 0x9f9   : > { %v1748_v10 = vld [vmem:[#allocation2 + $0x10] sm:$0xff] }
 0x9fa   : > { %v1750_v7 = vpack.c.bf16 %v1748_v10, %v1746_v9 }
 0x9fc   : > { %1932 = vmatmul.mubr.bf16.vlgmr.msra.gmra.mrb[16].mxu0 %v1750_v7 }
 0x9fd   : > { %2543 = vmatpush1.bf16.msra.mxu0 %v11252_v29  ;;  %v11311_v29 = vld [vmem:[%s15823_s8 + $0x1e4] ss:$24 sps:$4 sm:$0xff]  }
 0x9fe   : > { %2544 = vmatprep.subr.bf16.mxu0 %v11260_v43  ;;  %v11314_v43 = vld [vmem:[%s15823_s8 + $0x1ec] ss:$24 sps:$4 sm:$0xff]  }
 0xa01   : > { %2545 = vmatpush1.bf16.msra.mxu0 %v11258_v38  ;;  %v11315_v38 = vld [vmem:[%s15823_s8 + $0x210] ss:$24 sps:$4 sm:$0xff]  }
 0xa02   : > { %2546 = vmatprep.subr.bf16.mxu0 %v11266_v45  ;;  %v11318_v45 = vld [vmem:[%s15823_s8 + $0x218] ss:$24 sps:$4 sm:$0xff]  }
 0xa05   : > { %2547 = vmatpush1.bf16.msra.mxu0 %v11264_v48  ;;  %v11359_v48 = vld [vmem:[%s15825_s10 + $0x104] ss:$8 sps:$4 sm:$0xff]  }
 0xa06   : > { %2548 = vmatprep.subr.bf16.mxu0 %v11272_v50 }
 0xa09   : > { %2549 = vmatpush1.bf16.msra.mxu0 %v11270_v54 }
 0xa0a   : > { %2550 = vmatprep.subr.bf16.mxu0 %v11278_v47 }
 0xa0d   : > { %2551 = vmatpush1.bf16.msra.mxu0 %v11276_v57 }
 0xacf   : > { %v1933_v60 = vpop.f32.mrb[16].mxu0 }
 0xad0   : > { %v1942_v14 = vadd.f32 %v12353_v12, %v1933_v60  ;;  %v1935_v20 = vpop.f32.mrb[17].mxu0  ;;  %v11284_v12 = vld [vmem:[%s15823_s8 + $0xfc] ss:$24 sps:$4 sm:$0xff]  }
 0xad1   : > { %v1943_v22 = vadd.f32 %v12354_v21, %v1935_v20  ;;  %v1937_v23 = vpop.f32.mrb[18].mxu0  ;;  %2552 = vmatprep.subr.bf16.mxu0 %v11284_v12  ;;  %v11285_v20 = vld [vmem:[%s15823_s8 + $0x120] ss:$24 sps:$4 sm:$0xff]   ;;  %v11290_v21 = vld [vmem:[%s15823_s8 + $0x12c] ss:$24 sps:$4 sm:$0xff]  }
 0xad2   : > { %v1944_v1 = vadd.f32 %v12355_v24, %v1937_v23  ;;  %v1939_v13 = vpop.f32.mrb[19].mxu0  ;;  %v13036_v30 = vadd.f32 %v1951_v19, %v1942_v14  ;;  %v11282_v14 = vld [vmem:[%s15823_s8 + $0xf8] ss:$24 sps:$4 sm:$0xff]   ;;  %v11293_v23 = vld [vmem:[%s15823_s8 + $0x154] ss:$24 sps:$4 sm:$0xff]  }
 0xad3   : > { %v13033_v25 = vadd.f32 %v1955_v11, %v1943_v22  ;;  %v1945_v28 = vadd.f32 %v12356_v26, %v1939_v13  ;;  %2553 = vmatpush1.bf16.msra.mxu0 %v11282_v14  ;;  %v11288_v22 = vld [vmem:[%s15823_s8 + $0x128] ss:$24 sps:$4 sm:$0xff]   ;;  %v11294_v13 = vld [vmem:[%s15823_s8 + $0x158] ss:$24 sps:$4 sm:$0xff]   ;;  %v11299_v26 = vld [vmem:[%s15823_s8 + $0x184] ss:$24 sps:$4 sm:$0xff]  }
 0xad4   : > { %v13042_v36 = vadd.f32 %v1951_v19, %v1944_v1  ;;  %v11287_v19 = vld [vmem:[%s15823_s8 + $0x124] ss:$24 sps:$4 sm:$0xff]   ;;  %2554 = vmatprep.subr.bf16.mxu0 %v11290_v21  ;;  %v11291_v24 = vld [vmem:[%s15823_s8 + $0x150] ss:$24 sps:$4 sm:$0xff]  }
 0xad5   : > { %v13038_v33 = vadd.f32 %v1955_v11, %v1945_v28  ;;  %v1964_v34 = vsel %vm484_vm0, %v13033_v25, 0.0  ;;  %2511 = vmatprep.subr.bf16.mxu1 %v11287_v19  ;;  %v11296_v1 = vld [vmem:[%s15823_s8 + $0x15c] ss:$24 sps:$4 sm:$0xff]   ;;  %v11297_v28 = vld [vmem:[%s15823_s8 + $0x180] ss:$24 sps:$4 sm:$0xff]  }
 0xad6   : > { %v1965_v32 = vadd.f32 %v1964_v34, %v13036_v30  ;;  %2512 = vmatpush1.bf16.msra.mxu1 %v11285_v20  ;;  %v11302_v34 = vld [vmem:[%s15823_s8 + $0x18c] ss:$24 sps:$4 sm:$0xff]   ;;  %v11321_v20 = vld [vmem:[%s15823_s8 + $0x10] ss:$24 sps:$4 sm:$0xff]  }
 0xad7   : > { %v1968_v39 = vsel %vm484_vm0, %v13038_v33, 0.0  ;;  %2555 = vmatpush1.bf16.msra.mxu0 %v11288_v22  ;;  %2513 = vmatprep.subr.bf16.mxu1 %v11293_v23  ;;  %v11365_v22 = vld [vmem:[%s15825_s10 + $0x114] ss:$8 sps:$4 sm:$0xff]   ;;  %v11324_v23 = vld [vmem:[%s15823_s8 + $0x40] ss:$24 sps:$4 sm:$0xff]  }
 0xad8   : > { %1966 = vadd.xlane.f32.xlu1 %v1965_v32  ;;  %v1969_v35 = vadd.f32 %v1968_v39, %v13042_v36  ;;  %2556 = vmatprep.subr.bf16.mxu0 %v11296_v1  ;;  %v11300_v32 = vld [vmem:[%s15823_s8 + $0x188] ss:$24 sps:$4 sm:$0xff]   ;;  %v11305_v39 = vld [vmem:[%s15823_s8 + $0x1b4] ss:$24 sps:$4 sm:$0xff]   ;;  %v11363_v1 = vld [vmem:[%s15825_s10 + $0x110] ss:$8 sps:$4 sm:$0xff]  }
 0xada   : > { %1970 = vadd.xlane.f32.xlu0 %v1969_v35  ;;  %2514 = vmatpush1.bf16.msra.mxu1 %v11291_v24  ;;  %v11303_v35 = vld [vmem:[%s15823_s8 + $0x1b0] ss:$24 sps:$4 sm:$0xff]   ;;  %v11329_v24 = vld [vmem:[%s15823_s8 + $0x74] ss:$24 sps:$4 sm:$0xff]  }
 0xadb   : > { %2557 = vmatpush1.bf16.msra.mxu0 %v11294_v13  ;;  %2515 = vmatprep.subr.bf16.mxu1 %v11299_v26  ;;  %v11371_v13 = vld [vmem:[%s15825_s10 + $0x124] ss:$8 sps:$4 sm:$0xff]   ;;  %v11327_v26 = vld [vmem:[%s15823_s8 + $0x70] ss:$24 sps:$4 sm:$0xff]  }
 0xadc   : > { %2558 = vmatprep.subr.bf16.mxu0 %v11302_v34  ;;  %v11369_v34 = vld [vmem:[%s15825_s10 + $0x120] ss:$8 sps:$4 sm:$0xff]  }
 0xade   : > { %2516 = vmatpush1.bf16.msra.mxu1 %v11297_v28  ;;  %v11332_v28 = vld [vmem:[%s15823_s8 + $0xa4] ss:$24 sps:$4 sm:$0xff]  }
 0xadf   : > { %2559 = vmatpush1.bf16.msra.mxu0 %v11300_v32  ;;  %2517 = vmatprep.subr.bf16.mxu1 %v11305_v39  ;;  %v11377_v32 = vld [vmem:[%s15825_s10 + $0x134] ss:$8 sps:$4 sm:$0xff]   ;;  %v11330_v39 = vld [vmem:[%s15823_s8 + $0xa0] ss:$24 sps:$4 sm:$0xff]  }
 0xae0   : > { %2560 = vmatprep.subr.bf16.mxu0 %v11308_v40  ;;  %v11375_v40 = vld [vmem:[%s15825_s10 + $0x130] ss:$8 sps:$4 sm:$0xff]  }
 0xae2   : > { %2518 = vmatpush1.bf16.msra.mxu1 %v11303_v35  ;;  %v11335_v35 = vld [vmem:[%s15823_s8 + $0xd4] ss:$24 sps:$4 sm:$0xff]  }
 0xae3   : > { %2561 = vmatpush1.bf16.msra.mxu0 %v11306_v41  ;;  %2519 = vmatprep.subr.bf16.mxu1 %v11311_v29  ;;  %v11383_v41 = vld [vmem:[%s15825_s10 + $0x144] ss:$8 sps:$4 sm:$0xff]   ;;  %v11333_v29 = vld [vmem:[%s15823_s8 + $0xd0] ss:$24 sps:$4 sm:$0xff]  }
 0xae4   : > { %2562 = vmatprep.subr.bf16.mxu0 %v11314_v43  ;;  %v11389_v43 = vld [vmem:[%s15825_s10 + $0x154] ss:$8 sps:$4 sm:$0xff]  }
 0xae6   : > { %2520 = vmatpush1.bf16.msra.mxu1 %v11309_v31  ;;  %v11338_v31 = vld [vmem:[%s15823_s8 + $0x104] ss:$24 sps:$4 sm:$0xff]  }
 0xae7   : > { %2563 = vmatpush1.bf16.msra.mxu0 %v11312_v42  ;;  %2521 = vmatprep.subr.bf16.mxu1 %v11317_v37  ;;  %v11381_v42 = vld [vmem:[%s15825_s10 + $0x140] ss:$8 sps:$4 sm:$0xff]  }
 0xae8   : > { %2564 = vmatprep.subr.bf16.mxu0 %v11320_v44  ;;  %v11336_v37 = vld [vmem:[%s15823_s8 + $0x100] ss:$24 sps:$4 sm:$0xff]  }
 0xae9   : > { %v11387_v44 = vld [vmem:[%s15825_s10 + $0x150] ss:$8 sps:$4 sm:$0xff]  }
 0xaea   : > { %2522 = vmatpush1.bf16.msra.mxu1 %v11315_v38  ;;  %v11341_v38 = vld [vmem:[%s15823_s8 + $0x134] ss:$24 sps:$4 sm:$0xff]  }
 0xaeb   : > { %2565 = vmatpush1.bf16.msra.mxu0 %v11318_v45  ;;  %2585 = vmatprep.subr.bf16.mxu1 %v11323_v46  ;;  %v11395_v45 = vld [vmem:[%s15825_s10 + $0x164] ss:$8 sps:$4 sm:$0xff]   ;;  %v11339_v46 = vld [vmem:[%s15823_s8 + $0x130] ss:$24 sps:$4 sm:$0xff]  }
 0xaec   : > { %3277 = vmatprep.subr.bf16.mxu0 %v11359_v48  ;;  %v11344_v48 = vld [vmem:[%s15823_s8 + $0x164] ss:$24 sps:$4 sm:$0xff]  }
 0xb65   : > { %v1967_v61 = vpop.xlane.xlu1 %1966 }
 0xb66   : > { %v1972_v62 = vmul.f32 0.0052083335, %v1967_v61  ;;  %v1963_v61 = vld [vmem:[%s15822_s7] sm:$0x3] }
 0xb67   : > { %v1971_v63 = vpop.xlane.xlu0 %1970 }
 0xb68   : > { %v13115_v27 = vsub.f32 %v13036_v30, %v1972_v62  ;;  %v13118_v0 = vsub.f32 %v13033_v25, %v1972_v62  ;;  %v1973_v2 = vmul.f32 0.0052083335, %v1971_v63  ;;  %v2008_v62 = vrot.slane %v1962_v56, %v12730_v17 }
 0xb69   : > { %v2004_v63 = vrot.slane %v1962_v56, %v12733_v18  ;;  %v11345_v56 = vld [vmem:[%s15823_s8 + $0x190] ss:$24 sps:$4 sm:$0xff]  }
 0xb6a   : > { %v13121_v3 = vsub.f32 %v13042_v36, %v1973_v2  ;;  %v13124_v4 = vsub.f32 %v13038_v33, %v1973_v2  ;;  %v1978_v5 = vmul.f32 %v13115_v27, %v13115_v27  ;;  %v1979_v6 = vmul.f32 %v13118_v0, %v13118_v0 }
 0xb6c   : > { %v1982_v9 = vsel %vm484_vm0, %v1979_v6, 0.0  ;;  %v1981_v10 = vmul.f32 %v13124_v4, %v13124_v4  ;;  %v1980_v52 = vmul.f32 %v13121_v3, %v13121_v3  ;;  %v2019_v6 = vrot.slane %v1963_v61, %v12733_v18 }
 0xb6d   : > { %v1983_v7 = vadd.f32 %v1982_v9, %v1978_v5  ;;  %v2023_v5 = vrot.slane %v1963_v61, %v12730_v17  ;;  %v11348_v61 = vld [vmem:[%s15823_s8 + $0x1c0] ss:$24 sps:$4 sm:$0xff]  }
 0xb6e   : > { %v1986_v60 = vsel %vm484_vm0, %v1981_v10, 0.0 }
 0xb6f   : > { %1984 = vadd.xlane.f32.xlu0 %v1983_v7  ;;  %v1987_v11 = vadd.f32 %v1986_v60, %v1980_v52 }
 0xb73   : > { %1988 = vadd.xlane.f32.xlu0 %v1987_v11 }
 0xbfc   : > { %v1985_v49 = vpop.xlane.xlu0 %1984 }
 0xbfd   : > { %v1990_v50 = vmul.f32 0.0052083335, %v1985_v49  ;;  %v11393_v49 = vld [vmem:[%s15825_s10 + $0x160] ss:$8 sps:$4 sm:$0xff]  }
 0xbff   : > { %v1992_v51 = vadd.f32 1e-05, %v1990_v50  ;;  %v11401_v50 = vld [vmem:[%s15825_s10 + $0x174] ss:$8 sps:$4 sm:$0xff]  }
 0xc00   : > { %v1989_v54 = vpop.xlane.xlu0 %1988 }
 0xc01   : > { %12285 = vrsqrt.f32 %v1992_v51  ;;  %v1991_v55 = vmul.f32 0.0052083335, %v1989_v54  ;;  %v11342_v51 = vld [vmem:[%s15823_s8 + $0x160] ss:$24 sps:$4 sm:$0xff]   ;;  %v11347_v54 = vld [vmem:[%s15823_s8 + $0x194] ss:$24 sps:$4 sm:$0xff]  }
 0xc03   : > { %v1993_v47 = vadd.f32 1e-05, %v1991_v55  ;;  %v11399_v55 = vld [vmem:[%s15825_s10 + $0x170] ss:$8 sps:$4 sm:$0xff]  }
 0xc05   : > { %12287 = vrsqrt.f32 %v1993_v47  ;;  %v11407_v47 = vld [vmem:[%s15825_s10 + $0x184] ss:$8 sps:$4 sm:$0xff]  }
 0xc0b   : > { %v12286_v57 = vpop.eup %12285 }
 0xc0c   : > { %v1996_v58 = vmul.f32 %v12286_v57, %v13115_v27  ;;  %v1997_v59 = vmul.f32 %v12286_v57, %v13118_v0  ;;  %v11350_v57 = vld [vmem:[%s15823_s8 + $0x1c4] ss:$24 sps:$4 sm:$0xff]  }
 0xc0e   : > { %v2012_v27 = vmul.f32 %v2008_v62, %v1997_v59  ;;  %v2011_v7 = vmul.f32 %v2004_v63, %v1996_v58  ;;  %v11405_v58 = vld [vmem:[%s15825_s10 + $0x180] ss:$8 sps:$4 sm:$0xff]   ;;  %v11413_v59 = vld [vmem:[%s15825_s10 + $0x194] ss:$8 sps:$4 sm:$0xff]  }
 0xc0f   : > { %v12288_v2 = vpop.eup %12287 }
 0xc10   : > { %v1998_v9 = vmul.f32 %v12288_v2, %v13121_v3  ;;  %v1999_v10 = vmul.f32 %v12288_v2, %v13124_v4  ;;  %v2027_v60 = vadd.f32 %v2023_v5, %v2012_v27  ;;  %v2026_v12 = vadd.f32 %v2019_v6, %v2011_v7  ;;  %v11326_v3 = vld [vmem:[%s15823_s8 + $0x44] ss:$24 sps:$4 sm:$0xff]   ;;  %v11357_v4 = vld [vmem:[%s15825_s10 + $0x100] ss:$8 sps:$4 sm:$0xff]  }
 0xc11   : > { %v11419_v2 = vld [vmem:[%s15825_s10 + $0x1a4] ss:$8 sps:$4 sm:$0xff]   ;;  %v11354_v27 = vld [vmem:[%s15823_s8 + $0x220] ss:$24 sps:$4 sm:$0xff]  }
 0xc12   : > { %v2014_v0 = vmul.f32 %v2008_v62, %v1999_v10  ;;  %v2013_v52 = vmul.f32 %v2004_v63, %v1998_v9  ;;  %v11353_v62 = vld [vmem:[%s15823_s8 + $0x1f4] ss:$24 sps:$4 sm:$0xff]   ;;  %v11411_v63 = vld [vmem:[%s15825_s10 + $0x190] ss:$8 sps:$4 sm:$0xff]   ;;  %v11417_v9 = vld [vmem:[%s15825_s10 + $0x1a0] ss:$8 sps:$4 sm:$0xff]  }
 0xc13   : > { %v11425_v10 = vld [vmem:[%s15825_s10 + $0x1b4] ss:$8 sps:$4 sm:$0xff]   ;;  %v11362_v7 = vld [vmem:[%s15825_s10 + $0x4] ss:$8 sps:$4 sm:$0xff]  }
 0xc14   : > { %v2029_v11 = vadd.f32 %v2023_v5, %v2014_v0  ;;  %v2028_v14 = vadd.f32 %v2019_v6, %v2013_v52  ;;  %v11351_v5 = vld [vmem:[%s15823_s8 + $0x1f0] ss:$24 sps:$4 sm:$0xff]   ;;  %v11356_v6 = vld [vmem:[%s15823_s8 + $0x224] ss:$24 sps:$4 sm:$0xff]  }
 0xc15   : > { %v11423_v0 = vld [vmem:[%s15825_s10 + $0x1b0] ss:$8 sps:$4 sm:$0xff]   ;;  %v11431_v52 = vld [vmem:[%s15825_s10 + $0x1c4] ss:$8 sps:$4 sm:$0xff]  }
 0xc16   : > { %v2031_v19 = vpack.c.bf16 %v2029_v11, %v2027_v60  ;;  %v13237_v21 = vpack.c.bf16 %v2028_v14, %v2026_v12  ;;  %v11360_v60 = vld [vmem:[%s15825_s10] ss:$8 sps:$4 sm:$0xff]   ;;  %v11368_v11 = vld [vmem:[%s15825_s10 + $0x14] ss:$8 sps:$4 sm:$0xff]  }
 0xc17   : > { %v11429_v12 = vld [vmem:[%s15825_s10 + $0x1c0] ss:$8 sps:$4 sm:$0xff]   ;;  %v11437_v14 = vld [vmem:[%s15825_s10 + $0x1d4] ss:$8 sps:$4 sm:$0xff]  }
 0xc18   : > { %9556 = vmatprep.mubr.msk.bf16.mxu1 %vm484_vm0, %v2031_v19  ;;  %9557 = vmatprep.mubr.msk.bf16.mxu0 %vm484_vm0, %v2031_v19 }
 0xc19   : > { %2532 = vmatmul.mubr.bf16.vlgmr.msra.gmra.mrb[44].mxu1 %v13237_v21  ;;  %2575 = vmatmul.mubr.bf16.vlgmr.msra.gmra.mrb[20].mxu0 %v13237_v21 }
 0xc1a   : > { %2586 = vmatpush1.bf16.msra.mxu1 %v11321_v20  ;;  %9558 = vmatprep.mubr.msk.bf16.mxu1 %vm484_vm0, %v2031_v19  ;;  %v11366_v19 = vld [vmem:[%s15825_s10 + $0x10] ss:$8 sps:$4 sm:$0xff]   ;;  %v11374_v20 = vld [vmem:[%s15825_s10 + $0x24] ss:$8 sps:$4 sm:$0xff]  }
 0xc1b   : > { %2587 = vmatprep.subr.bf16.mxu1 %v11326_v3  ;;  %3278 = vmatpush1.bf16.msra.mxu0 %v11357_v4  ;;  %v11435_v3 = vld [vmem:[%s15825_s10 + $0x1d0] ss:$8 sps:$4 sm:$0xff]   ;;  %v11380_v4 = vld [vmem:[%s15825_s10 + $0x34] ss:$8 sps:$4 sm:$0xff]  }
 0xc1c   : > { %3279 = vmatprep.subr.bf16.mxu0 %v11365_v22  ;;  %v11378_v22 = vld [vmem:[%s15825_s10 + $0x30] ss:$8 sps:$4 sm:$0xff]  }
 0xc1e   : > { %2588 = vmatpush1.bf16.msra.mxu1 %v11324_v23  ;;  %v11386_v23 = vld [vmem:[%s15825_s10 + $0x44] ss:$8 sps:$4 sm:$0xff]  }
 0xc1f   : > { %2589 = vmatprep.subr.bf16.mxu1 %v11329_v24  ;;  %3280 = vmatpush1.bf16.msra.mxu0 %v11363_v1  ;;  %v11384_v24 = vld [vmem:[%s15825_s10 + $0x40] ss:$8 sps:$4 sm:$0xff]   ;;  %v11392_v1 = vld [vmem:[%s15825_s10 + $0x54] ss:$8 sps:$4 sm:$0xff]  }
 0xc20   : > { %3281 = vmatprep.subr.bf16.mxu0 %v11371_v13  ;;  %v11390_v13 = vld [vmem:[%s15825_s10 + $0x50] ss:$8 sps:$4 sm:$0xff]  }
 0xc22   : > { %2590 = vmatpush1.bf16.msra.mxu1 %v11327_v26  ;;  %v11398_v26 = vld [vmem:[%s15825_s10 + $0x64] ss:$8 sps:$4 sm:$0xff]  }
 0xc23   : > { %2591 = vmatprep.subr.bf16.mxu1 %v11332_v28  ;;  %3282 = vmatpush1.bf16.msra.mxu0 %v11369_v34  ;;  %v11396_v28 = vld [vmem:[%s15825_s10 + $0x60] ss:$8 sps:$4 sm:$0xff]   ;;  %v11404_v34 = vld [vmem:[%s15825_s10 + $0x74] ss:$8 sps:$4 sm:$0xff]  }
 0xc24   : > { %3283 = vmatprep.subr.bf16.mxu0 %v11377_v32  ;;  %v11402_v32 = vld [vmem:[%s15825_s10 + $0x70] ss:$8 sps:$4 sm:$0xff]  }
 0xc26   : > { %2592 = vmatpush1.bf16.msra.mxu1 %v11330_v39  ;;  %v11410_v39 = vld [vmem:[%s15825_s10 + $0x84] ss:$8 sps:$4 sm:$0xff]  }
 0xc27   : > { %2593 = vmatprep.subr.bf16.mxu1 %v11335_v35  ;;  %3284 = vmatpush1.bf16.msra.mxu0 %v11375_v40  ;;  %v11408_v35 = vld [vmem:[%s15825_s10 + $0x80] ss:$8 sps:$4 sm:$0xff]   ;;  %v11416_v40 = vld [vmem:[%s15825_s10 + $0x94] ss:$8 sps:$4 sm:$0xff]  }
 0xc28   : > { %3285 = vmatprep.subr.bf16.mxu0 %v11383_v41  ;;  %v11414_v41 = vld [vmem:[%s15825_s10 + $0x90] ss:$8 sps:$4 sm:$0xff]  }
 0xc2a   : > { %2594 = vmatpush1.bf16.msra.mxu1 %v11333_v29  ;;  %v11422_v29 = vld [vmem:[%s15825_s10 + $0xa4] ss:$8 sps:$4 sm:$0xff]  }
 0xc2b   : > { %2595 = vmatprep.subr.bf16.mxu1 %v11338_v31  ;;  %3286 = vmatpush1.bf16.msra.mxu0 %v11381_v42  ;;  %v11443_v31 = vld [vmem:[%s15825_s10 + $0x1e4] ss:$8 sps:$4 sm:$0xff]   ;;  %v11420_v42 = vld [vmem:[%s15825_s10 + $0xa0] ss:$8 sps:$4 sm:$0xff]  }
 0xc2c   : > { %3287 = vmatprep.subr.bf16.mxu0 %v11389_v43  ;;  %v11441_v43 = vld [vmem:[%s15825_s10 + $0x1e0] ss:$8 sps:$4 sm:$0xff]  }
 0xc2e   : > { %2596 = vmatpush1.bf16.msra.mxu1 %v11336_v37  ;;  %v11428_v37 = vld [vmem:[%s15825_s10 + $0xb4] ss:$8 sps:$4 sm:$0xff]  }
 0xc2f   : > { %2597 = vmatprep.subr.bf16.mxu1 %v11341_v38  ;;  %3288 = vmatpush1.bf16.msra.mxu0 %v11387_v44  ;;  %v11449_v38 = vld [vmem:[%s15825_s10 + $0x1f4] ss:$8 sps:$4 sm:$0xff]   ;;  %v11426_v44 = vld [vmem:[%s15825_s10 + $0xb0] ss:$8 sps:$4 sm:$0xff]  }
 0xc30   : > { %3289 = vmatprep.subr.bf16.mxu0 %v11395_v45  ;;  %v11447_v45 = vld [vmem:[%s15825_s10 + $0x1f0] ss:$8 sps:$4 sm:$0xff]  }
 0xc32   : > { %2598 = vmatpush1.bf16.msra.mxu1 %v11339_v46  ;;  %v11434_v46 = vld [vmem:[%s15825_s10 + $0xc4] ss:$8 sps:$4 sm:$0xff]  }
 0xc33   : > { %2599 = vmatprep.subr.bf16.mxu1 %v11344_v48  ;;  %3290 = vmatpush1.bf16.msra.mxu0 %v11393_v49  ;;  %v11455_v48 = vld [vmem:[%s15825_s10 + $0x204] ss:$8 sps:$4 sm:$0xff]   ;;  %v11432_v49 = vld [vmem:[%s15825_s10 + $0xc0] ss:$8 sps:$4 sm:$0xff]  }
 0xc34   : > { %3291 = vmatprep.subr.bf16.mxu0 %v11401_v50  ;;  %v11440_v50 = vld [vmem:[%s15825_s10 + $0xd4] ss:$8 sps:$4 sm:$0xff]  }
 0xc36   : > { %2600 = vmatpush1.bf16.msra.mxu1 %v11342_v51  ;;  %v11438_v51 = vld [vmem:[%s15825_s10 + $0xd0] ss:$8 sps:$4 sm:$0xff]  }
 0xc37   : > { %2601 = vmatprep.subr.bf16.mxu1 %v11347_v54  ;;  %3292 = vmatpush1.bf16.msra.mxu0 %v11399_v55  ;;  %v11446_v54 = vld [vmem:[%s15825_s10 + $0xe4] ss:$8 sps:$4 sm:$0xff]   ;;  %v11444_v55 = vld [vmem:[%s15825_s10 + $0xe0] ss:$8 sps:$4 sm:$0xff]  }
 0xc38   : > { %3293 = vmatprep.subr.bf16.mxu0 %v11407_v47  ;;  %v11452_v47 = vld [vmem:[%s15825_s10 + $0xf4] ss:$8 sps:$4 sm:$0xff]  }
 0xc3a   : > { %2602 = vmatpush1.bf16.msra.mxu1 %v11345_v56  ;;  %v11450_v56 = vld [vmem:[%s15825_s10 + $0xf0] ss:$8 sps:$4 sm:$0xff]  }
 0xc3b   : > { %2603 = vmatprep.subr.bf16.mxu1 %v11350_v57  ;;  %3294 = vmatpush1.bf16.msra.mxu0 %v11405_v58  ;;  %v13504_v57 = vsub.s32 2, %v12727_v16  ;;  %v13509_v58 = vld [vmem:[%s15824_s9] sm:$0x3f] }
 0xc3c   : > { %3295 = vmatprep.subr.bf16.mxu0 %v11413_v59  ;;  %v13512_v59 = vsub.s32 3, %v12727_v16 }
 0xc3e   : > { %2604 = vmatpush1.bf16.msra.mxu1 %v11348_v61  ;;  %v2109_v61 = vrot.slane %v13509_v58, %v12733_v18 }
 0xc3f   : > { %2605 = vmatprep.subr.bf16.mxu1 %v11353_v62  ;;  %3296 = vmatpush1.bf16.msra.mxu0 %v11411_v63  ;;  %v2117_v62 = vrot.slane %v13509_v58, %v13504_v57  ;;  %v2113_v63 = vrot.slane %v13509_v58, %v12730_v17 }
 0xc40   : > { %3297 = vmatprep.subr.bf16.mxu0 %v11419_v2  ;;  %v2121_v2 = vrot.slane %v13509_v58, %v13512_v59 }
 0xc42   : > { %2606 = vmatpush1.bf16.msra.mxu1 %v11351_v5 }
 0xc43   : > { %2607 = vmatprep.subr.bf16.mxu1 %v11356_v6  ;;  %3298 = vmatpush1.bf16.msra.mxu0 %v11417_v9 }
 0xc44   : > { %3299 = vmatprep.subr.bf16.mxu0 %v11425_v10 }
 0xc46   : > { %2608 = vmatpush1.bf16.msra.mxu1 %v11354_v27 }
 0xc47   : > { %3234 = vmatprep.subr.bf16.mxu1 %v11362_v7  ;;  %3300 = vmatpush1.bf16.msra.mxu0 %v11423_v0 }
 0xc48   : > { %3301 = vmatprep.subr.bf16.mxu0 %v11431_v52 }
 0xc49   : > { %2618 = vmatmul.mubr.bf16.vlgmr.msra.gmra.mrb[48].mxu1 %v13237_v21  ;;  %v11372_v21 = vld [vmem:[%s15825_s10 + $0x20] ss:$8 sps:$4 sm:$0xff]  }
 0xc4a   : > { %3235 = vmatpush1.bf16.msra.mxu1 %v11360_v60 }
 0xc4b   : > { %3236 = vmatprep.subr.bf16.mxu1 %v11368_v11  ;;  %3302 = vmatpush1.bf16.msra.mxu0 %v11429_v12 }
 0xc4c   : > { %3303 = vmatprep.subr.bf16.mxu0 %v11437_v14 }
 0xc4e   : > { %3237 = vmatpush1.bf16.msra.mxu1 %v11366_v19 }
 0xc4f   : > { %3238 = vmatprep.subr.bf16.mxu1 %v11374_v20  ;;  %3304 = vmatpush1.bf16.msra.mxu0 %v11435_v3 }
 0xc50   : > { %3305 = vmatprep.subr.bf16.mxu0 %v11443_v31  ;;  %v11461_v31 = vld [vmem:[%s15825_s10 + $0x224] ss:$8 sps:$4 sm:$0xff]  }
 0xc52   : > { %3239 = vmatpush1.bf16.msra.mxu1 %v11372_v21 }
 0xc53   : > { %3240 = vmatprep.subr.bf16.mxu1 %v11380_v4  ;;  %3306 = vmatpush1.bf16.msra.mxu0 %v11441_v43  ;;  %v11464_v43 = vld [vmem:[%s15825_s10 + $0x234] ss:$8 sps:$4 sm:$0xff]  }
 0xc54   : > { %3307 = vmatprep.subr.bf16.mxu0 %v11449_v38  ;;  %v11467_v38 = vld [vmem:[%s15825_s10 + $0x244] ss:$8 sps:$4 sm:$0xff]  }
 0xc56   : > { %3241 = vmatpush1.bf16.msra.mxu1 %v11378_v22 }
 0xc57   : > { %3242 = vmatprep.subr.bf16.mxu1 %v11386_v23  ;;  %3308 = vmatpush1.bf16.msra.mxu0 %v11447_v45  ;;  %v11470_v45 = vld [vmem:[%s15825_s10 + $0x254] ss:$8 sps:$4 sm:$0xff]  }
 0xc58   : > { %3320 = vmatprep.subr.bf16.mxu0 %v11455_v48  ;;  %v11473_v48 = vld [vmem:[%s15825_s10 + $0x264] ss:$8 sps:$4 sm:$0xff]  }
 0xc5a   : > { %3243 = vmatpush1.bf16.msra.mxu1 %v11384_v24 }
 0xc5b   : > { %3244 = vmatprep.subr.bf16.mxu1 %v11392_v1 }
 0xc5e   : > { %3245 = vmatpush1.bf16.msra.mxu1 %v11390_v13 }
 0xc5f   : > { %3246 = vmatprep.subr.bf16.mxu1 %v11398_v26 }
 0xc62   : > { %3247 = vmatpush1.bf16.msra.mxu1 %v11396_v28 }
 0xc63   : > { %3248 = vmatprep.subr.bf16.mxu1 %v11404_v34 }
 0xc66   : > { %3249 = vmatpush1.bf16.msra.mxu1 %v11402_v32 }
 0xc67   : > { %3250 = vmatprep.subr.bf16.mxu1 %v11410_v39 }
 0xc6a   : > { %3251 = vmatpush1.bf16.msra.mxu1 %v11408_v35 }
 0xc6b   : > { %3252 = vmatprep.subr.bf16.mxu1 %v11416_v40  ;;  %v11453_v40 = vld [vmem:[%s15825_s10 + $0x200] ss:$8 sps:$4 sm:$0xff]  }
 0xc6e   : > { %3253 = vmatpush1.bf16.msra.mxu1 %v11414_v41  ;;  %v11458_v41 = vld [vmem:[%s15825_s10 + $0x214] ss:$8 sps:$4 sm:$0xff]  }
 0xc6f   : > { %3254 = vmatprep.subr.bf16.mxu1 %v11422_v29  ;;  %v11456_v29 = vld [vmem:[%s15825_s10 + $0x210] ss:$8 sps:$4 sm:$0xff]  }
 0xc72   : > { %3255 = vmatpush1.bf16.msra.mxu1 %v11420_v42  ;;  %v11459_v42 = vld [vmem:[%s15825_s10 + $0x220] ss:$8 sps:$4 sm:$0xff]  }
 0xc73   : > { %3256 = vmatprep.subr.bf16.mxu1 %v11428_v37  ;;  %v11462_v37 = vld [vmem:[%s15825_s10 + $0x230] ss:$8 sps:$4 sm:$0xff]  }
 0xc76   : > { %3257 = vmatpush1.bf16.msra.mxu1 %v11426_v44  ;;  %v11465_v44 = vld [vmem:[%s15825_s10 + $0x240] ss:$8 sps:$4 sm:$0xff]  }
 0xc77   : > { %3258 = vmatprep.subr.bf16.mxu1 %v11434_v46  ;;  %v11468_v46 = vld [vmem:[%s15825_s10 + $0x250] ss:$8 sps:$4 sm:$0xff]  }
 0xc7a   : > { %3259 = vmatpush1.bf16.msra.mxu1 %v11432_v49  ;;  %v11471_v49 = vld [vmem:[%s15825_s10 + $0x260] ss:$8 sps:$4 sm:$0xff]  }
 0xc7b   : > { %3260 = vmatprep.subr.bf16.mxu1 %v11440_v50  ;;  %v11476_v50 = vld [vmem:[%s15825_s10 + $0x274] ss:$8 sps:$4 sm:$0xff]  }
 0xc7e   : > { %3261 = vmatpush1.bf16.msra.mxu1 %v11438_v51  ;;  %v11474_v51 = vld [vmem:[%s15825_s10 + $0x270] ss:$8 sps:$4 sm:$0xff]  }
 0xc7f   : > { %3262 = vmatprep.subr.bf16.mxu1 %v11446_v54  ;;  %v11479_v54 = vld [vmem:[%s15825_s10 + $0x284] ss:$8 sps:$4 sm:$0xff]  }
 0xc82   : > { %3263 = vmatpush1.bf16.msra.mxu1 %v11444_v55  ;;  %v11477_v55 = vld [vmem:[%s15825_s10 + $0x280] ss:$8 sps:$4 sm:$0xff]  }
 0xc83   : > { %3264 = vmatprep.subr.bf16.mxu1 %v11452_v47  ;;  %v11482_v47 = vld [vmem:[%s15825_s10 + $0x294] ss:$8 sps:$4 sm:$0xff]  }
 0xc86   : > { %3265 = vmatpush1.bf16.msra.mxu1 %v11450_v56  ;;  %v13577_v56 = vsub.s32 4, %v12727_v16 }
 0xcec   : > { %v2533_v5 = vpop.f32.mrb[44].mxu1  ;;  %v2576_v6 = vpop.f32.mrb[20].mxu0 }
 0xced   : > { %v2534_v9 = vadd.f32 %v2533_v5, %v2109_v61  ;;  %v2577_v10 = vadd.f32 %v2576_v6, %v2117_v62  ;;  %v2535_v27 = vpop.f32.mrb[45].mxu1  ;;  %v2578_v7 = vpop.f32.mrb[21].mxu0 }
 0xcee   : > { %v2536_v0 = vadd.f32 %v2535_v27, %v2113_v63  ;;  %v2579_v52 = vadd.f32 %v2578_v7, %v2121_v2  ;;  %v2537_v60 = vpop.f32.mrb[46].mxu1  ;;  %v2580_v11 = vpop.f32.mrb[22].mxu0  ;;  %v11488_v27 = vld [vmem:[%s15825_s10 + $0x2b4] ss:$8 sps:$4 sm:$0xff]  }
 0xcef   : > { %v2538_v12 = vadd.f32 %v2537_v60, %v2109_v61  ;;  %v2581_v14 = vadd.f32 %v2580_v11, %v2117_v62  ;;  %v2539_v19 = vpop.f32.mrb[47].mxu1  ;;  %v2582_v20 = vpop.f32.mrb[23].mxu0  ;;  %v2628_v4 = vmax.f32 %v2534_v9, 0.0  ;;  %v2630_v22 = vmax.f32 %v2577_v10, 0.0  ;;  %v11480_v62 = vld [vmem:[%s15825_s10 + $0x290] ss:$8 sps:$4 sm:$0xff]  }
 0xcf0   : > { %v2540_v3 = vadd.f32 %v2539_v19, %v2113_v63  ;;  %v2583_v21 = vadd.f32 %v2582_v20, %v2121_v2  ;;  %v2629_v1 = vmax.f32 %v2536_v0, 0.0  ;;  %v2631_v13 = vmax.f32 %v2579_v52, 0.0  ;;  %v11485_v2 = vld [vmem:[%s15825_s10 + $0x2a4] ss:$8 sps:$4 sm:$0xff]  }
 0xcf1   : > { %v2634_v23 = vmax.f32 %v2538_v12, 0.0  ;;  %v2636_v24 = vmax.f32 %v2581_v14, 0.0  ;;  %v13580_v61 = vsub.s32 5, %v12727_v16  ;;  %v2125_v63 = vrot.slane %v13509_v58, %v13577_v56  ;;  %v11483_v16 = vld [vmem:[%s15825_s10 + $0x2a0] ss:$8 sps:$4 sm:$0xff]  }
 0xcf2   : > { %v2635_v26 = vmax.f32 %v2540_v3, 0.0  ;;  %v2637_v28 = vmax.f32 %v2583_v21, 0.0  ;;  %v11491_v19 = vld [vmem:[%s15825_s10 + $0x2c4] ss:$8 sps:$4 sm:$0xff]  }
 0xcf3   : > { %v2640_v34 = vpack.c.bf16 %v2634_v23, %v2628_v4  ;;  %v2642_v32 = vpack.c.bf16 %v2636_v24, %v2630_v22  ;;  %v2129_v5 = vrot.slane %v13509_v58, %v13580_v61  ;;  %v11486_v58 = vld [vmem:[%s15825_s10 + $0x2b0] ss:$8 sps:$4 sm:$0xff]   ;;  %v11489_v22 = vld [vmem:[%s15825_s10 + $0x2c0] ss:$8 sps:$4 sm:$0xff]   ;;  %v11494_v23 = vld [vmem:[%s15825_s10 + $0x2d4] ss:$8 sps:$4 sm:$0xff]  }
 0xcf4   : > { %v2641_v39 = vpack.c.bf16 %v2635_v26, %v2629_v1  ;;  %v2643_v35 = vpack.c.bf16 %v2637_v28, %v2631_v13  ;;  %v11492_v24 = vld [vmem:[%s15825_s10 + $0x2d0] ss:$8 sps:$4 sm:$0xff]   ;;  %v11497_v1 = vld [vmem:[%s15825_s10 + $0x2e4] ss:$8 sps:$4 sm:$0xff]   ;;  %v11495_v13 = vld [vmem:[%s15825_s10 + $0x2e0] ss:$8 sps:$4 sm:$0xff]  }
 0xcf5   : > { %v11500_v26 = vld [vmem:[%s15825_s10 + $0x2f4] ss:$8 sps:$4 sm:$0xff]   ;;  %v11498_v28 = vld [vmem:[%s15825_s10 + $0x2f0] ss:$8 sps:$4 sm:$0xff]  }
 0xcf6   : > { %3266 = vmatprep.mubr.bf16.mxu1 %v2641_v39  ;;  %3309 = vmatprep.mubr.bf16.mxu0 %v2643_v35 }
 0xcf7   : > { %3267 = vmatmul.mubr.bf16.vlgmr.msra.gmra.mrb[52].mxu1 %v2640_v34  ;;  %3310 = vmatmul.mubr.bf16.vlgmr.msra.gmra.mrb[24].mxu0 %v2642_v32 }
 0xcf8   : > { %3321 = vmatpush1.bf16.msra.mxu0 %v11453_v40  ;;  %v2742_v40 = vld [vmem:[%s15826_s11] sm:$0x3] }
 0xcf9   : > { %3322 = vmatprep.subr.bf16.mxu0 %v11458_v41  ;;  %v2747_v41 = vrot.slane %v2742_v40, %v12733_v18 }
 0xcfc   : > { %3323 = vmatpush1.bf16.msra.mxu0 %v11456_v29  ;;  %v2751_v29 = vrot.slane %v2742_v40, %v12730_v17  ;;  %v11527_v40 = vld [vmem:[%s15818_s3 + $0x324] ss:$20 sps:$4 sm:$0xff]  }
 0xcfd   : > { %3324 = vmatprep.subr.bf16.mxu0 %v11461_v31 }
 0xd00   : > { %3325 = vmatpush1.bf16.msra.mxu0 %v11459_v42 }
 0xd01   : > { %3326 = vmatprep.subr.bf16.mxu0 %v11464_v43 }
 0xd04   : > { %3327 = vmatpush1.bf16.msra.mxu0 %v11462_v37 }
 0xd05   : > { %3328 = vmatprep.subr.bf16.mxu0 %v11467_v38 }
 0xd08   : > { %3329 = vmatpush1.bf16.msra.mxu0 %v11465_v44 }
 0xd09   : > { %3330 = vmatprep.subr.bf16.mxu0 %v11470_v45 }
 0xd0c   : > { %3331 = vmatpush1.bf16.msra.mxu0 %v11468_v46 }
 0xd0d   : > { %3332 = vmatprep.subr.bf16.mxu0 %v11473_v48 }
 0xd10   : > { %3333 = vmatpush1.bf16.msra.mxu0 %v11471_v49 }
 0xd11   : > { %3334 = vmatprep.subr.bf16.mxu0 %v11476_v50 }
 0xd14   : > { %3335 = vmatpush1.bf16.msra.mxu0 %v11474_v51 }
 0xd15   : > { %3336 = vmatprep.subr.bf16.mxu0 %v11479_v54 }
 0xd18   : > { %3337 = vmatpush1.bf16.msra.mxu0 %v11477_v55 }
 0xd19   : > { %3338 = vmatprep.subr.bf16.mxu0 %v11482_v47 }
 0xd1c   : > { %v2619_v6 = vpop.f32.mrb[48].mxu1  ;;  %3339 = vmatpush1.bf16.msra.mxu0 %v11480_v62 }
 0xd1d   : > { %v2620_v9 = vadd.f32 %v2619_v6, %v2125_v63  ;;  %v2621_v10 = vpop.f32.mrb[49].mxu1  ;;  %3340 = vmatprep.subr.bf16.mxu0 %v11485_v2  ;;  %v11506_v6 = vld [vmem:[%s15818_s3 + $0x20c] ss:$20 sps:$4 sm:$0xff]  }
 0xd1e   : > { %v2622_v7 = vadd.f32 %v2621_v10, %v2129_v5  ;;  %v2623_v0 = vpop.f32.mrb[50].mxu1  ;;  %v11512_v10 = vld [vmem:[%s15818_s3 + $0x25c] ss:$20 sps:$4 sm:$0xff]  }
 0xd1f   : > { %v2624_v52 = vadd.f32 %v2623_v0, %v2125_v63  ;;  %v2625_v60 = vpop.f32.mrb[51].mxu1  ;;  %v2632_v12 = vmax.f32 %v2620_v9, 0.0  ;;  %v11507_v9 = vld [vmem:[%s15818_s3 + $0x230] ss:$20 sps:$4 sm:$0xff]   ;;  %v11513_v0 = vld [vmem:[%s15818_s3 + $0x280] ss:$20 sps:$4 sm:$0xff]  }
 0xd20   : > { %v2626_v11 = vadd.f32 %v2625_v60, %v2129_v5  ;;  %3341 = vmatpush1.bf16.msra.mxu0 %v11483_v16  ;;  %v2633_v20 = vmax.f32 %v2622_v7, 0.0  ;;  %v11509_v16 = vld [vmem:[%s15818_s3 + $0x234] ss:$20 sps:$4 sm:$0xff]   ;;  %v11515_v7 = vld [vmem:[%s15818_s3 + $0x284] ss:$20 sps:$4 sm:$0xff]  }
 0xd21   : > { %v2638_v14 = vmax.f32 %v2624_v52, 0.0  ;;  %3342 = vmatprep.subr.bf16.mxu0 %v11488_v27  ;;  %v11510_v27 = vld [vmem:[%s15818_s3 + $0x258] ss:$20 sps:$4 sm:$0xff]   ;;  %v11516_v60 = vld [vmem:[%s15818_s3 + $0x2a8] ss:$20 sps:$4 sm:$0xff]  }
 0xd22   : > { %v2639_v3 = vmax.f32 %v2626_v11, 0.0  ;;  %v11518_v52 = vld [vmem:[%s15818_s3 + $0x2ac] ss:$20 sps:$4 sm:$0xff]  }
 0xd23   : > { %v2644_v21 = vpack.c.bf16 %v2638_v14, %v2632_v12 }
 0xd24   : > { %v2645_v4 = vpack.c.bf16 %v2639_v3, %v2633_v20  ;;  %3343 = vmatpush1.bf16.msra.mxu0 %v11486_v58 }
 0xd25   : > { %3344 = vmatprep.subr.bf16.mxu0 %v11491_v19 }
 0xd26   : > { %3352 = vmatprep.mubr.bf16.mxu0 %v2645_v4 }
 0xd28   : > { %3345 = vmatpush1.bf16.msra.mxu0 %v11489_v22 }
 0xd29   : > { %3346 = vmatprep.subr.bf16.mxu0 %v11494_v23 }
 0xd2c   : > { %3347 = vmatpush1.bf16.msra.mxu0 %v11492_v24 }
 0xd2d   : > { %3348 = vmatprep.subr.bf16.mxu0 %v11497_v1 }
 0xd30   : > { %3349 = vmatpush1.bf16.msra.mxu0 %v11495_v13 }
 0xd31   : > { %3350 = vmatprep.subr.bf16.mxu0 %v11500_v26 }
 0xd34   : > { %3351 = vmatpush1.bf16.msra.mxu0 %v11498_v28 }
 0xd35   : > { %10940 = vmatprep.subr.bf16.mxu0 %v12422_v53 }
 0xd37   : > { %3353 = vmatmul.mubr.bf16.vlgmr.msra.gmra.mrb[24].mxu0 %v2644_v21 }
 0xd38   : > { %10942 = vmatprep.mubr.msk.bf16.mxu0 %vm12423_vm1, %v12422_v53 }
 0xdca   : > { %v3268_v34 = vpop.f32.mrb[52].mxu1 }
 0xdcb   : > { %v3270_v32 = vpop.f32.mrb[53].mxu1  ;;  %v3269_v31 = vadd.f32 %v3268_v34, %v2747_v41  ;;  %v11521_v34 = vld [vmem:[%s15818_s3 + $0x2d4] ss:$20 sps:$4 sm:$0xff]  }
 0xdcc   : > { %v3272_v39 = vpop.f32.mrb[54].mxu1  ;;  %v3271_v42 = vadd.f32 %v3270_v32, %v2751_v29  ;;  %v11519_v32 = vld [vmem:[%s15818_s3 + $0x2d0] ss:$20 sps:$4 sm:$0xff]  }
 0xdcd   : > { %v3274_v35 = vpop.f32.mrb[55].mxu1  ;;  %v3273_v37 = vadd.f32 %v3272_v39, %v2747_v41  ;;  %v11524_v39 = vld [vmem:[%s15818_s3 + $0x2fc] ss:$20 sps:$4 sm:$0xff]   ;;  %v11525_v41 = vld [vmem:[%s15818_s3 + $0x320] ss:$20 sps:$4 sm:$0xff]  }
 0xdce   : > { %v3275_v45 = vadd.f32 %v3274_v35, %v2751_v29  ;;  %v11522_v35 = vld [vmem:[%s15818_s3 + $0x2f8] ss:$20 sps:$4 sm:$0xff]  }
 0xdcf   : > { %v11530_v29 = vld [vmem:[%s15818_s3 + $0x34c] ss:$20 sps:$4 sm:$0xff]  }
 0xe0a   : > { %v3354_v43 = vpop.f32.mrb[24].mxu0 }
 0xe0b   : > { %v11049_v38 = vadd.f32 %v3354_v43, %v3269_v31  ;;  %v3356_v44 = vpop.f32.mrb[25].mxu0  ;;  %v11528_v31 = vld [vmem:[%s15818_s3 + $0x348] ss:$20 sps:$4 sm:$0xff]   ;;  %v11531_v43 = vld [vmem:[%s15818_s3 + $0x370] ss:$20 sps:$4 sm:$0xff]  }
 0xe0c   : > { %v11051_v46 = vadd.f32 %v3356_v44, %v3271_v42  ;;  %v3358_v48 = vpop.f32.mrb[26].mxu0  ;;  %v11533_v42 = vld [vmem:[%s15818_s3 + $0x374] ss:$20 sps:$4 sm:$0xff]   ;;  %v11539_v44 = vld [vmem:[%s15818_s3 + $0x1ec] ss:$20 sps:$4 sm:$0xff]  }
 0xe0d   : > { %v11053_v49 = vadd.f32 %v3358_v48, %v3273_v37  ;;  %v3360_v50 = vpop.f32.mrb[27].mxu0  ;;  %v13637_v55 = vadd.f32 %v11049_v38, %v13036_v30  ;;  %v11501_v30 = vld [vmem:[%s15818_s3 + $0x1e0] ss:$20 sps:$4 sm:$0xff]   ;;  %v11536_v37 = vld [vmem:[%s15818_s3 + $0x39c] ss:$20 sps:$4 sm:$0xff]  }
 0xe0e   : > { %v13634_v51 = vadd.f32 %v11051_v46, %v13033_v25  ;;  %v11055_v54 = vadd.f32 %v3360_v50, %v3275_v45  ;;  %v11534_v38 = vld [vmem:[%s15818_s3 + $0x398] ss:$20 sps:$4 sm:$0xff]  }
 0xe0f   : > { %v13648_v5 = vadd.f32 %v11053_v49, %v13042_v36  ;;  %v11504_v36 = vld [vmem:[%s15818_s3 + $0x208] ss:$20 sps:$4 sm:$0xff]  }
 0xe10   : > { %v13640_v47 = vadd.f32 %v11055_v54, %v13038_v33  ;;  %v3371_v62 = vsel %vm484_vm0, %v13634_v51, 0.0  ;;  %v11503_v33 = vld [vmem:[%s15818_s3 + $0x1e4] ss:$20 sps:$4 sm:$0xff]  }
 0xe11   : > { %v3372_v63 = vadd.f32 %v3371_v62, %v13637_v55  ;;  %3827 = vmatprep.subr.bf16.mxu1 %v11503_v33  ;;  %v9655_v62 = vld [vmem:[%s15816_s1 + $0x2] sm:$0x3] }
 0xe12   : > { %v3375_v2 = vsel %vm484_vm0, %v13640_v47, 0.0  ;;  %3828 = vmatpush1.bf16.msra.mxu1 %v11501_v30  ;;  %v9656_v30 = vld [vmem:[%s15817_s2 + $0x2] sm:$0x3]  ;;  %v3415_v33 = vrot.slane %v9655_v62, %v12730_v17 }
 0xe13   : > { %3373 = vadd.xlane.f32.xlu0 %v3372_v63  ;;  %v3376_v25 = vadd.f32 %v3375_v2, %v13648_v5  ;;  %3829 = vmatprep.subr.bf16.mxu1 %v11506_v6  ;;  %v3411_v6 = vrot.slane %v9655_v62, %v12733_v18  ;;  %v11579_v62 = vld [vmem:[%s15818_s3 + $0x2e0] ss:$20 sps:$4 sm:$0xff]  }
 0xe16   : > { %3830 = vmatpush1.bf16.msra.mxu1 %v11504_v36 }
 0xe17   : > { %3377 = vadd.xlane.f32.xlu0 %v3376_v25  ;;  %3831 = vmatprep.subr.bf16.mxu1 %v11509_v16  ;;  %v3430_v16 = vrot.slane %v9656_v30, %v12730_v17 }
 0xe1a   : > { %3832 = vmatpush1.bf16.msra.mxu1 %v11507_v9  ;;  %v3426_v9 = vrot.slane %v9656_v30, %v12733_v18  ;;  %v11583_v30 = vld [vmem:[%s15818_s3 + $0x380] ss:$20 sps:$4 sm:$0xff]  }
 0xe1b   : > { %3833 = vmatprep.subr.bf16.mxu1 %v11512_v10 }
 0xe1e   : > { %3834 = vmatpush1.bf16.msra.mxu1 %v11510_v27 }
 0xe1f   : > { %3835 = vmatprep.subr.bf16.mxu1 %v11515_v7 }
 0xe22   : > { %3836 = vmatpush1.bf16.msra.mxu1 %v11513_v0 }
 0xe23   : > { %3837 = vmatprep.subr.bf16.mxu1 %v11518_v52 }
 0xe26   : > { %3838 = vmatpush1.bf16.msra.mxu1 %v11516_v60 }
 0xe27   : > { %3839 = vmatprep.subr.bf16.mxu1 %v11521_v34  ;;  %v11552_v34 = vld [vmem:[%s15818_s3 + $0x2b0] ss:$20 sps:$4 sm:$0xff]  }
 0xe2a   : > { %3840 = vmatpush1.bf16.msra.mxu1 %v11519_v32  ;;  %v11557_v32 = vld [vmem:[%s15818_s3 + $0x2dc] ss:$20 sps:$4 sm:$0xff]  }
 0xe2b   : > { %3841 = vmatprep.subr.bf16.mxu1 %v11524_v39  ;;  %v11555_v39 = vld [vmem:[%s15818_s3 + $0x2d8] ss:$20 sps:$4 sm:$0xff]  }
 0xe2e   : > { %3842 = vmatpush1.bf16.msra.mxu1 %v11522_v35  ;;  %v11560_v35 = vld [vmem:[%s15818_s3 + $0x304] ss:$20 sps:$4 sm:$0xff]  }
 0xe2f   : > { %3843 = vmatprep.subr.bf16.mxu1 %v11527_v40  ;;  %v11558_v40 = vld [vmem:[%s15818_s3 + $0x300] ss:$20 sps:$4 sm:$0xff]  }
 0xe32   : > { %3844 = vmatpush1.bf16.msra.mxu1 %v11525_v41  ;;  %v11563_v41 = vld [vmem:[%s15818_s3 + $0x32c] ss:$20 sps:$4 sm:$0xff]  }
 0xe33   : > { %3845 = vmatprep.subr.bf16.mxu1 %v11530_v29  ;;  %v11561_v29 = vld [vmem:[%s15818_s3 + $0x328] ss:$20 sps:$4 sm:$0xff]  }
 0xe36   : > { %3846 = vmatpush1.bf16.msra.mxu1 %v11528_v31  ;;  %v11566_v31 = vld [vmem:[%s15818_s3 + $0x354] ss:$20 sps:$4 sm:$0xff]  }
 0xe37   : > { %3847 = vmatprep.subr.bf16.mxu1 %v11533_v42  ;;  %v11564_v42 = vld [vmem:[%s15818_s3 + $0x350] ss:$20 sps:$4 sm:$0xff]  }
 0xe3a   : > { %3848 = vmatpush1.bf16.msra.mxu1 %v11531_v43  ;;  %v11569_v43 = vld [vmem:[%s15818_s3 + $0x37c] ss:$20 sps:$4 sm:$0xff]  }
 0xe3b   : > { %3849 = vmatprep.subr.bf16.mxu1 %v11536_v37  ;;  %v11567_v37 = vld [vmem:[%s15818_s3 + $0x378] ss:$20 sps:$4 sm:$0xff]  }
 0xe3e   : > { %3850 = vmatpush1.bf16.msra.mxu1 %v11534_v38  ;;  %v11572_v38 = vld [vmem:[%s15818_s3 + $0x3a4] ss:$20 sps:$4 sm:$0xff]  }
 0xe3f   : > { %3870 = vmatprep.subr.bf16.mxu1 %v11539_v44  ;;  %v11570_v44 = vld [vmem:[%s15818_s3 + $0x3a0] ss:$20 sps:$4 sm:$0xff]  }
 0xea0   : > { %v3374_v11 = vpop.xlane.xlu0 %3373 }
 0xea1   : > { %v3379_v58 = vmul.f32 0.0052083335, %v3374_v11 }
 0xea3   : > { %v3381_v12 = vsub.f32 %v13637_v55, %v3379_v58  ;;  %v3382_v14 = vsub.f32 %v13634_v51, %v3379_v58 }
 0xea4   : > { %v3378_v19 = vpop.xlane.xlu0 %3377 }
 0xea5   : > { %v3380_v20 = vmul.f32 0.0052083335, %v3378_v19  ;;  %v3385_v3 = vmul.f32 %v3381_v12, %v3381_v12  ;;  %v3386_v21 = vmul.f32 %v3382_v14, %v3382_v14 }
 0xea7   : > { %v3383_v4 = vsub.f32 %v13648_v5, %v3380_v20  ;;  %v3384_v22 = vsub.f32 %v13640_v47, %v3380_v20  ;;  %v3389_v23 = vsel %vm484_vm0, %v3386_v21, 0.0  ;;  %v11537_v20 = vld [vmem:[%s15818_s3 + $0x1e8] ss:$20 sps:$4 sm:$0xff]  }
 0xea8   : > { %v3390_v24 = vadd.f32 %v3389_v23, %v3385_v3  ;;  %v11542_v21 = vld [vmem:[%s15818_s3 + $0x214] ss:$20 sps:$4 sm:$0xff]   ;;  %v11543_v23 = vld [vmem:[%s15818_s3 + $0x238] ss:$20 sps:$4 sm:$0xff]  }
 0xea9   : > { %v3387_v1 = vmul.f32 %v3383_v4, %v3383_v4  ;;  %v3388_v13 = vmul.f32 %v3384_v22, %v3384_v22 }
 0xeaa   : > { %3391 = vadd.xlane.f32.xlu0 %v3390_v24  ;;  %v11548_v24 = vld [vmem:[%s15818_s3 + $0x264] ss:$20 sps:$4 sm:$0xff]  }
 0xeab   : > { %v3393_v26 = vsel %vm484_vm0, %v3388_v13, 0.0  ;;  %v11551_v13 = vld [vmem:[%s15818_s3 + $0x28c] ss:$20 sps:$4 sm:$0xff]  }
 0xeac   : > { %v3394_v28 = vadd.f32 %v3393_v26, %v3387_v1  ;;  %v11546_v1 = vld [vmem:[%s15818_s3 + $0x260] ss:$20 sps:$4 sm:$0xff]   ;;  %v11549_v26 = vld [vmem:[%s15818_s3 + $0x288] ss:$20 sps:$4 sm:$0xff]  }
 0xeae   : > { %3395 = vadd.xlane.f32.xlu0 %v3394_v28  ;;  %v11554_v28 = vld [vmem:[%s15818_s3 + $0x2b4] ss:$20 sps:$4 sm:$0xff]  }
 0xf37   : > { %v3392_v45 = vpop.xlane.xlu0 %3391 }
 0xf38   : > { %v3397_v46 = vmul.f32 0.0052083335, %v3392_v45  ;;  %v11573_v45 = vld [vmem:[%s15818_s3 + $0x1f0] ss:$20 sps:$4 sm:$0xff]  }
 0xf3a   : > { %v3399_v48 = vadd.f32 1e-05, %v3397_v46  ;;  %v11574_v46 = vld [vmem:[%s15818_s3 + $0x218] ss:$20 sps:$4 sm:$0xff]  }
 0xf3b   : > { %v3396_v49 = vpop.xlane.xlu0 %3395 }
 0xf3c   : > { %12289 = vrsqrt.f32 %v3399_v48  ;;  %v3398_v50 = vmul.f32 0.0052083335, %v3396_v49  ;;  %v11575_v48 = vld [vmem:[%s15818_s3 + $0x240] ss:$20 sps:$4 sm:$0xff]   ;;  %v11576_v49 = vld [vmem:[%s15818_s3 + $0x268] ss:$20 sps:$4 sm:$0xff]  }
 0xf3e   : > { %v3400_v54 = vadd.f32 1e-05, %v3398_v50  ;;  %v11577_v50 = vld [vmem:[%s15818_s3 + $0x290] ss:$20 sps:$4 sm:$0xff]  }
 0xf40   : > { %12291 = vrsqrt.f32 %v3400_v54  ;;  %v11578_v54 = vld [vmem:[%s15818_s3 + $0x2b8] ss:$20 sps:$4 sm:$0xff]  }
 0xf46   : > { %v12290_v63 = vpop.eup %12289 }
 0xf47   : > { %v3403_v2 = vmul.f32 %v12290_v63, %v3381_v12  ;;  %v3404_v25 = vmul.f32 %v12290_v63, %v3382_v14  ;;  %v11580_v63 = vld [vmem:[%s15818_s3 + $0x308] ss:$20 sps:$4 sm:$0xff]  }
 0xf49   : > { %v3419_v7 = vmul.f32 %v3415_v33, %v3404_v25  ;;  %v3418_v0 = vmul.f32 %v3411_v6, %v3403_v2  ;;  %v11581_v2 = vld [vmem:[%s15818_s3 + $0x330] ss:$20 sps:$4 sm:$0xff]   ;;  %v11582_v25 = vld [vmem:[%s15818_s3 + $0x358] ss:$20 sps:$4 sm:$0xff]  }
 0xf4a   : > { %v12292_v36 = vpop.eup %12291 }
 0xf4b   : > { %v3405_v10 = vmul.f32 %v12292_v36, %v3383_v4  ;;  %v3406_v27 = vmul.f32 %v12292_v36, %v3384_v22  ;;  %v3434_v11 = vadd.f32 %v3430_v16, %v3419_v7  ;;  %v3433_v12 = vadd.f32 %v3426_v9, %v3418_v0  ;;  %v11540_v4 = vld [vmem:[%s15818_s3 + $0x210] ss:$20 sps:$4 sm:$0xff]  }
 0xf4c   : > { %v11545_v22 = vld [vmem:[%s15818_s3 + $0x23c] ss:$20 sps:$4 sm:$0xff]  }
 0xf4d   : > { %v3421_v52 = vmul.f32 %v3415_v33, %v3406_v27  ;;  %v3420_v60 = vmul.f32 %v3411_v6, %v3405_v10  ;;  %v11584_v33 = vld [vmem:[%s15818_s3 + $0x3a8] ss:$20 sps:$4 sm:$0xff]  }
 0xf4f   : > { %v3436_v58 = vadd.f32 %v3430_v16, %v3421_v52  ;;  %v3435_v14 = vadd.f32 %v3426_v9, %v3420_v60 }
 0xf51   : > { %v3438_v19 = vpack.c.bf16 %v3436_v58, %v3434_v11  ;;  %v13745_v3 = vpack.c.bf16 %v3435_v14, %v3433_v12 }
 0xf53   : > { %9789 = vmatprep.mubr.msk.bf16.mxu1 %vm484_vm0, %v3438_v19 }
 0xf54   : > { %3860 = vmatmul.mubr.bf16.vlgmr.msra.gmra.mrb[56].mxu1 %v13745_v3 }
 0xf55   : > { %3871 = vmatpush1.bf16.msra.mxu1 %v11537_v20  ;;  %9790 = vmatprep.mubr.msk.bf16.mxu1 %vm484_vm0, %v3438_v19 }
 0xf56   : > { %3872 = vmatprep.subr.bf16.mxu1 %v11542_v21 }
 0xf59   : > { %3873 = vmatpush1.bf16.msra.mxu1 %v11540_v4 }
 0xf5a   : > { %3874 = vmatprep.subr.bf16.mxu1 %v11545_v22 }
 0xf5d   : > { %3875 = vmatpush1.bf16.msra.mxu1 %v11543_v23 }
 0xf5e   : > { %3876 = vmatprep.subr.bf16.mxu1 %v11548_v24 }
 0xf61   : > { %3877 = vmatpush1.bf16.msra.mxu1 %v11546_v1 }
 0xf62   : > { %3878 = vmatprep.subr.bf16.mxu1 %v11551_v13 }
 0xf65   : > { %3879 = vmatpush1.bf16.msra.mxu1 %v11549_v26 }
 0xf66   : > { %3880 = vmatprep.subr.bf16.mxu1 %v11554_v28 }
 0xf69   : > { %3881 = vmatpush1.bf16.msra.mxu1 %v11552_v34 }
 0xf6a   : > { %3882 = vmatprep.subr.bf16.mxu1 %v11557_v32 }
 0xf6d   : > { %3883 = vmatpush1.bf16.msra.mxu1 %v11555_v39 }
 0xf6e   : > { %3884 = vmatprep.subr.bf16.mxu1 %v11560_v35 }
 0xf71   : > { %3885 = vmatpush1.bf16.msra.mxu1 %v11558_v40 }
 0xf72   : > { %3886 = vmatprep.subr.bf16.mxu1 %v11563_v41 }
 0xf75   : > { %3887 = vmatpush1.bf16.msra.mxu1 %v11561_v29 }
 0xf76   : > { %3888 = vmatprep.subr.bf16.mxu1 %v11566_v31 }
 0xf79   : > { %3889 = vmatpush1.bf16.msra.mxu1 %v11564_v42 }
 0xf7a   : > { %3890 = vmatprep.subr.bf16.mxu1 %v11569_v43 }
 0xf7d   : > { %3891 = vmatpush1.bf16.msra.mxu1 %v11567_v37 }
 0xf7e   : > { %3892 = vmatprep.subr.bf16.mxu1 %v11572_v38 }
 0xf81   : > { %3893 = vmatpush1.bf16.msra.mxu1 %v11570_v44 }
 0xf82   : > { %3913 = vmatprep.subr.bf16.mxu1 %v12421_v8 }
 0xf84   : > { %3903 = vmatmul.mubr.bf16.vlgmr.msra.gmra.mrb[60].mxu1 %v13745_v3 }
 0xf85   : > { %3914 = vmatpush1.bf16.msra.mxu1 %v11573_v45  ;;  %9791 = vmatprep.mubr.msk.bf16.mxu1 %vm484_vm0, %v3438_v19 }
 0xf86   : > { %3915 = vmatprep.subr.bf16.mxu1 %v12421_v8 }
 0xf89   : > { %3916 = vmatpush1.bf16.msra.mxu1 %v11574_v46 }
 0xf8a   : > { %3917 = vmatprep.subr.bf16.mxu1 %v12421_v8 }
 0xf8d   : > { %3918 = vmatpush1.bf16.msra.mxu1 %v11575_v48 }
 0xf8e   : > { %3919 = vmatprep.subr.bf16.mxu1 %v12421_v8 }
 0xf91   : > { %3920 = vmatpush1.bf16.msra.mxu1 %v11576_v49 }
 0xf92   : > { %3921 = vmatprep.subr.bf16.mxu1 %v12421_v8 }
 0xf95   : > { %3922 = vmatpush1.bf16.msra.mxu1 %v11577_v50 }
 0xf96   : > { %3923 = vmatprep.subr.bf16.mxu1 %v12421_v8 }
 0xf99   : > { %3924 = vmatpush1.bf16.msra.mxu1 %v11578_v54 }
 0xf9a   : > { %3925 = vmatprep.subr.bf16.mxu1 %v12421_v8 }
 0xf9d   : > { %3926 = vmatpush1.bf16.msra.mxu1 %v11579_v62 }
 0xf9e   : > { %3927 = vmatprep.subr.bf16.mxu1 %v12421_v8 }
 0xfa1   : > { %3928 = vmatpush1.bf16.msra.mxu1 %v11580_v63 }
 0xfa2   : > { %3929 = vmatprep.subr.bf16.mxu1 %v12421_v8 }
 0xfa5   : > { %3930 = vmatpush1.bf16.msra.mxu1 %v11581_v2 }
 0xfa6   : > { %3931 = vmatprep.subr.bf16.mxu1 %v12421_v8 }
 0xfa9   : > { %3932 = vmatpush1.bf16.msra.mxu1 %v11582_v25 }
 0xfaa   : > { %3933 = vmatprep.subr.bf16.mxu1 %v12421_v8 }
 0xfad   : > { %3934 = vmatpush1.bf16.msra.mxu1 %v11583_v30 }
 0xfae   : > { %3935 = vmatprep.subr.bf16.mxu1 %v12421_v8 }
 0xfb1   : > { %3936 = vmatpush1.bf16.msra.mxu1 %v11584_v33 }
 0xfb2   : > { %10904 = vmatprep.subr.bf16.mxu1 %v12422_v53 }
 0xfb4   : > { %3946 = vmatmul.mubr.bf16.vlgmr.msra.gmra.mrb[64].mxu1 %v13745_v3 }
 0xfb5   : > { %10906 = vmatprep.mubr.msk.bf16.mxu1 %vm12423_vm1, %v12422_v53 }
0x1027   : > { %v3861_v6 = vpop.f32.mrb[56].mxu1 }
0x1028   : > { %v3863_v36 = vpop.f32.mrb[57].mxu1 }
0x1029   : > { %v3865_v16 = vpop.f32.mrb[58].mxu1 }
0x102a   : > { %v3954_v9 = vpack.c.bf16 %v3865_v16, %v3861_v6  ;;  %v3867_v10 = vpop.f32.mrb[59].mxu1 }
0x102b   : > { %v13870_v27 = vpack.c.bf16 %v3867_v10, %v3863_v36 }
0x102c   : > { %v4293_v14 = vrot.slane %v3954_v9, 4 }
0x102d   : > { %3960 = vrot.lane.b32.xlu0 %v13870_v27, %s12424_s0  ;;  %v4294_v12 = vrot.slane %v13870_v27, 4 }
0x1057   : > { %v3904_v7 = vpop.f32.mrb[60].mxu1 }
0x1058   : > { %v3906_v0 = vpop.f32.mrb[61].mxu1 }
0x1059   : > { %v3908_v52 = vpop.f32.mrb[62].mxu1 }
0x105a   : > { %v13874_v60 = vpack.c.bf16 %v3908_v52, %v3904_v7  ;;  %v3910_v11 = vpop.f32.mrb[63].mxu1 }
0x105b   : > { %v13876_v58 = vpack.c.bf16 %v3910_v11, %v3906_v0 }
0x105c   : > { %v4406_v19 = vrot.slane %v13874_v60, 4 }
0x105d   : > { %4129 = vrot.lane.b32.xlu0 %v13876_v58, %s12424_s0  ;;  %v4023_v1 = vsel %vm1137_vm2, %v13876_v58, 0 }
0x105e   : > { %v4411_v39 = vsel %vm484_vm0, %v4406_v19, 0 }
0x1061   : > { %4185 = vrot.lane.b32.xlu0 %v13874_v60, %s12424_s0 }
0x1065   : > { %4295 = vrot.lane.b32.xlu0 %v4294_v12, %s12424_s0 }
0x1069   : > { %4404 = vrot.lane.b32.xlu0 %v4293_v14, %s12424_s0 }
0x106d   : > { %4519 = vrot.lane.b32.xlu0 %v4406_v19, %s12424_s0 }
0x1087   : > { %v3947_v20 = vpop.f32.mrb[64].mxu1 }
0x1088   : > { %v3949_v3 = vpop.f32.mrb[65].mxu1 }
0x1089   : > { %v3950_v21 = vpop.f32.mrb[66].mxu1 }
0x108a   : > { %v13887_v4 = vpack.c.bf16 %v3950_v21, %v3947_v20  ;;  %v3952_v22 = vpop.f32.mrb[67].mxu1 }
0x109f   : > { %v3961_v23 = vpop.permute.xlu0 %3960 }
0x10a0   : > { %v3966_v24 = vsel %vm484_vm0, %v3961_v23, 0 }
0x10a1   : > { %10905 = vmatpush3.bf16.xpose.msra.mxu1 %v3966_v24 }
0x10a2   : > { %10910 = vmatprep.subr.bf16.mxu1 %v12422_v53 }
0x10a8   : > { %10907 = vmatmul.mubr.msk.bf16.vlgmr.msra.gmra.mrb[68].mxu1 %vm484_vm0, %v3954_v9 }
0x10a9   : > { %10911 = vmatpush3.bf16.msra.mxu1 %v4023_v1  ;;  %10912 = vmatprep.mubr.msk.bf16.mxu1 %vm12423_vm1, %v12422_v53 }
0x10aa   : > { %10916 = vmatprep.subr.bf16.mxu1 %v12422_v53 }
0x10cf   : > { %v4130_v13 = vpop.permute.xlu0 %4129 }
0x10d0   : > { %v4135_v7 = vsel %vm1137_vm2, %v4130_v13, 0  ;;  %v4354_v13 = vrot.slane %v13876_v58, 4 }
0x10d3   : > { %v13897_v26 = vpop.permute.xlu0 %4185 }
0x10d7   : > { %v4296_v28 = vpop.permute.xlu0 %4295 }
0x10d8   : > { %v4301_v34 = vsel %vm484_vm0, %v4296_v28, 0 }
0x10d9   : > { %10941 = vmatpush3.bf16.xpose.msra.mxu0 %v4301_v34 }
0x10da   : > { %10952 = vmatprep.subr.bf16.mxu0 %v12422_v53 }
0x10db   : > { %v4405_v32 = vpop.permute.xlu0 %4404 }
0x10df   : > { %v4520_v35 = vpop.permute.xlu0 %4519 }
0x10e0   : > { %10943 = vmatmul.mubr.msk.bf16.vlgmr.msra.gmra.mrb[28].mxu0 %vm484_vm0, %v4293_v14  ;;  %v4525_v40 = vsel %vm484_vm0, %v4520_v35, 0 }
0x10e1   : > { %10953 = vmatpush3.bf16.xpose.msra.mxu0 %v4411_v39  ;;  %10954 = vmatprep.mubr.msk.bf16.mxu0 %vm12423_vm1, %v12422_v53 }
0x10e2   : > { %10964 = vmatprep.subr.bf16.mxu0 %v12422_v53 }
0x10e8   : > { %10955 = vmatmul.mubr.msk.bf16.vlgmr.msra.gmra.mrb[32].mxu0 %vm484_vm0, %v4405_v32 }
0x10e9   : > { %10965 = vmatpush3.bf16.xpose.msra.mxu0 %v4525_v40  ;;  %10966 = vmatprep.mubr.msk.bf16.mxu0 %vm12423_vm1, %v12422_v53 }
0x10f0   : > { %10967 = vmatmul.mubr.msk.bf16.vlgmr.msra.gmra.mrb[36].mxu0 %vm484_vm0, %v4294_v12 }
0x117b   : > { %v4002_v41 = vpop.f32.mrb[68].mxu1 }
0x117c   : > { %v4008_v29 = vsel %vm12837_vm3, %v4002_v41, -1e+30  ;;  %v10908_v31 = vpop.f32.mrb[69].mxu1  ;;  %v4191_v41 = vsel %vm484_vm0, %v13897_v26, 0 }
0x117d   : > { %v4005_v42 = vpop.f32.mrb[70].mxu1  ;;  %v4009_v43 = vsel %vm1123_vm4, %v4008_v29, -inf }
0x117e   : > { %4010 = vmax.xlane.f32.xlu1 %v4009_v43  ;;  %v10909_v37 = vpop.f32.mrb[71].mxu1 }
0x118f   : > { %4069 = vrot.lane.b32.xlu1 %v3954_v9, %s12424_s0  ;;  %v4075_v9 = vsel %vm484_vm0, %v13874_v60, 0 }
0x11b3   : > { %v4337_v38 = vpop.f32.mrb[28].mxu0 }
0x11b4   : > { %v10944_v44 = vpop.f32.mrb[29].mxu0  ;;  %v4343_v21 = vsel %vm12837_vm3, %v4337_v38, -1e+30 }
0x11b5   : > { %v4340_v45 = vpop.f32.mrb[30].mxu0  ;;  %v4344_v23 = vsel %vm1123_vm4, %v4343_v21, -inf }
0x11b6   : > { %v10945_v46 = vpop.f32.mrb[31].mxu0 }
0x11bb   : > { %v4447_v48 = vpop.f32.mrb[32].mxu0 }
0x11bc   : > { %v10956_v49 = vpop.f32.mrb[33].mxu0  ;;  %v4453_v24 = vsel %vm12837_vm3, %v4447_v48, -1e+30 }
0x11bd   : > { %v4450_v50 = vpop.f32.mrb[34].mxu0  ;;  %v4454_v1 = vsel %vm1123_vm4, %v4453_v24, -inf }
0x11be   : > { %v10957_v54 = vpop.f32.mrb[35].mxu0 }
0x11c3   : > { %v13915_v62 = vpop.f32.mrb[36].mxu0 }
0x11c4   : > { %v10968_v63 = vpop.f32.mrb[37].mxu0 }
0x11c5   : > { %v4564_v2 = vpop.f32.mrb[38].mxu0 }
0x11c6   : > { %v10969_v25 = vpop.f32.mrb[39].mxu0 }
0x120b   : > { %v4011_v30 = vpop.xlane.xlu1 %4010 }
0x120c   : > { %v4012_v33 = vsub.f32 %v4008_v29, %v4011_v30  ;;  %v4248_v29 = vsel %vm1137_vm2, %v13887_v4, 0 }
0x120e   : > { %v4013_v6 = vmul.f32 1.442695, %v4012_v33 }
0x120f   : > { %v4070_v10 = vpop.permute.xlu1 %4069 }
0x1210   : > { %12293 = vpow2.f32 %v4013_v6  ;;  %v4567_v6 = vsel %vm12837_vm3, %v13915_v62, -1e+30 }
0x121a   : > { %v12294_v36 = vpop.eup %12293 }
0x121b   : > { %v4018_v16 = vpack.c.bf16 %v12294_v36, %v12294_v36  ;;  %v4015_v28 = vsel %vm1123_vm4, %v12294_v36, 0.0 }
0x121d   : > { %10913 = vmatmul.mubr.msk.bf16.vlgmr.msra.gmra.mrb[72].mxu1 %vm1123_vm4, %v4018_v16  ;;  %v4568_v16 = vsel %vm1123_vm4, %v4567_v6, -inf }
0x121e   : > { %10917 = vmatpush3.bf16.xpose.msra.mxu1 %v4075_v9  ;;  %10918 = vmatprep.mubr.msk.bf16.mxu1 %vm12423_vm1, %v12422_v53 }
0x121f   : > { %10922 = vmatprep.subr.bf16.mxu1 %v12422_v53 }
0x1225   : > { %10919 = vmatmul.mubr.msk.bf16.vlgmr.msra.gmra.mrb[76].mxu1 %vm484_vm0, %v4070_v10 }
0x1226   : > { %10923 = vmatpush3.bf16.msra.mxu1 %v4135_v7  ;;  %10924 = vmatprep.mubr.msk.bf16.mxu1 %vm12423_vm1, %v12422_v53 }
0x1227   : > { %10928 = vmatprep.subr.bf16.mxu1 %v12422_v53 }
0x12f0   : > { %v4059_v0 = vpop.f32.mrb[72].mxu1 }
0x12f1   : > { %v10914_v52 = vpop.f32.mrb[73].mxu1 }
0x12f2   : > { %v4062_v60 = vpop.f32.mrb[74].mxu1 }
0x12f3   : > { %v10915_v11 = vpop.f32.mrb[75].mxu1 }
0x12f8   : > { %v4111_v12 = vpop.f32.mrb[76].mxu1 }
0x12f9   : > { %v4117_v14 = vsel %vm12837_vm3, %v4111_v12, -1e+30  ;;  %v10920_v19 = vpop.f32.mrb[77].mxu1 }
0x12fa   : > { %v4114_v20 = vpop.f32.mrb[78].mxu1  ;;  %v4118_v3 = vsel %vm1123_vm4, %v4117_v14, -inf }
0x12fb   : > { %4119 = vmax.xlane.f32.xlu1 %v4118_v3  ;;  %v10921_v22 = vpop.f32.mrb[79].mxu1 }
0x12ff   : > { %4345 = vmax.xlane.f32.xlu1 %v4344_v23 }
0x1303   : > { %4455 = vmax.xlane.f32.xlu1 %v4454_v1 }
0x1314   : > { %4464 = vrot.lane.b32.xlu1 %v4354_v13, %s12424_s0 }
0x1338   : > { %4016 = vadd.xlane.f32.xlu1 %v4015_v28 }
0x1388   : > { %v4120_v34 = vpop.xlane.xlu1 %4119 }
0x1389   : > { %v4121_v32 = vsub.f32 %v4117_v14, %v4120_v34 }
0x138b   : > { %v4122_v39 = vmul.f32 1.442695, %v4121_v32 }
0x138c   : > { %v4346_v26 = vpop.xlane.xlu1 %4345 }
0x138d   : > { %12295 = vpow2.f32 %v4122_v39  ;;  %v4347_v49 = vsub.f32 %v4343_v21, %v4346_v26  ;;  %v4359_v21 = vsel %vm1137_vm2, %v4354_v13, 0  ;;  %v4579_v13 = vrot.slane %v13887_v4, 4  ;;  %v11585_v4 = vld [vmem:[%s15819_s4 + $0xc0] ss:$8 sps:$4 sm:$0xff]   ;;  %v11588_v26 = vld [vmem:[%s15819_s4 + $0xd0] ss:$8 sps:$4 sm:$0xff]  }
0x138f   : > { %v4348_v63 = vmul.f32 1.442695, %v4347_v49  ;;  %v4584_v32 = vsel %vm1137_vm2, %v4579_v13, 0  ;;  %v11605_v49 = vld [vmem:[%s15819_s4 + $0x124] ss:$8 sps:$4 sm:$0xff]  }
0x1390   : > { %v4456_v31 = vpop.xlane.xlu1 %4455 }
0x1391   : > { %v4457_v45 = vsub.f32 %v4453_v24, %v4456_v31  ;;  %v11593_v31 = vld [vmem:[%s15819_s4 + $0xe4] ss:$8 sps:$4 sm:$0xff]  }
0x1393   : > { %v4458_v50 = vmul.f32 1.442695, %v4457_v45  ;;  %v11597_v45 = vld [vmem:[%s15819_s4 + $0x100] ss:$8 sps:$4 sm:$0xff]  }
0x1394   : > { %v4465_v42 = vpop.permute.xlu1 %4464 }
0x1395   : > { %v4470_v28 = vsel %vm1137_vm2, %v4465_v42, 0  ;;  %v11591_v42 = vld [vmem:[%s15819_s4 + $0xe0] ss:$8 sps:$4 sm:$0xff]  }
0x1397   : > { %v12296_v35 = vpop.eup %12295 }
0x1398   : > { %v4127_v40 = vpack.c.bf16 %v12296_v35, %v12296_v35  ;;  %v4124_v9 = vsel %vm1123_vm4, %v12296_v35, 0.0 }
0x139a   : > { %10925 = vmatmul.mubr.msk.bf16.vlgmr.msra.gmra.mrb[80].mxu1 %vm1123_vm4, %v4127_v40 }
0x139b   : > { %10929 = vmatpush3.bf16.xpose.msra.mxu1 %v4191_v41  ;;  %10930 = vmatprep.mubr.msk.bf16.mxu1 %vm12423_vm1, %v12422_v53  ;;  %v11587_v41 = vld [vmem:[%s15819_s4 + $0xc4] ss:$8 sps:$4 sm:$0xff]  }
0x139c   : > { %10934 = vmatprep.subr.bf16.mxu1 %v12422_v53  ;;  %4783 = vmatprep.subr.bf16.mxu0 %v11587_v41 }
0x139d   : > { %4784 = vmatpush1.bf16.msra.mxu0 %v11585_v4 }
0x13a2   : > { %10931 = vmatmul.mubr.msk.bf16.vlgmr.msra.gmra.mrb[84].mxu1 %vm484_vm0, %v13870_v27 }
0x13a3   : > { %10935 = vmatpush3.bf16.msra.mxu1 %v4248_v29  ;;  %10936 = vmatprep.mubr.msk.bf16.mxu1 %vm12423_vm1, %v12422_v53  ;;  %v11590_v29 = vld [vmem:[%s15819_s4 + $0xd4] ss:$8 sps:$4 sm:$0xff]  }
0x13a4   : > { %10946 = vmatprep.subr.bf16.mxu1 %v12422_v53  ;;  %4785 = vmatprep.subr.bf16.mxu0 %v11590_v29 }
0x13a5   : > { %4786 = vmatpush1.bf16.msra.mxu0 %v11588_v26 }
0x13a6   : > { %4787 = vmatprep.subr.bf16.mxu0 %v11593_v31 }
0x13a9   : > { %4788 = vmatpush1.bf16.msra.mxu0 %v11591_v42 }
0x13c5   : > { %v4017_v43 = vpop.xlane.xlu1 %4016 }
0x13c6   : > { %12297 = vrcp.f32 %v4017_v43  ;;  %v11596_v43 = vld [vmem:[%s15819_s4 + $0xf4] ss:$8 sps:$4 sm:$0xff]  }
0x13c7   : > { %12299 = vpow2.f32 %v4458_v50  ;;  %4789 = vmatprep.subr.bf16.mxu0 %v11596_v43  ;;  %v11603_v50 = vld [vmem:[%s15819_s4 + $0x120] ss:$8 sps:$4 sm:$0xff]  }
0x13c8   : > { %12301 = vpow2.f32 %v4348_v63  ;;  %v11608_v63 = vld [vmem:[%s15819_s4 + $0x134] ss:$8 sps:$4 sm:$0xff]  }
0x13d0   : > { %v12298_v37 = vpop.eup %12297 }
0x13d1   : > { %v4066_v38 = vmul.f32 %v12298_v37, %v4059_v0  ;;  %v12300_v10 = vpop.eup %12299  ;;  %v11594_v37 = vld [vmem:[%s15819_s4 + $0xf0] ss:$8 sps:$4 sm:$0xff]  }
0x13d2   : > { %v4460_v7 = vsel %vm1123_vm4, %v12300_v10, 0.0  ;;  %v12302_v0 = vpop.eup %12301  ;;  %v4463_v34 = vpack.c.bf16 %v12300_v10, %v12300_v10  ;;  %4790 = vmatpush1.bf16.msra.mxu0 %v11594_v37 }
0x13d3   : > { %4067 = vst.msk [vmem:[#allocation2] sm:$0xff] %vm484_vm0, %v4066_v38  ;;  %v4350_v52 = vsel %vm1123_vm4, %v12302_v0, 0.0  ;;  %v4353_v1 = vpack.c.bf16 %v12302_v0, %v12302_v0  ;;  %v11599_v38 = vld [vmem:[%s15819_s4 + $0x104] ss:$8 sps:$4 sm:$0xff]  }
0x13d4   : > { %4791 = vmatprep.subr.bf16.mxu0 %v11599_v38 }
0x13d6   : > { %4792 = vmatpush1.bf16.msra.mxu0 %v11597_v45 }
0x146d   : > { %v13956_v44 = vpop.f32.mrb[80].mxu1 }
0x146e   : > { %v10926_v46 = vpop.f32.mrb[81].mxu1 }
0x146f   : > { %v4174_v27 = vpop.f32.mrb[82].mxu1  ;;  %v11602_v46 = vld [vmem:[%s15819_s4 + $0x114] ss:$8 sps:$4 sm:$0xff]  }
0x1470   : > { %v10927_v48 = vpop.f32.mrb[83].mxu1  ;;  %v11600_v27 = vld [vmem:[%s15819_s4 + $0x110] ss:$8 sps:$4 sm:$0xff]   ;;  %4793 = vmatprep.subr.bf16.mxu0 %v11602_v46 }
0x1471   : > { %4794 = vmatpush1.bf16.msra.mxu0 %v11600_v27 }
0x1472   : > { %4795 = vmatprep.subr.bf16.mxu0 %v11605_v49 }
0x1475   : > { %v4227_v54 = vpop.f32.mrb[84].mxu1  ;;  %4796 = vmatpush1.bf16.msra.mxu0 %v11603_v50 }
0x1476   : > { %v4233_v2 = vsel %vm12837_vm3, %v4227_v54, -1e+30  ;;  %v10932_v25 = vpop.f32.mrb[85].mxu1  ;;  %4797 = vmatprep.subr.bf16.mxu0 %v11608_v63 }
0x1477   : > { %v4230_v30 = vpop.f32.mrb[86].mxu1  ;;  %v4234_v33 = vsel %vm1123_vm4, %v4233_v2, -inf }
0x1478   : > { %4235 = vmax.xlane.f32.xlu0 %v4234_v33  ;;  %v10933_v36 = vpop.f32.mrb[87].mxu1  ;;  %v11611_v30 = vld [vmem:[%s15819_s4 + $0x144] ss:$8 sps:$4 sm:$0xff]   ;;  %v11609_v33 = vld [vmem:[%s15819_s4 + $0x140] ss:$8 sps:$4 sm:$0xff]  }
0x1479   : > { %v11614_v36 = vld [vmem:[%s15819_s4 + $0x154] ss:$8 sps:$4 sm:$0xff]  }
0x147c   : > { %4569 = vmax.xlane.f32.xlu0 %v4568_v16  ;;  %v11612_v16 = vld [vmem:[%s15819_s4 + $0x150] ss:$8 sps:$4 sm:$0xff]  }
0x1480   : > { %4125 = vadd.xlane.f32.xlu0 %v4124_v9 }
0x1484   : > { %4461 = vadd.xlane.f32.xlu0 %v4460_v7 }
0x1488   : > { %4351 = vadd.xlane.f32.xlu0 %v4350_v52 }
0x1505   : > { %v4236_v60 = vpop.xlane.xlu0 %4235 }
0x1506   : > { %v4237_v11 = vsub.f32 %v4233_v2, %v4236_v60  ;;  %v11606_v2 = vld [vmem:[%s15819_s4 + $0x130] ss:$8 sps:$4 sm:$0xff]  }
0x1507   : > { %4798 = vmatpush1.bf16.msra.mxu0 %v11606_v2 }
0x1508   : > { %v4238_v62 = vmul.f32 1.442695, %v4237_v11  ;;  %4799 = vmatprep.subr.bf16.mxu0 %v11611_v30  ;;  %v11615_v11 = vld [vmem:[%s15819_s4 + $0x160] ss:$8 sps:$4 sm:$0xff]  }
0x1509   : > { %v4570_v12 = vpop.xlane.xlu0 %4569 }
0x150a   : > { %12303 = vpow2.f32 %v4238_v62  ;;  %v4571_v14 = vsub.f32 %v4567_v6, %v4570_v12  ;;  %v11617_v62 = vld [vmem:[%s15819_s4 + $0x164] ss:$8 sps:$4 sm:$0xff]   ;;  %v11620_v12 = vld [vmem:[%s15819_s4 + $0x174] ss:$8 sps:$4 sm:$0xff]  }
0x150b   : > { %4800 = vmatpush1.bf16.msra.mxu0 %v11609_v33 }
0x150c   : > { %v4572_v19 = vmul.f32 1.442695, %v4571_v14  ;;  %4801 = vmatprep.subr.bf16.mxu0 %v11614_v36 }
0x150d   : > { %v4126_v58 = vpop.xlane.xlu0 %4125 }
0x150e   : > { %12305 = vpow2.f32 %v4572_v19 }
0x150f   : > { %12307 = vrcp.f32 %v4126_v58  ;;  %4802 = vmatpush1.bf16.msra.mxu0 %v11612_v16 }
0x1510   : > { %4803 = vmatprep.subr.bf16.mxu0 %v11617_v62  ;;  %v11635_v62 = vld [vmem:[%s15823_s8 + $0x2a4] ss:$24 sps:$4 sm:$0xff]  }
0x1513   : > { %4804 = vmatpush1.bf16.msra.mxu0 %v11615_v11  ;;  %v11630_v11 = vld [vmem:[%s15823_s8 + $0x278] ss:$24 sps:$4 sm:$0xff]  }
0x1514   : > { %v12304_v20 = vpop.eup %12303  ;;  %4805 = vmatprep.subr.bf16.mxu0 %v11620_v12  ;;  %v11638_v12 = vld [vmem:[%s15823_s8 + $0x2ac] ss:$24 sps:$4 sm:$0xff]  }
0x1515   : > { %v4243_v3 = vpack.c.bf16 %v12304_v20, %v12304_v20  ;;  %v4240_v24 = vsel %vm1123_vm4, %v12304_v20, 0.0 }
0x1517   : > { %10937 = vmatmul.mubr.msk.bf16.vlgmr.msra.gmra.mrb[88].mxu1 %vm1123_vm4, %v4243_v3 }
0x1518   : > { %v12306_v22 = vpop.eup %12305  ;;  %10947 = vmatpush3.bf16.msra.mxu1 %v4359_v21  ;;  %10948 = vmatprep.mubr.msk.bf16.mxu1 %vm12423_vm1, %v12422_v53  ;;  %v11618_v21 = vld [vmem:[%s15819_s4 + $0x170] ss:$8 sps:$4 sm:$0xff]  }
0x1519   : > { %v4574_v23 = vsel %vm1123_vm4, %v12306_v22, 0.0  ;;  %10958 = vmatprep.subr.bf16.mxu1 %v12422_v53  ;;  %v4577_v39 = vpack.c.bf16 %v12306_v22, %v12306_v22  ;;  %v12308_v35 = vpop.eup %12307  ;;  %4806 = vmatpush1.bf16.msra.mxu0 %v11618_v21  ;;  %v11639_v21 = vld [vmem:[%s15823_s8 + $0x2d0] ss:$24 sps:$4 sm:$0xff]  }
0x151a   : > { %4575 = vadd.xlane.f32.xlu0 %v4574_v23  ;;  %v4178_v40 = vmul.f32 %v12308_v35, %v13956_v44  ;;  %v4462_v44 = vpop.xlane.xlu0 %4461 }
0x151e   : > { %4241 = vadd.xlane.f32.xlu0 %v4240_v24  ;;  %v4352_v48 = vpop.xlane.xlu0 %4351 }
0x151f   : > { %10949 = vmatmul.mubr.msk.bf16.vlgmr.msra.gmra.mrb[92].mxu1 %vm1123_vm4, %v4353_v1 }
0x1520   : > { %10959 = vmatpush3.bf16.msra.mxu1 %v4470_v28  ;;  %10960 = vmatprep.mubr.msk.bf16.mxu1 %vm12423_vm1, %v12422_v53 }
0x1521   : > { %10970 = vmatprep.subr.bf16.mxu1 %v12422_v53 }
0x1527   : > { %10961 = vmatmul.mubr.msk.bf16.vlgmr.msra.gmra.mrb[96].mxu1 %vm1123_vm4, %v4463_v34 }
0x1528   : > { %10971 = vmatpush3.bf16.msra.mxu1 %v4584_v32  ;;  %10972 = vmatprep.mubr.msk.bf16.mxu1 %vm12423_vm1, %v12422_v53 }
0x152f   : > { %10973 = vmatmul.mubr.msk.bf16.vlgmr.msra.gmra.mrb[100].mxu1 %vm1123_vm4, %v4577_v39 }
0x1534   : > { %4180 = vrot.lane.b32.xlu0 %v4178_v40, %s12424_s0 }
0x15a7   : > { %v4576_v54 = vpop.xlane.xlu0 %4575 }
0x15ab   : > { %v4242_v25 = vpop.xlane.xlu0 %4241 }
0x15ac   : > { %12309 = vrcp.f32 %v4242_v25 }
0x15ad   : > { %12311 = vrcp.f32 %v4352_v48 }
0x15ae   : > { %12313 = vrcp.f32 %v4462_v44  ;;  %v9853_v44 = vld [vmem:[%s15820_s5 + $0x2] sm:$0x3] }
0x15af   : > { %v4181_v6 = vpop.permute.xlu0 %4180  ;;  %12315 = vrcp.f32 %v4576_v54  ;;  %v4840_v46 = vrot.slane %v9853_v44, %v12730_v17  ;;  %v4836_v48 = vrot.slane %v9853_v44, %v12733_v18 }
0x15b0   : > { %4183 = vst.msk [vmem:[#allocation2] sm:$0xff] %vm1299_vm5, %v4181_v6 }
0x15b6   : > { %v12310_v9 = vpop.eup %12309 }
0x15b7   : > { %v12312_v14 = vpop.eup %12311  ;;  %v4629_v43 = vld [vmem:[#allocation2] sm:$0xff] }
0x15b8   : > { %v12314_v24 = vpop.eup %12313 }
0x15b9   : > { %v12316_v32 = vpop.eup %12315 }
0x15ea   : > { %v4284_v10 = vpop.f32.mrb[88].mxu1 }
0x15eb   : > { %v4291_v7 = vmul.f32 %v12310_v9, %v4284_v10  ;;  %v10938_v0 = vpop.f32.mrb[89].mxu1  ;;  %v11623_v9 = vld [vmem:[%s15823_s8 + $0x244] ss:$24 sps:$4 sm:$0xff]   ;;  %v11624_v10 = vld [vmem:[%s15823_s8 + $0x248] ss:$24 sps:$4 sm:$0xff]  }
0x15ec   : > { %v4287_v52 = vpop.f32.mrb[90].mxu1  ;;  %v11629_v0 = vld [vmem:[%s15823_s8 + $0x274] ss:$24 sps:$4 sm:$0xff]   ;;  %5388 = vmatprep.subr.bf16.mxu1 %v11623_v9 }
0x15ed   : > { %4292 = vst.msk [vmem:[#allocation2 + $0x8] sm:$0xff] %vm484_vm0, %v4291_v7  ;;  %v10939_v60 = vpop.f32.mrb[91].mxu1  ;;  %v11626_v7 = vld [vmem:[%s15823_s8 + $0x24c] ss:$24 sps:$4 sm:$0xff]   ;;  %v11632_v52 = vld [vmem:[%s15823_s8 + $0x27c] ss:$24 sps:$4 sm:$0xff]  }
0x15ee   : > { %5431 = vmatprep.subr.bf16.mxu0 %v11626_v7  ;;  %v11627_v60 = vld [vmem:[%s15823_s8 + $0x270] ss:$24 sps:$4 sm:$0xff]   ;;  %v11677_v9 = vld [vmem:[%s15823_s8 + $0x3f4] ss:$24 sps:$4 sm:$0xff]  }
0x15ef   : > { %v11680_v7 = vld [vmem:[%s15823_s8 + $0x3fc] ss:$24 sps:$4 sm:$0xff]  }
0x15f2   : > { %v4395_v19 = vpop.f32.mrb[92].mxu1 }
0x15f3   : > { %v4402_v20 = vmul.f32 %v12312_v14, %v4395_v19  ;;  %v10950_v3 = vpop.f32.mrb[93].mxu1  ;;  %v11633_v14 = vld [vmem:[%s15823_s8 + $0x2a0] ss:$24 sps:$4 sm:$0xff]  }
0x15f4   : > { %v4398_v22 = vpop.f32.mrb[94].mxu1  ;;  %v4630_v29 = vld [vmem:[#allocation2 + $0x8] sm:$0xff]  ;;  %v11644_v3 = vld [vmem:[%s15823_s8 + $0x2dc] ss:$24 sps:$4 sm:$0xff]  }
0x15f5   : > { %4403 = vst.msk [vmem:[#allocation2 + $0x10] sm:$0xff] %vm484_vm0, %v4402_v20  ;;  %v10951_v23 = vpop.f32.mrb[95].mxu1  ;;  %v11636_v19 = vld [vmem:[%s15823_s8 + $0x2a8] ss:$24 sps:$4 sm:$0xff]   ;;  %v11641_v20 = vld [vmem:[%s15823_s8 + $0x2d4] ss:$24 sps:$4 sm:$0xff]  }
0x15f6   : > { %v11642_v22 = vld [vmem:[%s15823_s8 + $0x2d8] ss:$24 sps:$4 sm:$0xff]   ;;  %v11647_v23 = vld [vmem:[%s15823_s8 + $0x304] ss:$24 sps:$4 sm:$0xff]  }
0x15fa   : > { %v4506_v1 = vpop.f32.mrb[96].mxu1 }
0x15fb   : > { %v4513_v28 = vmul.f32 %v12314_v24, %v4506_v1  ;;  %v10962_v58 = vpop.f32.mrb[97].mxu1  ;;  %v11650_v24 = vld [vmem:[%s15823_s8 + $0x30c] ss:$24 sps:$4 sm:$0xff]   ;;  %v11645_v1 = vld [vmem:[%s15823_s8 + $0x300] ss:$24 sps:$4 sm:$0xff]  }
0x15fc   : > { %v4509_v13 = vpop.f32.mrb[98].mxu1  ;;  %v11653_v58 = vld [vmem:[%s15823_s8 + $0x334] ss:$24 sps:$4 sm:$0xff]  }
0x15fd   : > { %4515 = vrot.lane.b32.xlu1 %v4513_v28, %s12424_s0  ;;  %v10963_v34 = vpop.f32.mrb[99].mxu1  ;;  %v11648_v28 = vld [vmem:[%s15823_s8 + $0x308] ss:$24 sps:$4 sm:$0xff]  }
0x15fe   : > { %v11651_v13 = vld [vmem:[%s15823_s8 + $0x330] ss:$24 sps:$4 sm:$0xff]  }
0x1602   : > { %v4620_v39 = vpop.f32.mrb[100].mxu1 }
0x1603   : > { %v4627_v35 = vmul.f32 %v12316_v32, %v4620_v39  ;;  %v10974_v40 = vpop.f32.mrb[101].mxu1 }
0x1604   : > { %v4623_v4 = vpop.f32.mrb[102].mxu1 }
0x1605   : > { %4628 = vst.msk [vmem:[#allocation2 + $0x18] sm:$0xff] %vm484_vm0, %v4627_v35  ;;  %v10975_v41 = vpop.f32.mrb[103].mxu1 }
0x160c   : > { %v4632_v26 = vld [vmem:[#allocation2 + $0x18] sm:$0xff] }
0x160d   : > { %v4634_v31 = vpack.c.bf16 %v4632_v26, %v4630_v29 }
0x160f   : > { %9852 = vmatprep.mubr.msk.bf16.mxu0 %vm484_vm0, %v4634_v31 }
0x166f   : > { %v4516_v42 = vpop.permute.xlu1 %4515 }
0x1670   : > { %4518 = vst.msk [vmem:[#allocation2 + $0x10] sm:$0xff] %vm1299_vm5, %v4516_v42 }
0x1677   : > { %v4631_v37 = vld [vmem:[#allocation2 + $0x10] sm:$0xff] }
0x1678   : > { %v4633_v38 = vpack.c.bf16 %v4631_v37, %v4629_v43 }
0x167a   : > { %4816 = vmatmul.mubr.bf16.vlgmr.msra.gmra.mrb[40].mxu0 %v4633_v38 }
0x167b   : > { %5432 = vmatpush1.bf16.msra.mxu0 %v11624_v10  ;;  %v11675_v10 = vld [vmem:[%s15823_s8 + $0x3f0] ss:$24 sps:$4 sm:$0xff]  }
0x167c   : > { %5433 = vmatprep.subr.bf16.mxu0 %v11632_v52  ;;  %v11683_v52 = vld [vmem:[%s15823_s8 + $0x424] ss:$24 sps:$4 sm:$0xff]  }
0x167f   : > { %5434 = vmatpush1.bf16.msra.mxu0 %v11630_v11  ;;  %v11684_v11 = vld [vmem:[%s15823_s8 + $0x428] ss:$24 sps:$4 sm:$0xff]  }
0x1680   : > { %5435 = vmatprep.subr.bf16.mxu0 %v11638_v12  ;;  %v11689_v12 = vld [vmem:[%s15823_s8 + $0x454] ss:$24 sps:$4 sm:$0xff]  }
0x1683   : > { %5436 = vmatpush1.bf16.msra.mxu0 %v11636_v19  ;;  %v11692_v19 = vld [vmem:[%s15823_s8 + $0x45c] ss:$24 sps:$4 sm:$0xff]  }
0x1684   : > { %5437 = vmatprep.subr.bf16.mxu0 %v11644_v3  ;;  %v11695_v3 = vld [vmem:[%s15823_s8 + $0x254] ss:$24 sps:$4 sm:$0xff]  }
0x1687   : > { %5438 = vmatpush1.bf16.msra.mxu0 %v11642_v22 }
0x1688   : > { %5439 = vmatprep.subr.bf16.mxu0 %v11650_v24 }
0x168b   : > { %5440 = vmatpush1.bf16.msra.mxu0 %v11648_v28 }
0x174d   : > { %v4817_v45 = vpop.f32.mrb[40].mxu0 }
0x174e   : > { %v4826_v27 = vadd.f32 %v4817_v45, %v13637_v55  ;;  %v4819_v49 = vpop.f32.mrb[41].mxu0 }
0x174f   : > { %v4827_v50 = vadd.f32 %v4819_v49, %v13634_v51  ;;  %v4821_v54 = vpop.f32.mrb[42].mxu0  ;;  %v11657_v49 = vld [vmem:[%s15823_s8 + $0x360] ss:$24 sps:$4 sm:$0xff]  }
0x1750   : > { %v4828_v63 = vadd.f32 %v4821_v54, %v13648_v5  ;;  %v4823_v2 = vpop.f32.mrb[43].mxu0  ;;  %v14080_v33 = vadd.f32 %v4836_v48, %v4826_v27  ;;  %v11654_v27 = vld [vmem:[%s15823_s8 + $0x338] ss:$24 sps:$4 sm:$0xff]   ;;  %v11660_v54 = vld [vmem:[%s15823_s8 + $0x368] ss:$24 sps:$4 sm:$0xff]  }
0x1751   : > { %v14077_v25 = vadd.f32 %v4840_v46, %v4827_v50  ;;  %v4829_v30 = vadd.f32 %v4823_v2, %v13640_v47  ;;  %v11621_v47 = vld [vmem:[%s15823_s8 + $0x240] ss:$24 sps:$4 sm:$0xff]   ;;  %v11662_v50 = vld [vmem:[%s15823_s8 + $0x36c] ss:$24 sps:$4 sm:$0xff]   ;;  %v11663_v2 = vld [vmem:[%s15823_s8 + $0x390] ss:$24 sps:$4 sm:$0xff]  }
0x1752   : > { %v14086_v36 = vadd.f32 %v4836_v48, %v4828_v63  ;;  %5389 = vmatpush1.bf16.msra.mxu1 %v11621_v47  ;;  %v11659_v48 = vld [vmem:[%s15823_s8 + $0x364] ss:$24 sps:$4 sm:$0xff]   ;;  %v11665_v63 = vld [vmem:[%s15823_s8 + $0x394] ss:$24 sps:$4 sm:$0xff]   ;;  %v11672_v47 = vld [vmem:[%s15823_s8 + $0x3c8] ss:$24 sps:$4 sm:$0xff]  }
0x1753   : > { %v14082_v6 = vadd.f32 %v4840_v46, %v4829_v30  ;;  %v4851_v55 = vsel %vm484_vm0, %v14077_v25, 0.0  ;;  %5390 = vmatprep.subr.bf16.mxu1 %v11629_v0  ;;  %v11656_v46 = vld [vmem:[%s15823_s8 + $0x33c] ss:$24 sps:$4 sm:$0xff]   ;;  %v11678_v0 = vld [vmem:[%s15823_s8 + $0x3f8] ss:$24 sps:$4 sm:$0xff]  }
0x1754   : > { %v4852_v16 = vadd.f32 %v4851_v55, %v14080_v33  ;;  %5441 = vmatprep.subr.bf16.mxu0 %v11656_v46  ;;  %v11668_v30 = vld [vmem:[%s15823_s8 + $0x39c] ss:$24 sps:$4 sm:$0xff]   ;;  %v11666_v55 = vld [vmem:[%s15823_s8 + $0x398] ss:$24 sps:$4 sm:$0xff]  }
0x1755   : > { %v4855_v51 = vsel %vm484_vm0, %v14082_v6, 0.0  ;;  %5442 = vmatpush1.bf16.msra.mxu0 %v11654_v27 }
0x1756   : > { %4853 = vadd.xlane.f32.xlu0 %v4852_v16  ;;  %v4856_v5 = vadd.f32 %v4855_v51, %v14086_v36  ;;  %5391 = vmatpush1.bf16.msra.mxu1 %v11627_v60  ;;  %v11671_v16 = vld [vmem:[%s15823_s8 + $0x3c4] ss:$24 sps:$4 sm:$0xff]   ;;  %v11669_v51 = vld [vmem:[%s15823_s8 + $0x3c0] ss:$24 sps:$4 sm:$0xff]  }
0x1757   : > { %5392 = vmatprep.subr.bf16.mxu1 %v11635_v62  ;;  %5443 = vmatprep.subr.bf16.mxu0 %v11662_v50  ;;  %v11681_v60 = vld [vmem:[%s15823_s8 + $0x420] ss:$24 sps:$4 sm:$0xff]   ;;  %v11686_v62 = vld [vmem:[%s15823_s8 + $0x42c] ss:$24 sps:$4 sm:$0xff]  }
0x1758   : > { %4857 = vadd.xlane.f32.xlu1 %v4856_v5  ;;  %v11674_v5 = vld [vmem:[%s15823_s8 + $0x3cc] ss:$24 sps:$4 sm:$0xff]  }
0x1759   : > { %5444 = vmatpush1.bf16.msra.mxu0 %v11660_v54 }
0x175a   : > { %5393 = vmatpush1.bf16.msra.mxu1 %v11633_v14  ;;  %5445 = vmatprep.subr.bf16.mxu0 %v11668_v30  ;;  %v11687_v14 = vld [vmem:[%s15823_s8 + $0x450] ss:$24 sps:$4 sm:$0xff]   ;;  %v11734_v30 = vld [vmem:[%s15825_s10 + $0x314] ss:$8 sps:$4 sm:$0xff]  }
0x175b   : > { %5394 = vmatprep.subr.bf16.mxu1 %v11641_v20  ;;  %v11690_v20 = vld [vmem:[%s15823_s8 + $0x458] ss:$24 sps:$4 sm:$0xff]  }
0x175d   : > { %5446 = vmatpush1.bf16.msra.mxu0 %v11666_v55  ;;  %v11696_v55 = vld [vmem:[%s15823_s8 + $0x280] ss:$24 sps:$4 sm:$0xff]  }
0x175e   : > { %5395 = vmatpush1.bf16.msra.mxu1 %v11639_v21  ;;  %5447 = vmatprep.subr.bf16.mxu0 %v11674_v5  ;;  %v11731_v21 = vld [vmem:[%s15825_s10 + $0x304] ss:$8 sps:$4 sm:$0xff]  }
0x175f   : > { %5396 = vmatprep.subr.bf16.mxu1 %v11647_v23  ;;  %v11737_v5 = vld [vmem:[%s15825_s10 + $0x324] ss:$8 sps:$4 sm:$0xff]  }
0x1761   : > { %5448 = vmatpush1.bf16.msra.mxu0 %v11672_v47  ;;  %v11699_v47 = vld [vmem:[%s15823_s8 + $0x2b0] ss:$24 sps:$4 sm:$0xff]  }
0x1762   : > { %5397 = vmatpush1.bf16.msra.mxu1 %v11645_v1  ;;  %5449 = vmatprep.subr.bf16.mxu0 %v11680_v7  ;;  %v11740_v7 = vld [vmem:[%s15825_s10 + $0x334] ss:$8 sps:$4 sm:$0xff]  }
0x1763   : > { %5398 = vmatprep.subr.bf16.mxu1 %v11653_v58 }
0x1765   : > { %5450 = vmatpush1.bf16.msra.mxu0 %v11678_v0  ;;  %v11702_v0 = vld [vmem:[%s15823_s8 + $0x2e0] ss:$24 sps:$4 sm:$0xff]  }
0x1766   : > { %5399 = vmatpush1.bf16.msra.mxu1 %v11651_v13  ;;  %5451 = vmatprep.subr.bf16.mxu0 %v11686_v62  ;;  %v9854_v13 = vld [vmem:[%s15821_s6 + $0x2] sm:$0x3]  ;;  %v11705_v62 = vld [vmem:[%s15823_s8 + $0x310] ss:$24 sps:$4 sm:$0xff]  }
0x1767   : > { %5400 = vmatprep.subr.bf16.mxu1 %v11659_v48 }
0x1769   : > { %5452 = vmatpush1.bf16.msra.mxu0 %v11684_v11  ;;  %v11743_v11 = vld [vmem:[%s15825_s10 + $0x344] ss:$8 sps:$4 sm:$0xff]  }
0x176a   : > { %5401 = vmatpush1.bf16.msra.mxu1 %v11657_v49  ;;  %5453 = vmatprep.subr.bf16.mxu0 %v11692_v19  ;;  %v11746_v19 = vld [vmem:[%s15825_s10 + $0x354] ss:$8 sps:$4 sm:$0xff]  }
0x176b   : > { %5402 = vmatprep.subr.bf16.mxu1 %v11665_v63  ;;  %v11693_v63 = vld [vmem:[%s15823_s8 + $0x250] ss:$24 sps:$4 sm:$0xff]  }
0x176d   : > { %5454 = vmatpush1.bf16.msra.mxu0 %v11690_v20  ;;  %v11708_v20 = vld [vmem:[%s15823_s8 + $0x340] ss:$24 sps:$4 sm:$0xff]  }
0x176e   : > { %5403 = vmatpush1.bf16.msra.mxu1 %v11663_v2  ;;  %6125 = vmatprep.subr.bf16.mxu0 %v11731_v21  ;;  %v11744_v21 = vld [vmem:[%s15825_s10 + $0x350] ss:$8 sps:$4 sm:$0xff]  }
0x176f   : > { %5404 = vmatprep.subr.bf16.mxu1 %v11671_v16  ;;  %v11701_v16 = vld [vmem:[%s15823_s8 + $0x2b4] ss:$24 sps:$4 sm:$0xff]  }
0x1772   : > { %5405 = vmatpush1.bf16.msra.mxu1 %v11669_v51  ;;  %v11732_v51 = vld [vmem:[%s15825_s10 + $0x310] ss:$8 sps:$4 sm:$0xff]  }
0x1773   : > { %5406 = vmatprep.subr.bf16.mxu1 %v11677_v9  ;;  %v11704_v9 = vld [vmem:[%s15823_s8 + $0x2e4] ss:$24 sps:$4 sm:$0xff]  }
0x1776   : > { %5407 = vmatpush1.bf16.msra.mxu1 %v11675_v10  ;;  %v11735_v10 = vld [vmem:[%s15825_s10 + $0x320] ss:$8 sps:$4 sm:$0xff]  }
0x1777   : > { %5408 = vmatprep.subr.bf16.mxu1 %v11683_v52  ;;  %v11707_v52 = vld [vmem:[%s15823_s8 + $0x314] ss:$24 sps:$4 sm:$0xff]  }
0x177a   : > { %5409 = vmatpush1.bf16.msra.mxu1 %v11681_v60  ;;  %v11738_v60 = vld [vmem:[%s15825_s10 + $0x330] ss:$8 sps:$4 sm:$0xff]  }
0x177b   : > { %5410 = vmatprep.subr.bf16.mxu1 %v11689_v12  ;;  %v11710_v12 = vld [vmem:[%s15823_s8 + $0x344] ss:$24 sps:$4 sm:$0xff]  }
0x177e   : > { %5411 = vmatpush1.bf16.msra.mxu1 %v11687_v14  ;;  %v11741_v14 = vld [vmem:[%s15825_s10 + $0x340] ss:$8 sps:$4 sm:$0xff]  }
0x177f   : > { %5474 = vmatprep.subr.bf16.mxu1 %v11695_v3  ;;  %v11713_v3 = vld [vmem:[%s15823_s8 + $0x374] ss:$24 sps:$4 sm:$0xff]  }
0x17e3   : > { %v4854_v34 = vpop.xlane.xlu0 %4853 }
0x17e4   : > { %v4859_v32 = vmul.f32 0.0052083335, %v4854_v34 }
0x17e5   : > { %v4858_v39 = vpop.xlane.xlu1 %4857 }
0x17e6   : > { %v14159_v35 = vsub.f32 %v14080_v33, %v4859_v32  ;;  %v14162_v40 = vsub.f32 %v14077_v25, %v4859_v32  ;;  %v4860_v4 = vmul.f32 0.0052083335, %v4858_v39 }
0x17e8   : > { %v14165_v41 = vsub.f32 %v14086_v36, %v4860_v4  ;;  %v14168_v29 = vsub.f32 %v14082_v6, %v4860_v4  ;;  %v4865_v26 = vmul.f32 %v14159_v35, %v14159_v35  ;;  %v4866_v31 = vmul.f32 %v14162_v40, %v14162_v40  ;;  %v9855_v4 = vld [vmem:[%s15822_s7 + $0x2] sm:$0x3] }
0x17ea   : > { %v4869_v42 = vsel %vm484_vm0, %v4866_v31, 0.0  ;;  %v4868_v43 = vmul.f32 %v14168_v29, %v14168_v29  ;;  %v4867_v38 = vmul.f32 %v14165_v41, %v14165_v41  ;;  %v4891_v31 = vrot.slane %v9854_v13, %v12733_v18 }
0x17eb   : > { %v4870_v37 = vadd.f32 %v4869_v42, %v4865_v26  ;;  %v4895_v26 = vrot.slane %v9854_v13, %v12730_v17  ;;  %v11719_v13 = vld [vmem:[%s15823_s8 + $0x3d4] ss:$24 sps:$4 sm:$0xff]  }
0x17ec   : > { %v4873_v44 = vsel %vm484_vm0, %v4868_v43, 0.0  ;;  %v4910_v43 = vrot.slane %v9855_v4, %v12730_v17 }
0x17ed   : > { %4871 = vadd.xlane.f32.xlu0 %v4870_v37  ;;  %v4874_v45 = vadd.f32 %v4873_v44, %v4867_v38  ;;  %v4906_v37 = vrot.slane %v9855_v4, %v12733_v18  ;;  %v11722_v4 = vld [vmem:[%s15823_s8 + $0x404] ss:$24 sps:$4 sm:$0xff]  }
0x17f1   : > { %4875 = vadd.xlane.f32.xlu0 %v4874_v45 }
0x187a   : > { %v4872_v22 = vpop.xlane.xlu0 %4871 }
0x187b   : > { %v4877_v23 = vmul.f32 0.0052083335, %v4872_v22  ;;  %v11749_v22 = vld [vmem:[%s15825_s10 + $0x364] ss:$8 sps:$4 sm:$0xff]  }
0x187d   : > { %v4879_v24 = vadd.f32 1e-05, %v4877_v23  ;;  %v11711_v23 = vld [vmem:[%s15823_s8 + $0x370] ss:$24 sps:$4 sm:$0xff]  }
0x187e   : > { %v4876_v1 = vpop.xlane.xlu0 %4875 }
0x187f   : > { %12317 = vrsqrt.f32 %v4879_v24  ;;  %v4878_v28 = vmul.f32 0.0052083335, %v4876_v1  ;;  %v11716_v24 = vld [vmem:[%s15823_s8 + $0x3a4] ss:$24 sps:$4 sm:$0xff]   ;;  %v11747_v1 = vld [vmem:[%s15825_s10 + $0x360] ss:$8 sps:$4 sm:$0xff]  }
0x1881   : > { %v4880_v58 = vadd.f32 1e-05, %v4878_v28  ;;  %v11752_v28 = vld [vmem:[%s15825_s10 + $0x374] ss:$8 sps:$4 sm:$0xff]  }
0x1883   : > { %12319 = vrsqrt.f32 %v4880_v58  ;;  %v11714_v58 = vld [vmem:[%s15823_s8 + $0x3a0] ss:$24 sps:$4 sm:$0xff]  }
0x1889   : > { %v12318_v34 = vpop.eup %12317 }
0x188a   : > { %v4883_v32 = vmul.f32 %v12318_v34, %v14159_v35  ;;  %v4884_v39 = vmul.f32 %v12318_v34, %v14162_v40  ;;  %v11750_v34 = vld [vmem:[%s15825_s10 + $0x370] ss:$8 sps:$4 sm:$0xff]  }
0x188c   : > { %v4899_v35 = vmul.f32 %v4895_v26, %v4884_v39  ;;  %v4898_v45 = vmul.f32 %v4891_v31, %v4883_v32  ;;  %v11755_v32 = vld [vmem:[%s15825_s10 + $0x384] ss:$8 sps:$4 sm:$0xff]   ;;  %v11717_v39 = vld [vmem:[%s15823_s8 + $0x3d0] ss:$24 sps:$4 sm:$0xff]  }
0x188d   : > { %v12320_v42 = vpop.eup %12319 }
0x188e   : > { %v4885_v38 = vmul.f32 %v12320_v42, %v14165_v41  ;;  %v4886_v44 = vmul.f32 %v12320_v42, %v14168_v29  ;;  %v4914_v27 = vadd.f32 %v4910_v43, %v4899_v35  ;;  %v4913_v49 = vadd.f32 %v4906_v37, %v4898_v45  ;;  %v11698_v41 = vld [vmem:[%s15823_s8 + $0x284] ss:$24 sps:$4 sm:$0xff]   ;;  %v11729_v29 = vld [vmem:[%s15825_s10 + $0x300] ss:$8 sps:$4 sm:$0xff]  }
0x188f   : > { %v11720_v42 = vld [vmem:[%s15823_s8 + $0x400] ss:$24 sps:$4 sm:$0xff]   ;;  %v11728_v35 = vld [vmem:[%s15823_s8 + $0x464] ss:$24 sps:$4 sm:$0xff]  }
0x1890   : > { %v4901_v40 = vmul.f32 %v4895_v26, %v4886_v44  ;;  %v4900_v46 = vmul.f32 %v4891_v31, %v4885_v38  ;;  %v11753_v26 = vld [vmem:[%s15825_s10 + $0x380] ss:$8 sps:$4 sm:$0xff]   ;;  %v11758_v31 = vld [vmem:[%s15825_s10 + $0x394] ss:$8 sps:$4 sm:$0xff]   ;;  %v11761_v38 = vld [vmem:[%s15825_s10 + $0x3a4] ss:$8 sps:$4 sm:$0xff]  }
0x1891   : > { %v11723_v44 = vld [vmem:[%s15823_s8 + $0x430] ss:$24 sps:$4 sm:$0xff]  }
0x1892   : > { %v4916_v48 = vadd.f32 %v4910_v43, %v4901_v40  ;;  %v4915_v50 = vadd.f32 %v4906_v37, %v4900_v46  ;;  %v11725_v43 = vld [vmem:[%s15823_s8 + $0x434] ss:$24 sps:$4 sm:$0xff]   ;;  %v11756_v37 = vld [vmem:[%s15825_s10 + $0x390] ss:$8 sps:$4 sm:$0xff]   ;;  %v11759_v45 = vld [vmem:[%s15825_s10 + $0x3a0] ss:$8 sps:$4 sm:$0xff]  }
0x1893   : > { %v11764_v40 = vld [vmem:[%s15825_s10 + $0x3b4] ss:$8 sps:$4 sm:$0xff]   ;;  %v11726_v46 = vld [vmem:[%s15823_s8 + $0x460] ss:$24 sps:$4 sm:$0xff]  }
0x1894   : > { %v4918_v54 = vpack.c.bf16 %v4916_v48, %v4914_v27  ;;  %v14281_v2 = vpack.c.bf16 %v4915_v50, %v4913_v49  ;;  %v11762_v27 = vld [vmem:[%s15825_s10 + $0x3b0] ss:$8 sps:$4 sm:$0xff]   ;;  %v11767_v48 = vld [vmem:[%s15825_s10 + $0x3c4] ss:$8 sps:$4 sm:$0xff]   ;;  %v11765_v49 = vld [vmem:[%s15825_s10 + $0x3c0] ss:$8 sps:$4 sm:$0xff]  }
0x1895   : > { %v11770_v50 = vld [vmem:[%s15825_s10 + $0x3d4] ss:$8 sps:$4 sm:$0xff]  }
0x1896   : > { %10001 = vmatprep.mubr.msk.bf16.mxu1 %vm484_vm0, %v4918_v54  ;;  %10002 = vmatprep.mubr.msk.bf16.mxu0 %vm484_vm0, %v4918_v54 }
0x1897   : > { %5421 = vmatmul.mubr.bf16.vlgmr.msra.gmra.mrb[104].mxu1 %v14281_v2  ;;  %5464 = vmatmul.mubr.bf16.vlgmr.msra.gmra.mrb[44].mxu0 %v14281_v2 }
0x1898   : > { %5475 = vmatpush1.bf16.msra.mxu1 %v11693_v63  ;;  %10003 = vmatprep.mubr.msk.bf16.mxu1 %vm484_vm0, %v4918_v54  ;;  %v11768_v54 = vld [vmem:[%s15825_s10 + $0x3d0] ss:$8 sps:$4 sm:$0xff]   ;;  %v11773_v63 = vld [vmem:[%s15825_s10 + $0x3e4] ss:$8 sps:$4 sm:$0xff]  }
0x1899   : > { %5476 = vmatprep.subr.bf16.mxu1 %v11698_v41  ;;  %6126 = vmatpush1.bf16.msra.mxu0 %v11729_v29  ;;  %v11771_v41 = vld [vmem:[%s15825_s10 + $0x3e0] ss:$8 sps:$4 sm:$0xff]   ;;  %v11774_v29 = vld [vmem:[%s15825_s10 + $0x3f0] ss:$8 sps:$4 sm:$0xff]  }
0x189a   : > { %6127 = vmatprep.subr.bf16.mxu0 %v11734_v30  ;;  %v11779_v30 = vld [vmem:[%s15825_s10 + $0x404] ss:$8 sps:$4 sm:$0xff]  }
0x189c   : > { %5477 = vmatpush1.bf16.msra.mxu1 %v11696_v55  ;;  %v14454_v55 = vld [vmem:[%s15824_s9 + $0x6] sm:$0x3f] }
0x189d   : > { %5478 = vmatprep.subr.bf16.mxu1 %v11701_v16  ;;  %6128 = vmatpush1.bf16.msra.mxu0 %v11732_v51  ;;  %v4998_v16 = vrot.slane %v14454_v55, %v12733_v18  ;;  %v5006_v51 = vrot.slane %v14454_v55, %v13504_v57 }
0x189e   : > { %6129 = vmatprep.subr.bf16.mxu0 %v11737_v5  ;;  %v5002_v5 = vrot.slane %v14454_v55, %v12730_v17 }
0x18a0   : > { %5479 = vmatpush1.bf16.msra.mxu1 %v11699_v47  ;;  %v5010_v47 = vrot.slane %v14454_v55, %v13512_v59 }
0x18a1   : > { %5480 = vmatprep.subr.bf16.mxu1 %v11704_v9  ;;  %6130 = vmatpush1.bf16.msra.mxu0 %v11735_v10 }
0x18a2   : > { %6131 = vmatprep.subr.bf16.mxu0 %v11740_v7 }
0x18a4   : > { %5481 = vmatpush1.bf16.msra.mxu1 %v11702_v0 }
0x18a5   : > { %5482 = vmatprep.subr.bf16.mxu1 %v11707_v52  ;;  %6132 = vmatpush1.bf16.msra.mxu0 %v11738_v60 }
0x18a6   : > { %6133 = vmatprep.subr.bf16.mxu0 %v11743_v11 }
0x18a8   : > { %5483 = vmatpush1.bf16.msra.mxu1 %v11705_v62 }
0x18a9   : > { %5484 = vmatprep.subr.bf16.mxu1 %v11710_v12  ;;  %6134 = vmatpush1.bf16.msra.mxu0 %v11741_v14 }
0x18aa   : > { %6135 = vmatprep.subr.bf16.mxu0 %v11746_v19 }
0x18ac   : > { %5485 = vmatpush1.bf16.msra.mxu1 %v11708_v20 }
0x18ad   : > { %5486 = vmatprep.subr.bf16.mxu1 %v11713_v3  ;;  %6136 = vmatpush1.bf16.msra.mxu0 %v11744_v21 }
0x18ae   : > { %6137 = vmatprep.subr.bf16.mxu0 %v11749_v22 }
0x18b0   : > { %5487 = vmatpush1.bf16.msra.mxu1 %v11711_v23 }
0x18b1   : > { %5488 = vmatprep.subr.bf16.mxu1 %v11716_v24  ;;  %6138 = vmatpush1.bf16.msra.mxu0 %v11747_v1 }
0x18b2   : > { %6139 = vmatprep.subr.bf16.mxu0 %v11752_v28 }
0x18b4   : > { %5489 = vmatpush1.bf16.msra.mxu1 %v11714_v58 }
0x18b5   : > { %5490 = vmatprep.subr.bf16.mxu1 %v11719_v13  ;;  %6140 = vmatpush1.bf16.msra.mxu0 %v11750_v34 }
0x18b6   : > { %6141 = vmatprep.subr.bf16.mxu0 %v11755_v32 }
0x18b8   : > { %5491 = vmatpush1.bf16.msra.mxu1 %v11717_v39 }
0x18b9   : > { %5492 = vmatprep.subr.bf16.mxu1 %v11722_v4  ;;  %6142 = vmatpush1.bf16.msra.mxu0 %v11753_v26 }
0x18ba   : > { %6143 = vmatprep.subr.bf16.mxu0 %v11758_v31 }
0x18bc   : > { %5493 = vmatpush1.bf16.msra.mxu1 %v11720_v42 }
0x18bd   : > { %5494 = vmatprep.subr.bf16.mxu1 %v11725_v43  ;;  %6144 = vmatpush1.bf16.msra.mxu0 %v11756_v37  ;;  %v11777_v43 = vld [vmem:[%s15825_s10 + $0x400] ss:$8 sps:$4 sm:$0xff]   ;;  %v11782_v37 = vld [vmem:[%s15825_s10 + $0x414] ss:$8 sps:$4 sm:$0xff]  }
0x18be   : > { %6145 = vmatprep.subr.bf16.mxu0 %v11761_v38  ;;  %v11780_v38 = vld [vmem:[%s15825_s10 + $0x410] ss:$8 sps:$4 sm:$0xff]  }
0x18c0   : > { %5495 = vmatpush1.bf16.msra.mxu1 %v11723_v44  ;;  %v11785_v44 = vld [vmem:[%s15825_s10 + $0x424] ss:$8 sps:$4 sm:$0xff]  }
0x18c1   : > { %5496 = vmatprep.subr.bf16.mxu1 %v11728_v35  ;;  %6146 = vmatpush1.bf16.msra.mxu0 %v11759_v45  ;;  %v11783_v35 = vld [vmem:[%s15825_s10 + $0x420] ss:$8 sps:$4 sm:$0xff]   ;;  %v11788_v45 = vld [vmem:[%s15825_s10 + $0x434] ss:$8 sps:$4 sm:$0xff]  }
0x18c2   : > { %6147 = vmatprep.subr.bf16.mxu0 %v11764_v40  ;;  %v11786_v40 = vld [vmem:[%s15825_s10 + $0x430] ss:$8 sps:$4 sm:$0xff]  }
0x18c4   : > { %5497 = vmatpush1.bf16.msra.mxu1 %v11726_v46  ;;  %v11791_v46 = vld [vmem:[%s15825_s10 + $0x444] ss:$8 sps:$4 sm:$0xff]  }
0x18c5   : > { %6148 = vmatpush1.bf16.msra.mxu0 %v11762_v27  ;;  %v11789_v27 = vld [vmem:[%s15825_s10 + $0x440] ss:$8 sps:$4 sm:$0xff]  }
0x18c6   : > { %6149 = vmatprep.subr.bf16.mxu0 %v11767_v48  ;;  %v11794_v48 = vld [vmem:[%s15825_s10 + $0x454] ss:$8 sps:$4 sm:$0xff]  }
0x18c7   : > { %5507 = vmatmul.mubr.bf16.vlgmr.msra.gmra.mrb[108].mxu1 %v14281_v2  ;;  %v11776_v2 = vld [vmem:[%s15825_s10 + $0x3f4] ss:$8 sps:$4 sm:$0xff]  }
0x18c9   : > { %6150 = vmatpush1.bf16.msra.mxu0 %v11765_v49  ;;  %v11792_v49 = vld [vmem:[%s15825_s10 + $0x450] ss:$8 sps:$4 sm:$0xff]  }
0x18ca   : > { %6151 = vmatprep.subr.bf16.mxu0 %v11770_v50  ;;  %v11797_v50 = vld [vmem:[%s15825_s10 + $0x464] ss:$8 sps:$4 sm:$0xff]  }
0x18cd   : > { %6152 = vmatpush1.bf16.msra.mxu0 %v11768_v54  ;;  %v11795_v54 = vld [vmem:[%s15825_s10 + $0x460] ss:$8 sps:$4 sm:$0xff]  }
0x18ce   : > { %6153 = vmatprep.subr.bf16.mxu0 %v11773_v63  ;;  %v11800_v63 = vld [vmem:[%s15825_s10 + $0x474] ss:$8 sps:$4 sm:$0xff]  }
0x18d1   : > { %6154 = vmatpush1.bf16.msra.mxu0 %v11771_v41  ;;  %v11798_v41 = vld [vmem:[%s15825_s10 + $0x470] ss:$8 sps:$4 sm:$0xff]  }
0x18d2   : > { %6155 = vmatprep.subr.bf16.mxu0 %v11776_v2  ;;  %v11803_v2 = vld [vmem:[%s15825_s10 + $0x484] ss:$8 sps:$4 sm:$0xff]  }
0x18d5   : > { %6156 = vmatpush1.bf16.msra.mxu0 %v11774_v29  ;;  %v11801_v29 = vld [vmem:[%s15825_s10 + $0x480] ss:$8 sps:$4 sm:$0xff]  }
0x18d6   : > { %6168 = vmatprep.subr.bf16.mxu0 %v11779_v30  ;;  %v11806_v30 = vld [vmem:[%s15825_s10 + $0x494] ss:$8 sps:$4 sm:$0xff]  }
0x196a   : > { %v5422_v9 = vpop.f32.mrb[104].mxu1  ;;  %v5465_v10 = vpop.f32.mrb[44].mxu0 }
0x196b   : > { %v5423_v7 = vadd.f32 %v5422_v9, %v4998_v16  ;;  %v5466_v0 = vadd.f32 %v5465_v10, %v5006_v51  ;;  %v5424_v52 = vpop.f32.mrb[105].mxu1  ;;  %v5467_v60 = vpop.f32.mrb[45].mxu0  ;;  %v11807_v10 = vld [vmem:[%s15825_s10 + $0x4a0] ss:$8 sps:$4 sm:$0xff]  }
0x196c   : > { %v5425_v11 = vadd.f32 %v5424_v52, %v5002_v5  ;;  %v5468_v62 = vadd.f32 %v5467_v60, %v5010_v47  ;;  %v5426_v12 = vpop.f32.mrb[106].mxu1  ;;  %v5469_v14 = vpop.f32.mrb[46].mxu0  ;;  %v11812_v52 = vld [vmem:[%s15825_s10 + $0x4b4] ss:$8 sps:$4 sm:$0xff]  }
0x196d   : > { %v5427_v19 = vadd.f32 %v5426_v12, %v4998_v16  ;;  %v5470_v20 = vadd.f32 %v5469_v14, %v5006_v51  ;;  %v5428_v3 = vpop.f32.mrb[107].mxu1  ;;  %v5471_v21 = vpop.f32.mrb[47].mxu0  ;;  %v5517_v24 = vmax.f32 %v5423_v7, 0.0  ;;  %v5519_v1 = vmax.f32 %v5466_v0, 0.0  ;;  %v11804_v16 = vld [vmem:[%s15825_s10 + $0x490] ss:$8 sps:$4 sm:$0xff]  }
0x196e   : > { %v5429_v22 = vadd.f32 %v5428_v3, %v5002_v5  ;;  %v5472_v23 = vadd.f32 %v5471_v21, %v5010_v47  ;;  %v5518_v13 = vmax.f32 %v5425_v11, 0.0  ;;  %v5520_v34 = vmax.f32 %v5468_v62, 0.0  ;;  %v11809_v5 = vld [vmem:[%s15825_s10 + $0x4a4] ss:$8 sps:$4 sm:$0xff]  }
0x196f   : > { %v5523_v28 = vmax.f32 %v5427_v19, 0.0  ;;  %v5525_v58 = vmax.f32 %v5470_v20, 0.0  ;;  %v5014_v51 = vrot.slane %v14454_v55, %v13577_v56  ;;  %v5018_v47 = vrot.slane %v14454_v55, %v13580_v61  ;;  %v11810_v55 = vld [vmem:[%s15825_s10 + $0x4b0] ss:$8 sps:$4 sm:$0xff]   ;;  %v11815_v3 = vld [vmem:[%s15825_s10 + $0x4c4] ss:$8 sps:$4 sm:$0xff]  }
0x1970   : > { %v5524_v32 = vmax.f32 %v5429_v22, 0.0  ;;  %v5526_v39 = vmax.f32 %v5472_v23, 0.0 }
0x1971   : > { %v5529_v4 = vpack.c.bf16 %v5523_v28, %v5517_v24  ;;  %v14464_v26 = vpack.c.bf16 %v5525_v58, %v5519_v1  ;;  %v11813_v1 = vld [vmem:[%s15825_s10 + $0x4c0] ss:$8 sps:$4 sm:$0xff]   ;;  %v11818_v28 = vld [vmem:[%s15825_s10 + $0x4d4] ss:$8 sps:$4 sm:$0xff]   ;;  %v11816_v58 = vld [vmem:[%s15825_s10 + $0x4d0] ss:$8 sps:$4 sm:$0xff]  }
0x1972   : > { %v5530_v31 = vpack.c.bf16 %v5524_v32, %v5518_v13  ;;  %v5532_v42 = vpack.c.bf16 %v5526_v39, %v5520_v34  ;;  %v11821_v13 = vld [vmem:[%s15825_s10 + $0x4e4] ss:$8 sps:$4 sm:$0xff]   ;;  %v11819_v34 = vld [vmem:[%s15825_s10 + $0x4e0] ss:$8 sps:$4 sm:$0xff]   ;;  %v11824_v32 = vld [vmem:[%s15825_s10 + $0x4f4] ss:$8 sps:$4 sm:$0xff]  }
0x1973   : > { %v11822_v39 = vld [vmem:[%s15825_s10 + $0x4f0] ss:$8 sps:$4 sm:$0xff]  }
0x1974   : > { %6157 = vmatprep.mubr.bf16.mxu0 %v5530_v31  ;;  %v11825_v31 = vld [vmem:[%s15825_s10 + $0x500] ss:$8 sps:$4 sm:$0xff]  }
0x1975   : > { %6158 = vmatmul.mubr.bf16.vlgmr.msra.gmra.mrb[48].mxu0 %v5529_v4  ;;  %v11827_v4 = vld [vmem:[%s15825_s10 + $0x504] ss:$8 sps:$4 sm:$0xff]  }
0x1976   : > { %6169 = vmatpush1.bf16.msra.mxu0 %v11777_v43  ;;  %6200 = vmatprep.mubr.bf16.mxu0 %v5532_v42  ;;  %v11830_v42 = vld [vmem:[%s15825_s10 + $0x514] ss:$8 sps:$4 sm:$0xff]   ;;  %v11828_v43 = vld [vmem:[%s15825_s10 + $0x510] ss:$8 sps:$4 sm:$0xff]  }
0x1977   : > { %6170 = vmatprep.subr.bf16.mxu0 %v11782_v37  ;;  %v11833_v37 = vld [vmem:[%s15825_s10 + $0x524] ss:$8 sps:$4 sm:$0xff]  }
0x197a   : > { %6171 = vmatpush1.bf16.msra.mxu0 %v11780_v38  ;;  %v11831_v38 = vld [vmem:[%s15825_s10 + $0x520] ss:$8 sps:$4 sm:$0xff]  }
0x197b   : > { %6172 = vmatprep.subr.bf16.mxu0 %v11785_v44  ;;  %v11834_v44 = vld [vmem:[%s15825_s10 + $0x530] ss:$8 sps:$4 sm:$0xff]  }
0x197e   : > { %6173 = vmatpush1.bf16.msra.mxu0 %v11783_v35  ;;  %v11839_v35 = vld [vmem:[%s15825_s10 + $0x544] ss:$8 sps:$4 sm:$0xff]  }
0x197f   : > { %6174 = vmatprep.subr.bf16.mxu0 %v11788_v45  ;;  %v11837_v45 = vld [vmem:[%s15825_s10 + $0x540] ss:$8 sps:$4 sm:$0xff]  }
0x1982   : > { %6175 = vmatpush1.bf16.msra.mxu0 %v11786_v40  ;;  %v11842_v40 = vld [vmem:[%s15825_s10 + $0x554] ss:$8 sps:$4 sm:$0xff]  }
0x1983   : > { %6176 = vmatprep.subr.bf16.mxu0 %v11791_v46  ;;  %v11840_v46 = vld [vmem:[%s15825_s10 + $0x550] ss:$8 sps:$4 sm:$0xff]  }
0x1986   : > { %6177 = vmatpush1.bf16.msra.mxu0 %v11789_v27  ;;  %v11845_v27 = vld [vmem:[%s15825_s10 + $0x564] ss:$8 sps:$4 sm:$0xff]  }
0x1987   : > { %6178 = vmatprep.subr.bf16.mxu0 %v11794_v48  ;;  %v11843_v48 = vld [vmem:[%s15825_s10 + $0x560] ss:$8 sps:$4 sm:$0xff]  }
0x198a   : > { %6179 = vmatpush1.bf16.msra.mxu0 %v11792_v49  ;;  %v11848_v49 = vld [vmem:[%s15825_s10 + $0x574] ss:$8 sps:$4 sm:$0xff]  }
0x198b   : > { %6180 = vmatprep.subr.bf16.mxu0 %v11797_v50  ;;  %v11846_v50 = vld [vmem:[%s15825_s10 + $0x570] ss:$8 sps:$4 sm:$0xff]  }
0x198e   : > { %6181 = vmatpush1.bf16.msra.mxu0 %v11795_v54  ;;  %v11851_v54 = vld [vmem:[%s15825_s10 + $0x584] ss:$8 sps:$4 sm:$0xff]  }
0x198f   : > { %6182 = vmatprep.subr.bf16.mxu0 %v11800_v63  ;;  %v11849_v63 = vld [vmem:[%s15825_s10 + $0x580] ss:$8 sps:$4 sm:$0xff]  }
0x1992   : > { %6183 = vmatpush1.bf16.msra.mxu0 %v11798_v41  ;;  %v11854_v41 = vld [vmem:[%s15825_s10 + $0x594] ss:$8 sps:$4 sm:$0xff]  }
0x1993   : > { %6184 = vmatprep.subr.bf16.mxu0 %v11803_v2  ;;  %v11852_v2 = vld [vmem:[%s15825_s10 + $0x590] ss:$8 sps:$4 sm:$0xff]  }
0x1996   : > { %6185 = vmatpush1.bf16.msra.mxu0 %v11801_v29  ;;  %v11857_v29 = vld [vmem:[%s15825_s10 + $0x5a4] ss:$8 sps:$4 sm:$0xff]  }
0x1997   : > { %6186 = vmatprep.subr.bf16.mxu0 %v11806_v30  ;;  %v11855_v30 = vld [vmem:[%s15825_s10 + $0x5a0] ss:$8 sps:$4 sm:$0xff]  }
0x199a   : > { %v5508_v9 = vpop.f32.mrb[108].mxu1  ;;  %6187 = vmatpush1.bf16.msra.mxu0 %v11804_v16  ;;  %v11860_v16 = vld [vmem:[%s15825_s10 + $0x5b4] ss:$8 sps:$4 sm:$0xff]  }
0x199b   : > { %v5509_v7 = vadd.f32 %v5508_v9, %v5014_v51  ;;  %v5510_v0 = vpop.f32.mrb[109].mxu1  ;;  %6188 = vmatprep.subr.bf16.mxu0 %v11809_v5  ;;  %v11863_v5 = vld [vmem:[%s15825_s10 + $0x5c4] ss:$8 sps:$4 sm:$0xff]   ;;  %v11866_v9 = vld [vmem:[%s15825_s10 + $0x5d4] ss:$8 sps:$4 sm:$0xff]  }
0x199c   : > { %v5511_v60 = vadd.f32 %v5510_v0, %v5018_v47  ;;  %v5512_v11 = vpop.f32.mrb[110].mxu1  ;;  %v11867_v0 = vld [vmem:[%s15825_s10 + $0x5e0] ss:$8 sps:$4 sm:$0xff]  }
0x199d   : > { %v5513_v62 = vadd.f32 %v5512_v11, %v5014_v51  ;;  %v5514_v12 = vpop.f32.mrb[111].mxu1  ;;  %v5521_v19 = vmax.f32 %v5509_v7, 0.0  ;;  %v11858_v51 = vld [vmem:[%s15825_s10 + $0x5b0] ss:$8 sps:$4 sm:$0xff]   ;;  %v11869_v7 = vld [vmem:[%s15825_s10 + $0x5e4] ss:$8 sps:$4 sm:$0xff]  }
0x199e   : > { %v5515_v14 = vadd.f32 %v5514_v12, %v5018_v47  ;;  %6189 = vmatpush1.bf16.msra.mxu0 %v11807_v10  ;;  %v5522_v21 = vmax.f32 %v5511_v60, 0.0  ;;  %v11861_v47 = vld [vmem:[%s15825_s10 + $0x5c0] ss:$8 sps:$4 sm:$0xff]   ;;  %v11864_v10 = vld [vmem:[%s15825_s10 + $0x5d0] ss:$8 sps:$4 sm:$0xff]  }
0x199f   : > { %v5527_v20 = vmax.f32 %v5513_v62, 0.0  ;;  %6190 = vmatprep.subr.bf16.mxu0 %v11812_v52  ;;  %v11872_v52 = vld [vmem:[%s15825_s10 + $0x5f4] ss:$8 sps:$4 sm:$0xff]   ;;  %v11870_v60 = vld [vmem:[%s15825_s10 + $0x5f0] ss:$8 sps:$4 sm:$0xff]  }
0x19a0   : > { %v5528_v22 = vmax.f32 %v5515_v14, 0.0  ;;  %v10100_v11 = vld [vmem:[%s15826_s11 + $0x2] sm:$0x3] }
0x19a1   : > { %v14542_v23 = vpack.c.bf16 %v5527_v20, %v5521_v19  ;;  %v5638_v62 = vrot.slane %v10100_v11, %v12733_v18  ;;  %v5642_v12 = vrot.slane %v10100_v11, %v12730_v17  ;;  %v11905_v11 = vld [vmem:[%s15818_s3 + $0x554] ss:$20 sps:$4 sm:$0xff]  }
0x19a2   : > { %v5534_v24 = vpack.c.bf16 %v5528_v22, %v5522_v21  ;;  %6191 = vmatpush1.bf16.msra.mxu0 %v11810_v55 }
0x19a3   : > { %6192 = vmatprep.subr.bf16.mxu0 %v11815_v3 }
0x19a6   : > { %6193 = vmatpush1.bf16.msra.mxu0 %v11813_v1 }
0x19a7   : > { %6194 = vmatprep.subr.bf16.mxu0 %v11818_v28 }
0x19aa   : > { %6195 = vmatpush1.bf16.msra.mxu0 %v11816_v58 }
0x19ab   : > { %6196 = vmatprep.subr.bf16.mxu0 %v11821_v13 }
0x19ae   : > { %6197 = vmatpush1.bf16.msra.mxu0 %v11819_v34 }
0x19af   : > { %6198 = vmatprep.subr.bf16.mxu0 %v11824_v32 }
0x19b2   : > { %6199 = vmatpush1.bf16.msra.mxu0 %v11822_v39  ;;  %v11878_v39 = vld [vmem:[%s15818_s3 + $0x3ec] ss:$20 sps:$4 sm:$0xff]  }
0x19b3   : > { %6211 = vmatprep.subr.bf16.mxu0 %v11827_v4  ;;  %v11881_v4 = vld [vmem:[%s15818_s3 + $0x414] ss:$20 sps:$4 sm:$0xff]  }
0x19b5   : > { %6201 = vmatmul.mubr.bf16.vlgmr.msra.gmra.mrb[48].mxu0 %v14464_v26  ;;  %v11836_v26 = vld [vmem:[%s15825_s10 + $0x534] ss:$8 sps:$4 sm:$0xff]  }
0x19b6   : > { %6212 = vmatpush1.bf16.msra.mxu0 %v11825_v31  ;;  %6243 = vmatprep.mubr.bf16.mxu0 %v5534_v24  ;;  %v11879_v31 = vld [vmem:[%s15818_s3 + $0x410] ss:$20 sps:$4 sm:$0xff]  }
0x19b7   : > { %6213 = vmatprep.subr.bf16.mxu0 %v11830_v42  ;;  %v11884_v42 = vld [vmem:[%s15818_s3 + $0x43c] ss:$20 sps:$4 sm:$0xff]  }
0x19ba   : > { %6214 = vmatpush1.bf16.msra.mxu0 %v11828_v43  ;;  %v11882_v43 = vld [vmem:[%s15818_s3 + $0x438] ss:$20 sps:$4 sm:$0xff]  }
0x19bb   : > { %6215 = vmatprep.subr.bf16.mxu0 %v11833_v37  ;;  %v11887_v37 = vld [vmem:[%s15818_s3 + $0x464] ss:$20 sps:$4 sm:$0xff]  }
0x19be   : > { %6216 = vmatpush1.bf16.msra.mxu0 %v11831_v38  ;;  %v11885_v38 = vld [vmem:[%s15818_s3 + $0x460] ss:$20 sps:$4 sm:$0xff]  }
0x19bf   : > { %6217 = vmatprep.subr.bf16.mxu0 %v11836_v26  ;;  %v11890_v26 = vld [vmem:[%s15818_s3 + $0x48c] ss:$20 sps:$4 sm:$0xff]  }
0x19c2   : > { %6218 = vmatpush1.bf16.msra.mxu0 %v11834_v44  ;;  %v11888_v44 = vld [vmem:[%s15818_s3 + $0x488] ss:$20 sps:$4 sm:$0xff]  }
0x19c3   : > { %6219 = vmatprep.subr.bf16.mxu0 %v11839_v35 }
0x19c6   : > { %6220 = vmatpush1.bf16.msra.mxu0 %v11837_v45 }
0x19c7   : > { %6221 = vmatprep.subr.bf16.mxu0 %v11842_v40 }
0x19ca   : > { %6222 = vmatpush1.bf16.msra.mxu0 %v11840_v46 }
0x19cb   : > { %6223 = vmatprep.subr.bf16.mxu0 %v11845_v27 }
0x19ce   : > { %6224 = vmatpush1.bf16.msra.mxu0 %v11843_v48 }
0x19cf   : > { %6225 = vmatprep.subr.bf16.mxu0 %v11848_v49 }
0x19d2   : > { %6226 = vmatpush1.bf16.msra.mxu0 %v11846_v50 }
0x19d3   : > { %6227 = vmatprep.subr.bf16.mxu0 %v11851_v54 }
0x19d6   : > { %6228 = vmatpush1.bf16.msra.mxu0 %v11849_v63 }
0x19d7   : > { %6229 = vmatprep.subr.bf16.mxu0 %v11854_v41 }
0x19da   : > { %6230 = vmatpush1.bf16.msra.mxu0 %v11852_v2 }
0x19db   : > { %6231 = vmatprep.subr.bf16.mxu0 %v11857_v29 }
0x19de   : > { %6232 = vmatpush1.bf16.msra.mxu0 %v11855_v30 }
0x19df   : > { %6233 = vmatprep.subr.bf16.mxu0 %v11860_v16 }
0x19e2   : > { %6234 = vmatpush1.bf16.msra.mxu0 %v11858_v51 }
0x19e3   : > { %6235 = vmatprep.subr.bf16.mxu0 %v11863_v5  ;;  %v11893_v5 = vld [vmem:[%s15818_s3 + $0x4b4] ss:$20 sps:$4 sm:$0xff]  }
0x19e6   : > { %6236 = vmatpush1.bf16.msra.mxu0 %v11861_v47  ;;  %v11891_v47 = vld [vmem:[%s15818_s3 + $0x4b0] ss:$20 sps:$4 sm:$0xff]  }
0x19e7   : > { %6237 = vmatprep.subr.bf16.mxu0 %v11866_v9  ;;  %v11896_v9 = vld [vmem:[%s15818_s3 + $0x4dc] ss:$20 sps:$4 sm:$0xff]  }
0x19ea   : > { %6238 = vmatpush1.bf16.msra.mxu0 %v11864_v10  ;;  %v11894_v10 = vld [vmem:[%s15818_s3 + $0x4d8] ss:$20 sps:$4 sm:$0xff]  }
0x19eb   : > { %6239 = vmatprep.subr.bf16.mxu0 %v11869_v7  ;;  %v11899_v7 = vld [vmem:[%s15818_s3 + $0x504] ss:$20 sps:$4 sm:$0xff]  }
0x19ee   : > { %6240 = vmatpush1.bf16.msra.mxu0 %v11867_v0  ;;  %v11897_v0 = vld [vmem:[%s15818_s3 + $0x500] ss:$20 sps:$4 sm:$0xff]  }
0x19ef   : > { %6241 = vmatprep.subr.bf16.mxu0 %v11872_v52  ;;  %v11902_v52 = vld [vmem:[%s15818_s3 + $0x52c] ss:$20 sps:$4 sm:$0xff]  }
0x19f2   : > { %6242 = vmatpush1.bf16.msra.mxu0 %v11870_v60  ;;  %v11900_v60 = vld [vmem:[%s15818_s3 + $0x528] ss:$20 sps:$4 sm:$0xff]  }
0x19f3   : > { %11012 = vmatprep.subr.bf16.mxu0 %v12422_v53 }
0x19f5   : > { %6244 = vmatmul.mubr.bf16.vlgmr.msra.gmra.mrb[48].mxu0 %v14542_v23 }
0x19f6   : > { %11014 = vmatprep.mubr.msk.bf16.mxu0 %vm12423_vm1, %v12422_v53 }
0x1ac8   : > { %v6245_v14 = vpop.f32.mrb[48].mxu0 }
0x1ac9   : > { %v11056_v55 = vadd.f32 %v6245_v14, %v5638_v62  ;;  %v6247_v19 = vpop.f32.mrb[49].mxu0  ;;  %v11906_v14 = vld [vmem:[%s15818_s3 + $0x578] ss:$20 sps:$4 sm:$0xff]  }
0x1aca   : > { %v11057_v20 = vadd.f32 %v6247_v19, %v5642_v12  ;;  %v6249_v3 = vpop.f32.mrb[50].mxu0 }
0x1acb   : > { %v6251_v21 = vpop.f32.mrb[51].mxu0  ;;  %v14675_v24 = vadd.f32 %v11056_v55, %v14080_v33  ;;  %v11058_v1 = vadd.f32 %v6249_v3, %v5638_v62  ;;  %v11873_v33 = vld [vmem:[%s15818_s3 + $0x3c0] ss:$20 sps:$4 sm:$0xff]   ;;  %v11903_v62 = vld [vmem:[%s15818_s3 + $0x550] ss:$20 sps:$4 sm:$0xff]  }
0x1acc   : > { %v14672_v22 = vadd.f32 %v11057_v20, %v14077_v25  ;;  %v11059_v23 = vadd.f32 %v6251_v21, %v5642_v12  ;;  %v11908_v12 = vld [vmem:[%s15818_s3 + $0x57c] ss:$20 sps:$4 sm:$0xff]   ;;  %v11911_v55 = vld [vmem:[%s15818_s3 + $0x3cc] ss:$20 sps:$4 sm:$0xff]  }
0x1acd   : > { %v14686_v32 = vadd.f32 %v11058_v1, %v14086_v36  ;;  %v11876_v36 = vld [vmem:[%s15818_s3 + $0x3e8] ss:$20 sps:$4 sm:$0xff]  }
0x1ace   : > { %v14678_v28 = vadd.f32 %v11059_v23, %v14082_v6  ;;  %v6262_v58 = vsel %vm484_vm0, %v14672_v22, 0.0  ;;  %v11875_v6 = vld [vmem:[%s15818_s3 + $0x3c4] ss:$20 sps:$4 sm:$0xff]  }
0x1acf   : > { %v6263_v13 = vadd.f32 %v6262_v58, %v14675_v24  ;;  %6718 = vmatprep.subr.bf16.mxu1 %v11875_v6  ;;  %v10197_v58 = vld [vmem:[%s15816_s1 + $0x4] sm:$0x3] }
0x1ad0   : > { %v6266_v34 = vsel %vm484_vm0, %v14678_v28, 0.0  ;;  %6719 = vmatpush1.bf16.msra.mxu1 %v11873_v33  ;;  %v10198_v33 = vld [vmem:[%s15817_s2 + $0x4] sm:$0x3]  ;;  %v6306_v6 = vrot.slane %v10197_v58, %v12730_v17 }
0x1ad1   : > { %6264 = vadd.xlane.f32.xlu0 %v6263_v13  ;;  %v6267_v25 = vadd.f32 %v6266_v34, %v14686_v32  ;;  %6720 = vmatprep.subr.bf16.mxu1 %v11878_v39  ;;  %v6302_v39 = vrot.slane %v10197_v58, %v12733_v18  ;;  %v11951_v58 = vld [vmem:[%s15818_s3 + $0x4c0] ss:$20 sps:$4 sm:$0xff]  }
0x1ad4   : > { %6721 = vmatpush1.bf16.msra.mxu1 %v11876_v36 }
0x1ad5   : > { %6268 = vadd.xlane.f32.xlu0 %v6267_v25  ;;  %6722 = vmatprep.subr.bf16.mxu1 %v11881_v4  ;;  %v6321_v4 = vrot.slane %v10198_v33, %v12730_v17 }
0x1ad8   : > { %6723 = vmatpush1.bf16.msra.mxu1 %v11879_v31  ;;  %v6317_v31 = vrot.slane %v10198_v33, %v12733_v18  ;;  %v11955_v33 = vld [vmem:[%s15818_s3 + $0x560] ss:$20 sps:$4 sm:$0xff]  }
0x1ad9   : > { %6724 = vmatprep.subr.bf16.mxu1 %v11884_v42 }
0x1adc   : > { %6725 = vmatpush1.bf16.msra.mxu1 %v11882_v43 }
0x1add   : > { %6726 = vmatprep.subr.bf16.mxu1 %v11887_v37 }
0x1ae0   : > { %6727 = vmatpush1.bf16.msra.mxu1 %v11885_v38 }
0x1ae1   : > { %6728 = vmatprep.subr.bf16.mxu1 %v11890_v26 }
0x1ae4   : > { %6729 = vmatpush1.bf16.msra.mxu1 %v11888_v44 }
0x1ae5   : > { %6730 = vmatprep.subr.bf16.mxu1 %v11893_v5  ;;  %v11924_v5 = vld [vmem:[%s15818_s3 + $0x490] ss:$20 sps:$4 sm:$0xff]  }
0x1ae8   : > { %6731 = vmatpush1.bf16.msra.mxu1 %v11891_v47  ;;  %v11929_v47 = vld [vmem:[%s15818_s3 + $0x4bc] ss:$20 sps:$4 sm:$0xff]  }
0x1ae9   : > { %6732 = vmatprep.subr.bf16.mxu1 %v11896_v9  ;;  %v11927_v9 = vld [vmem:[%s15818_s3 + $0x4b8] ss:$20 sps:$4 sm:$0xff]  }
0x1aec   : > { %6733 = vmatpush1.bf16.msra.mxu1 %v11894_v10  ;;  %v11932_v10 = vld [vmem:[%s15818_s3 + $0x4e4] ss:$20 sps:$4 sm:$0xff]  }
0x1aed   : > { %6734 = vmatprep.subr.bf16.mxu1 %v11899_v7  ;;  %v11930_v7 = vld [vmem:[%s15818_s3 + $0x4e0] ss:$20 sps:$4 sm:$0xff]  }
0x1af0   : > { %6735 = vmatpush1.bf16.msra.mxu1 %v11897_v0  ;;  %v11935_v0 = vld [vmem:[%s15818_s3 + $0x50c] ss:$20 sps:$4 sm:$0xff]  }
0x1af1   : > { %6736 = vmatprep.subr.bf16.mxu1 %v11902_v52  ;;  %v11933_v52 = vld [vmem:[%s15818_s3 + $0x508] ss:$20 sps:$4 sm:$0xff]  }
0x1af4   : > { %6737 = vmatpush1.bf16.msra.mxu1 %v11900_v60  ;;  %v11938_v60 = vld [vmem:[%s15818_s3 + $0x534] ss:$20 sps:$4 sm:$0xff]  }
0x1af5   : > { %6738 = vmatprep.subr.bf16.mxu1 %v11905_v11  ;;  %v11936_v11 = vld [vmem:[%s15818_s3 + $0x530] ss:$20 sps:$4 sm:$0xff]  }
0x1af8   : > { %6739 = vmatpush1.bf16.msra.mxu1 %v11903_v62  ;;  %v11941_v62 = vld [vmem:[%s15818_s3 + $0x55c] ss:$20 sps:$4 sm:$0xff]  }
0x1af9   : > { %6740 = vmatprep.subr.bf16.mxu1 %v11908_v12  ;;  %v11939_v12 = vld [vmem:[%s15818_s3 + $0x558] ss:$20 sps:$4 sm:$0xff]  }
0x1afc   : > { %6741 = vmatpush1.bf16.msra.mxu1 %v11906_v14  ;;  %v11944_v14 = vld [vmem:[%s15818_s3 + $0x584] ss:$20 sps:$4 sm:$0xff]  }
0x1afd   : > { %6761 = vmatprep.subr.bf16.mxu1 %v11911_v55  ;;  %v11942_v55 = vld [vmem:[%s15818_s3 + $0x580] ss:$20 sps:$4 sm:$0xff]  }
0x1b5e   : > { %v6265_v35 = vpop.xlane.xlu0 %6264 }
0x1b5f   : > { %v6270_v45 = vmul.f32 0.0052083335, %v6265_v35 }
0x1b61   : > { %v6272_v40 = vsub.f32 %v14675_v24, %v6270_v45  ;;  %v6273_v46 = vsub.f32 %v14672_v22, %v6270_v45 }
0x1b62   : > { %v6269_v27 = vpop.xlane.xlu0 %6268 }
0x1b63   : > { %v6271_v48 = vmul.f32 0.0052083335, %v6269_v27  ;;  %v6276_v49 = vmul.f32 %v6272_v40, %v6272_v40  ;;  %v6277_v50 = vmul.f32 %v6273_v46, %v6273_v46 }
0x1b65   : > { %v6274_v54 = vsub.f32 %v14686_v32, %v6271_v48  ;;  %v6275_v63 = vsub.f32 %v14678_v28, %v6271_v48  ;;  %v6280_v41 = vsel %vm484_vm0, %v6277_v50, 0.0  ;;  %v11909_v48 = vld [vmem:[%s15818_s3 + $0x3c8] ss:$20 sps:$4 sm:$0xff]  }
0x1b66   : > { %v6281_v2 = vadd.f32 %v6280_v41, %v6276_v49  ;;  %v11914_v50 = vld [vmem:[%s15818_s3 + $0x3f4] ss:$20 sps:$4 sm:$0xff]   ;;  %v11915_v41 = vld [vmem:[%s15818_s3 + $0x418] ss:$20 sps:$4 sm:$0xff]  }
0x1b67   : > { %v6278_v29 = vmul.f32 %v6274_v54, %v6274_v54  ;;  %v6279_v30 = vmul.f32 %v6275_v63, %v6275_v63 }
0x1b68   : > { %6282 = vadd.xlane.f32.xlu0 %v6281_v2  ;;  %v11920_v2 = vld [vmem:[%s15818_s3 + $0x444] ss:$20 sps:$4 sm:$0xff]  }
0x1b69   : > { %v6284_v16 = vsel %vm484_vm0, %v6279_v30, 0.0  ;;  %v11923_v30 = vld [vmem:[%s15818_s3 + $0x46c] ss:$20 sps:$4 sm:$0xff]  }
0x1b6a   : > { %v6285_v51 = vadd.f32 %v6284_v16, %v6278_v29  ;;  %v11918_v29 = vld [vmem:[%s15818_s3 + $0x440] ss:$20 sps:$4 sm:$0xff]   ;;  %v11921_v16 = vld [vmem:[%s15818_s3 + $0x468] ss:$20 sps:$4 sm:$0xff]  }
0x1b6c   : > { %6286 = vadd.xlane.f32.xlu0 %v6285_v51  ;;  %v11926_v51 = vld [vmem:[%s15818_s3 + $0x494] ss:$20 sps:$4 sm:$0xff]  }
0x1bf5   : > { %v6283_v19 = vpop.xlane.xlu0 %6282 }
0x1bf6   : > { %v6288_v20 = vmul.f32 0.0052083335, %v6283_v19  ;;  %v11945_v19 = vld [vmem:[%s15818_s3 + $0x3d0] ss:$20 sps:$4 sm:$0xff]  }
0x1bf8   : > { %v6290_v3 = vadd.f32 1e-05, %v6288_v20  ;;  %v11946_v20 = vld [vmem:[%s15818_s3 + $0x3f8] ss:$20 sps:$4 sm:$0xff]  }
0x1bf9   : > { %v6287_v21 = vpop.xlane.xlu0 %6286 }
0x1bfa   : > { %12321 = vrsqrt.f32 %v6290_v3  ;;  %v6289_v23 = vmul.f32 0.0052083335, %v6287_v21  ;;  %v11947_v3 = vld [vmem:[%s15818_s3 + $0x420] ss:$20 sps:$4 sm:$0xff]   ;;  %v11948_v21 = vld [vmem:[%s15818_s3 + $0x448] ss:$20 sps:$4 sm:$0xff]  }
0x1bfc   : > { %v6291_v1 = vadd.f32 1e-05, %v6289_v23  ;;  %v11949_v23 = vld [vmem:[%s15818_s3 + $0x470] ss:$20 sps:$4 sm:$0xff]  }
0x1bfe   : > { %12323 = vrsqrt.f32 %v6291_v1  ;;  %v11950_v1 = vld [vmem:[%s15818_s3 + $0x498] ss:$20 sps:$4 sm:$0xff]  }
0x1c04   : > { %v12322_v13 = vpop.eup %12321 }
0x1c05   : > { %v6294_v34 = vmul.f32 %v12322_v13, %v6272_v40  ;;  %v6295_v25 = vmul.f32 %v12322_v13, %v6273_v46  ;;  %v11952_v13 = vld [vmem:[%s15818_s3 + $0x4e8] ss:$20 sps:$4 sm:$0xff]  }
0x1c07   : > { %v6310_v37 = vmul.f32 %v6306_v6, %v6295_v25  ;;  %v6309_v38 = vmul.f32 %v6302_v39, %v6294_v34  ;;  %v11953_v34 = vld [vmem:[%s15818_s3 + $0x510] ss:$20 sps:$4 sm:$0xff]   ;;  %v11954_v25 = vld [vmem:[%s15818_s3 + $0x538] ss:$20 sps:$4 sm:$0xff]  }
0x1c08   : > { %v12324_v36 = vpop.eup %12323 }
0x1c09   : > { %v6296_v42 = vmul.f32 %v12324_v36, %v6274_v54  ;;  %v6297_v43 = vmul.f32 %v12324_v36, %v6275_v63  ;;  %v6325_v35 = vadd.f32 %v6321_v4, %v6310_v37  ;;  %v6324_v40 = vadd.f32 %v6317_v31, %v6309_v38  ;;  %v11912_v54 = vld [vmem:[%s15818_s3 + $0x3f0] ss:$20 sps:$4 sm:$0xff]  }
0x1c0a   : > { %v11917_v63 = vld [vmem:[%s15818_s3 + $0x41c] ss:$20 sps:$4 sm:$0xff]  }
0x1c0b   : > { %v6312_v26 = vmul.f32 %v6306_v6, %v6297_v43  ;;  %v6311_v44 = vmul.f32 %v6302_v39, %v6296_v42  ;;  %v11956_v6 = vld [vmem:[%s15818_s3 + $0x588] ss:$20 sps:$4 sm:$0xff]  }
0x1c0d   : > { %v6327_v45 = vadd.f32 %v6321_v4, %v6312_v26  ;;  %v6326_v46 = vadd.f32 %v6317_v31, %v6311_v44 }
0x1c0f   : > { %v6329_v27 = vpack.c.bf16 %v6327_v45, %v6325_v35  ;;  %v14783_v49 = vpack.c.bf16 %v6326_v46, %v6324_v40 }
0x1c11   : > { %10331 = vmatprep.mubr.msk.bf16.mxu1 %vm484_vm0, %v6329_v27 }
0x1c12   : > { %6751 = vmatmul.mubr.bf16.vlgmr.msra.gmra.mrb[112].mxu1 %v14783_v49 }
0x1c13   : > { %6762 = vmatpush1.bf16.msra.mxu1 %v11909_v48  ;;  %10332 = vmatprep.mubr.msk.bf16.mxu1 %vm484_vm0, %v6329_v27 }
0x1c14   : > { %6763 = vmatprep.subr.bf16.mxu1 %v11914_v50 }
0x1c17   : > { %6764 = vmatpush1.bf16.msra.mxu1 %v11912_v54 }
0x1c18   : > { %6765 = vmatprep.subr.bf16.mxu1 %v11917_v63 }
0x1c1b   : > { %6766 = vmatpush1.bf16.msra.mxu1 %v11915_v41 }
0x1c1c   : > { %6767 = vmatprep.subr.bf16.mxu1 %v11920_v2 }
0x1c1f   : > { %6768 = vmatpush1.bf16.msra.mxu1 %v11918_v29 }
0x1c20   : > { %6769 = vmatprep.subr.bf16.mxu1 %v11923_v30 }
0x1c23   : > { %6770 = vmatpush1.bf16.msra.mxu1 %v11921_v16 }
0x1c24   : > { %6771 = vmatprep.subr.bf16.mxu1 %v11926_v51 }
0x1c27   : > { %6772 = vmatpush1.bf16.msra.mxu1 %v11924_v5 }
0x1c28   : > { %6773 = vmatprep.subr.bf16.mxu1 %v11929_v47 }
0x1c2b   : > { %6774 = vmatpush1.bf16.msra.mxu1 %v11927_v9 }
0x1c2c   : > { %6775 = vmatprep.subr.bf16.mxu1 %v11932_v10 }
0x1c2f   : > { %6776 = vmatpush1.bf16.msra.mxu1 %v11930_v7 }
0x1c30   : > { %6777 = vmatprep.subr.bf16.mxu1 %v11935_v0 }
0x1c33   : > { %6778 = vmatpush1.bf16.msra.mxu1 %v11933_v52 }
0x1c34   : > { %6779 = vmatprep.subr.bf16.mxu1 %v11938_v60 }
0x1c37   : > { %6780 = vmatpush1.bf16.msra.mxu1 %v11936_v11 }
0x1c38   : > { %6781 = vmatprep.subr.bf16.mxu1 %v11941_v62 }
0x1c3b   : > { %6782 = vmatpush1.bf16.msra.mxu1 %v11939_v12 }
0x1c3c   : > { %6783 = vmatprep.subr.bf16.mxu1 %v11944_v14 }
0x1c3f   : > { %6784 = vmatpush1.bf16.msra.mxu1 %v11942_v55 }
0x1c40   : > { %6804 = vmatprep.subr.bf16.mxu1 %v12421_v8 }
0x1c42   : > { %6794 = vmatmul.mubr.bf16.vlgmr.msra.gmra.mrb[116].mxu1 %v14783_v49 }
0x1c43   : > { %6805 = vmatpush1.bf16.msra.mxu1 %v11945_v19  ;;  %10333 = vmatprep.mubr.msk.bf16.mxu1 %vm484_vm0, %v6329_v27 }
0x1c44   : > { %6806 = vmatprep.subr.bf16.mxu1 %v12421_v8 }
0x1c47   : > { %6807 = vmatpush1.bf16.msra.mxu1 %v11946_v20 }
0x1c48   : > { %6808 = vmatprep.subr.bf16.mxu1 %v12421_v8 }
0x1c4b   : > { %6809 = vmatpush1.bf16.msra.mxu1 %v11947_v3 }
0x1c4c   : > { %6810 = vmatprep.subr.bf16.mxu1 %v12421_v8 }
0x1c4f   : > { %6811 = vmatpush1.bf16.msra.mxu1 %v11948_v21 }
0x1c50   : > { %6812 = vmatprep.subr.bf16.mxu1 %v12421_v8 }
0x1c53   : > { %6813 = vmatpush1.bf16.msra.mxu1 %v11949_v23 }
0x1c54   : > { %6814 = vmatprep.subr.bf16.mxu1 %v12421_v8 }
0x1c57   : > { %6815 = vmatpush1.bf16.msra.mxu1 %v11950_v1 }
0x1c58   : > { %6816 = vmatprep.subr.bf16.mxu1 %v12421_v8 }
0x1c5b   : > { %6817 = vmatpush1.bf16.msra.mxu1 %v11951_v58 }
0x1c5c   : > { %6818 = vmatprep.subr.bf16.mxu1 %v12421_v8 }
0x1c5f   : > { %6819 = vmatpush1.bf16.msra.mxu1 %v11952_v13 }
0x1c60   : > { %6820 = vmatprep.subr.bf16.mxu1 %v12421_v8 }
0x1c63   : > { %6821 = vmatpush1.bf16.msra.mxu1 %v11953_v34 }
0x1c64   : > { %6822 = vmatprep.subr.bf16.mxu1 %v12421_v8 }
0x1c67   : > { %6823 = vmatpush1.bf16.msra.mxu1 %v11954_v25 }
0x1c68   : > { %6824 = vmatprep.subr.bf16.mxu1 %v12421_v8 }
0x1c6b   : > { %6825 = vmatpush1.bf16.msra.mxu1 %v11955_v33 }
0x1c6c   : > { %6826 = vmatprep.subr.bf16.mxu1 %v12421_v8 }
0x1c6f   : > { %6827 = vmatpush1.bf16.msra.mxu1 %v11956_v6 }
0x1c70   : > { %10976 = vmatprep.subr.bf16.mxu1 %v12422_v53 }
0x1c72   : > { %6837 = vmatmul.mubr.bf16.vlgmr.msra.gmra.mrb[120].mxu1 %v14783_v49 }
0x1c73   : > { %10978 = vmatprep.mubr.msk.bf16.mxu1 %vm12423_vm1, %v12422_v53 }
0x1ce5   : > { %v6752_v39 = vpop.f32.mrb[112].mxu1 }
0x1ce6   : > { %v6754_v36 = vpop.f32.mrb[113].mxu1 }
0x1ce7   : > { %v6756_v4 = vpop.f32.mrb[114].mxu1 }
0x1ce8   : > { %v6845_v31 = vpack.c.bf16 %v6756_v4, %v6752_v39  ;;  %v6758_v42 = vpop.f32.mrb[115].mxu1 }
0x1ce9   : > { %v14908_v43 = vpack.c.bf16 %v6758_v42, %v6754_v36 }
0x1cea   : > { %v7184_v47 = vrot.slane %v6845_v31, 4 }
0x1ceb   : > { %6851 = vrot.lane.b32.xlu1 %v14908_v43, %s12424_s0  ;;  %v7185_v5 = vrot.slane %v14908_v43, 4 }
0x1d15   : > { %v6795_v37 = vpop.f32.mrb[116].mxu1 }
0x1d16   : > { %v6797_v38 = vpop.f32.mrb[117].mxu1 }
0x1d17   : > { %v6799_v26 = vpop.f32.mrb[118].mxu1 }
0x1d18   : > { %v6847_v44 = vpack.c.bf16 %v6799_v26, %v6795_v37  ;;  %v6801_v35 = vpop.f32.mrb[119].mxu1 }
0x1d19   : > { %v14912_v45 = vpack.c.bf16 %v6801_v35, %v6797_v38 }
0x1d1a   : > { %v7297_v9 = vrot.slane %v6847_v44, 4  ;;  %v6966_v19 = vsel %vm484_vm0, %v6847_v44, 0 }
0x1d1b   : > { %v6914_v63 = vsel %vm1137_vm2, %v14912_v45, 0 }
0x1d1c   : > { %v7302_v3 = vsel %vm484_vm0, %v7297_v9, 0 }
0x1d45   : > { %v6838_v40 = vpop.f32.mrb[120].mxu1 }
0x1d46   : > { %v6840_v46 = vpop.f32.mrb[121].mxu1 }
0x1d47   : > { %v6841_v27 = vpop.f32.mrb[122].mxu1 }
0x1d48   : > { %v14914_v48 = vpack.c.bf16 %v6841_v27, %v6838_v40  ;;  %v6843_v49 = vpop.f32.mrb[123].mxu1 }
0x1d5d   : > { %v6852_v50 = vpop.permute.xlu1 %6851 }
0x1d5e   : > { %v6857_v54 = vsel %vm484_vm0, %v6852_v50, 0 }
0x1d5f   : > { %10977 = vmatpush3.bf16.xpose.msra.mxu1 %v6857_v54 }
0x1d60   : > { %10982 = vmatprep.subr.bf16.mxu1 %v12422_v53 }
0x1d66   : > { %10979 = vmatmul.mubr.msk.bf16.vlgmr.msra.gmra.mrb[124].mxu1 %vm484_vm0, %v6845_v31 }
0x1d67   : > { %10983 = vmatpush3.bf16.msra.mxu1 %v6914_v63  ;;  %10984 = vmatprep.mubr.msk.bf16.mxu1 %vm12423_vm1, %v12422_v53 }
0x1d68   : > { %10988 = vmatprep.subr.bf16.mxu1 %v12422_v53 }
0x1e39   : > { %v6893_v41 = vpop.f32.mrb[124].mxu1 }
0x1e3a   : > { %v6899_v2 = vsel %vm12837_vm3, %v6893_v41, -1e+30  ;;  %v10980_v29 = vpop.f32.mrb[125].mxu1 }
0x1e3b   : > { %v6896_v30 = vpop.f32.mrb[126].mxu1  ;;  %v6900_v16 = vsel %vm1123_vm4, %v6899_v2, -inf }
0x1e3c   : > { %6901 = vmax.xlane.f32.xlu0 %v6900_v16  ;;  %v10981_v51 = vpop.f32.mrb[127].mxu1  ;;  %v7245_v30 = vrot.slane %v14912_v45, 4 }
0x1e52   : > { %6960 = vrot.lane.b32.xlu0 %v6845_v31, %s12424_s0 }
0x1e56   : > { %7020 = vrot.lane.b32.xlu0 %v14912_v45, %s12424_s0  ;;  %v7470_v45 = vrot.slane %v14914_v48, 4 }
0x1e5a   : > { %7076 = vrot.lane.b32.xlu0 %v6847_v44, %s12424_s0 }
0x1e5e   : > { %7186 = vrot.lane.b32.xlu0 %v7185_v5, %s12424_s0 }
0x1e62   : > { %7295 = vrot.lane.b32.xlu0 %v7184_v47, %s12424_s0 }
0x1e66   : > { %7410 = vrot.lane.b32.xlu0 %v7297_v9, %s12424_s0 }
0x1ec9   : > { %v6902_v10 = vpop.xlane.xlu0 %6901 }
0x1eca   : > { %v6903_v7 = vsub.f32 %v6899_v2, %v6902_v10 }
0x1ecc   : > { %v6904_v0 = vmul.f32 1.442695, %v6903_v7 }
0x1ecd   : > { %v6961_v52 = vpop.permute.xlu0 %6960 }
0x1ece   : > { %12325 = vpow2.f32 %v6904_v0 }
0x1ed1   : > { %v7021_v60 = vpop.permute.xlu0 %7020 }
0x1ed2   : > { %v7026_v21 = vsel %vm1137_vm2, %v7021_v60, 0 }
0x1ed5   : > { %v14935_v11 = vpop.permute.xlu0 %7076 }
0x1ed6   : > { %v7082_v0 = vsel %vm484_vm0, %v14935_v11, 0 }
0x1ed8   : > { %v14937_v62 = vpop.eup %12325 }
0x1ed9   : > { %v7187_v12 = vpop.permute.xlu0 %7186  ;;  %v6909_v14 = vpack.c.bf16 %v14937_v62, %v14937_v62  ;;  %v6906_v15 = vsel %vm1123_vm4, %v14937_v62, 0.0 }
0x1eda   : > { %v7192_v55 = vsel %vm484_vm0, %v7187_v12, 0 }
0x1edb   : > { %10985 = vmatmul.mubr.msk.bf16.vlgmr.msra.gmra.mrb[128].mxu1 %vm1123_vm4, %v6909_v14  ;;  %11013 = vmatpush3.bf16.xpose.msra.mxu0 %v7192_v55 }
0x1edc   : > { %10989 = vmatpush3.bf16.xpose.msra.mxu1 %v6966_v19  ;;  %10990 = vmatprep.mubr.msk.bf16.mxu1 %vm12423_vm1, %v12422_v53 }
0x1edd   : > { %10994 = vmatprep.subr.bf16.mxu1 %v12422_v53  ;;  %11024 = vmatprep.subr.bf16.mxu0 %v12422_v53  ;;  %v7296_v20 = vpop.permute.xlu0 %7295 }
0x1ee1   : > { %v7411_v23 = vpop.permute.xlu0 %7410 }
0x1ee2   : > { %11015 = vmatmul.mubr.msk.bf16.vlgmr.msra.gmra.mrb[52].mxu0 %vm484_vm0, %v7184_v47  ;;  %v7416_v1 = vsel %vm484_vm0, %v7411_v23, 0 }
0x1ee3   : > { %10991 = vmatmul.mubr.msk.bf16.vlgmr.msra.gmra.mrb[132].mxu1 %vm484_vm0, %v6961_v52  ;;  %11025 = vmatpush3.bf16.xpose.msra.mxu0 %v7302_v3  ;;  %v7139_v52 = vsel %vm1137_vm2, %v14914_v48, 0  ;;  %v11957_v48 = vld [vmem:[%s15819_s4 + $0x180] ss:$8 sps:$4 sm:$0xff]  }
0x1ee4   : > { %10995 = vmatpush3.bf16.msra.mxu1 %v7026_v21  ;;  %11026 = vmatprep.mubr.msk.bf16.mxu0 %vm12423_vm1, %v12422_v53 }
0x1ee5   : > { %11036 = vmatprep.subr.bf16.mxu0 %v12422_v53  ;;  %10996 = vmatprep.mubr.msk.bf16.mxu1 %vm12423_vm1, %v12422_v53 }
0x1ee6   : > { %11000 = vmatprep.subr.bf16.mxu1 %v12422_v53 }
0x1eea   : > { %11027 = vmatmul.mubr.msk.bf16.vlgmr.msra.gmra.mrb[56].mxu0 %vm484_vm0, %v7296_v20 }
0x1eeb   : > { %11037 = vmatpush3.bf16.xpose.msra.mxu0 %v7416_v1  ;;  %11038 = vmatprep.mubr.msk.bf16.mxu0 %vm12423_vm1, %v12422_v53 }
0x1ef2   : > { %11039 = vmatmul.mubr.msk.bf16.vlgmr.msra.gmra.mrb[60].mxu0 %vm484_vm0, %v7185_v5 }
0x1fae   : > { %v14963_v58 = vpop.f32.mrb[128].mxu1 }
0x1faf   : > { %v10986_v13 = vpop.f32.mrb[129].mxu1 }
0x1fb0   : > { %v6953_v34 = vpop.f32.mrb[130].mxu1 }
0x1fb1   : > { %v10987_v25 = vpop.f32.mrb[131].mxu1 }
0x1fb5   : > { %v7228_v33 = vpop.f32.mrb[52].mxu0 }
0x1fb6   : > { %v7002_v6 = vpop.f32.mrb[132].mxu1  ;;  %v11016_v39 = vpop.f32.mrb[53].mxu0  ;;  %v7234_v26 = vsel %vm12837_vm3, %v7228_v33, -1e+30 }
0x1fb7   : > { %v7008_v36 = vsel %vm12837_vm3, %v7002_v6, -1e+30  ;;  %v10992_v4 = vpop.f32.mrb[133].mxu1  ;;  %v7231_v31 = vpop.f32.mrb[54].mxu0  ;;  %v7235_v35 = vsel %vm1123_vm4, %v7234_v26, -inf }
0x1fb8   : > { %v7005_v42 = vpop.f32.mrb[134].mxu1  ;;  %v11017_v37 = vpop.f32.mrb[55].mxu0  ;;  %v7009_v38 = vsel %vm1123_vm4, %v7008_v36, -inf }
0x1fb9   : > { %7010 = vmax.xlane.f32.xlu1 %v7009_v38  ;;  %v10993_v44 = vpop.f32.mrb[135].mxu1 }
0x1fbd   : > { %v7338_v40 = vpop.f32.mrb[56].mxu0  ;;  %7236 = vmax.xlane.f32.xlu1 %v7235_v35 }
0x1fbe   : > { %v7344_v46 = vsel %vm12837_vm3, %v7338_v40, -1e+30  ;;  %v11028_v27 = vpop.f32.mrb[57].mxu0 }
0x1fbf   : > { %v7341_v49 = vpop.f32.mrb[58].mxu0  ;;  %v7345_v50 = vsel %vm1123_vm4, %v7344_v46, -inf }
0x1fc0   : > { %v11029_v54 = vpop.f32.mrb[59].mxu0 }
0x1fc1   : > { %7346 = vmax.xlane.f32.xlu1 %v7345_v50 }
0x1fc5   : > { %v7452_v63 = vpop.f32.mrb[60].mxu0 }
0x1fc6   : > { %v11040_v41 = vpop.f32.mrb[61].mxu0  ;;  %v7458_v16 = vsel %vm12837_vm3, %v7452_v63, -1e+30 }
0x1fc7   : > { %v7455_v2 = vpop.f32.mrb[62].mxu0  ;;  %v7459_v51 = vsel %vm1123_vm4, %v7458_v16, -inf }
0x1fc8   : > { %v11041_v29 = vpop.f32.mrb[63].mxu0  ;;  %v7250_v2 = vsel %vm1137_vm2, %v7245_v30, 0 }
0x1fd2   : > { %7355 = vrot.lane.b32.xlu1 %v7245_v30, %s12424_s0 }
0x1ff6   : > { %7460 = vmax.xlane.f32.xlu1 %v7459_v51 }
0x2046   : > { %v7011_v5 = vpop.xlane.xlu1 %7010 }
0x2047   : > { %v7012_v47 = vsub.f32 %v7008_v36, %v7011_v5 }
0x2049   : > { %v7013_v9 = vmul.f32 1.442695, %v7012_v47 }
0x204a   : > { %v7237_v60 = vpop.xlane.xlu1 %7236 }
0x204b   : > { %12327 = vpow2.f32 %v7013_v9  ;;  %v7238_v23 = vsub.f32 %v7234_v26, %v7237_v60  ;;  %v11963_v60 = vld [vmem:[%s15819_s4 + $0x1a0] ss:$8 sps:$4 sm:$0xff]  }
0x204d   : > { %v7239_v13 = vmul.f32 1.442695, %v7238_v23 }
0x204e   : > { %v7347_v11 = vpop.xlane.xlu1 %7346 }
0x204f   : > { %v7348_v12 = vsub.f32 %v7344_v46, %v7347_v11  ;;  %v11968_v11 = vld [vmem:[%s15819_s4 + $0x1b4] ss:$8 sps:$4 sm:$0xff]  }
0x2051   : > { %v7349_v55 = vmul.f32 1.442695, %v7348_v12 }
0x2052   : > { %v7356_v20 = vpop.permute.xlu1 %7355 }
0x2053   : > { %12329 = vpow2.f32 %v7349_v55  ;;  %v7361_v5 = vsel %vm1137_vm2, %v7356_v20, 0  ;;  %v11971_v55 = vld [vmem:[%s15819_s4 + $0x1c4] ss:$8 sps:$4 sm:$0xff]  }
0x2054   : > { %12331 = vpow2.f32 %v7239_v13 }
0x2055   : > { %v12328_v10 = vpop.eup %12327 }
0x2056   : > { %v7018_v7 = vpack.c.bf16 %v12328_v10, %v12328_v10  ;;  %v7015_v31 = vsel %vm1123_vm4, %v12328_v10, 0.0 }
0x2058   : > { %10997 = vmatmul.mubr.msk.bf16.vlgmr.msra.gmra.mrb[136].mxu1 %vm1123_vm4, %v7018_v7  ;;  %v11959_v7 = vld [vmem:[%s15819_s4 + $0x184] ss:$8 sps:$4 sm:$0xff]  }
0x2059   : > { %11001 = vmatpush3.bf16.xpose.msra.mxu1 %v7082_v0  ;;  %11002 = vmatprep.mubr.msk.bf16.mxu1 %vm12423_vm1, %v12422_v53  ;;  %v11962_v0 = vld [vmem:[%s15819_s4 + $0x194] ss:$8 sps:$4 sm:$0xff]  }
0x205a   : > { %11006 = vmatprep.subr.bf16.mxu1 %v12422_v53  ;;  %7674 = vmatprep.subr.bf16.mxu0 %v11959_v7 }
0x205b   : > { %7675 = vmatpush1.bf16.msra.mxu0 %v11957_v48 }
0x205c   : > { %7676 = vmatprep.subr.bf16.mxu0 %v11962_v0 }
0x205d   : > { %v12330_v42 = vpop.eup %12329 }
0x205e   : > { %v7351_v37 = vsel %vm1123_vm4, %v12330_v42, 0.0  ;;  %v12332_v38 = vpop.eup %12331  ;;  %v7354_v30 = vpack.c.bf16 %v12330_v42, %v12330_v42 }
0x205f   : > { %v7241_v26 = vsel %vm1123_vm4, %v12332_v38, 0.0  ;;  %v7244_v51 = vpack.c.bf16 %v12332_v38, %v12332_v38 }
0x2060   : > { %11003 = vmatmul.mubr.msk.bf16.vlgmr.msra.gmra.mrb[140].mxu1 %vm484_vm0, %v14908_v43 }
0x2061   : > { %11007 = vmatpush3.bf16.msra.mxu1 %v7139_v52  ;;  %11008 = vmatprep.mubr.msk.bf16.mxu1 %vm12423_vm1, %v12422_v53  ;;  %v11965_v52 = vld [vmem:[%s15819_s4 + $0x1a4] ss:$8 sps:$4 sm:$0xff]  }
0x2062   : > { %11018 = vmatprep.subr.bf16.mxu1 %v12422_v53 }
0x2083   : > { %v7461_v1 = vpop.xlane.xlu1 %7460 }
0x2084   : > { %v7462_v34 = vsub.f32 %v7458_v16, %v7461_v1  ;;  %v11977_v1 = vld [vmem:[%s15819_s4 + $0x1e4] ss:$8 sps:$4 sm:$0xff]  }
0x2086   : > { %v7463_v4 = vmul.f32 1.442695, %v7462_v34  ;;  %v11980_v34 = vld [vmem:[%s15819_s4 + $0x1f4] ss:$8 sps:$4 sm:$0xff]  }
0x2088   : > { %12333 = vpow2.f32 %v7463_v4 }
0x2092   : > { %v12334_v44 = vpop.eup %12333 }
0x2093   : > { %v7465_v35 = vsel %vm1123_vm4, %v12334_v44, 0.0  ;;  %v7468_v10 = vpack.c.bf16 %v12334_v44, %v12334_v44  ;;  %v11989_v44 = vld [vmem:[%s15819_s4 + $0x224] ss:$8 sps:$4 sm:$0xff]  }
0x212b   : > { %v14994_v14 = vpop.f32.mrb[136].mxu1 }
0x212c   : > { %v10998_v19 = vpop.f32.mrb[137].mxu1 }
0x212d   : > { %v7065_v3 = vpop.f32.mrb[138].mxu1  ;;  %v11969_v19 = vld [vmem:[%s15819_s4 + $0x1c0] ss:$8 sps:$4 sm:$0xff]  }
0x212e   : > { %v10999_v21 = vpop.f32.mrb[139].mxu1  ;;  %v11974_v3 = vld [vmem:[%s15819_s4 + $0x1d4] ss:$8 sps:$4 sm:$0xff]  }
0x212f   : > { %v11972_v21 = vld [vmem:[%s15819_s4 + $0x1d0] ss:$8 sps:$4 sm:$0xff]  }
0x2133   : > { %v7118_v43 = vpop.f32.mrb[140].mxu1 }
0x2134   : > { %v7124_v25 = vsel %vm12837_vm3, %v7118_v43, -1e+30  ;;  %v11004_v33 = vpop.f32.mrb[141].mxu1  ;;  %v11975_v43 = vld [vmem:[%s15819_s4 + $0x1e0] ss:$8 sps:$4 sm:$0xff]  }
0x2135   : > { %v7121_v6 = vpop.f32.mrb[142].mxu1  ;;  %v7125_v39 = vsel %vm1123_vm4, %v7124_v25, -inf  ;;  %v11983_v33 = vld [vmem:[%s15819_s4 + $0x204] ss:$8 sps:$4 sm:$0xff]  }
0x2136   : > { %7126 = vmax.xlane.f32.xlu0 %v7125_v39  ;;  %v11005_v36 = vpop.f32.mrb[143].mxu1  ;;  %v11981_v6 = vld [vmem:[%s15819_s4 + $0x200] ss:$8 sps:$4 sm:$0xff]   ;;  %v11986_v39 = vld [vmem:[%s15819_s4 + $0x214] ss:$8 sps:$4 sm:$0xff]  }
0x2137   : > { %v11984_v36 = vld [vmem:[%s15819_s4 + $0x210] ss:$8 sps:$4 sm:$0xff]  }
0x213a   : > { %7016 = vadd.xlane.f32.xlu0 %v7015_v31 }
0x213e   : > { %7352 = vadd.xlane.f32.xlu0 %v7351_v37 }
0x2142   : > { %6907 = vadd.xlane.f32.xlu0 %v6906_v15 }
0x2146   : > { %7242 = vadd.xlane.f32.xlu0 %v7241_v26  ;;  %v11987_v26 = vld [vmem:[%s15819_s4 + $0x220] ss:$8 sps:$4 sm:$0xff]  }
0x214a   : > { %7466 = vadd.xlane.f32.xlu0 %v7465_v35  ;;  %v11992_v35 = vld [vmem:[%s15819_s4 + $0x234] ss:$8 sps:$4 sm:$0xff]  }
0x21c3   : > { %v7127_v40 = vpop.xlane.xlu0 %7126 }
0x21c4   : > { %v7128_v46 = vsub.f32 %v7124_v25, %v7127_v40  ;;  %v11978_v25 = vld [vmem:[%s15819_s4 + $0x1f0] ss:$8 sps:$4 sm:$0xff]  }
0x21c6   : > { %v7129_v27 = vmul.f32 1.442695, %v7128_v46 }
0x21c7   : > { %v7017_v49 = vpop.xlane.xlu0 %7016 }
0x21c8   : > { %12335 = vpow2.f32 %v7129_v27 }
0x21cb   : > { %v15005_v50 = vpop.xlane.xlu0 %7352 }
0x21cf   : > { %v6908_v54 = vpop.xlane.xlu0 %6907 }
0x21d0   : > { %12337 = vrcp.f32 %v6908_v54 }
0x21d1   : > { %12339 = vrcp.f32 %v7017_v49 }
0x21d2   : > { %v12336_v63 = vpop.eup %12335 }
0x21d3   : > { %v7131_v62 = vsel %vm1123_vm4, %v12336_v63, 0.0  ;;  %v7134_v41 = vpack.c.bf16 %v12336_v63, %v12336_v63  ;;  %v7243_v12 = vpop.xlane.xlu0 %7242 }
0x21d4   : > { %7132 = vadd.xlane.f32.xlu0 %v7131_v62 }
0x21d5   : > { %11009 = vmatmul.mubr.msk.bf16.vlgmr.msra.gmra.mrb[144].mxu1 %vm1123_vm4, %v7134_v41 }
0x21d6   : > { %11019 = vmatpush3.bf16.msra.mxu1 %v7250_v2  ;;  %11020 = vmatprep.mubr.msk.bf16.mxu1 %vm12423_vm1, %v12422_v53 }
0x21d7   : > { %11030 = vmatprep.subr.bf16.mxu1 %v12422_v53  ;;  %v7467_v20 = vpop.xlane.xlu0 %7466 }
0x21da   : > { %v12338_v29 = vpop.eup %12337 }
0x21db   : > { %v6957_v16 = vmul.f32 %v12338_v29, %v14963_v58  ;;  %v12340_v47 = vpop.eup %12339  ;;  %v7475_v58 = vsel %vm1137_vm2, %v7470_v45, 0 }
0x21dc   : > { %v7069_v9 = vmul.f32 %v12340_v47, %v14994_v14  ;;  %v11966_v14 = vld [vmem:[%s15819_s4 + $0x1b0] ss:$8 sps:$4 sm:$0xff]  }
0x21dd   : > { %6958 = vst.msk [vmem:[#allocation2] sm:$0xff] %vm484_vm0, %v6957_v16  ;;  %11021 = vmatmul.mubr.msk.bf16.vlgmr.msra.gmra.mrb[148].mxu1 %vm1123_vm4, %v7244_v51 }
0x21de   : > { %11031 = vmatpush3.bf16.msra.mxu1 %v7361_v5  ;;  %11032 = vmatprep.mubr.msk.bf16.mxu1 %vm12423_vm1, %v12422_v53 }
0x21df   : > { %11042 = vmatprep.subr.bf16.mxu1 %v12422_v53 }
0x21e5   : > { %11033 = vmatmul.mubr.msk.bf16.vlgmr.msra.gmra.mrb[152].mxu1 %vm1123_vm4, %v7354_v30 }
0x21e6   : > { %11043 = vmatpush3.bf16.msra.mxu1 %v7475_v58  ;;  %11044 = vmatprep.mubr.msk.bf16.mxu1 %vm12423_vm1, %v12422_v53  ;;  %v11960_v53 = vld [vmem:[%s15819_s4 + $0x190] ss:$8 sps:$4 sm:$0xff]  }
0x21e7   : > { %7677 = vmatpush1.bf16.msra.mxu0 %v11960_v53 }
0x21e8   : > { %7678 = vmatprep.subr.bf16.mxu0 %v11965_v52 }
0x21ea   : > { %7071 = vrot.lane.b32.xlu0 %v7069_v9, %s12424_s0 }
0x21eb   : > { %7679 = vmatpush1.bf16.msra.mxu0 %v11963_v60 }
0x21ec   : > { %7680 = vmatprep.subr.bf16.mxu0 %v11968_v11  ;;  %v10395_v11 = vld [vmem:[%s15820_s5 + $0x4] sm:$0x3] }
0x21ed   : > { %11045 = vmatmul.mubr.msk.bf16.vlgmr.msra.gmra.mrb[156].mxu1 %vm1123_vm4, %v7468_v10 }
0x21ef   : > { %7681 = vmatpush1.bf16.msra.mxu0 %v11966_v14  ;;  %v7731_v14 = vrot.slane %v10395_v11, %v12730_v17 }
0x21f0   : > { %7682 = vmatprep.subr.bf16.mxu0 %v11971_v55 }
0x21f3   : > { %7683 = vmatpush1.bf16.msra.mxu0 %v11969_v19  ;;  %v7727_v19 = vrot.slane %v10395_v11, %v12733_v18  ;;  %v12028_v11 = vld [vmem:[%s15823_s8 + $0x57c] ss:$24 sps:$4 sm:$0xff]  }
0x21f4   : > { %7684 = vmatprep.subr.bf16.mxu0 %v11974_v3 }
0x21f7   : > { %7685 = vmatpush1.bf16.msra.mxu0 %v11972_v21 }
0x21f8   : > { %7686 = vmatprep.subr.bf16.mxu0 %v11977_v1 }
0x21fb   : > { %7687 = vmatpush1.bf16.msra.mxu0 %v11975_v43 }
0x21fc   : > { %7688 = vmatprep.subr.bf16.mxu0 %v11980_v34 }
0x21ff   : > { %7689 = vmatpush1.bf16.msra.mxu0 %v11978_v25 }
0x2200   : > { %7690 = vmatprep.subr.bf16.mxu0 %v11983_v33 }
0x2203   : > { %7691 = vmatpush1.bf16.msra.mxu0 %v11981_v6 }
0x2204   : > { %7692 = vmatprep.subr.bf16.mxu0 %v11986_v39  ;;  %v11995_v39 = vld [vmem:[%s15823_s8 + $0x484] ss:$24 sps:$4 sm:$0xff]  }
0x2205   : > { %8279 = vmatprep.subr.bf16.mxu1 %v11995_v39  ;;  %v12052_v39 = vld [vmem:[%s15823_s8 + $0x63c] ss:$24 sps:$4 sm:$0xff]  }
0x2207   : > { %7693 = vmatpush1.bf16.msra.mxu0 %v11984_v36  ;;  %v11996_v36 = vld [vmem:[%s15823_s8 + $0x488] ss:$24 sps:$4 sm:$0xff]  }
0x2208   : > { %7694 = vmatprep.subr.bf16.mxu0 %v11989_v44  ;;  %v12005_v44 = vld [vmem:[%s15823_s8 + $0x4e0] ss:$24 sps:$4 sm:$0xff]  }
0x220b   : > { %7695 = vmatpush1.bf16.msra.mxu0 %v11987_v26  ;;  %v12010_v26 = vld [vmem:[%s15823_s8 + $0x4ec] ss:$24 sps:$4 sm:$0xff]  }
0x220c   : > { %7696 = vmatprep.subr.bf16.mxu0 %v11992_v35  ;;  %v12008_v35 = vld [vmem:[%s15823_s8 + $0x4e8] ss:$24 sps:$4 sm:$0xff]  }
0x2261   : > { %v7133_v23 = vpop.xlane.xlu0 %7132 }
0x2262   : > { %12341 = vrcp.f32 %v7133_v23 }
0x2263   : > { %12343 = vrcp.f32 %v7243_v12 }
0x2264   : > { %12345 = vrcp.f32 %v15005_v50  ;;  %v11990_v50 = vld [vmem:[%s15819_s4 + $0x230] ss:$8 sps:$4 sm:$0xff]  }
0x2265   : > { %v7072_v13 = vpop.permute.xlu0 %7071  ;;  %7697 = vmatpush1.bf16.msra.mxu0 %v11990_v50  ;;  %12347 = vrcp.f32 %v7467_v20  ;;  %v12019_v50 = vld [vmem:[%s15823_s8 + $0x544] ss:$24 sps:$4 sm:$0xff]  }
0x2266   : > { %7074 = vst.msk [vmem:[#allocation2] sm:$0xff] %vm1299_vm5, %v7072_v13 }
0x226c   : > { %v12342_v4 = vpop.eup %12341 }
0x226d   : > { %v12344_v40 = vpop.eup %12343  ;;  %v7520_v53 = vld [vmem:[#allocation2] sm:$0xff] }
0x226e   : > { %v12346_v62 = vpop.eup %12345 }
0x226f   : > { %v12348_v5 = vpop.eup %12347 }
0x22a8   : > { %v7175_v31 = vpop.f32.mrb[144].mxu1 }
0x22a9   : > { %v7182_v42 = vmul.f32 %v12342_v4, %v7175_v31  ;;  %v11010_v37 = vpop.f32.mrb[145].mxu1  ;;  %v11998_v4 = vld [vmem:[%s15823_s8 + $0x48c] ss:$24 sps:$4 sm:$0xff]  }
0x22aa   : > { %v7178_v15 = vpop.f32.mrb[146].mxu1  ;;  %v12001_v31 = vld [vmem:[%s15823_s8 + $0x4b4] ss:$24 sps:$4 sm:$0xff]   ;;  %8322 = vmatprep.subr.bf16.mxu0 %v11998_v4  ;;  %v11999_v37 = vld [vmem:[%s15823_s8 + $0x4b0] ss:$24 sps:$4 sm:$0xff]  }
0x22ab   : > { %7183 = vst.msk [vmem:[#allocation2 + $0x8] sm:$0xff] %vm484_vm0, %v7182_v42  ;;  %v11011_v38 = vpop.f32.mrb[147].mxu1  ;;  %v12004_v42 = vld [vmem:[%s15823_s8 + $0x4bc] ss:$24 sps:$4 sm:$0xff]   ;;  %v12002_v15 = vld [vmem:[%s15823_s8 + $0x4b8] ss:$24 sps:$4 sm:$0xff]  }
0x22ac   : > { %v12007_v38 = vld [vmem:[%s15823_s8 + $0x4e4] ss:$24 sps:$4 sm:$0xff]  }
0x22ad   : > { %v12055_v4 = vld [vmem:[%s15823_s8 + $0x664] ss:$24 sps:$4 sm:$0xff]  }
0x22b0   : > { %v7286_v46 = vpop.f32.mrb[148].mxu1 }
0x22b1   : > { %v7293_v27 = vmul.f32 %v12344_v40, %v7286_v46  ;;  %v11022_v49 = vpop.f32.mrb[149].mxu1  ;;  %v12013_v40 = vld [vmem:[%s15823_s8 + $0x514] ss:$24 sps:$4 sm:$0xff]  }
0x22b2   : > { %v7289_v54 = vpop.f32.mrb[150].mxu1  ;;  %v7521_v10 = vld [vmem:[#allocation2 + $0x8] sm:$0xff]  ;;  %v12016_v46 = vld [vmem:[%s15823_s8 + $0x51c] ss:$24 sps:$4 sm:$0xff]   ;;  %v12014_v49 = vld [vmem:[%s15823_s8 + $0x518] ss:$24 sps:$4 sm:$0xff]  }
0x22b3   : > { %7294 = vst.msk [vmem:[#allocation2 + $0x10] sm:$0xff] %vm484_vm0, %v7293_v27  ;;  %v11023_v63 = vpop.f32.mrb[151].mxu1  ;;  %v12011_v27 = vld [vmem:[%s15823_s8 + $0x510] ss:$24 sps:$4 sm:$0xff]   ;;  %v12022_v54 = vld [vmem:[%s15823_s8 + $0x54c] ss:$24 sps:$4 sm:$0xff]  }
0x22b4   : > { %v12017_v63 = vld [vmem:[%s15823_s8 + $0x540] ss:$24 sps:$4 sm:$0xff]  }
0x22b8   : > { %v7397_v41 = vpop.f32.mrb[152].mxu1 }
0x22b9   : > { %v7404_v2 = vmul.f32 %v12346_v62, %v7397_v41  ;;  %v11034_v29 = vpop.f32.mrb[153].mxu1  ;;  %v12020_v62 = vld [vmem:[%s15823_s8 + $0x548] ss:$24 sps:$4 sm:$0xff]   ;;  %v12025_v41 = vld [vmem:[%s15823_s8 + $0x574] ss:$24 sps:$4 sm:$0xff]  }
0x22ba   : > { %v7400_v16 = vpop.f32.mrb[154].mxu1 }
0x22bb   : > { %7406 = vrot.lane.b32.xlu1 %v7404_v2, %s12424_s0  ;;  %v11035_v51 = vpop.f32.mrb[155].mxu1  ;;  %v12023_v2 = vld [vmem:[%s15823_s8 + $0x570] ss:$24 sps:$4 sm:$0xff]  }
0x22c0   : > { %v7511_v45 = vpop.f32.mrb[156].mxu1 }
0x22c1   : > { %v7518_v30 = vmul.f32 %v12348_v5, %v7511_v45  ;;  %v11046_v47 = vpop.f32.mrb[157].mxu1 }
0x22c2   : > { %v7514_v58 = vpop.f32.mrb[158].mxu1 }
0x22c3   : > { %7519 = vst.msk [vmem:[#allocation2 + $0x18] sm:$0xff] %vm484_vm0, %v7518_v30  ;;  %v11047_v9 = vpop.f32.mrb[159].mxu1 }
0x22ca   : > { %v7523_v48 = vld [vmem:[#allocation2 + $0x18] sm:$0xff] }
0x22cb   : > { %v7525_v7 = vpack.c.bf16 %v7523_v48, %v7521_v10 }
0x22cd   : > { %10394 = vmatprep.mubr.msk.bf16.mxu0 %vm484_vm0, %v7525_v7 }
0x232d   : > { %v7407_v0 = vpop.permute.xlu1 %7406 }
0x232e   : > { %7409 = vst.msk [vmem:[#allocation2 + $0x10] sm:$0xff] %vm1299_vm5, %v7407_v0 }
0x2335   : > { %v7522_v52 = vld [vmem:[#allocation2 + $0x10] sm:$0xff] }
0x2336   : > { %v7524_v60 = vpack.c.bf16 %v7522_v52, %v7520_v53 }
0x2338   : > { %7707 = vmatmul.mubr.bf16.vlgmr.msra.gmra.mrb[64].mxu0 %v7524_v60 }
0x2339   : > { %8323 = vmatpush1.bf16.msra.mxu0 %v11996_v36  ;;  %v12050_v36 = vld [vmem:[%s15823_s8 + $0x638] ss:$24 sps:$4 sm:$0xff]  }
0x233a   : > { %8324 = vmatprep.subr.bf16.mxu0 %v12004_v42  ;;  %v12056_v42 = vld [vmem:[%s15823_s8 + $0x668] ss:$24 sps:$4 sm:$0xff]  }
0x233d   : > { %8325 = vmatpush1.bf16.msra.mxu0 %v12002_v15  ;;  %v12061_v15 = vld [vmem:[%s15823_s8 + $0x694] ss:$24 sps:$4 sm:$0xff]  }
0x233e   : > { %8326 = vmatprep.subr.bf16.mxu0 %v12010_v26  ;;  %v12064_v26 = vld [vmem:[%s15823_s8 + $0x69c] ss:$24 sps:$4 sm:$0xff]  }
0x2341   : > { %8327 = vmatpush1.bf16.msra.mxu0 %v12008_v35  ;;  %v12067_v35 = vld [vmem:[%s15823_s8 + $0x494] ss:$24 sps:$4 sm:$0xff]  }
0x2342   : > { %8328 = vmatprep.subr.bf16.mxu0 %v12016_v46 }
0x2345   : > { %8329 = vmatpush1.bf16.msra.mxu0 %v12014_v49 }
0x2346   : > { %8330 = vmatprep.subr.bf16.mxu0 %v12022_v54 }
0x2349   : > { %8331 = vmatpush1.bf16.msra.mxu0 %v12020_v62  ;;  %v10396_v62 = vld [vmem:[%s15821_s6 + $0x4] sm:$0x3] }
0x234a   : > { %8332 = vmatprep.subr.bf16.mxu0 %v12028_v11 }
0x240b   : > { %v7708_v12 = vpop.f32.mrb[64].mxu0 }
0x240c   : > { %v7717_v55 = vadd.f32 %v7708_v12, %v14675_v24  ;;  %v7710_v20 = vpop.f32.mrb[65].mxu0  ;;  %v12026_v12 = vld [vmem:[%s15823_s8 + $0x578] ss:$24 sps:$4 sm:$0xff]  }
0x240d   : > { %v7718_v3 = vadd.f32 %v7710_v20, %v14672_v22  ;;  %v7712_v21 = vpop.f32.mrb[66].mxu0  ;;  %8333 = vmatpush1.bf16.msra.mxu0 %v12026_v12  ;;  %v12032_v20 = vld [vmem:[%s15823_s8 + $0x5a8] ss:$24 sps:$4 sm:$0xff]  }
0x240e   : > { %v7719_v23 = vadd.f32 %v7712_v21, %v14686_v32  ;;  %v7714_v1 = vpop.f32.mrb[67].mxu0  ;;  %v15121_v34 = vadd.f32 %v7727_v19, %v7717_v55  ;;  %v12029_v55 = vld [vmem:[%s15823_s8 + $0x5a0] ss:$24 sps:$4 sm:$0xff]   ;;  %v12035_v21 = vld [vmem:[%s15823_s8 + $0x5d0] ss:$24 sps:$4 sm:$0xff]  }
0x240f   : > { %v15118_v43 = vadd.f32 %v7731_v14, %v7718_v3  ;;  %v7720_v13 = vadd.f32 %v7714_v1, %v14678_v28  ;;  %v11993_v28 = vld [vmem:[%s15823_s8 + $0x480] ss:$24 sps:$4 sm:$0xff]   ;;  %v12037_v3 = vld [vmem:[%s15823_s8 + $0x5d4] ss:$24 sps:$4 sm:$0xff]  }
0x2410   : > { %v15127_v33 = vadd.f32 %v7727_v19, %v7719_v23  ;;  %8280 = vmatpush1.bf16.msra.mxu1 %v11993_v28  ;;  %v12034_v19 = vld [vmem:[%s15823_s8 + $0x5ac] ss:$24 sps:$4 sm:$0xff]   ;;  %v12040_v23 = vld [vmem:[%s15823_s8 + $0x5dc] ss:$24 sps:$4 sm:$0xff]   ;;  %v12038_v1 = vld [vmem:[%s15823_s8 + $0x5d8] ss:$24 sps:$4 sm:$0xff]  }
0x2411   : > { %v15123_v25 = vadd.f32 %v7731_v14, %v7720_v13  ;;  %v7742_v24 = vsel %vm484_vm0, %v15118_v43, 0.0  ;;  %8281 = vmatprep.subr.bf16.mxu1 %v12001_v31  ;;  %v12031_v14 = vld [vmem:[%s15823_s8 + $0x5a4] ss:$24 sps:$4 sm:$0xff]   ;;  %8334 = vmatprep.subr.bf16.mxu0 %v12034_v19  ;;  %v12047_v28 = vld [vmem:[%s15823_s8 + $0x630] ss:$24 sps:$4 sm:$0xff]  }
0x2412   : > { %v7743_v6 = vadd.f32 %v7742_v24, %v15121_v34  ;;  %8335 = vmatpush1.bf16.msra.mxu0 %v12032_v20  ;;  %v12043_v13 = vld [vmem:[%s15823_s8 + $0x604] ss:$24 sps:$4 sm:$0xff]   ;;  %v12041_v24 = vld [vmem:[%s15823_s8 + $0x600] ss:$24 sps:$4 sm:$0xff]   ;;  %v12065_v19 = vld [vmem:[%s15823_s8 + $0x490] ss:$24 sps:$4 sm:$0xff]  }
0x2413   : > { %v7746_v22 = vsel %vm484_vm0, %v15123_v25, 0.0  ;;  %8336 = vmatprep.subr.bf16.mxu0 %v12040_v23  ;;  %v12053_v31 = vld [vmem:[%s15823_s8 + $0x660] ss:$24 sps:$4 sm:$0xff]   ;;  %v12073_v23 = vld [vmem:[%s15823_s8 + $0x4f4] ss:$24 sps:$4 sm:$0xff]  }
0x2414   : > { %7744 = vadd.xlane.f32.xlu0 %v7743_v6  ;;  %v7747_v32 = vadd.f32 %v7746_v22, %v15127_v33  ;;  %8282 = vmatpush1.bf16.msra.mxu1 %v11999_v37  ;;  %v12046_v6 = vld [vmem:[%s15823_s8 + $0x60c] ss:$24 sps:$4 sm:$0xff]   ;;  %v12044_v22 = vld [vmem:[%s15823_s8 + $0x608] ss:$24 sps:$4 sm:$0xff]  }
0x2415   : > { %8283 = vmatprep.subr.bf16.mxu1 %v12007_v38  ;;  %v12058_v37 = vld [vmem:[%s15823_s8 + $0x66c] ss:$24 sps:$4 sm:$0xff]   ;;  %v12059_v38 = vld [vmem:[%s15823_s8 + $0x690] ss:$24 sps:$4 sm:$0xff]  }
0x2416   : > { %7748 = vadd.xlane.f32.xlu1 %v7747_v32  ;;  %8337 = vmatpush1.bf16.msra.mxu0 %v12038_v1  ;;  %v12049_v32 = vld [vmem:[%s15823_s8 + $0x634] ss:$24 sps:$4 sm:$0xff]   ;;  %v12104_v1 = vld [vmem:[%s15825_s10 + $0x610] ss:$8 sps:$4 sm:$0xff]  }
0x2417   : > { %8338 = vmatprep.subr.bf16.mxu0 %v12046_v6  ;;  %v12076_v6 = vld [vmem:[%s15823_s8 + $0x524] ss:$24 sps:$4 sm:$0xff]  }
0x2418   : > { %8284 = vmatpush1.bf16.msra.mxu1 %v12005_v44  ;;  %v12062_v44 = vld [vmem:[%s15823_s8 + $0x698] ss:$24 sps:$4 sm:$0xff]  }
0x2419   : > { %8285 = vmatprep.subr.bf16.mxu1 %v12013_v40  ;;  %v12103_v40 = vld [vmem:[%s15825_s10 + $0x604] ss:$8 sps:$4 sm:$0xff]  }
0x241a   : > { %8339 = vmatpush1.bf16.msra.mxu0 %v12044_v22  ;;  %v12107_v22 = vld [vmem:[%s15825_s10 + $0x620] ss:$8 sps:$4 sm:$0xff]  }
0x241b   : > { %8340 = vmatprep.subr.bf16.mxu0 %v12052_v39  ;;  %v12079_v39 = vld [vmem:[%s15823_s8 + $0x554] ss:$24 sps:$4 sm:$0xff]  }
0x241c   : > { %8286 = vmatpush1.bf16.msra.mxu1 %v12011_v27 }
0x241d   : > { %8287 = vmatprep.subr.bf16.mxu1 %v12019_v50 }
0x241e   : > { %8341 = vmatpush1.bf16.msra.mxu0 %v12050_v36  ;;  %v12110_v36 = vld [vmem:[%s15825_s10 + $0x630] ss:$8 sps:$4 sm:$0xff]  }
0x241f   : > { %8342 = vmatprep.subr.bf16.mxu0 %v12058_v37  ;;  %v12113_v37 = vld [vmem:[%s15825_s10 + $0x640] ss:$8 sps:$4 sm:$0xff]  }
0x2420   : > { %8288 = vmatpush1.bf16.msra.mxu1 %v12017_v63 }
0x2421   : > { %8289 = vmatprep.subr.bf16.mxu1 %v12025_v41 }
0x2422   : > { %8343 = vmatpush1.bf16.msra.mxu0 %v12056_v42  ;;  %v12082_v42 = vld [vmem:[%s15823_s8 + $0x584] ss:$24 sps:$4 sm:$0xff]  }
0x2423   : > { %8344 = vmatprep.subr.bf16.mxu0 %v12064_v26  ;;  %v12085_v26 = vld [vmem:[%s15823_s8 + $0x5b4] ss:$24 sps:$4 sm:$0xff]  }
0x2424   : > { %8290 = vmatpush1.bf16.msra.mxu1 %v12023_v2 }
0x2425   : > { %8291 = vmatprep.subr.bf16.mxu1 %v12031_v14 }
0x2426   : > { %8345 = vmatpush1.bf16.msra.mxu0 %v12062_v44  ;;  %v12116_v44 = vld [vmem:[%s15825_s10 + $0x650] ss:$8 sps:$4 sm:$0xff]  }
0x2427   : > { %9016 = vmatprep.subr.bf16.mxu0 %v12103_v40  ;;  %v12083_v40 = vld [vmem:[%s15823_s8 + $0x5b0] ss:$24 sps:$4 sm:$0xff]  }
0x2428   : > { %8292 = vmatpush1.bf16.msra.mxu1 %v12029_v55 }
0x2429   : > { %8293 = vmatprep.subr.bf16.mxu1 %v12037_v3  ;;  %v12106_v3 = vld [vmem:[%s15825_s10 + $0x614] ss:$8 sps:$4 sm:$0xff]  }
0x242c   : > { %8294 = vmatpush1.bf16.msra.mxu1 %v12035_v21  ;;  %v12068_v21 = vld [vmem:[%s15823_s8 + $0x4c0] ss:$24 sps:$4 sm:$0xff]  }
0x242d   : > { %8295 = vmatprep.subr.bf16.mxu1 %v12043_v13  ;;  %v12109_v13 = vld [vmem:[%s15825_s10 + $0x624] ss:$8 sps:$4 sm:$0xff]  }
0x2430   : > { %8296 = vmatpush1.bf16.msra.mxu1 %v12041_v24  ;;  %v12071_v24 = vld [vmem:[%s15823_s8 + $0x4f0] ss:$24 sps:$4 sm:$0xff]  }
0x2431   : > { %8297 = vmatprep.subr.bf16.mxu1 %v12049_v32  ;;  %v12112_v32 = vld [vmem:[%s15825_s10 + $0x634] ss:$8 sps:$4 sm:$0xff]  }
0x2434   : > { %8298 = vmatpush1.bf16.msra.mxu1 %v12047_v28  ;;  %v12074_v28 = vld [vmem:[%s15823_s8 + $0x520] ss:$24 sps:$4 sm:$0xff]  }
0x2435   : > { %8299 = vmatprep.subr.bf16.mxu1 %v12055_v4  ;;  %v12115_v4 = vld [vmem:[%s15825_s10 + $0x644] ss:$8 sps:$4 sm:$0xff]  }
0x2438   : > { %8300 = vmatpush1.bf16.msra.mxu1 %v12053_v31  ;;  %v12077_v31 = vld [vmem:[%s15823_s8 + $0x550] ss:$24 sps:$4 sm:$0xff]  }
0x2439   : > { %8301 = vmatprep.subr.bf16.mxu1 %v12061_v15  ;;  %v12118_v15 = vld [vmem:[%s15825_s10 + $0x654] ss:$8 sps:$4 sm:$0xff]  }
0x243c   : > { %8302 = vmatpush1.bf16.msra.mxu1 %v12059_v38  ;;  %v12080_v38 = vld [vmem:[%s15823_s8 + $0x580] ss:$24 sps:$4 sm:$0xff]  }
0x243d   : > { %8365 = vmatprep.subr.bf16.mxu1 %v12067_v35  ;;  %v12121_v35 = vld [vmem:[%s15825_s10 + $0x664] ss:$8 sps:$4 sm:$0xff]  }
0x24a1   : > { %v7745_v29 = vpop.xlane.xlu0 %7744 }
0x24a2   : > { %v7750_v16 = vmul.f32 0.0052083335, %v7745_v29 }
0x24a3   : > { %v7749_v51 = vpop.xlane.xlu1 %7748 }
0x24a4   : > { %v15200_v5 = vsub.f32 %v15121_v34, %v7750_v16  ;;  %v15203_v45 = vsub.f32 %v15118_v43, %v7750_v16  ;;  %v7751_v30 = vmul.f32 0.0052083335, %v7749_v51  ;;  %v10397_v16 = vld [vmem:[%s15822_s7 + $0x4] sm:$0x3]  ;;  %v7786_v51 = vrot.slane %v10396_v62, %v12730_v17 }
0x24a6   : > { %v7756_v47 = vmul.f32 %v15200_v5, %v15200_v5  ;;  %v7757_v58 = vmul.f32 %v15203_v45, %v15203_v45  ;;  %v15210_v9 = vsub.f32 %v15127_v33, %v7751_v30  ;;  %v15213_v10 = vsub.f32 %v15123_v25, %v7751_v30 }
0x24a7   : > { %v7782_v30 = vrot.slane %v10396_v62, %v12733_v18  ;;  %v12127_v62 = vld [vmem:[%s15825_s10 + $0x684] ss:$8 sps:$4 sm:$0xff]  }
0x24a8   : > { %v7759_v48 = vmul.f32 %v15213_v10, %v15213_v10  ;;  %v7760_v7 = vsel %vm484_vm0, %v7757_v58, 0.0  ;;  %v7758_v0 = vmul.f32 %v15210_v9, %v15210_v9  ;;  %v7801_v58 = vrot.slane %v10397_v16, %v12730_v17 }
0x24a9   : > { %v7761_v53 = vadd.f32 %v7760_v7, %v7756_v47 }
0x24aa   : > { %v7764_v52 = vsel %vm484_vm0, %v7759_v48, 0.0  ;;  %v7797_v48 = vrot.slane %v10397_v16, %v12733_v18  ;;  %v12130_v16 = vld [vmem:[%s15825_s10 + $0x694] ss:$8 sps:$4 sm:$0xff]  }
0x24ab   : > { %7762 = vadd.xlane.f32.xlu0 %v7761_v53  ;;  %v7765_v60 = vadd.f32 %v7764_v52, %v7758_v0 }
0x24af   : > { %7766 = vadd.xlane.f32.xlu0 %v7765_v60 }
0x2538   : > { %v7763_v46 = vpop.xlane.xlu0 %7762 }
0x2539   : > { %v7768_v27 = vmul.f32 0.0052083335, %v7763_v46  ;;  %v12088_v46 = vld [vmem:[%s15823_s8 + $0x5e4] ss:$24 sps:$4 sm:$0xff]  }
0x253b   : > { %v7770_v49 = vadd.f32 1e-05, %v7768_v27  ;;  %v12119_v27 = vld [vmem:[%s15825_s10 + $0x660] ss:$8 sps:$4 sm:$0xff]  }
0x253c   : > { %v7767_v50 = vpop.xlane.xlu0 %7766 }
0x253d   : > { %12349 = vrsqrt.f32 %v7770_v49  ;;  %v7769_v54 = vmul.f32 0.0052083335, %v7767_v50  ;;  %v12124_v49 = vld [vmem:[%s15825_s10 + $0x674] ss:$8 sps:$4 sm:$0xff]   ;;  %v12086_v50 = vld [vmem:[%s15823_s8 + $0x5e0] ss:$24 sps:$4 sm:$0xff]  }
0x253f   : > { %v7771_v63 = vadd.f32 1e-05, %v7769_v54  ;;  %v12091_v54 = vld [vmem:[%s15823_s8 + $0x614] ss:$24 sps:$4 sm:$0xff]  }
0x2541   : > { %12351 = vrsqrt.f32 %v7771_v63  ;;  %v12122_v63 = vld [vmem:[%s15825_s10 + $0x670] ss:$8 sps:$4 sm:$0xff]  }
0x2547   : > { %v12350_v41 = vpop.eup %12349 }
0x2548   : > { %v7774_v2 = vmul.f32 %v12350_v41, %v15200_v5  ;;  %v7775_v29 = vmul.f32 %v12350_v41, %v15203_v45  ;;  %v12089_v41 = vld [vmem:[%s15823_s8 + $0x610] ss:$24 sps:$4 sm:$0xff]  }
0x254a   : > { %v7790_v5 = vmul.f32 %v7786_v51, %v7775_v29  ;;  %v7789_v53 = vmul.f32 %v7782_v30, %v7774_v2  ;;  %v12094_v2 = vld [vmem:[%s15823_s8 + $0x644] ss:$24 sps:$4 sm:$0xff]   ;;  %v12125_v29 = vld [vmem:[%s15825_s10 + $0x680] ss:$8 sps:$4 sm:$0xff]  }
0x254b   : > { %v12352_v47 = vpop.eup %12351 }
0x254c   : > { %v7776_v7 = vmul.f32 %v12352_v47, %v15210_v9  ;;  %v7777_v0 = vmul.f32 %v12352_v47, %v15213_v10  ;;  %v7805_v60 = vadd.f32 %v7801_v58, %v7790_v5  ;;  %v7804_v12 = vadd.f32 %v7797_v48, %v7789_v53  ;;  %v12070_v9 = vld [vmem:[%s15823_s8 + $0x4c4] ss:$24 sps:$4 sm:$0xff]   ;;  %v12101_v10 = vld [vmem:[%s15825_s10 + $0x600] ss:$8 sps:$4 sm:$0xff]   ;;  %v12128_v47 = vld [vmem:[%s15825_s10 + $0x690] ss:$8 sps:$4 sm:$0xff]  }
0x254d   : > { %v12136_v5 = vld [vmem:[%s15825_s10 + $0x6b4] ss:$8 sps:$4 sm:$0xff]   ;;  %v12098_v53 = vld [vmem:[%s15823_s8 + $0x6a0] ss:$24 sps:$4 sm:$0xff]  }
0x254e   : > { %v7792_v45 = vmul.f32 %v7786_v51, %v7777_v0  ;;  %v7791_v52 = vmul.f32 %v7782_v30, %v7776_v7  ;;  %v12092_v51 = vld [vmem:[%s15823_s8 + $0x640] ss:$24 sps:$4 sm:$0xff]   ;;  %v12097_v30 = vld [vmem:[%s15823_s8 + $0x674] ss:$24 sps:$4 sm:$0xff]   ;;  %v12100_v7 = vld [vmem:[%s15823_s8 + $0x6a4] ss:$24 sps:$4 sm:$0xff]  }
0x254f   : > { %v12131_v0 = vld [vmem:[%s15825_s10 + $0x6a0] ss:$8 sps:$4 sm:$0xff]  }
0x2550   : > { %v7807_v11 = vadd.f32 %v7801_v58, %v7792_v45  ;;  %v7806_v14 = vadd.f32 %v7797_v48, %v7791_v52  ;;  %v12133_v58 = vld [vmem:[%s15825_s10 + $0x6a4] ss:$8 sps:$4 sm:$0xff]   ;;  %v12095_v48 = vld [vmem:[%s15823_s8 + $0x670] ss:$24 sps:$4 sm:$0xff]  }
0x2551   : > { %v12134_v45 = vld [vmem:[%s15825_s10 + $0x6b0] ss:$8 sps:$4 sm:$0xff]   ;;  %v12139_v52 = vld [vmem:[%s15825_s10 + $0x6c4] ss:$8 sps:$4 sm:$0xff]  }
0x2552   : > { %v7809_v55 = vpack.c.bf16 %v7807_v11, %v7805_v60  ;;  %v15322_v20 = vpack.c.bf16 %v7806_v14, %v7804_v12  ;;  %v12137_v60 = vld [vmem:[%s15825_s10 + $0x6c0] ss:$8 sps:$4 sm:$0xff]   ;;  %v12142_v11 = vld [vmem:[%s15825_s10 + $0x6d4] ss:$8 sps:$4 sm:$0xff]   ;;  %v12140_v12 = vld [vmem:[%s15825_s10 + $0x6d0] ss:$8 sps:$4 sm:$0xff]  }
0x2553   : > { %v12145_v14 = vld [vmem:[%s15825_s10 + $0x6e4] ss:$8 sps:$4 sm:$0xff]  }
0x2554   : > { %10543 = vmatprep.mubr.msk.bf16.mxu1 %vm484_vm0, %v7809_v55  ;;  %10544 = vmatprep.mubr.msk.bf16.mxu0 %vm484_vm0, %v7809_v55 }
0x2555   : > { %8312 = vmatmul.mubr.bf16.vlgmr.msra.gmra.mrb[160].mxu1 %v15322_v20  ;;  %8355 = vmatmul.mubr.bf16.vlgmr.msra.gmra.mrb[68].mxu0 %v15322_v20 }
0x2556   : > { %8366 = vmatpush1.bf16.msra.mxu1 %v12065_v19  ;;  %10545 = vmatprep.mubr.msk.bf16.mxu1 %vm484_vm0, %v7809_v55  ;;  %v12143_v55 = vld [vmem:[%s15825_s10 + $0x6e0] ss:$8 sps:$4 sm:$0xff]   ;;  %v12148_v19 = vld [vmem:[%s15825_s10 + $0x6f4] ss:$8 sps:$4 sm:$0xff]  }
0x2557   : > { %8367 = vmatprep.subr.bf16.mxu1 %v12070_v9  ;;  %9017 = vmatpush1.bf16.msra.mxu0 %v12101_v10  ;;  %v12151_v9 = vld [vmem:[%s15825_s10 + $0x704] ss:$8 sps:$4 sm:$0xff]  }
0x2558   : > { %9018 = vmatprep.subr.bf16.mxu0 %v12106_v3  ;;  %v15496_v10 = vld [vmem:[%s15824_s9 + $0xc] sm:$0x3f] }
0x2559   : > { %v7889_v3 = vrot.slane %v15496_v10, %v12733_v18 }
0x255a   : > { %8368 = vmatpush1.bf16.msra.mxu1 %v12068_v21  ;;  %v7897_v21 = vrot.slane %v15496_v10, %v13504_v57 }
0x255b   : > { %8369 = vmatprep.subr.bf16.mxu1 %v12073_v23  ;;  %9019 = vmatpush1.bf16.msra.mxu0 %v12104_v1  ;;  %v7893_v23 = vrot.slane %v15496_v10, %v12730_v17  ;;  %v7901_v1 = vrot.slane %v15496_v10, %v13512_v59 }
0x255c   : > { %9020 = vmatprep.subr.bf16.mxu0 %v12109_v13 }
0x255e   : > { %8370 = vmatpush1.bf16.msra.mxu1 %v12071_v24 }
0x255f   : > { %8371 = vmatprep.subr.bf16.mxu1 %v12076_v6  ;;  %9021 = vmatpush1.bf16.msra.mxu0 %v12107_v22 }
0x2560   : > { %9022 = vmatprep.subr.bf16.mxu0 %v12112_v32 }
0x2562   : > { %8372 = vmatpush1.bf16.msra.mxu1 %v12074_v28 }
0x2563   : > { %8373 = vmatprep.subr.bf16.mxu1 %v12079_v39  ;;  %9023 = vmatpush1.bf16.msra.mxu0 %v12110_v36 }
0x2564   : > { %9024 = vmatprep.subr.bf16.mxu0 %v12115_v4 }
0x2566   : > { %8374 = vmatpush1.bf16.msra.mxu1 %v12077_v31 }
0x2567   : > { %8375 = vmatprep.subr.bf16.mxu1 %v12082_v42  ;;  %9025 = vmatpush1.bf16.msra.mxu0 %v12113_v37 }
0x2568   : > { %9026 = vmatprep.subr.bf16.mxu0 %v12118_v15 }
0x256a   : > { %8376 = vmatpush1.bf16.msra.mxu1 %v12080_v38 }
0x256b   : > { %8377 = vmatprep.subr.bf16.mxu1 %v12085_v26  ;;  %9027 = vmatpush1.bf16.msra.mxu0 %v12116_v44 }
0x256c   : > { %9028 = vmatprep.subr.bf16.mxu0 %v12121_v35 }
0x256e   : > { %8378 = vmatpush1.bf16.msra.mxu1 %v12083_v40 }
0x256f   : > { %8379 = vmatprep.subr.bf16.mxu1 %v12088_v46  ;;  %9029 = vmatpush1.bf16.msra.mxu0 %v12119_v27 }
0x2570   : > { %9030 = vmatprep.subr.bf16.mxu0 %v12124_v49 }
0x2572   : > { %8380 = vmatpush1.bf16.msra.mxu1 %v12086_v50 }
0x2573   : > { %8381 = vmatprep.subr.bf16.mxu1 %v12091_v54  ;;  %9031 = vmatpush1.bf16.msra.mxu0 %v12122_v63 }
0x2574   : > { %9032 = vmatprep.subr.bf16.mxu0 %v12127_v62 }
0x2576   : > { %8382 = vmatpush1.bf16.msra.mxu1 %v12089_v41 }
0x2577   : > { %8383 = vmatprep.subr.bf16.mxu1 %v12094_v2  ;;  %9033 = vmatpush1.bf16.msra.mxu0 %v12125_v29  ;;  %v12149_v2 = vld [vmem:[%s15825_s10 + $0x700] ss:$8 sps:$4 sm:$0xff]   ;;  %v12154_v29 = vld [vmem:[%s15825_s10 + $0x714] ss:$8 sps:$4 sm:$0xff]  }
0x2578   : > { %9034 = vmatprep.subr.bf16.mxu0 %v12130_v16  ;;  %v12245_v16 = vld [vmem:[%s15827_s12] sm:$0xff]  }
0x257a   : > { %8384 = vmatpush1.bf16.msra.mxu1 %v12092_v51  ;;  %v12152_v51 = vld [vmem:[%s15825_s10 + $0x710] ss:$8 sps:$4 sm:$0xff]  }
0x257b   : > { %8385 = vmatprep.subr.bf16.mxu1 %v12097_v30  ;;  %9035 = vmatpush1.bf16.msra.mxu0 %v12128_v47  ;;  %v12157_v30 = vld [vmem:[%s15825_s10 + $0x724] ss:$8 sps:$4 sm:$0xff]  }
0x257c   : > { %9036 = vmatprep.subr.bf16.mxu0 %v12133_v58  ;;  %v12246_v47 = vld [vmem:[%s15827_s12 + $0x8] sm:$0xff]  }
0x257d   : > { %v12155_v58 = vld [vmem:[%s15825_s10 + $0x720] ss:$8 sps:$4 sm:$0xff]  }
0x257e   : > { %8386 = vmatpush1.bf16.msra.mxu1 %v12095_v48  ;;  %v12160_v48 = vld [vmem:[%s15825_s10 + $0x734] ss:$8 sps:$4 sm:$0xff]  }
0x257f   : > { %8387 = vmatprep.subr.bf16.mxu1 %v12100_v7  ;;  %9037 = vmatpush1.bf16.msra.mxu0 %v12131_v0  ;;  %v12247_v7 = vld [vmem:[%s15827_s12 + $0x10] sm:$0xff]  }
0x2580   : > { %9038 = vmatprep.subr.bf16.mxu0 %v12136_v5  ;;  %v12158_v0 = vld [vmem:[%s15825_s10 + $0x730] ss:$8 sps:$4 sm:$0xff]   ;;  %v12163_v5 = vld [vmem:[%s15825_s10 + $0x744] ss:$8 sps:$4 sm:$0xff]  }
0x2582   : > { %8388 = vmatpush1.bf16.msra.mxu1 %v12098_v53  ;;  %v12248_v53 = vld [vmem:[%s15827_s12 + $0x18] sm:$0xff]  }
0x2583   : > { %9039 = vmatpush1.bf16.msra.mxu0 %v12134_v45  ;;  %9257 = vmatprep.subr.bf16.mxu1 %v12421_v8  ;;  %v12161_v45 = vld [vmem:[%s15825_s10 + $0x740] ss:$8 sps:$4 sm:$0xff]  }
0x2584   : > { %9040 = vmatprep.subr.bf16.mxu0 %v12139_v52  ;;  %v12166_v52 = vld [vmem:[%s15825_s10 + $0x754] ss:$8 sps:$4 sm:$0xff]  }
0x2585   : > { %8398 = vmatmul.mubr.bf16.vlgmr.msra.gmra.mrb[164].mxu1 %v15322_v20  ;;  %v12146_v20 = vld [vmem:[%s15825_s10 + $0x6f0] ss:$8 sps:$4 sm:$0xff]  }
0x2586   : > { %9258 = vmatpush1.bf16.msra.mxu1 %v12245_v16  ;;  %v12202_v16 = vld [vmem:[%s15825_s10 + $0x814] ss:$8 sps:$4 sm:$0xff]  }
0x2587   : > { %9041 = vmatpush1.bf16.msra.mxu0 %v12137_v60  ;;  %9259 = vmatprep.subr.bf16.mxu1 %v12421_v8  ;;  %v12249_v60 = vld [vmem:[%s15827_s12 + $0x20] sm:$0xff]  }
0x2588   : > { %9042 = vmatprep.subr.bf16.mxu0 %v12142_v11  ;;  %v12164_v11 = vld [vmem:[%s15825_s10 + $0x750] ss:$8 sps:$4 sm:$0xff]  }
0x258a   : > { %9260 = vmatpush1.bf16.msra.mxu1 %v12246_v47  ;;  %v12203_v47 = vld [vmem:[%s15825_s10 + $0x820] ss:$8 sps:$4 sm:$0xff]  }
0x258b   : > { %9043 = vmatpush1.bf16.msra.mxu0 %v12140_v12  ;;  %9261 = vmatprep.subr.bf16.mxu1 %v12421_v8  ;;  %v12169_v12 = vld [vmem:[%s15825_s10 + $0x764] ss:$8 sps:$4 sm:$0xff]  }
0x258c   : > { %9044 = vmatprep.subr.bf16.mxu0 %v12145_v14  ;;  %v12250_v14 = vld [vmem:[%s15827_s12 + $0x28] sm:$0xff]  }
0x258e   : > { %9262 = vmatpush1.bf16.msra.mxu1 %v12247_v7  ;;  %v12209_v7 = vld [vmem:[%s15825_s10 + $0x840] ss:$8 sps:$4 sm:$0xff]  }
0x258f   : > { %9045 = vmatpush1.bf16.msra.mxu0 %v12143_v55  ;;  %9263 = vmatprep.subr.bf16.mxu1 %v12421_v8  ;;  %v12167_v55 = vld [vmem:[%s15825_s10 + $0x760] ss:$8 sps:$4 sm:$0xff]  }
0x2590   : > { %9046 = vmatprep.subr.bf16.mxu0 %v12148_v19  ;;  %v12172_v19 = vld [vmem:[%s15825_s10 + $0x774] ss:$8 sps:$4 sm:$0xff]  }
0x2592   : > { %9264 = vmatpush1.bf16.msra.mxu1 %v12248_v53  ;;  %v12217_v53 = vld [vmem:[%s15825_s10 + $0x864] ss:$8 sps:$4 sm:$0xff]  }
0x2593   : > { %9047 = vmatpush1.bf16.msra.mxu0 %v12146_v20  ;;  %9265 = vmatprep.subr.bf16.mxu1 %v12421_v8  ;;  %v12251_v20 = vld [vmem:[%s15827_s12 + $0x30] sm:$0xff]  }
0x2594   : > { %9059 = vmatprep.subr.bf16.mxu0 %v12151_v9  ;;  %v12170_v9 = vld [vmem:[%s15825_s10 + $0x770] ss:$8 sps:$4 sm:$0xff]  }
0x2596   : > { %9266 = vmatpush1.bf16.msra.mxu1 %v12249_v60  ;;  %v12218_v60 = vld [vmem:[%s15825_s10 + $0x870] ss:$8 sps:$4 sm:$0xff]  }
0x2597   : > { %9267 = vmatprep.subr.bf16.mxu1 %v12421_v8 }
0x259a   : > { %9268 = vmatpush1.bf16.msra.mxu1 %v12250_v14  ;;  %v12226_v14 = vld [vmem:[%s15825_s10 + $0x894] ss:$8 sps:$4 sm:$0xff]  }
0x259b   : > { %9269 = vmatprep.subr.bf16.mxu1 %v12421_v8 }
0x259e   : > { %9270 = vmatpush1.bf16.msra.mxu1 %v12251_v20  ;;  %v12227_v20 = vld [vmem:[%s15825_s10 + $0x8a0] ss:$8 sps:$4 sm:$0xff]  }
0x259f   : > { %9271 = vmatprep.subr.bf16.mxu1 %v12421_v8 }
0x2628   : > { %v8313_v13 = vpop.f32.mrb[160].mxu1  ;;  %v8356_v24 = vpop.f32.mrb[68].mxu0 }
0x2629   : > { %v8314_v6 = vadd.f32 %v8313_v13, %v7889_v3  ;;  %v8357_v22 = vadd.f32 %v8356_v24, %v7897_v21  ;;  %v8315_v32 = vpop.f32.mrb[161].mxu1  ;;  %v8358_v28 = vpop.f32.mrb[69].mxu0  ;;  %v12253_v13 = vld [vmem:[%s15827_s12 + $0x40] sm:$0xff]   ;;  %v12176_v24 = vld [vmem:[%s15825_s10 + $0x790] ss:$8 sps:$4 sm:$0xff]  }
0x262a   : > { %v8316_v39 = vadd.f32 %v8315_v32, %v7893_v23  ;;  %v8359_v36 = vadd.f32 %v8358_v28, %v7901_v1  ;;  %v8317_v4 = vpop.f32.mrb[162].mxu1  ;;  %v8360_v31 = vpop.f32.mrb[70].mxu0  ;;  %v7909_v32 = vrot.slane %v15496_v10, %v13580_v61 }
0x262b   : > { %v8318_v42 = vadd.f32 %v8317_v4, %v7889_v3  ;;  %v8361_v37 = vadd.f32 %v8360_v31, %v7897_v21  ;;  %v8319_v15 = vpop.f32.mrb[163].mxu1  ;;  %v8362_v57 = vpop.f32.mrb[71].mxu0  ;;  %v8408_v44 = vmax.f32 %v8314_v6, 0.0  ;;  %v8410_v35 = vmax.f32 %v8357_v22, 0.0  ;;  %v12175_v3 = vld [vmem:[%s15825_s10 + $0x784] ss:$8 sps:$4 sm:$0xff]  }
0x262c   : > { %v8320_v38 = vadd.f32 %v8319_v15, %v7893_v23  ;;  %v8363_v26 = vadd.f32 %v8362_v57, %v7901_v1  ;;  %v8409_v46 = vmax.f32 %v8316_v39, 0.0  ;;  %v8411_v27 = vmax.f32 %v8359_v36, 0.0  ;;  %v12252_v21 = vld [vmem:[%s15827_s12 + $0x38] sm:$0xff]   ;;  %v12173_v23 = vld [vmem:[%s15825_s10 + $0x780] ss:$8 sps:$4 sm:$0xff]  }
0x262d   : > { %v8414_v40 = vmax.f32 %v8318_v42, 0.0  ;;  %v8416_v59 = vmax.f32 %v8361_v37, 0.0  ;;  %v12178_v1 = vld [vmem:[%s15825_s10 + $0x794] ss:$8 sps:$4 sm:$0xff]   ;;  %9272 = vmatpush1.bf16.msra.mxu1 %v12252_v21  ;;  %v7905_v6 = vrot.slane %v15496_v10, %v13577_v56  ;;  %v12181_v22 = vld [vmem:[%s15825_s10 + $0x7a4] ss:$8 sps:$4 sm:$0xff]  }
0x262e   : > { %v8415_v49 = vmax.f32 %v8320_v38, 0.0  ;;  %v8417_v50 = vmax.f32 %v8363_v26, 0.0  ;;  %9273 = vmatprep.subr.bf16.mxu1 %v12421_v8  ;;  %v12179_v39 = vld [vmem:[%s15825_s10 + $0x7a0] ss:$8 sps:$4 sm:$0xff]   ;;  %v12184_v56 = vld [vmem:[%s15825_s10 + $0x7b4] ss:$8 sps:$4 sm:$0xff]  }
0x262f   : > { %v8420_v54 = vpack.c.bf16 %v8414_v40, %v8408_v44  ;;  %v15506_v63 = vpack.c.bf16 %v8416_v59, %v8410_v35  ;;  %v12182_v10 = vld [vmem:[%s15825_s10 + $0x7b0] ss:$8 sps:$4 sm:$0xff]   ;;  %v12187_v26 = vld [vmem:[%s15825_s10 + $0x7c4] ss:$8 sps:$4 sm:$0xff]  }
0x2630   : > { %v8421_v62 = vpack.c.bf16 %v8415_v49, %v8409_v46  ;;  %v8423_v41 = vpack.c.bf16 %v8417_v50, %v8411_v27  ;;  %v12185_v46 = vld [vmem:[%s15825_s10 + $0x7c0] ss:$8 sps:$4 sm:$0xff]   ;;  %v12190_v27 = vld [vmem:[%s15825_s10 + $0x7d4] ss:$8 sps:$4 sm:$0xff]   ;;  %v12188_v49 = vld [vmem:[%s15825_s10 + $0x7d0] ss:$8 sps:$4 sm:$0xff]  }
0x2631   : > { %9274 = vmatpush1.bf16.msra.mxu1 %v12253_v13  ;;  %v12193_v50 = vld [vmem:[%s15825_s10 + $0x7e4] ss:$8 sps:$4 sm:$0xff]   ;;  %v12236_v13 = vld [vmem:[%s15825_s10 + $0x8d0] ss:$8 sps:$4 sm:$0xff]  }
0x2632   : > { %9048 = vmatprep.mubr.bf16.mxu0 %v8421_v62  ;;  %9275 = vmatprep.subr.bf16.mxu1 %v12421_v8  ;;  %v12196_v62 = vld [vmem:[%s15825_s10 + $0x7f4] ss:$8 sps:$4 sm:$0xff]   ;;  %v12235_v21 = vld [vmem:[%s15825_s10 + $0x8c4] ss:$8 sps:$4 sm:$0xff]  }
0x2633   : > { %9049 = vmatmul.mubr.bf16.vlgmr.msra.gmra.mrb[72].mxu0 %v8420_v54  ;;  %v12191_v54 = vld [vmem:[%s15825_s10 + $0x7e0] ss:$8 sps:$4 sm:$0xff]  }
0x2634   : > { %9060 = vmatpush1.bf16.msra.mxu0 %v12149_v2  ;;  %9091 = vmatprep.mubr.bf16.mxu0 %v8423_v41  ;;  %v12194_v41 = vld [vmem:[%s15825_s10 + $0x7f0] ss:$8 sps:$4 sm:$0xff]   ;;  %v12199_v2 = vld [vmem:[%s15825_s10 + $0x804] ss:$8 sps:$4 sm:$0xff]  }
0x2635   : > { %9061 = vmatprep.subr.bf16.mxu0 %v12154_v29  ;;  %v12197_v29 = vld [vmem:[%s15825_s10 + $0x800] ss:$8 sps:$4 sm:$0xff]  }
0x2638   : > { %9062 = vmatpush1.bf16.msra.mxu0 %v12152_v51  ;;  %v12200_v51 = vld [vmem:[%s15825_s10 + $0x810] ss:$8 sps:$4 sm:$0xff]  }
0x2639   : > { %9063 = vmatprep.subr.bf16.mxu0 %v12157_v30  ;;  %v12205_v30 = vld [vmem:[%s15825_s10 + $0x824] ss:$8 sps:$4 sm:$0xff]  }
0x263c   : > { %9064 = vmatpush1.bf16.msra.mxu0 %v12155_v58  ;;  %v12206_v58 = vld [vmem:[%s15825_s10 + $0x830] ss:$8 sps:$4 sm:$0xff]  }
0x263d   : > { %9065 = vmatprep.subr.bf16.mxu0 %v12160_v48  ;;  %v12211_v48 = vld [vmem:[%s15825_s10 + $0x844] ss:$8 sps:$4 sm:$0xff]  }
0x2640   : > { %9066 = vmatpush1.bf16.msra.mxu0 %v12158_v0  ;;  %v12214_v0 = vld [vmem:[%s15825_s10 + $0x854] ss:$8 sps:$4 sm:$0xff]  }
0x2641   : > { %9067 = vmatprep.subr.bf16.mxu0 %v12163_v5  ;;  %v12212_v5 = vld [vmem:[%s15825_s10 + $0x850] ss:$8 sps:$4 sm:$0xff]  }
0x2644   : > { %9068 = vmatpush1.bf16.msra.mxu0 %v12161_v45  ;;  %v12215_v45 = vld [vmem:[%s15825_s10 + $0x860] ss:$8 sps:$4 sm:$0xff]  }
0x2645   : > { %9069 = vmatprep.subr.bf16.mxu0 %v12166_v52  ;;  %v12220_v52 = vld [vmem:[%s15825_s10 + $0x874] ss:$8 sps:$4 sm:$0xff]  }
0x2648   : > { %9070 = vmatpush1.bf16.msra.mxu0 %v12164_v11  ;;  %v12223_v11 = vld [vmem:[%s15825_s10 + $0x884] ss:$8 sps:$4 sm:$0xff]  }
0x2649   : > { %9071 = vmatprep.subr.bf16.mxu0 %v12169_v12  ;;  %v12221_v12 = vld [vmem:[%s15825_s10 + $0x880] ss:$8 sps:$4 sm:$0xff]  }
0x264c   : > { %9072 = vmatpush1.bf16.msra.mxu0 %v12167_v55  ;;  %v12224_v55 = vld [vmem:[%s15825_s10 + $0x890] ss:$8 sps:$4 sm:$0xff]  }
0x264d   : > { %9073 = vmatprep.subr.bf16.mxu0 %v12172_v19  ;;  %v12229_v19 = vld [vmem:[%s15825_s10 + $0x8a4] ss:$8 sps:$4 sm:$0xff]  }
0x2650   : > { %9074 = vmatpush1.bf16.msra.mxu0 %v12170_v9  ;;  %v12232_v9 = vld [vmem:[%s15825_s10 + $0x8b4] ss:$8 sps:$4 sm:$0xff]  }
0x2651   : > { %9075 = vmatprep.subr.bf16.mxu0 %v12175_v3  ;;  %v12230_v3 = vld [vmem:[%s15825_s10 + $0x8b0] ss:$8 sps:$4 sm:$0xff]  }
0x2654   : > { %9076 = vmatpush1.bf16.msra.mxu0 %v12173_v23  ;;  %v12233_v23 = vld [vmem:[%s15825_s10 + $0x8c0] ss:$8 sps:$4 sm:$0xff]  }
0x2655   : > { %9077 = vmatprep.subr.bf16.mxu0 %v12178_v1  ;;  %v12238_v1 = vld [vmem:[%s15825_s10 + $0x8d4] ss:$8 sps:$4 sm:$0xff]  }
0x2658   : > { %v8399_v28 = vpop.f32.mrb[164].mxu1  ;;  %9078 = vmatpush1.bf16.msra.mxu0 %v12176_v24  ;;  %v12241_v24 = vld [vmem:[%s15825_s10 + $0x8e4] ss:$8 sps:$4 sm:$0xff]  }
0x2659   : > { %v8400_v36 = vadd.f32 %v8399_v28, %v7905_v6  ;;  %v8401_v4 = vpop.f32.mrb[165].mxu1  ;;  %9079 = vmatprep.subr.bf16.mxu0 %v12181_v22  ;;  %v12244_v22 = vld [vmem:[%s15825_s10 + $0x8f4] ss:$8 sps:$4 sm:$0xff]   ;;  %v12254_v28 = vld [vmem:[%s15827_s12 + $0x48] sm:$0xff]  }
0x265a   : > { %v8402_v31 = vadd.f32 %v8401_v4, %v7909_v32  ;;  %v8403_v42 = vpop.f32.mrb[166].mxu1  ;;  %9276 = vmatpush1.bf16.msra.mxu1 %v12254_v28  ;;  %v10642_v4 = vld [vmem:[%s15826_s11 + $0x4] sm:$0x3] }
0x265b   : > { %v8404_v37 = vadd.f32 %v8403_v42, %v7905_v6  ;;  %v8405_v15 = vpop.f32.mrb[167].mxu1  ;;  %v8412_v57 = vmax.f32 %v8400_v36, 0.0  ;;  %v12239_v6 = vld [vmem:[%s15825_s10 + $0x8e0] ss:$8 sps:$4 sm:$0xff]   ;;  %9277 = vmatprep.subr.bf16.mxu1 %v12421_v8  ;;  %v12256_v36 = vld [vmem:[%s15827_s12 + $0x58] sm:$0xff]  }
0x265c   : > { %v8406_v61 = vadd.f32 %v8405_v15, %v7909_v32  ;;  %9080 = vmatpush1.bf16.msra.mxu0 %v12179_v39  ;;  %v8413_v44 = vmax.f32 %v8402_v31, 0.0  ;;  %v12242_v32 = vld [vmem:[%s15825_s10 + $0x8f0] ss:$8 sps:$4 sm:$0xff]   ;;  %v8533_v31 = vrot.slane %v10642_v4, %v12730_v17 }
0x265d   : > { %v8418_v38 = vmax.f32 %v8404_v37, 0.0  ;;  %9081 = vmatprep.subr.bf16.mxu0 %v12184_v56  ;;  %v12255_v39 = vld [vmem:[%s15827_s12 + $0x50] sm:$0xff]   ;;  %v8529_v56 = vrot.slane %v10642_v4, %v12733_v18 }
0x265e   : > { %v8419_v35 = vmax.f32 %v8406_v61, 0.0  ;;  %9278 = vmatpush1.bf16.msra.mxu1 %v12255_v39 }
0x265f   : > { %v15620_v40 = vpack.c.bf16 %v8418_v38, %v8412_v57  ;;  %9279 = vmatprep.subr.bf16.mxu1 %v12421_v8 }
0x2660   : > { %v8425_v59 = vpack.c.bf16 %v8419_v35, %v8413_v44  ;;  %9082 = vmatpush1.bf16.msra.mxu0 %v12182_v10 }
0x2661   : > { %9083 = vmatprep.subr.bf16.mxu0 %v12187_v26 }
0x2662   : > { %9280 = vmatpush1.bf16.msra.mxu1 %v12256_v36 }
0x2664   : > { %9084 = vmatpush1.bf16.msra.mxu0 %v12185_v46 }
0x2665   : > { %9085 = vmatprep.subr.bf16.mxu0 %v12190_v27 }
0x2668   : > { %9086 = vmatpush1.bf16.msra.mxu0 %v12188_v49 }
0x2669   : > { %9087 = vmatprep.subr.bf16.mxu0 %v12193_v50 }
0x266c   : > { %9088 = vmatpush1.bf16.msra.mxu0 %v12191_v54 }
0x266d   : > { %9089 = vmatprep.subr.bf16.mxu0 %v12196_v62 }
0x2670   : > { %9090 = vmatpush1.bf16.msra.mxu0 %v12194_v41 }
0x2671   : > { %9102 = vmatprep.subr.bf16.mxu0 %v12199_v2 }
0x2673   : > { %9092 = vmatmul.mubr.bf16.vlgmr.msra.gmra.mrb[72].mxu0 %v15506_v63  ;;  %v12208_v63 = vld [vmem:[%s15825_s10 + $0x834] ss:$8 sps:$4 sm:$0xff]  }
0x2674   : > { %9103 = vmatpush1.bf16.msra.mxu0 %v12197_v29  ;;  %9134 = vmatprep.mubr.bf16.mxu0 %v8425_v59  ;;  %v10739_v59 = vld [vmem:[%s15828_s13] ss:$0 sm:$0xff] }
0x2675   : > { %9104 = vmatprep.subr.bf16.mxu0 %v12202_v16 }
0x2678   : > { %9105 = vmatpush1.bf16.msra.mxu0 %v12200_v51 }
0x2679   : > { %9106 = vmatprep.subr.bf16.mxu0 %v12205_v30 }
0x267c   : > { %9107 = vmatpush1.bf16.msra.mxu0 %v12203_v47 }
0x267d   : > { %9108 = vmatprep.subr.bf16.mxu0 %v12208_v63 }
0x2680   : > { %9109 = vmatpush1.bf16.msra.mxu0 %v12206_v58 }
0x2681   : > { %9110 = vmatprep.subr.bf16.mxu0 %v12211_v48 }
0x2684   : > { %9111 = vmatpush1.bf16.msra.mxu0 %v12209_v7 }
0x2685   : > { %9112 = vmatprep.subr.bf16.mxu0 %v12214_v0 }
0x2688   : > { %9113 = vmatpush1.bf16.msra.mxu0 %v12212_v5 }
0x2689   : > { %9114 = vmatprep.subr.bf16.mxu0 %v12217_v53 }
0x268c   : > { %9115 = vmatpush1.bf16.msra.mxu0 %v12215_v45 }
0x268d   : > { %9116 = vmatprep.subr.bf16.mxu0 %v12220_v52 }
0x2690   : > { %9117 = vmatpush1.bf16.msra.mxu0 %v12218_v60 }
0x2691   : > { %9118 = vmatprep.subr.bf16.mxu0 %v12223_v11 }
0x2694   : > { %9119 = vmatpush1.bf16.msra.mxu0 %v12221_v12 }
0x2695   : > { %9120 = vmatprep.subr.bf16.mxu0 %v12226_v14 }
0x2698   : > { %9121 = vmatpush1.bf16.msra.mxu0 %v12224_v55 }
0x2699   : > { %9122 = vmatprep.subr.bf16.mxu0 %v12229_v19 }
0x269c   : > { %9123 = vmatpush1.bf16.msra.mxu0 %v12227_v20 }
0x269d   : > { %9124 = vmatprep.subr.bf16.mxu0 %v12232_v9 }
0x26a0   : > { %9125 = vmatpush1.bf16.msra.mxu0 %v12230_v3 }
0x26a1   : > { %9126 = vmatprep.subr.bf16.mxu0 %v12235_v21 }
0x26a4   : > { %9127 = vmatpush1.bf16.msra.mxu0 %v12233_v23 }
0x26a5   : > { %9128 = vmatprep.subr.bf16.mxu0 %v12238_v1 }
0x26a8   : > { %9129 = vmatpush1.bf16.msra.mxu0 %v12236_v13 }
0x26a9   : > { %9130 = vmatprep.subr.bf16.mxu0 %v12241_v24 }
0x26ac   : > { %9131 = vmatpush1.bf16.msra.mxu0 %v12239_v6 }
0x26ad   : > { %9132 = vmatprep.subr.bf16.mxu0 %v12244_v22 }
0x26b0   : > { %9133 = vmatpush1.bf16.msra.mxu0 %v12242_v32 }
0x26b3   : > { %9135 = vmatmul.mubr.bf16.vlgmr.msra.gmra.mrb[72].mxu0 %v15620_v40 }
0x2786   : > { %v9136_v42 = vpop.f32.mrb[72].mxu0 }
0x2787   : > { %v11060_v37 = vadd.f32 %v9136_v42, %v8529_v56  ;;  %v9138_v15 = vpop.f32.mrb[73].mxu0 }
0x2788   : > { %v11061_v61 = vadd.f32 %v9138_v15, %v8533_v31  ;;  %v9140_v10 = vpop.f32.mrb[74].mxu0 }
0x2789   : > { %v11062_v8 = vadd.f32 %v9140_v10, %v8529_v56  ;;  %v9142_v57 = vpop.f32.mrb[75].mxu0  ;;  %v9145_v26 = vadd.f32 %v11060_v37, %v15121_v34 }
0x278a   : > { %v11063_v38 = vadd.f32 %v9142_v57, %v8533_v31  ;;  %v9146_v35 = vadd.f32 %v11061_v61, %v15118_v43 }
0x278b   : > { %v9147_v44 = vadd.f32 %v11062_v8, %v15127_v33 }
0x278c   : > { %v9148_v18 = vadd.f32 %v11063_v38, %v15123_v25 }
0x278d   : > { %v9149_v40 = vpack.c.bf16 %v9147_v44, %v9145_v26 }
0x278e   : > { %v9150_v17 = vpack.c.bf16 %v9148_v18, %v9146_v35 }
0x2790   : > { %10752 = vmatprep.mubr.msk.bf16.mxu1 %vm484_vm0, %v9150_v17 }
0x2791   : > { %9290 = vmatmul.mubr.bf16.vlgmr.msra.gmra.mrb[168].mxu1 %v9149_v40 }
0x2864   : > { %v9291_v34 = vpop.f32.mrb[168].mxu1 }
0x2865   : > { %v9292_v33 = vadd.f32 %v10739_v59, %v9291_v34  ;;  %v9293_v43 = vpop.f32.mrb[169].mxu1 }
0x2866   : > { %v9294_v25 = vpop.f32.mrb[170].mxu1 }
0x2867   : > { %9298 = vst [vmem:[%s463_s25] sm:$0xff] %v9292_v33  ;;  %v9295_v46 = vadd.f32 %v10739_v59, %v9294_v25  ;;  %v9296_v27 = vpop.f32.mrb[171].mxu1 }
0x2869   : > { %9299 = vst [vmem:[%s463_s25 + $0x8] sm:$0xff] %v9295_v46 }
0x286a   : > { %12370 = shalt.err (!%p12367_p3)
}
0x286b   : > { %s12371_s19 = scalar_lea.hbm %s15772_s24, 256  ;;  %s12375_s25 = scalar_lea.hbm %s15829_s14, 512 }
0x286c   : > { %p12372_p4 = scmp.ne.s32.totalorder %s15772_s24, %s12371_s19  ;;  %p12376_p9 = scmp.lt.u32.totalorder %s15772_s24, %s15829_s14 }
0x286d   : > { %p12377_p10 = scmp.lt.u32.totalorder %s12375_s25, %s12371_s19  ;;  %p12379_p12 = scmp.lt.u32.totalorder %s12371_s19, %s15772_s24 }
0x286e   : > { %p12373_p7 = pnand %p12372_p4, %p12541_p5 }
0x286f   : > { %p12378_p11 = por %p12377_p10, %p12376_p9 }
0x2870   : > { %p12374_p8 = pneg %p12373_p7 }
0x2871   : > { %p12380_p13 = por %p12379_p12, %p12378_p11 }
0x2873   : > { %p12381_p0 = pnand %p12380_p13, %p12374_p8 }
0x2875   : > { %12384 = shalt.err (!%p12381_p0)
}
0x2876   : > { %s12426_s29 = smov 128   ;;  %s12427_s17 = smov 8  }
0x2877   : > { %11084 = dma.vmem_to_hbm [thread:$0]  (%p12541_p5), %s15767_s18, 256, %s15772_s24, %s15774_s27, %s12426_s29, %s12426_s29, %s12427_s17  }
0x2878 PF: > { %s15846_s28 = sld [smem:[#allocation6_spill]]  ;;  %p11090_p1 = scmp.ge.s32.totalorder %s12419_s16, 2 }
0x287a   : > { %p11087_p2 = pnand %p11090_p1, %p12545_p6 }
0x287e   : > { %s9329_s22 = sand.u32 1, %s15846_s28  }
0x287f   : > { %s9330_s19 = scalar_lea.sflag [#allocation4], %s9329_s22 }
0x2880   : > { %12402 = dma.done.wait (!%p11087_p2), %s9330_s19, 256  }
0x2881   : > { %12404 = vsyncadd (!%p11087_p2), %s9330_s19, 4294967040  ;;  %s15848_s16 = sld [smem:[#allocation8_spill]]  ;;  %s15849_s20 = sld [smem:[#allocation7_spill]] }
0x2882   : > { %s15850_s15 = sld [smem:[#allocation9_spill]]  ;;  %s15851_s29 = smov %s12411_s30 }
0x2887   : > { %p24_p3 = scmp.ge.s32.totalorder %s15848_s16, 4   ;;  %s15852_s30 = smov %s15849_s20 }
0x2889   :  { %26 = sbr.rel (!%p24_p3) target bundleno = 5 (0x5), region = 133 }
0x2890   :  { %9335 = vsyncpa [#allocation4], 1 }
0x2891   :  { %9337 = vsyncpa [#allocation4 + $0x1], 1 }

</bundles_post_ra>
